<compile_context>
chip_gen: v6e
topology: v6e:2x2x1
jax: 0.10.0
libtpu: 0.0.40
codegen_flags: <defaults>
</compile_context>

<pallas_src>
import jax
import jax.numpy as jnp
from jax.experimental import pallas as pl
from jax.experimental.pallas import tpu as pltpu

# ---------------------------------------------------------------------------
# Model constants (implied by nn.Linear(5046, internal_dim) == 6 * 29 * 29)
# ---------------------------------------------------------------------------
KSIZE = 4
C_IN = 3
C_OUT = 6
IMG = 32
OUT_SP = IMG - KSIZE + 1            # 29
NPOS = OUT_SP * OUT_SP              # 841
FLAT = C_OUT * NPOS                 # 5046
NUM_CLASSES = 10

KPATCH = C_IN * KSIZE * KSIZE       # 48   (im2col K)
KPATCH_PAD = 128                    # im2col K padded to one lane width
C_OUT_PAD = 128                     # conv out-channels padded -> lane-dense stores
KPAD = 5120                         # FLAT padded to a multiple of 128 (40 * 128)
CLS_PAD = 128                       # logits padded to one lane width


def _round_up(x, m):
    return (x + m - 1) // m * m


def _pick_tile(dim, candidates):
    for c in candidates:
        if dim % c == 0:
            return c
    return dim


# ---------------------------------------------------------------------------
# Kernel 1: conv as im2col matmul + bias + relu (lane-dense, single block)
# ---------------------------------------------------------------------------
def _conv_relu_kernel(p_ref, w_ref, b_ref, o_ref):
    y = jnp.dot(p_ref[...], w_ref[...], preferred_element_type=jnp.float32)
    o_ref[...] = jnp.maximum(y + b_ref[...], 0.0)


def conv_relu(p_pad, w_pad, b_pad):
    """p_pad: (MR_pad, 128) f32, w_pad: (128, 128) f32, b_pad: (1, 128) f32."""
    mr_pad, kp = p_pad.shape
    _, cp = w_pad.shape
    return pl.pallas_call(
        _conv_relu_kernel,
        out_shape=jax.ShapeDtypeStruct((mr_pad, cp), jnp.float32),
        grid=(1,),
        in_specs=[
            pl.BlockSpec((mr_pad, kp), lambda i: (0, 0)),
            pl.BlockSpec((kp, cp), lambda i: (0, 0)),
            pl.BlockSpec((1, cp), lambda i: (0, 0)),
        ],
        out_specs=pl.BlockSpec((mr_pad, cp), lambda i: (0, 0)),
    )(p_pad, w_pad, b_pad)


# ---------------------------------------------------------------------------
# Kernel 2: fused dense(5046 -> D) + bias + relu + final(D -> 10)
#   Grid over output-feature (d) tiles only; full-K weight block per step.
#   Each step writes its own partial-logits block, so the d axis is "parallel"
#   (megacore-shardable on v7x); the d-tile partials are summed on the host.
# ---------------------------------------------------------------------------
def _dense_final_kernel(h_ref, wd_ref, bd_ref, wf_ref, y_ref):
    o = jnp.dot(h_ref[...], wd_ref[...], preferred_element_type=jnp.float32)
    o = jnp.maximum(o + bd_ref[...], 0.0)                       # (mp, dt) f32
    y_ref[0] = jnp.dot(o, wf_ref[...], preferred_element_type=jnp.float32)


def dense_final(h_pad, wd_pad, bd_pad, wf_pad):
    """h_pad: (MP, KPAD) bf16, wd_pad: (KPAD, DPAD) bf16, bd_pad: (1, DPAD) f32,
    wf_pad: (DPAD, 128) f32 -> partial logits (num_d, MP, 128) f32."""
    mp, kpad = h_pad.shape
    kpad2, dpad = wd_pad.shape
    assert kpad == kpad2
    _, cls = wf_pad.shape
    dt = _pick_tile(dpad, (512, 256, 128))      # 5 MiB bf16 weight block at dt=512
    num_d = dpad // dt

    cost = pl.CostEstimate(
        flops=2 * mp * kpad * dpad + 2 * mp * dpad * cls,
        transcendentals=0,
        bytes_accessed=(wd_pad.size * 2
                        + num_d * h_pad.size * 2
                        + bd_pad.size * 4
                        + wf_pad.size * 4
                        + num_d * mp * cls * 4),
    )
    return pl.pallas_call(
        _dense_final_kernel,
        out_shape=jax.ShapeDtypeStruct((num_d, mp, cls), jnp.float32),
        grid_spec=pltpu.PrefetchScalarGridSpec(
            num_scalar_prefetch=0,
            grid=(num_d,),
            in_specs=[
                pl.BlockSpec((mp, kpad), lambda d: (0, 0)),
                pl.BlockSpec((kpad, dt), lambda d: (0, d)),
                pl.BlockSpec((1, dt), lambda d: (0, d)),
                pl.BlockSpec((dt, cls), lambda d: (d, 0)),
            ],
            out_specs=pl.BlockSpec((1, mp, cls), lambda d: (d, 0, 0)),
        ),
        compiler_params=pltpu.CompilerParams(
            dimension_semantics=("parallel",),
            vmem_limit_bytes=32 * 1024 * 1024,
        ),
        cost_estimate=cost,
    )(h_pad, wd_pad, bd_pad, wf_pad)


# ---------------------------------------------------------------------------
# Host-side glue: im2col patch extraction (pure indexing, no FLOPs)
# ---------------------------------------------------------------------------
def im2col(x):
    """x: (N, 3, 32, 32) NCHW -> (N*841, 48); K order (ci, di, dj) matches OIHW reshape."""
    n = x.shape[0]
    cols = []
    for ci in range(C_IN):
        for di in range(KSIZE):
            for dj in range(KSIZE):
                cols.append(x[:, ci, di:di + OUT_SP, dj:dj + OUT_SP])  # (N, 29, 29)
    p = jnp.stack(cols, axis=-1)                                       # (N, 29, 29, 48)
    return p.reshape(n * NPOS, KPATCH)


# ---------------------------------------------------------------------------
# One-time parameter preparation (hoisted OUT of the per-forward path)
# ---------------------------------------------------------------------------
def prepare_params(params):
    internal_dim = params["dense_w"].shape[0]
    dpad = _round_up(internal_dim, 128)
    f32 = jnp.float32

    # conv: (6,3,4,4) OIHW -> (48, 6), padded to (128, 128) for lane-dense matmul/stores.
    cw = params["conv_w"].reshape(C_OUT, -1).T.astype(f32)             # (48, 6)
    conv_w = jnp.zeros((KPATCH_PAD, C_OUT_PAD), f32).at[:KPATCH, :C_OUT].set(cw)
    conv_b = jnp.zeros((1, C_OUT_PAD), f32).at[0, :C_OUT].set(params["conv_b"])

    # dense: permute the (internal_dim, 5046) torch weight from channel-major (c, p) to
    # position-major (p, c) K-ordering (matches our conv-activation layout exactly),
    # pad to (KPAD, DPAD), and cast to bf16 for streaming (f32 accumulation in-kernel).
    wd = params["dense_w"].astype(f32)                                 # (D, 5046)
    w2 = jnp.transpose(wd.reshape(internal_dim, C_OUT, NPOS),
                       (2, 1, 0)).reshape(FLAT, internal_dim)          # (5046, D)
    dense_w = jnp.zeros((KPAD, dpad), jnp.bfloat16).at[:FLAT, :internal_dim].set(
        w2.astype(jnp.bfloat16))
    dense_b = jnp.zeros((1, dpad), f32).at[0, :internal_dim].set(params["dense_b"])

    # final: (10, D) -> (D, 10), padded to (DPAD, 128); stays f32 (tiny, fused epilogue).
    wf = params["final_w"].T.astype(f32)                               # (D, 10)
    final_w = jnp.zeros((dpad, CLS_PAD), f32).at[:internal_dim, :NUM_CLASSES].set(wf)
    final_b = jnp.zeros((1, CLS_PAD), f32).at[0, :NUM_CLASSES].set(params["final_b"])

    return {"conv_w": conv_w, "conv_b": conv_b,
            "dense_w": dense_w, "dense_b": dense_b,
            "final_w": final_w, "final_b": final_b}


# ---------------------------------------------------------------------------
# Model forward (jit-able; all weight reshuffling already done in prepare_params)
# ---------------------------------------------------------------------------
def cifar10_model_forward(x, prepped):
    n = x.shape[0]

    # conv(3, 6, 4) + relu as a lane-dense im2col matmul (single block).
    patches = im2col(x)                                   # (n*841, 48)
    mr = n * NPOS
    mr_pad = _round_up(mr, 8)
    p_pad = jnp.pad(patches, ((0, mr_pad - mr), (0, KPATCH_PAD - KPATCH)))
    conv_out = conv_relu(p_pad, prepped["conv_w"], prepped["conv_b"])  # (mr_pad, 128)

    # Position-major flatten h[n, p*6 + c]; the matching dense-weight permutation was
    # applied once in prepare_params, so this reproduces torch's channel-major flatten.
    h = conv_out[:mr, :C_OUT].reshape(n, FLAT)            # (n, 5046), ~40 KB at n=2

    mp = _round_up(max(n, 16), 16)                        # 16 sublanes per bf16 vreg
    h_pad = jnp.pad(h, ((0, mp - n), (0, KPAD - FLAT))).astype(jnp.bfloat16)

    # Fused dense(5046 -> D) + relu + final(D -> 10): per-d-tile partial logits
    # (parallel d axis -> v7x megacore splits the weight stream), summed on host.
    partials = dense_final(h_pad, prepped["dense_w"], prepped["dense_b"],
                           prepped["final_w"])            # (num_d, mp, 128) f32, ~32 KB

    # milp_model = MILPNet(Sequential(NamedLinear(internal_dim, 10)), w_range=0.1)
    # TODO(synk): MILPNet's MILP / w_range machinery is assumed to have no inference-time
    #             effect; its forward is treated as the wrapped Linear(internal_dim, 10).
    y_pad = jnp.sum(partials, axis=0) + prepped["final_b"]             # (mp, 128)
    return y_pad[:n, :NUM_CLASSES]


# ---------------------------------------------------------------------------
# Deterministic PyTorch-style init and pure-JAX reference
# ---------------------------------------------------------------------------
def init_params(key, internal_dim):
    ks = jax.random.split(key, 6)

    def u(k, shape, fan_in):
        bound = 1.0 / jnp.sqrt(float(fan_in))
        return jax.random.uniform(k, shape, jnp.float32, -bound, bound)

    conv_fan = C_IN * KSIZE * KSIZE
    return {
        "conv_w": u(ks[0], (C_OUT, C_IN, KSIZE, KSIZE), conv_fan),
        "conv_b": u(ks[1], (C_OUT,), conv_fan),
        "dense_w": u(ks[2], (internal_dim, FLAT), FLAT),
        "dense_b": u(ks[3], (internal_dim,), FLAT),
        "final_w": u(ks[4], (NUM_CLASSES, internal_dim), internal_dim),
        "final_b": u(ks[5], (NUM_CLASSES,), internal_dim),
    }


def reference_forward(x, params):
    hp = jax.lax.Precision.HIGHEST
    conv = jax.lax.conv_general_dilated(
        x, params["conv_w"], window_strides=(1, 1), padding="VALID",
        dimension_numbers=("NCHW", "OIHW", "NCHW"), precision=hp)
    conv = conv + params["conv_b"][None, :, None, None]
    r = jnp.maximum(conv, 0.0)
    h = r.reshape(x.shape[0], -1)                         # torch channel-major flatten
    o = jnp.maximum(jnp.dot(h, params["dense_w"].T, precision=hp) + params["dense_b"], 0.0)
    y = jnp.dot(o, params["final_w"].T, precision=hp) + params["final_b"]
    return y


if __name__ == "__main__":
    internal_dim = 2000        # the module's default; dense weight streamed in d tiles
    batch = 2

    key = jax.random.PRNGKey(0)
    x_key, p_key = jax.random.split(key)
    x = jax.random.normal(x_key, (batch, C_IN, IMG, IMG), dtype=jnp.float32)
    params = init_params(p_key, internal_dim)

    prepped = prepare_params(params)                      # one-time weight prep (hoisted)
    fwd = jax.jit(cifar10_model_forward)

    logits = jax.block_until_ready(fwd(x, prepped))
    assert logits.shape == (batch, NUM_CLASSES)

    ref = jax.block_until_ready(reference_forward(x, params))
    max_err = float(jnp.max(jnp.abs(logits - ref)))
    assert jnp.allclose(logits, ref, atol=5e-2, rtol=5e-2), f"max abs err = {max_err}"

    print("KERNEL_OK")
</pallas_src>

<mosaic_0001>
module attributes {stable_mosaic.version = 11 : i64} {
  func.func @_conv_relu_kernel(%arg0: i32, %arg1: memref<1688x128xf32, #tpu.memory_space<vmem>>, %arg2: memref<128x128xf32, #tpu.memory_space<vmem>>, %arg3: memref<1x128xf32, #tpu.memory_space<vmem>>, %arg4: memref<1688x128xf32, #tpu.memory_space<vmem>>) attributes {dimension_semantics = [#tpu.dimension_semantics<arbitrary>], iteration_bounds = array<i64: 1>, scalar_prefetch = 0 : i64, scratch_operands = 0 : i64, tpu.core_type = #tpu.core_type<tc>, window_params = [{pipeline_mode = #tpu.pipeline_mode<synchronous>, transform_indices = @transform_0, window_bounds = array<i64: 1688, 128>}, {pipeline_mode = #tpu.pipeline_mode<synchronous>, transform_indices = @transform_1, window_bounds = array<i64: 128, 128>}, {pipeline_mode = #tpu.pipeline_mode<synchronous>, transform_indices = @transform_2, window_bounds = array<i64: 1, 128>}, {pipeline_mode = #tpu.pipeline_mode<synchronous>, transform_indices = @transform_3, window_bounds = array<i64: 1688, 128>}]} {
    %c0 = arith.constant 0 : index
    %c0_0 = arith.constant 0 : index
    %0 = vector.load %arg1[%c0, %c0_0] : memref<1688x128xf32, #tpu.memory_space<vmem>>, vector<1688x128xf32>
    %c0_1 = arith.constant 0 : index
    %c0_2 = arith.constant 0 : index
    %1 = vector.load %arg2[%c0_1, %c0_2] : memref<128x128xf32, #tpu.memory_space<vmem>>, vector<128x128xf32>
    %cst = arith.constant dense<0.000000e+00> : vector<1688x128xf32>
    %2 = tpu.matmul %0, %1, %cst {dimension_numbers = #tpu.dot_dimension_numbers<[1], [0], [0], [1], [0, 0, 1, 1], [], []>} : vector<1688x128xf32>, vector<128x128xf32>, vector<1688x128xf32> -> vector<1688x128xf32>
    %c0_3 = arith.constant 0 : index
    %c0_4 = arith.constant 0 : index
    %3 = vector.load %arg3[%c0_3, %c0_4] : memref<1x128xf32, #tpu.memory_space<vmem>>, vector<1x128xf32>
    %4 = vector.broadcast %3 : vector<1x128xf32> to vector<1688x128xf32>
    %5 = arith.addf %2, %4 : vector<1688x128xf32>
    %cst_5 = arith.constant 0.000000e+00 : f32
    %6 = vector.broadcast %cst_5 : f32 to vector<1688x128xf32>
    %7 = arith.maximumf %5, %6 : vector<1688x128xf32>
    %c0_6 = arith.constant 0 : index
    %c0_7 = arith.constant 0 : index
    %8 = vector.load %arg4[%c0_6, %c0_7] : memref<1688x128xf32, #tpu.memory_space<vmem>>, vector<1688x128xf32>
    tpu.vector_store %arg4[%c0_6, %c0_7], %7 {strides = array<i32>} : memref<1688x128xf32, #tpu.memory_space<vmem>>, vector<1688x128xf32>,
    return
  }
  func.func @transform_0(%arg0: i32) -> (i32, i32) {
    %c0_i32 = arith.constant 0 : i32
    %c0_i32_0 = arith.constant 0 : i32
    %c0_i32_1 = arith.constant 0 : i32
    return %c0_i32, %c0_i32_0 : i32, i32
  }
  func.func @transform_1(%arg0: i32) -> (i32, i32) {
    %c0_i32 = arith.constant 0 : i32
    %c0_i32_0 = arith.constant 0 : i32
    %c0_i32_1 = arith.constant 0 : i32
    return %c0_i32, %c0_i32_0 : i32, i32
  }
  func.func @transform_2(%arg0: i32) -> (i32, i32) {
    %c0_i32 = arith.constant 0 : i32
    %c0_i32_0 = arith.constant 0 : i32
    %c0_i32_1 = arith.constant 0 : i32
    return %c0_i32, %c0_i32_0 : i32, i32
  }
  func.func @transform_3(%arg0: i32) -> (i32, i32) {
    %c0_i32 = arith.constant 0 : i32
    %c0_i32_0 = arith.constant 0 : i32
    %c0_i32_1 = arith.constant 0 : i32
    return %c0_i32, %c0_i32_0 : i32, i32
  }
}

module attributes {stable_mosaic.version = 11 : i64} {
  func.func @_dense_final_kernel(%arg0: i32, %arg1: memref<16x5120xbf16, #tpu.memory_space<vmem>>, %arg2: memref<5120x512xbf16, #tpu.memory_space<vmem>>, %arg3: memref<1x512xf32, #tpu.memory_space<vmem>>, %arg4: memref<512x128xf32, #tpu.memory_space<vmem>>, %arg5: memref<1x16x128xf32, #tpu.memory_space<vmem>>) attributes {dimension_semantics = [#tpu.dimension_semantics<parallel>], iteration_bounds = array<i64: 4>, scalar_prefetch = 0 : i64, scratch_operands = 0 : i64, tpu.core_type = #tpu.core_type<tc>, window_params = [{pipeline_mode = #tpu.pipeline_mode<synchronous>, transform_indices = @transform_0, window_bounds = array<i64: 16, 5120>}, {transform_indices = @transform_1, window_bounds = array<i64: 5120, 512>}, {transform_indices = @transform_2, window_bounds = array<i64: 1, 512>}, {transform_indices = @transform_3, window_bounds = array<i64: 512, 128>}, {transform_indices = @transform_4, window_bounds = array<i64: 1, 16, 128>}]} {
    %c0 = arith.constant 0 : index
    %c0_0 = arith.constant 0 : index
    %0 = vector.load %arg1[%c0, %c0_0] : memref<16x5120xbf16, #tpu.memory_space<vmem>>, vector<16x5120xbf16>
    %c0_1 = arith.constant 0 : index
    %c0_2 = arith.constant 0 : index
    %1 = vector.load %arg2[%c0_1, %c0_2] : memref<5120x512xbf16, #tpu.memory_space<vmem>>, vector<5120x512xbf16>
    %cst = arith.constant dense<0.000000e+00> : vector<16x512xf32>
    %2 = tpu.matmul %0, %1, %cst {dimension_numbers = #tpu.dot_dimension_numbers<[1], [0], [0], [1], [0, 0, 1, 1], [], []>} : vector<16x5120xbf16>, vector<5120x512xbf16>, vector<16x512xf32> -> vector<16x512xf32>
    %c0_3 = arith.constant 0 : index
    %c0_4 = arith.constant 0 : index
    %3 = vector.load %arg3[%c0_3, %c0_4] : memref<1x512xf32, #tpu.memory_space<vmem>>, vector<1x512xf32>
    %4 = vector.broadcast %3 : vector<1x512xf32> to vector<16x512xf32>
    %5 = arith.addf %2, %4 : vector<16x512xf32>
    %cst_5 = arith.constant 0.000000e+00 : f32
    %6 = vector.broadcast %cst_5 : f32 to vector<16x512xf32>
    %7 = arith.maximumf %5, %6 : vector<16x512xf32>
    %c0_6 = arith.constant 0 : index
    %c0_7 = arith.constant 0 : index
    %8 = vector.load %arg4[%c0_6, %c0_7] : memref<512x128xf32, #tpu.memory_space<vmem>>, vector<512x128xf32>
    %cst_8 = arith.constant dense<0.000000e+00> : vector<16x128xf32>
    %9 = tpu.matmul %7, %8, %cst_8 {dimension_numbers = #tpu.dot_dimension_numbers<[1], [0], [0], [1], [0, 0, 1, 1], [], []>} : vector<16x512xf32>, vector<512x128xf32>, vector<16x128xf32> -> vector<16x128xf32>
    %c0_9 = arith.constant 0 : index
    %c0_10 = arith.constant 0 : index
    %c0_11 = arith.constant 0 : index
    %10 = vector.load %arg5[%c0_9, %c0_10, %c0_11] : memref<1x16x128xf32, #tpu.memory_space<vmem>>, vector<1x16x128xf32>
    %11 = vector.shape_cast %10 : vector<1x16x128xf32> to vector<16x128xf32>
    %12 = vector.shape_cast %9 : vector<16x128xf32> to vector<1x16x128xf32>
    tpu.vector_store %arg5[%c0_9, %c0_10, %c0_11], %12 {strides = array<i32>} : memref<1x16x128xf32, #tpu.memory_space<vmem>>, vector<1x16x128xf32>,
    return
  }
  func.func @transform_0(%arg0: i32) -> (i32, i32) {
    %c0_i32 = arith.constant 0 : i32
    %c0_i32_0 = arith.constant 0 : i32
    %c0_i32_1 = arith.constant 0 : i32
    return %c0_i32, %c0_i32_0 : i32, i32
  }
  func.func @transform_1(%arg0: i32) -> (i32, i32) {
    %c0_i32 = arith.constant 0 : i32
    %c0_i32_0 = arith.constant 0 : i32
    return %c0_i32, %arg0 : i32, i32
  }
  func.func @transform_2(%arg0: i32) -> (i32, i32) {
    %c0_i32 = arith.constant 0 : i32
    %c0_i32_0 = arith.constant 0 : i32
    return %c0_i32, %arg0 : i32, i32
  }
  func.func @transform_3(%arg0: i32) -> (i32, i32) {
    %c0_i32 = arith.constant 0 : i32
    %c0_i32_0 = arith.constant 0 : i32
    return %arg0, %c0_i32 : i32, i32
  }
  func.func @transform_4(%arg0: i32) -> (i32, i32, i32) {
    %c0_i32 = arith.constant 0 : i32
    %c0_i32_0 = arith.constant 0 : i32
    %c0_i32_1 = arith.constant 0 : i32
    return %arg0, %c0_i32, %c0_i32_0 : i32, i32, i32
  }
}

</mosaic_0001>

<bundles_post_ra>
// kernel: cifar10_model_forward.2
= control target key start
LH: loop header
LB: loop body
LE: loop exit
PB: predicated region body
PF: predicated region fallthrough
CT: control target
= control target key end

     0   :  { %8 = vsyncpa [#allocation3], 0  ;;  %s4768_s0 = inlined_call_operand.vmem [shape: f32[1688,128], index: 0, kind: input, shape index: {}]   ;;  %s4769_s1 = inlined_call_operand.hbm [shape: f32[128,128], index: 1, kind: input, shape index: {}]   ;;  %s4770_s2 = inlined_call_operand.hbm [shape: f32[1,128], index: 2, kind: input, shape index: {}]   ;;  %s4771_s3 = inlined_call_operand.vmem [shape: f32[1688,128], index: 3, kind: output, shape index: {}]  }
   0x1   :  { %9 = vsyncpa [#allocation5], 0  ;;  %s2799_s12 = smov [#allocation2]  }
   0x2   :  { %s17_s13 = sshll.u32 %s2799_s12, 4  ;;  %s18_s13 = int_to_ptr.vmem [resolvable:$true] %s17_s13 }
   0x3   :  { %s2763_s14 = scalar_lea.vmem %s18_s13, 2048  ;;  %p2768_p1 = scmp.lt.s32.totalorder %s18_s13, %s18_s13 }
   0x4   :  { %p2764_p0 = scmp.ne.s32.totalorder %s18_s13, %s2763_s14  ;;  %p2769_p2 = scmp.lt.s32.totalorder %s2763_s14, %s2763_s14 }
   0x6   :  { %p2770_p3 = por %p2769_p2, %p2768_p1 }
   0x8   :  { %p2771_p4 = pnand %p2770_p3, %p2764_p0 }
   0xa   :  { %2774 = shalt.err (!%p2771_p4)
}
   0xb   :  { %s2800_s15 = smov 128   ;;  %s2801_s16 = smov 8  }
   0xc   :  { %23 = dma.hbm_to_vmem [thread:$0]  %s4769_s1, 2048, %s18_s13, [#allocation3], %s2800_s15, %s2800_s15, %s2801_s16  }
   0xd   :  { %s2802_s19 = smov [#allocation4]  }
   0xe   :  { %s30_s20 = sshll.u32 %s2802_s19, 4  ;;  %s31_s20 = int_to_ptr.vmem [resolvable:$true] %s30_s20 }
   0xf   :  { %s2783_s21 = scalar_lea.vmem %s31_s20, 16  ;;  %s2787_s22 = scalar_lea.vmem %s31_s20, 32 }
  0x10   :  { %p2784_p5 = scmp.ne.s32.totalorder %s31_s20, %s2783_s21  ;;  %p2788_p6 = scmp.lt.s32.totalorder %s31_s20, %s31_s20 }
  0x11   :  { %p2789_p7 = scmp.lt.s32.totalorder %s2787_s22, %s2783_s21 }
  0x13   :  { %p2790_p8 = por %p2789_p7, %p2788_p6 }
  0x15   :  { %p2791_p9 = pnand %p2790_p8, %p2784_p5 }
  0x17   :  { %2794 = shalt.err (!%p2791_p9)
}
  0x18   :  { %33 = dma.hbm_to_vmem [thread:$0]  %s4770_s2, 16, %s31_s20, [#allocation5]  }
  0x19   :  { %2795 = dma.done.wait [#allocation3], 2048  }
  0x1a   :  { %2796 = vsyncadd [#allocation3], 4294965248 }
  0x1b   :  { %2797 = dma.done.wait [#allocation5], 16  }
  0x1c   :  { %2798 = vsyncadd [#allocation5], 4294967280  ;;  %v2803_v0 = vmov 0.0   ;;  %vm2804_vm0 = vmmov 0   ;;  %v266_v1 = vld [vmem:[#allocation2 + $0x78] sm:$0xff]  ;;  %v265_v2 = vld [vmem:[#allocation2 + $0x70] sm:$0xff] }
  0x1d   :  { %2050 = vmatprep.subr.mxu0 %v2803_v0  ;;  %2715 = vmatprep.subr.mxu1 %v2803_v0  ;;  %v264_v3 = vld [vmem:[#allocation2 + $0x68] sm:$0xff]  ;;  %v263_v4 = vld [vmem:[#allocation2 + $0x60] sm:$0xff]  ;;  %v262_v5 = vld [vmem:[#allocation2 + $0x58] sm:$0xff] }
  0x1e   :  { %2082 = vmatprep.mubr.msk.f32.mxu0 %vm2804_vm0, %v2803_v0  ;;  %2400 = vmatprep.mubr.msk.f32.mxu1 %vm2804_vm0, %v2803_v0  ;;  %v261_v6 = vld [vmem:[#allocation2 + $0x50] sm:$0xff]  ;;  %v260_v7 = vld [vmem:[#allocation2 + $0x48] sm:$0xff]  ;;  %v259_v8 = vld [vmem:[#allocation2 + $0x40] sm:$0xff] }
  0x1f   :  { %2051 = vmatpush3.msra.mxu0 %v266_v1  ;;  %2731 = vmatpush3.msra.mxu1 %v266_v1  ;;  %v258_v9 = vld [vmem:[#allocation2 + $0x38] sm:$0xff]  ;;  %v257_v10 = vld [vmem:[#allocation2 + $0x30] sm:$0xff]  ;;  %v256_v11 = vld [vmem:[#allocation2 + $0x28] sm:$0xff] }
  0x20   :  { %2052 = vmatprep.subr.mxu0 %v2803_v0  ;;  %2716 = vmatprep.subr.mxu1 %v2803_v0  ;;  %v255_v12 = vld [vmem:[#allocation2 + $0x20] sm:$0xff]  ;;  %v254_v13 = vld [vmem:[#allocation2 + $0x18] sm:$0xff]  ;;  %v253_v14 = vld [vmem:[#allocation2 + $0x10] sm:$0xff] }
  0x21   :  { %2053 = vmatpush3.msra.mxu0 %v265_v2  ;;  %2732 = vmatpush3.msra.mxu1 %v265_v2  ;;  %v252_v15 = vld [vmem:[#allocation2 + $0x8] sm:$0xff]  ;;  %v251_v16 = vld [vmem:[#allocation2] sm:$0xff]  ;;  %v146_v18 = vld [vmem:[%s4768_s0 + $0x350] sm:$0xff] }
  0x22   :  { %2054 = vmatprep.subr.mxu0 %v2803_v0  ;;  %2717 = vmatprep.subr.mxu1 %v2803_v0  ;;  %v40_v17 = vld [vmem:[%s4768_s0] sm:$0xff]  ;;  %v41_v19 = vld [vmem:[%s4768_s0 + $0x8] sm:$0xff]  ;;  %v147_v20 = vld [vmem:[%s4768_s0 + $0x358] sm:$0xff] }
  0x23   :  { %2055 = vmatpush3.msra.mxu0 %v264_v3  ;;  %2733 = vmatpush3.msra.mxu1 %v264_v3  ;;  %v42_v21 = vld [vmem:[%s4768_s0 + $0x10] sm:$0xff]  ;;  %v148_v22 = vld [vmem:[%s4768_s0 + $0x360] sm:$0xff]  ;;  %v43_v23 = vld [vmem:[%s4768_s0 + $0x18] sm:$0xff] }
  0x24   :  { %2056 = vmatprep.subr.mxu0 %v2803_v0  ;;  %2718 = vmatprep.subr.mxu1 %v2803_v0  ;;  %v149_v24 = vld [vmem:[%s4768_s0 + $0x368] sm:$0xff]  ;;  %v44_v25 = vld [vmem:[%s4768_s0 + $0x20] sm:$0xff]  ;;  %v150_v26 = vld [vmem:[%s4768_s0 + $0x370] sm:$0xff] }
  0x25   :  { %2057 = vmatpush3.msra.mxu0 %v263_v4  ;;  %2734 = vmatpush3.msra.mxu1 %v263_v4  ;;  %v45_v27 = vld [vmem:[%s4768_s0 + $0x28] sm:$0xff]  ;;  %v151_v28 = vld [vmem:[%s4768_s0 + $0x378] sm:$0xff]  ;;  %v46_v29 = vld [vmem:[%s4768_s0 + $0x30] sm:$0xff] }
  0x26   :  { %2058 = vmatprep.subr.mxu0 %v2803_v0  ;;  %2719 = vmatprep.subr.mxu1 %v2803_v0  ;;  %v152_v30 = vld [vmem:[%s4768_s0 + $0x380] sm:$0xff]  ;;  %v47_v31 = vld [vmem:[%s4768_s0 + $0x38] sm:$0xff]  ;;  %v153_v32 = vld [vmem:[%s4768_s0 + $0x388] sm:$0xff] }
  0x27   :  { %2059 = vmatpush3.msra.mxu0 %v262_v5  ;;  %2735 = vmatpush3.msra.mxu1 %v262_v5  ;;  %v48_v33 = vld [vmem:[%s4768_s0 + $0x40] sm:$0xff]  ;;  %v154_v34 = vld [vmem:[%s4768_s0 + $0x390] sm:$0xff]  ;;  %v49_v35 = vld [vmem:[%s4768_s0 + $0x48] sm:$0xff] }
  0x28   :  { %2060 = vmatprep.subr.mxu0 %v2803_v0  ;;  %2720 = vmatprep.subr.mxu1 %v2803_v0  ;;  %v155_v36 = vld [vmem:[%s4768_s0 + $0x398] sm:$0xff]  ;;  %v50_v37 = vld [vmem:[%s4768_s0 + $0x50] sm:$0xff]  ;;  %v156_v38 = vld [vmem:[%s4768_s0 + $0x3a0] sm:$0xff] }
  0x29   :  { %2061 = vmatpush3.msra.mxu0 %v261_v6  ;;  %2736 = vmatpush3.msra.mxu1 %v261_v6  ;;  %v51_v39 = vld [vmem:[%s4768_s0 + $0x58] sm:$0xff]  ;;  %v157_v40 = vld [vmem:[%s4768_s0 + $0x3a8] sm:$0xff]  ;;  %v52_v41 = vld [vmem:[%s4768_s0 + $0x60] sm:$0xff] }
  0x2a   :  { %2062 = vmatprep.subr.mxu0 %v2803_v0  ;;  %2721 = vmatprep.subr.mxu1 %v2803_v0  ;;  %v158_v42 = vld [vmem:[%s4768_s0 + $0x3b0] sm:$0xff]  ;;  %v53_v43 = vld [vmem:[%s4768_s0 + $0x68] sm:$0xff]  ;;  %v159_v44 = vld [vmem:[%s4768_s0 + $0x3b8] sm:$0xff] }
  0x2b   :  { %2063 = vmatpush3.msra.mxu0 %v260_v7  ;;  %2737 = vmatpush3.msra.mxu1 %v260_v7  ;;  %v54_v45 = vld [vmem:[%s4768_s0 + $0x70] sm:$0xff]  ;;  %v160_v46 = vld [vmem:[%s4768_s0 + $0x3c0] sm:$0xff]  ;;  %v55_v47 = vld [vmem:[%s4768_s0 + $0x78] sm:$0xff] }
  0x2c   :  { %2064 = vmatprep.subr.mxu0 %v2803_v0  ;;  %2722 = vmatprep.subr.mxu1 %v2803_v0  ;;  %v161_v48 = vld [vmem:[%s4768_s0 + $0x3c8] sm:$0xff]  ;;  %v56_v49 = vld [vmem:[%s4768_s0 + $0x80] sm:$0xff]  ;;  %v162_v50 = vld [vmem:[%s4768_s0 + $0x3d0] sm:$0xff] }
  0x2d   :  { %2065 = vmatpush3.msra.mxu0 %v259_v8  ;;  %2738 = vmatpush3.msra.mxu1 %v259_v8  ;;  %v57_v51 = vld [vmem:[%s4768_s0 + $0x88] sm:$0xff]  ;;  %v163_v52 = vld [vmem:[%s4768_s0 + $0x3d8] sm:$0xff]  ;;  %v58_v53 = vld [vmem:[%s4768_s0 + $0x90] sm:$0xff] }
  0x2e   :  { %2066 = vmatprep.subr.mxu0 %v2803_v0  ;;  %2723 = vmatprep.subr.mxu1 %v2803_v0  ;;  %v164_v54 = vld [vmem:[%s4768_s0 + $0x3e0] sm:$0xff]  ;;  %v59_v55 = vld [vmem:[%s4768_s0 + $0x98] sm:$0xff]  ;;  %v165_v56 = vld [vmem:[%s4768_s0 + $0x3e8] sm:$0xff] }
  0x2f   :  { %2067 = vmatpush3.msra.mxu0 %v258_v9  ;;  %2739 = vmatpush3.msra.mxu1 %v258_v9  ;;  %v60_v57 = vld [vmem:[%s4768_s0 + $0xa0] sm:$0xff]  ;;  %v166_v58 = vld [vmem:[%s4768_s0 + $0x3f0] sm:$0xff]  ;;  %v61_v59 = vld [vmem:[%s4768_s0 + $0xa8] sm:$0xff] }
  0x30   :  { %2068 = vmatprep.subr.mxu0 %v2803_v0  ;;  %2724 = vmatprep.subr.mxu1 %v2803_v0  ;;  %v167_v60 = vld [vmem:[%s4768_s0 + $0x3f8] sm:$0xff]  ;;  %v62_v61 = vld [vmem:[%s4768_s0 + $0xb0] sm:$0xff]  ;;  %v168_v62 = vld [vmem:[%s4768_s0 + $0x400] sm:$0xff] }
  0x31   :  { %2069 = vmatpush3.msra.mxu0 %v257_v10  ;;  %2740 = vmatpush3.msra.mxu1 %v257_v10  ;;  %v63_v63 = vld [vmem:[%s4768_s0 + $0xb8] sm:$0xff]  ;;  %v169_v1 = vld [vmem:[%s4768_s0 + $0x408] sm:$0xff]  ;;  %v64_v2 = vld [vmem:[%s4768_s0 + $0xc0] sm:$0xff] }
  0x32   :  { %2070 = vmatprep.subr.mxu0 %v2803_v0  ;;  %2725 = vmatprep.subr.mxu1 %v2803_v0  ;;  %v170_v3 = vld [vmem:[%s4768_s0 + $0x410] sm:$0xff]  ;;  %v65_v4 = vld [vmem:[%s4768_s0 + $0xc8] sm:$0xff]  ;;  %v171_v5 = vld [vmem:[%s4768_s0 + $0x418] sm:$0xff] }
  0x33   :  { %2071 = vmatpush3.msra.mxu0 %v256_v11  ;;  %2741 = vmatpush3.msra.mxu1 %v256_v11  ;;  %v66_v6 = vld [vmem:[%s4768_s0 + $0xd0] sm:$0xff]  ;;  %v172_v7 = vld [vmem:[%s4768_s0 + $0x420] sm:$0xff]  ;;  %v67_v8 = vld [vmem:[%s4768_s0 + $0xd8] sm:$0xff] }
  0x34   :  { %2072 = vmatprep.subr.mxu0 %v2803_v0  ;;  %2726 = vmatprep.subr.mxu1 %v2803_v0  ;;  %v173_v9 = vld [vmem:[%s4768_s0 + $0x428] sm:$0xff]  ;;  %v68_v10 = vld [vmem:[%s4768_s0 + $0xe0] sm:$0xff]  ;;  %v174_v11 = vld [vmem:[%s4768_s0 + $0x430] sm:$0xff] }
  0x35   :  { %2073 = vmatpush3.msra.mxu0 %v255_v12  ;;  %2742 = vmatpush3.msra.mxu1 %v255_v12  ;;  %v69_v12 = vld [vmem:[%s4768_s0 + $0xe8] sm:$0xff] }
  0x36   :  { %2074 = vmatprep.subr.mxu0 %v2803_v0  ;;  %2727 = vmatprep.subr.mxu1 %v2803_v0 }
  0x37   :  { %2075 = vmatpush3.msra.mxu0 %v254_v13  ;;  %2743 = vmatpush3.msra.mxu1 %v254_v13  ;;  %v175_v13 = vld [vmem:[%s4768_s0 + $0x438] sm:$0xff] }
  0x38   :  { %2076 = vmatprep.subr.mxu0 %v2803_v0  ;;  %2728 = vmatprep.subr.mxu1 %v2803_v0 }
  0x39   :  { %2077 = vmatpush3.msra.mxu0 %v253_v14  ;;  %2744 = vmatpush3.msra.mxu1 %v253_v14  ;;  %v70_v14 = vld [vmem:[%s4768_s0 + $0xf0] sm:$0xff] }
  0x3a   :  { %2078 = vmatprep.subr.mxu0 %v2803_v0  ;;  %2729 = vmatprep.subr.mxu1 %v2803_v0 }
  0x3b   :  { %2079 = vmatpush3.msra.mxu0 %v252_v15  ;;  %2745 = vmatpush3.msra.mxu1 %v252_v15  ;;  %v176_v15 = vld [vmem:[%s4768_s0 + $0x440] sm:$0xff] }
  0x3c   :  { %2080 = vmatprep.subr.mxu0 %v2803_v0  ;;  %2730 = vmatprep.subr.mxu1 %v2803_v0 }
  0x3d   :  { %2081 = vmatpush3.msra.mxu0 %v251_v16  ;;  %2746 = vmatpush3.msra.mxu1 %v251_v16  ;;  %v71_v16 = vld [vmem:[%s4768_s0 + $0xf8] sm:$0xff] }
  0x3e   :  { %2083 = vmatmul.mubr.f32.vlgmr.msra.gmra.mxu0 %v40_v17  ;;  %2401 = vmatmul.mubr.f32.vlgmr.msra.gmra.mxu1 %v146_v18  ;;  %v177_v17 = vld [vmem:[%s4768_s0 + $0x448] sm:$0xff]  ;;  %v72_v18 = vld [vmem:[%s4768_s0 + $0x100] sm:$0xff] }
  0x3f   :  { %2085 = vmatprep.mubr.msk.f32.mxu0 %vm2804_vm0, %v2803_v0  ;;  %2403 = vmatprep.mubr.msk.f32.mxu1 %vm2804_vm0, %v2803_v0 }
  0x42   :  { %2086 = vmatmul.mubr.f32.gmra.mxu0 %v41_v19  ;;  %2404 = vmatmul.mubr.f32.gmra.mxu1 %v147_v20  ;;  %v178_v19 = vld [vmem:[%s4768_s0 + $0x450] sm:$0xff]  ;;  %v73_v20 = vld [vmem:[%s4768_s0 + $0x108] sm:$0xff] }
  0x43   :  { %2088 = vmatprep.mubr.msk.f32.mxu0 %vm2804_vm0, %v2803_v0  ;;  %2406 = vmatprep.mubr.msk.f32.mxu1 %vm2804_vm0, %v2803_v0 }
  0x46   :  { %2089 = vmatmul.mubr.f32.gmra.mxu0 %v42_v21  ;;  %2407 = vmatmul.mubr.f32.gmra.mxu1 %v148_v22  ;;  %v179_v21 = vld [vmem:[%s4768_s0 + $0x458] sm:$0xff]  ;;  %v74_v22 = vld [vmem:[%s4768_s0 + $0x110] sm:$0xff] }
  0x47   :  { %2091 = vmatprep.mubr.msk.f32.mxu0 %vm2804_vm0, %v2803_v0  ;;  %2409 = vmatprep.mubr.msk.f32.mxu1 %vm2804_vm0, %v2803_v0 }
  0x4a   :  { %2092 = vmatmul.mubr.f32.gmra.mxu0 %v43_v23  ;;  %2410 = vmatmul.mubr.f32.gmra.mxu1 %v149_v24  ;;  %v180_v23 = vld [vmem:[%s4768_s0 + $0x460] sm:$0xff]  ;;  %v75_v24 = vld [vmem:[%s4768_s0 + $0x118] sm:$0xff] }
  0x4b   :  { %2094 = vmatprep.mubr.msk.f32.mxu0 %vm2804_vm0, %v2803_v0  ;;  %2412 = vmatprep.mubr.msk.f32.mxu1 %vm2804_vm0, %v2803_v0 }
  0x4e   :  { %2095 = vmatmul.mubr.f32.gmra.mxu0 %v44_v25  ;;  %2413 = vmatmul.mubr.f32.gmra.mxu1 %v150_v26  ;;  %v181_v25 = vld [vmem:[%s4768_s0 + $0x468] sm:$0xff]  ;;  %v76_v26 = vld [vmem:[%s4768_s0 + $0x120] sm:$0xff] }
  0x4f   :  { %2097 = vmatprep.mubr.msk.f32.mxu0 %vm2804_vm0, %v2803_v0  ;;  %2415 = vmatprep.mubr.msk.f32.mxu1 %vm2804_vm0, %v2803_v0 }
  0x52   :  { %2098 = vmatmul.mubr.f32.gmra.mxu0 %v45_v27  ;;  %2416 = vmatmul.mubr.f32.gmra.mxu1 %v151_v28  ;;  %v182_v27 = vld [vmem:[%s4768_s0 + $0x470] sm:$0xff]  ;;  %v77_v28 = vld [vmem:[%s4768_s0 + $0x128] sm:$0xff] }
  0x53   :  { %2100 = vmatprep.mubr.msk.f32.mxu0 %vm2804_vm0, %v2803_v0  ;;  %2418 = vmatprep.mubr.msk.f32.mxu1 %vm2804_vm0, %v2803_v0 }
  0x56   :  { %2101 = vmatmul.mubr.f32.gmra.mxu0 %v46_v29  ;;  %2419 = vmatmul.mubr.f32.gmra.mxu1 %v152_v30  ;;  %v183_v29 = vld [vmem:[%s4768_s0 + $0x478] sm:$0xff]  ;;  %v78_v30 = vld [vmem:[%s4768_s0 + $0x130] sm:$0xff] }
  0x57   :  { %2103 = vmatprep.mubr.msk.f32.mxu0 %vm2804_vm0, %v2803_v0  ;;  %2421 = vmatprep.mubr.msk.f32.mxu1 %vm2804_vm0, %v2803_v0 }
  0x5a   :  { %2104 = vmatmul.mubr.f32.gmra.mxu0 %v47_v31  ;;  %2422 = vmatmul.mubr.f32.gmra.mxu1 %v153_v32  ;;  %v184_v31 = vld [vmem:[%s4768_s0 + $0x480] sm:$0xff]  ;;  %v79_v32 = vld [vmem:[%s4768_s0 + $0x138] sm:$0xff] }
  0x5b   :  { %2106 = vmatprep.mubr.msk.f32.mxu0 %vm2804_vm0, %v2803_v0  ;;  %2424 = vmatprep.mubr.msk.f32.mxu1 %vm2804_vm0, %v2803_v0 }
  0x5e   :  { %2107 = vmatmul.mubr.f32.gmra.mxu0 %v48_v33  ;;  %2425 = vmatmul.mubr.f32.gmra.mxu1 %v154_v34  ;;  %v185_v33 = vld [vmem:[%s4768_s0 + $0x488] sm:$0xff]  ;;  %v80_v34 = vld [vmem:[%s4768_s0 + $0x140] sm:$0xff] }
  0x5f   :  { %2109 = vmatprep.mubr.msk.f32.mxu0 %vm2804_vm0, %v2803_v0  ;;  %2427 = vmatprep.mubr.msk.f32.mxu1 %vm2804_vm0, %v2803_v0 }
  0x62   :  { %2110 = vmatmul.mubr.f32.gmra.mxu0 %v49_v35  ;;  %2428 = vmatmul.mubr.f32.gmra.mxu1 %v155_v36  ;;  %v186_v35 = vld [vmem:[%s4768_s0 + $0x490] sm:$0xff]  ;;  %v81_v36 = vld [vmem:[%s4768_s0 + $0x148] sm:$0xff] }
  0x63   :  { %2112 = vmatprep.mubr.msk.f32.mxu0 %vm2804_vm0, %v2803_v0  ;;  %2430 = vmatprep.mubr.msk.f32.mxu1 %vm2804_vm0, %v2803_v0 }
  0x66   :  { %2113 = vmatmul.mubr.f32.gmra.mxu0 %v50_v37  ;;  %2431 = vmatmul.mubr.f32.gmra.mxu1 %v156_v38  ;;  %v187_v37 = vld [vmem:[%s4768_s0 + $0x498] sm:$0xff]  ;;  %v82_v38 = vld [vmem:[%s4768_s0 + $0x150] sm:$0xff] }
  0x67   :  { %2115 = vmatprep.mubr.msk.f32.mxu0 %vm2804_vm0, %v2803_v0  ;;  %2433 = vmatprep.mubr.msk.f32.mxu1 %vm2804_vm0, %v2803_v0 }
  0x6a   :  { %2116 = vmatmul.mubr.f32.gmra.mxu0 %v51_v39  ;;  %2434 = vmatmul.mubr.f32.gmra.mxu1 %v157_v40  ;;  %v188_v39 = vld [vmem:[%s4768_s0 + $0x4a0] sm:$0xff]  ;;  %v83_v40 = vld [vmem:[%s4768_s0 + $0x158] sm:$0xff] }
  0x6b   :  { %2118 = vmatprep.mubr.msk.f32.mxu0 %vm2804_vm0, %v2803_v0  ;;  %2436 = vmatprep.mubr.msk.f32.mxu1 %vm2804_vm0, %v2803_v0 }
  0x6e   :  { %2119 = vmatmul.mubr.f32.gmra.mxu0 %v52_v41  ;;  %2437 = vmatmul.mubr.f32.gmra.mxu1 %v158_v42  ;;  %v189_v41 = vld [vmem:[%s4768_s0 + $0x4a8] sm:$0xff]  ;;  %v84_v42 = vld [vmem:[%s4768_s0 + $0x160] sm:$0xff] }
  0x6f   :  { %2121 = vmatprep.mubr.msk.f32.mxu0 %vm2804_vm0, %v2803_v0  ;;  %2439 = vmatprep.mubr.msk.f32.mxu1 %vm2804_vm0, %v2803_v0 }
  0x72   :  { %2122 = vmatmul.mubr.f32.gmra.mxu0 %v53_v43  ;;  %2440 = vmatmul.mubr.f32.gmra.mxu1 %v159_v44  ;;  %v190_v43 = vld [vmem:[%s4768_s0 + $0x4b0] sm:$0xff]  ;;  %v85_v44 = vld [vmem:[%s4768_s0 + $0x168] sm:$0xff] }
  0x73   :  { %2124 = vmatprep.mubr.msk.f32.mxu0 %vm2804_vm0, %v2803_v0  ;;  %2442 = vmatprep.mubr.msk.f32.mxu1 %vm2804_vm0, %v2803_v0 }
  0x76   :  { %2125 = vmatmul.mubr.f32.gmra.mxu0 %v54_v45  ;;  %2443 = vmatmul.mubr.f32.gmra.mxu1 %v160_v46  ;;  %v191_v45 = vld [vmem:[%s4768_s0 + $0x4b8] sm:$0xff]  ;;  %v86_v46 = vld [vmem:[%s4768_s0 + $0x170] sm:$0xff] }
  0x77   :  { %2127 = vmatprep.mubr.msk.f32.mxu0 %vm2804_vm0, %v2803_v0  ;;  %2445 = vmatprep.mubr.msk.f32.mxu1 %vm2804_vm0, %v2803_v0 }
  0x7a   :  { %2128 = vmatmul.mubr.f32.gmra.mxu0 %v55_v47  ;;  %2446 = vmatmul.mubr.f32.gmra.mxu1 %v161_v48  ;;  %v192_v47 = vld [vmem:[%s4768_s0 + $0x4c0] sm:$0xff]  ;;  %v87_v48 = vld [vmem:[%s4768_s0 + $0x178] sm:$0xff] }
  0x7b   :  { %2130 = vmatprep.mubr.msk.f32.mxu0 %vm2804_vm0, %v2803_v0  ;;  %2448 = vmatprep.mubr.msk.f32.mxu1 %vm2804_vm0, %v2803_v0 }
  0x7e   :  { %2131 = vmatmul.mubr.f32.gmra.mxu0 %v56_v49  ;;  %2449 = vmatmul.mubr.f32.gmra.mxu1 %v162_v50  ;;  %v193_v49 = vld [vmem:[%s4768_s0 + $0x4c8] sm:$0xff]  ;;  %v88_v50 = vld [vmem:[%s4768_s0 + $0x180] sm:$0xff] }
  0x7f   :  { %2133 = vmatprep.mubr.msk.f32.mxu0 %vm2804_vm0, %v2803_v0  ;;  %2451 = vmatprep.mubr.msk.f32.mxu1 %vm2804_vm0, %v2803_v0 }
  0x82   :  { %2134 = vmatmul.mubr.f32.gmra.mxu0 %v57_v51  ;;  %2452 = vmatmul.mubr.f32.gmra.mxu1 %v163_v52  ;;  %v194_v51 = vld [vmem:[%s4768_s0 + $0x4d0] sm:$0xff]  ;;  %v3353_v52 = vld [vmem:[#allocation4] ss:$0 sm:$0xff] }
  0x83   :  { %2136 = vmatprep.mubr.msk.f32.mxu0 %vm2804_vm0, %v2803_v0  ;;  %2454 = vmatprep.mubr.msk.f32.mxu1 %vm2804_vm0, %v2803_v0 }
  0x86   :  { %2137 = vmatmul.mubr.f32.gmra.mxu0 %v58_v53  ;;  %2455 = vmatmul.mubr.f32.gmra.mxu1 %v164_v54 }
  0x87   :  { %2139 = vmatprep.mubr.msk.f32.mxu0 %vm2804_vm0, %v2803_v0  ;;  %2457 = vmatprep.mubr.msk.f32.mxu1 %vm2804_vm0, %v2803_v0 }
  0x8a   :  { %2140 = vmatmul.mubr.f32.gmra.mxu0 %v59_v55  ;;  %2458 = vmatmul.mubr.f32.gmra.mxu1 %v165_v56 }
  0x8b   :  { %2142 = vmatprep.mubr.msk.f32.mxu0 %vm2804_vm0, %v2803_v0  ;;  %2460 = vmatprep.mubr.msk.f32.mxu1 %vm2804_vm0, %v2803_v0 }
  0x8e   :  { %2143 = vmatmul.mubr.f32.gmra.mxu0 %v60_v57  ;;  %2461 = vmatmul.mubr.f32.gmra.mxu1 %v166_v58  ;;  %v89_v57 = vld [vmem:[%s4768_s0 + $0x188] sm:$0xff]  ;;  %v195_v58 = vld [vmem:[%s4768_s0 + $0x4d8] sm:$0xff] }
  0x8f   :  { %2145 = vmatprep.mubr.msk.f32.mxu0 %vm2804_vm0, %v2803_v0  ;;  %2463 = vmatprep.mubr.msk.f32.mxu1 %vm2804_vm0, %v2803_v0 }
  0x92   :  { %2146 = vmatmul.mubr.f32.gmra.mxu0 %v61_v59  ;;  %2464 = vmatmul.mubr.f32.gmra.mxu1 %v167_v60 }
  0x93   :  { %2148 = vmatprep.mubr.msk.f32.mxu0 %vm2804_vm0, %v2803_v0  ;;  %2466 = vmatprep.mubr.msk.f32.mxu1 %vm2804_vm0, %v2803_v0 }
  0x96   :  { %2149 = vmatmul.mubr.f32.gmra.mxu0 %v62_v61  ;;  %2467 = vmatmul.mubr.f32.gmra.mxu1 %v168_v62 }
  0x97   :  { %2151 = vmatprep.mubr.msk.f32.mxu0 %vm2804_vm0, %v2803_v0  ;;  %2469 = vmatprep.mubr.msk.f32.mxu1 %vm2804_vm0, %v2803_v0 }
  0x9a   :  { %2152 = vmatmul.mubr.f32.gmra.mxu0 %v63_v63  ;;  %2470 = vmatmul.mubr.f32.gmra.mxu1 %v169_v1 }
  0x9b   :  { %2154 = vmatprep.mubr.msk.f32.mxu0 %vm2804_vm0, %v2803_v0  ;;  %2472 = vmatprep.mubr.msk.f32.mxu1 %vm2804_vm0, %v2803_v0 }
  0x9e   :  { %2155 = vmatmul.mubr.f32.gmra.mxu0 %v64_v2  ;;  %2473 = vmatmul.mubr.f32.gmra.mxu1 %v170_v3 }
  0x9f   :  { %2157 = vmatprep.mubr.msk.f32.mxu0 %vm2804_vm0, %v2803_v0  ;;  %2475 = vmatprep.mubr.msk.f32.mxu1 %vm2804_vm0, %v2803_v0 }
  0xa2   :  { %2158 = vmatmul.mubr.f32.gmra.mxu0 %v65_v4  ;;  %2476 = vmatmul.mubr.f32.gmra.mxu1 %v171_v5  ;;  %v90_v4 = vld [vmem:[%s4768_s0 + $0x190] sm:$0xff]  ;;  %v196_v5 = vld [vmem:[%s4768_s0 + $0x4e0] sm:$0xff] }
  0xa3   :  { %2160 = vmatprep.mubr.msk.f32.mxu0 %vm2804_vm0, %v2803_v0  ;;  %2478 = vmatprep.mubr.msk.f32.mxu1 %vm2804_vm0, %v2803_v0 }
  0xa6   :  { %2161 = vmatmul.mubr.f32.gmra.mxu0 %v66_v6  ;;  %2479 = vmatmul.mubr.f32.gmra.mxu1 %v172_v7 }
  0xa7   :  { %2163 = vmatprep.mubr.msk.f32.mxu0 %vm2804_vm0, %v2803_v0  ;;  %2481 = vmatprep.mubr.msk.f32.mxu1 %vm2804_vm0, %v2803_v0 }
  0xaa   :  { %2164 = vmatmul.mubr.f32.gmra.mxu0 %v67_v8  ;;  %2482 = vmatmul.mubr.f32.gmra.mxu1 %v173_v9 }
  0xab   :  { %2166 = vmatprep.mubr.msk.f32.mxu0 %vm2804_vm0, %v2803_v0  ;;  %2484 = vmatprep.mubr.msk.f32.mxu1 %vm2804_vm0, %v2803_v0 }
  0xae   :  { %2167 = vmatmul.mubr.f32.gmra.mxu0 %v68_v10  ;;  %2485 = vmatmul.mubr.f32.gmra.mxu1 %v174_v11 }
  0xaf   :  { %2169 = vmatprep.mubr.msk.f32.mxu0 %vm2804_vm0, %v2803_v0  ;;  %2487 = vmatprep.mubr.msk.f32.mxu1 %vm2804_vm0, %v2803_v0 }
  0xb2   :  { %2170 = vmatmul.mubr.f32.gmra.mxu0 %v69_v12  ;;  %2488 = vmatmul.mubr.f32.gmra.mxu1 %v175_v13 }
  0xb3   :  { %2172 = vmatprep.mubr.msk.f32.mxu0 %vm2804_vm0, %v2803_v0  ;;  %2490 = vmatprep.mubr.msk.f32.mxu1 %vm2804_vm0, %v2803_v0 }
  0xb6   :  { %2173 = vmatmul.mubr.f32.gmra.mxu0 %v70_v14  ;;  %2491 = vmatmul.mubr.f32.gmra.mxu1 %v176_v15  ;;  %v91_v14 = vld [vmem:[%s4768_s0 + $0x198] sm:$0xff]  ;;  %v197_v15 = vld [vmem:[%s4768_s0 + $0x4e8] sm:$0xff] }
  0xb7   :  { %2175 = vmatprep.mubr.msk.f32.mxu0 %vm2804_vm0, %v2803_v0  ;;  %2493 = vmatprep.mubr.msk.f32.mxu1 %vm2804_vm0, %v2803_v0 }
  0xba   :  { %2176 = vmatmul.mubr.f32.gmra.mxu0 %v71_v16  ;;  %2494 = vmatmul.mubr.f32.gmra.mxu1 %v177_v17 }
  0xbb   :  { %2178 = vmatprep.mubr.msk.f32.mxu0 %vm2804_vm0, %v2803_v0  ;;  %2496 = vmatprep.mubr.msk.f32.mxu1 %vm2804_vm0, %v2803_v0 }
  0xbe   :  { %2179 = vmatmul.mubr.f32.gmra.mxu0 %v72_v18  ;;  %2497 = vmatmul.mubr.f32.gmra.mxu1 %v178_v19 }
  0xbf   :  { %2181 = vmatprep.mubr.msk.f32.mxu0 %vm2804_vm0, %v2803_v0  ;;  %2499 = vmatprep.mubr.msk.f32.mxu1 %vm2804_vm0, %v2803_v0 }
  0xc2   :  { %2182 = vmatmul.mubr.f32.gmra.mxu0 %v73_v20  ;;  %2500 = vmatmul.mubr.f32.gmra.mxu1 %v179_v21 }
  0xc3   :  { %2184 = vmatprep.mubr.msk.f32.mxu0 %vm2804_vm0, %v2803_v0  ;;  %2502 = vmatprep.mubr.msk.f32.mxu1 %vm2804_vm0, %v2803_v0 }
  0xc6   :  { %2185 = vmatmul.mubr.f32.gmra.mxu0 %v74_v22  ;;  %2503 = vmatmul.mubr.f32.gmra.mxu1 %v180_v23 }
  0xc7   :  { %2187 = vmatprep.mubr.msk.f32.mxu0 %vm2804_vm0, %v2803_v0  ;;  %2505 = vmatprep.mubr.msk.f32.mxu1 %vm2804_vm0, %v2803_v0 }
  0xca   :  { %2188 = vmatmul.mubr.f32.gmra.mxu0 %v75_v24  ;;  %2506 = vmatmul.mubr.f32.gmra.mxu1 %v181_v25  ;;  %v92_v24 = vld [vmem:[%s4768_s0 + $0x1a0] sm:$0xff]  ;;  %v198_v25 = vld [vmem:[%s4768_s0 + $0x4f0] sm:$0xff] }
  0xcb   :  { %2190 = vmatprep.mubr.msk.f32.mxu0 %vm2804_vm0, %v2803_v0  ;;  %2508 = vmatprep.mubr.msk.f32.mxu1 %vm2804_vm0, %v2803_v0 }
  0xce   :  { %2191 = vmatmul.mubr.f32.gmra.mxu0 %v76_v26  ;;  %2509 = vmatmul.mubr.f32.gmra.mxu1 %v182_v27 }
  0xcf   :  { %2193 = vmatprep.mubr.msk.f32.mxu0 %vm2804_vm0, %v2803_v0  ;;  %2511 = vmatprep.mubr.msk.f32.mxu1 %vm2804_vm0, %v2803_v0 }
  0xd2   :  { %2194 = vmatmul.mubr.f32.gmra.mxu0 %v77_v28  ;;  %2512 = vmatmul.mubr.f32.gmra.mxu1 %v183_v29 }
  0xd3   :  { %2196 = vmatprep.mubr.msk.f32.mxu0 %vm2804_vm0, %v2803_v0  ;;  %2514 = vmatprep.mubr.msk.f32.mxu1 %vm2804_vm0, %v2803_v0 }
  0xd6   :  { %2197 = vmatmul.mubr.f32.gmra.mxu0 %v78_v30  ;;  %2515 = vmatmul.mubr.f32.gmra.mxu1 %v184_v31 }
  0xd7   :  { %2199 = vmatprep.mubr.msk.f32.mxu0 %vm2804_vm0, %v2803_v0  ;;  %2517 = vmatprep.mubr.msk.f32.mxu1 %vm2804_vm0, %v2803_v0 }
  0xda   :  { %2200 = vmatmul.mubr.f32.gmra.mxu0 %v79_v32  ;;  %2518 = vmatmul.mubr.f32.gmra.mxu1 %v185_v33 }
  0xdb   :  { %2202 = vmatprep.mubr.msk.f32.mxu0 %vm2804_vm0, %v2803_v0  ;;  %2520 = vmatprep.mubr.msk.f32.mxu1 %vm2804_vm0, %v2803_v0 }
  0xde   :  { %2203 = vmatmul.mubr.f32.gmra.mxu0 %v80_v34  ;;  %2521 = vmatmul.mubr.f32.gmra.mxu1 %v186_v35  ;;  %v93_v34 = vld [vmem:[%s4768_s0 + $0x1a8] sm:$0xff]  ;;  %v199_v35 = vld [vmem:[%s4768_s0 + $0x4f8] sm:$0xff] }
  0xdf   :  { %2205 = vmatprep.mubr.msk.f32.mxu0 %vm2804_vm0, %v2803_v0  ;;  %2523 = vmatprep.mubr.msk.f32.mxu1 %vm2804_vm0, %v2803_v0 }
  0xe2   :  { %2206 = vmatmul.mubr.f32.gmra.mxu0 %v81_v36  ;;  %2524 = vmatmul.mubr.f32.gmra.mxu1 %v187_v37 }
  0xe3   :  { %2208 = vmatprep.mubr.msk.f32.mxu0 %vm2804_vm0, %v2803_v0  ;;  %2526 = vmatprep.mubr.msk.f32.mxu1 %vm2804_vm0, %v2803_v0 }
  0xe6   :  { %2209 = vmatmul.mubr.f32.gmra.mxu0 %v82_v38  ;;  %2527 = vmatmul.mubr.f32.gmra.mxu1 %v188_v39 }
  0xe7   :  { %2211 = vmatprep.mubr.msk.f32.mxu0 %vm2804_vm0, %v2803_v0  ;;  %2529 = vmatprep.mubr.msk.f32.mxu1 %vm2804_vm0, %v2803_v0 }
  0xea   :  { %2212 = vmatmul.mubr.f32.gmra.mxu0 %v83_v40  ;;  %2530 = vmatmul.mubr.f32.gmra.mxu1 %v189_v41 }
  0xeb   :  { %2214 = vmatprep.mubr.msk.f32.mxu0 %vm2804_vm0, %v2803_v0  ;;  %2532 = vmatprep.mubr.msk.f32.mxu1 %vm2804_vm0, %v2803_v0 }
  0xee   :  { %2215 = vmatmul.mubr.f32.gmra.mxu0 %v84_v42  ;;  %2533 = vmatmul.mubr.f32.gmra.mxu1 %v190_v43 }
  0xef   :  { %2217 = vmatprep.mubr.msk.f32.mxu0 %vm2804_vm0, %v2803_v0  ;;  %2535 = vmatprep.mubr.msk.f32.mxu1 %vm2804_vm0, %v2803_v0 }
  0xf2   :  { %2218 = vmatmul.mubr.f32.gmra.mxu0 %v85_v44  ;;  %2536 = vmatmul.mubr.f32.gmra.mxu1 %v191_v45  ;;  %v94_v44 = vld [vmem:[%s4768_s0 + $0x1b0] sm:$0xff]  ;;  %v200_v45 = vld [vmem:[%s4768_s0 + $0x500] sm:$0xff] }
  0xf3   :  { %2220 = vmatprep.mubr.msk.f32.mxu0 %vm2804_vm0, %v2803_v0  ;;  %2538 = vmatprep.mubr.msk.f32.mxu1 %vm2804_vm0, %v2803_v0 }
  0xf6   :  { %2221 = vmatmul.mubr.f32.gmra.mxu0 %v86_v46  ;;  %2539 = vmatmul.mubr.f32.gmra.mxu1 %v192_v47 }
  0xf7   :  { %2223 = vmatprep.mubr.msk.f32.mxu0 %vm2804_vm0, %v2803_v0  ;;  %2541 = vmatprep.mubr.msk.f32.mxu1 %vm2804_vm0, %v2803_v0 }
  0xfa   :  { %2224 = vmatmul.mubr.f32.gmra.mxu0 %v87_v48  ;;  %2542 = vmatmul.mubr.f32.gmra.mxu1 %v193_v49 }
  0xfb   :  { %2226 = vmatprep.mubr.msk.f32.mxu0 %vm2804_vm0, %v2803_v0  ;;  %2544 = vmatprep.mubr.msk.f32.mxu1 %vm2804_vm0, %v2803_v0 }
  0xfe   :  { %v340_v53 = vpop.f32.mrf.mxu0  ;;  %2227 = vmatmul.mubr.f32.gmra.mxu0 %v88_v50  ;;  %v870_v54 = vpop.f32.mrf.mxu1  ;;  %2545 = vmatmul.mubr.f32.gmra.mxu1 %v194_v51 }
  0xff   :  { %v341_v55 = vadd.f32 %v3353_v52, %v340_v53  ;;  %v871_v56 = vadd.f32 %v3353_v52, %v870_v54  ;;  %2229 = vmatprep.mubr.msk.f32.mxu0 %vm2804_vm0, %v2803_v0  ;;  %2547 = vmatprep.mubr.msk.f32.mxu1 %vm2804_vm0, %v2803_v0 }
 0x100   :  { %v2084_v59 = vpop.f32.mrf.mxu0  ;;  %v2402_v60 = vpop.f32.mrf.mxu1 }
 0x101   :  { %v1394_v61 = vmax.f32 %v341_v55, 0.0  ;;  %v1500_v62 = vmax.f32 %v871_v56, 0.0  ;;  %v95_v55 = vld [vmem:[%s4768_s0 + $0x1b8] sm:$0xff]  ;;  %v201_v56 = vld [vmem:[%s4768_s0 + $0x508] sm:$0xff] }
 0x102   :  { %v345_v63 = vpop.f32.mrf.mxu0  ;;  %2230 = vmatmul.mubr.f32.gmra.mxu0 %v89_v57  ;;  %v875_v1 = vpop.f32.mrf.mxu1  ;;  %2548 = vmatmul.mubr.f32.gmra.mxu1 %v195_v58 }
 0x103   :  { %1605 = vst [vmem:[%s4771_s3] sm:$0xff] %v1394_v61  ;;  %1711 = vst [vmem:[%s4771_s3 + $0x350] sm:$0xff] %v1500_v62  ;;  %v346_v2 = vadd.f32 %v3353_v52, %v345_v63  ;;  %v876_v3 = vadd.f32 %v3353_v52, %v875_v1  ;;  %2232 = vmatprep.mubr.msk.f32.mxu0 %vm2804_vm0, %v2803_v0  ;;  %2550 = vmatprep.mubr.msk.f32.mxu1 %vm2804_vm0, %v2803_v0 }
 0x104   :  { %v2087_v6 = vpop.f32.mrf.mxu0  ;;  %v2405_v7 = vpop.f32.mrf.mxu1 }
 0x105   :  { %v1395_v8 = vmax.f32 %v346_v2, 0.0  ;;  %v1501_v9 = vmax.f32 %v876_v3, 0.0  ;;  %v96_v2 = vld [vmem:[%s4768_s0 + $0x1c0] sm:$0xff]  ;;  %v202_v3 = vld [vmem:[%s4768_s0 + $0x510] sm:$0xff] }
 0x106   :  { %v350_v10 = vpop.f32.mrf.mxu0  ;;  %2233 = vmatmul.mubr.f32.gmra.mxu0 %v90_v4  ;;  %v880_v11 = vpop.f32.mrf.mxu1  ;;  %2551 = vmatmul.mubr.f32.gmra.mxu1 %v196_v5 }
 0x107   :  { %1606 = vst [vmem:[%s4771_s3 + $0x8] sm:$0xff] %v1395_v8  ;;  %1712 = vst [vmem:[%s4771_s3 + $0x358] sm:$0xff] %v1501_v9  ;;  %v351_v12 = vadd.f32 %v3353_v52, %v350_v10  ;;  %v881_v13 = vadd.f32 %v3353_v52, %v880_v11  ;;  %2235 = vmatprep.mubr.msk.f32.mxu0 %vm2804_vm0, %v2803_v0  ;;  %2553 = vmatprep.mubr.msk.f32.mxu1 %vm2804_vm0, %v2803_v0 }
 0x108   :  { %v2090_v16 = vpop.f32.mrf.mxu0  ;;  %v2408_v17 = vpop.f32.mrf.mxu1 }
 0x109   :  { %v1396_v18 = vmax.f32 %v351_v12, 0.0  ;;  %v1502_v19 = vmax.f32 %v881_v13, 0.0  ;;  %v97_v12 = vld [vmem:[%s4768_s0 + $0x1c8] sm:$0xff]  ;;  %v203_v13 = vld [vmem:[%s4768_s0 + $0x518] sm:$0xff] }
 0x10a   :  { %v355_v20 = vpop.f32.mrf.mxu0  ;;  %2236 = vmatmul.mubr.f32.gmra.mxu0 %v91_v14  ;;  %v885_v21 = vpop.f32.mrf.mxu1  ;;  %2554 = vmatmul.mubr.f32.gmra.mxu1 %v197_v15 }
 0x10b   :  { %1607 = vst [vmem:[%s4771_s3 + $0x10] sm:$0xff] %v1396_v18  ;;  %1713 = vst [vmem:[%s4771_s3 + $0x360] sm:$0xff] %v1502_v19  ;;  %v356_v22 = vadd.f32 %v3353_v52, %v355_v20  ;;  %v886_v23 = vadd.f32 %v3353_v52, %v885_v21  ;;  %2238 = vmatprep.mubr.msk.f32.mxu0 %vm2804_vm0, %v2803_v0  ;;  %2556 = vmatprep.mubr.msk.f32.mxu1 %vm2804_vm0, %v2803_v0 }
 0x10c   :  { %v2093_v26 = vpop.f32.mrf.mxu0  ;;  %v2411_v27 = vpop.f32.mrf.mxu1 }
 0x10d   :  { %v1397_v28 = vmax.f32 %v356_v22, 0.0  ;;  %v1503_v29 = vmax.f32 %v886_v23, 0.0  ;;  %v98_v22 = vld [vmem:[%s4768_s0 + $0x1d0] sm:$0xff]  ;;  %v204_v23 = vld [vmem:[%s4768_s0 + $0x520] sm:$0xff] }
 0x10e   :  { %v360_v30 = vpop.f32.mrf.mxu0  ;;  %2239 = vmatmul.mubr.f32.gmra.mxu0 %v92_v24  ;;  %v890_v31 = vpop.f32.mrf.mxu1  ;;  %2557 = vmatmul.mubr.f32.gmra.mxu1 %v198_v25 }
 0x10f   :  { %1608 = vst [vmem:[%s4771_s3 + $0x18] sm:$0xff] %v1397_v28  ;;  %1714 = vst [vmem:[%s4771_s3 + $0x368] sm:$0xff] %v1503_v29  ;;  %v361_v32 = vadd.f32 %v3353_v52, %v360_v30  ;;  %v891_v33 = vadd.f32 %v3353_v52, %v890_v31  ;;  %2241 = vmatprep.mubr.msk.f32.mxu0 %vm2804_vm0, %v2803_v0  ;;  %2559 = vmatprep.mubr.msk.f32.mxu1 %vm2804_vm0, %v2803_v0 }
 0x110   :  { %v2096_v36 = vpop.f32.mrf.mxu0  ;;  %v2414_v37 = vpop.f32.mrf.mxu1 }
 0x111   :  { %v1398_v38 = vmax.f32 %v361_v32, 0.0  ;;  %v1504_v39 = vmax.f32 %v891_v33, 0.0  ;;  %v99_v32 = vld [vmem:[%s4768_s0 + $0x1d8] sm:$0xff]  ;;  %v205_v33 = vld [vmem:[%s4768_s0 + $0x528] sm:$0xff] }
 0x112   :  { %v365_v40 = vpop.f32.mrf.mxu0  ;;  %2242 = vmatmul.mubr.f32.gmra.mxu0 %v93_v34  ;;  %v895_v41 = vpop.f32.mrf.mxu1  ;;  %2560 = vmatmul.mubr.f32.gmra.mxu1 %v199_v35 }
 0x113   :  { %1609 = vst [vmem:[%s4771_s3 + $0x20] sm:$0xff] %v1398_v38  ;;  %1715 = vst [vmem:[%s4771_s3 + $0x370] sm:$0xff] %v1504_v39  ;;  %v366_v42 = vadd.f32 %v3353_v52, %v365_v40  ;;  %v896_v43 = vadd.f32 %v3353_v52, %v895_v41  ;;  %2244 = vmatprep.mubr.msk.f32.mxu0 %vm2804_vm0, %v2803_v0  ;;  %2562 = vmatprep.mubr.msk.f32.mxu1 %vm2804_vm0, %v2803_v0 }
 0x114   :  { %v2099_v46 = vpop.f32.mrf.mxu0  ;;  %v2417_v47 = vpop.f32.mrf.mxu1 }
 0x115   :  { %v1399_v48 = vmax.f32 %v366_v42, 0.0  ;;  %v1505_v49 = vmax.f32 %v896_v43, 0.0  ;;  %v100_v42 = vld [vmem:[%s4768_s0 + $0x1e0] sm:$0xff]  ;;  %v206_v43 = vld [vmem:[%s4768_s0 + $0x530] sm:$0xff] }
 0x116   :  { %v370_v50 = vpop.f32.mrf.mxu0  ;;  %2245 = vmatmul.mubr.f32.gmra.mxu0 %v94_v44  ;;  %v900_v51 = vpop.f32.mrf.mxu1  ;;  %2563 = vmatmul.mubr.f32.gmra.mxu1 %v200_v45 }
 0x117   :  { %1610 = vst [vmem:[%s4771_s3 + $0x28] sm:$0xff] %v1399_v48  ;;  %1716 = vst [vmem:[%s4771_s3 + $0x378] sm:$0xff] %v1505_v49  ;;  %v371_v53 = vadd.f32 %v3353_v52, %v370_v50  ;;  %v901_v54 = vadd.f32 %v3353_v52, %v900_v51  ;;  %2247 = vmatprep.mubr.msk.f32.mxu0 %vm2804_vm0, %v2803_v0  ;;  %2565 = vmatprep.mubr.msk.f32.mxu1 %vm2804_vm0, %v2803_v0 }
 0x118   :  { %v2102_v57 = vpop.f32.mrf.mxu0  ;;  %v2420_v58 = vpop.f32.mrf.mxu1 }
 0x119   :  { %v1400_v59 = vmax.f32 %v371_v53, 0.0  ;;  %v1506_v60 = vmax.f32 %v901_v54, 0.0  ;;  %v101_v53 = vld [vmem:[%s4768_s0 + $0x1e8] sm:$0xff]  ;;  %v207_v54 = vld [vmem:[%s4768_s0 + $0x538] sm:$0xff] }
 0x11a   :  { %v375_v61 = vpop.f32.mrf.mxu0  ;;  %2248 = vmatmul.mubr.f32.gmra.mxu0 %v95_v55  ;;  %v905_v62 = vpop.f32.mrf.mxu1  ;;  %2566 = vmatmul.mubr.f32.gmra.mxu1 %v201_v56 }
 0x11b   :  { %1611 = vst [vmem:[%s4771_s3 + $0x30] sm:$0xff] %v1400_v59  ;;  %1717 = vst [vmem:[%s4771_s3 + $0x380] sm:$0xff] %v1506_v60  ;;  %v376_v63 = vadd.f32 %v3353_v52, %v375_v61  ;;  %v906_v1 = vadd.f32 %v3353_v52, %v905_v62  ;;  %2250 = vmatprep.mubr.msk.f32.mxu0 %vm2804_vm0, %v2803_v0  ;;  %2568 = vmatprep.mubr.msk.f32.mxu1 %vm2804_vm0, %v2803_v0 }
 0x11c   :  { %v2105_v4 = vpop.f32.mrf.mxu0  ;;  %v2423_v5 = vpop.f32.mrf.mxu1 }
 0x11d   :  { %v1401_v6 = vmax.f32 %v376_v63, 0.0  ;;  %v1507_v7 = vmax.f32 %v906_v1, 0.0  ;;  %v102_v63 = vld [vmem:[%s4768_s0 + $0x1f0] sm:$0xff]  ;;  %v208_v1 = vld [vmem:[%s4768_s0 + $0x540] sm:$0xff] }
 0x11e   :  { %v380_v8 = vpop.f32.mrf.mxu0  ;;  %2251 = vmatmul.mubr.f32.gmra.mxu0 %v96_v2  ;;  %v910_v9 = vpop.f32.mrf.mxu1  ;;  %2569 = vmatmul.mubr.f32.gmra.mxu1 %v202_v3 }
 0x11f   :  { %1612 = vst [vmem:[%s4771_s3 + $0x38] sm:$0xff] %v1401_v6  ;;  %1718 = vst [vmem:[%s4771_s3 + $0x388] sm:$0xff] %v1507_v7  ;;  %v381_v10 = vadd.f32 %v3353_v52, %v380_v8  ;;  %v911_v11 = vadd.f32 %v3353_v52, %v910_v9  ;;  %2253 = vmatprep.mubr.msk.f32.mxu0 %vm2804_vm0, %v2803_v0  ;;  %2571 = vmatprep.mubr.msk.f32.mxu1 %vm2804_vm0, %v2803_v0 }
 0x120   :  { %v2108_v14 = vpop.f32.mrf.mxu0  ;;  %v2426_v15 = vpop.f32.mrf.mxu1 }
 0x121   :  { %v1402_v16 = vmax.f32 %v381_v10, 0.0  ;;  %v1508_v17 = vmax.f32 %v911_v11, 0.0  ;;  %v103_v10 = vld [vmem:[%s4768_s0 + $0x1f8] sm:$0xff]  ;;  %v209_v11 = vld [vmem:[%s4768_s0 + $0x548] sm:$0xff] }
 0x122   :  { %v385_v18 = vpop.f32.mrf.mxu0  ;;  %2254 = vmatmul.mubr.f32.gmra.mxu0 %v97_v12  ;;  %v915_v19 = vpop.f32.mrf.mxu1  ;;  %2572 = vmatmul.mubr.f32.gmra.mxu1 %v203_v13 }
 0x123   :  { %1613 = vst [vmem:[%s4771_s3 + $0x40] sm:$0xff] %v1402_v16  ;;  %1719 = vst [vmem:[%s4771_s3 + $0x390] sm:$0xff] %v1508_v17  ;;  %v386_v20 = vadd.f32 %v3353_v52, %v385_v18  ;;  %v916_v21 = vadd.f32 %v3353_v52, %v915_v19  ;;  %2256 = vmatprep.mubr.msk.f32.mxu0 %vm2804_vm0, %v2803_v0  ;;  %2574 = vmatprep.mubr.msk.f32.mxu1 %vm2804_vm0, %v2803_v0 }
 0x124   :  { %v2111_v24 = vpop.f32.mrf.mxu0  ;;  %v2429_v25 = vpop.f32.mrf.mxu1 }
 0x125   :  { %v1403_v26 = vmax.f32 %v386_v20, 0.0  ;;  %v1509_v27 = vmax.f32 %v916_v21, 0.0  ;;  %v104_v20 = vld [vmem:[%s4768_s0 + $0x200] sm:$0xff]  ;;  %v210_v21 = vld [vmem:[%s4768_s0 + $0x550] sm:$0xff] }
 0x126   :  { %v390_v28 = vpop.f32.mrf.mxu0  ;;  %2257 = vmatmul.mubr.f32.gmra.mxu0 %v98_v22  ;;  %v920_v29 = vpop.f32.mrf.mxu1  ;;  %2575 = vmatmul.mubr.f32.gmra.mxu1 %v204_v23 }
 0x127   :  { %1614 = vst [vmem:[%s4771_s3 + $0x48] sm:$0xff] %v1403_v26  ;;  %1720 = vst [vmem:[%s4771_s3 + $0x398] sm:$0xff] %v1509_v27  ;;  %v391_v30 = vadd.f32 %v3353_v52, %v390_v28  ;;  %v921_v31 = vadd.f32 %v3353_v52, %v920_v29  ;;  %2259 = vmatprep.mubr.msk.f32.mxu0 %vm2804_vm0, %v2803_v0  ;;  %2577 = vmatprep.mubr.msk.f32.mxu1 %vm2804_vm0, %v2803_v0 }
 0x128   :  { %v2114_v34 = vpop.f32.mrf.mxu0  ;;  %v2432_v35 = vpop.f32.mrf.mxu1 }
 0x129   :  { %v1404_v36 = vmax.f32 %v391_v30, 0.0  ;;  %v1510_v37 = vmax.f32 %v921_v31, 0.0  ;;  %v105_v30 = vld [vmem:[%s4768_s0 + $0x208] sm:$0xff]  ;;  %v211_v31 = vld [vmem:[%s4768_s0 + $0x558] sm:$0xff] }
 0x12a   :  { %v395_v38 = vpop.f32.mrf.mxu0  ;;  %2260 = vmatmul.mubr.f32.gmra.mxu0 %v99_v32  ;;  %v925_v39 = vpop.f32.mrf.mxu1  ;;  %2578 = vmatmul.mubr.f32.gmra.mxu1 %v205_v33 }
 0x12b   :  { %1615 = vst [vmem:[%s4771_s3 + $0x50] sm:$0xff] %v1404_v36  ;;  %1721 = vst [vmem:[%s4771_s3 + $0x3a0] sm:$0xff] %v1510_v37  ;;  %v396_v40 = vadd.f32 %v3353_v52, %v395_v38  ;;  %v926_v41 = vadd.f32 %v3353_v52, %v925_v39  ;;  %2262 = vmatprep.mubr.msk.f32.mxu0 %vm2804_vm0, %v2803_v0  ;;  %2580 = vmatprep.mubr.msk.f32.mxu1 %vm2804_vm0, %v2803_v0 }
 0x12c   :  { %v2117_v44 = vpop.f32.mrf.mxu0  ;;  %v2435_v45 = vpop.f32.mrf.mxu1 }
 0x12d   :  { %v1405_v46 = vmax.f32 %v396_v40, 0.0  ;;  %v1511_v47 = vmax.f32 %v926_v41, 0.0  ;;  %v106_v40 = vld [vmem:[%s4768_s0 + $0x210] sm:$0xff]  ;;  %v212_v41 = vld [vmem:[%s4768_s0 + $0x560] sm:$0xff] }
 0x12e   :  { %v400_v48 = vpop.f32.mrf.mxu0  ;;  %2263 = vmatmul.mubr.f32.gmra.mxu0 %v100_v42  ;;  %v930_v49 = vpop.f32.mrf.mxu1  ;;  %2581 = vmatmul.mubr.f32.gmra.mxu1 %v206_v43 }
 0x12f   :  { %1616 = vst [vmem:[%s4771_s3 + $0x58] sm:$0xff] %v1405_v46  ;;  %1722 = vst [vmem:[%s4771_s3 + $0x3a8] sm:$0xff] %v1511_v47  ;;  %v401_v50 = vadd.f32 %v3353_v52, %v400_v48  ;;  %v931_v51 = vadd.f32 %v3353_v52, %v930_v49  ;;  %2265 = vmatprep.mubr.msk.f32.mxu0 %vm2804_vm0, %v2803_v0  ;;  %2583 = vmatprep.mubr.msk.f32.mxu1 %vm2804_vm0, %v2803_v0 }
 0x130   :  { %v2120_v55 = vpop.f32.mrf.mxu0  ;;  %v2438_v56 = vpop.f32.mrf.mxu1 }
 0x131   :  { %v1406_v57 = vmax.f32 %v401_v50, 0.0  ;;  %v1512_v58 = vmax.f32 %v931_v51, 0.0  ;;  %v107_v50 = vld [vmem:[%s4768_s0 + $0x218] sm:$0xff]  ;;  %v213_v51 = vld [vmem:[%s4768_s0 + $0x568] sm:$0xff] }
 0x132   :  { %v405_v59 = vpop.f32.mrf.mxu0  ;;  %2266 = vmatmul.mubr.f32.gmra.mxu0 %v101_v53  ;;  %v935_v60 = vpop.f32.mrf.mxu1  ;;  %2584 = vmatmul.mubr.f32.gmra.mxu1 %v207_v54 }
 0x133   :  { %1617 = vst [vmem:[%s4771_s3 + $0x60] sm:$0xff] %v1406_v57  ;;  %1723 = vst [vmem:[%s4771_s3 + $0x3b0] sm:$0xff] %v1512_v58  ;;  %v406_v61 = vadd.f32 %v3353_v52, %v405_v59  ;;  %v936_v62 = vadd.f32 %v3353_v52, %v935_v60  ;;  %2268 = vmatprep.mubr.msk.f32.mxu0 %vm2804_vm0, %v2803_v0  ;;  %2586 = vmatprep.mubr.msk.f32.mxu1 %vm2804_vm0, %v2803_v0 }
 0x134   :  { %v2123_v2 = vpop.f32.mrf.mxu0  ;;  %v2441_v3 = vpop.f32.mrf.mxu1 }
 0x135   :  { %v1407_v4 = vmax.f32 %v406_v61, 0.0  ;;  %v1513_v5 = vmax.f32 %v936_v62, 0.0  ;;  %v108_v61 = vld [vmem:[%s4768_s0 + $0x220] sm:$0xff]  ;;  %v214_v62 = vld [vmem:[%s4768_s0 + $0x570] sm:$0xff] }
 0x136   :  { %v410_v6 = vpop.f32.mrf.mxu0  ;;  %2269 = vmatmul.mubr.f32.gmra.mxu0 %v102_v63  ;;  %v940_v7 = vpop.f32.mrf.mxu1  ;;  %2587 = vmatmul.mubr.f32.gmra.mxu1 %v208_v1 }
 0x137   :  { %1618 = vst [vmem:[%s4771_s3 + $0x68] sm:$0xff] %v1407_v4  ;;  %1724 = vst [vmem:[%s4771_s3 + $0x3b8] sm:$0xff] %v1513_v5  ;;  %v411_v8 = vadd.f32 %v3353_v52, %v410_v6  ;;  %v941_v9 = vadd.f32 %v3353_v52, %v940_v7  ;;  %2271 = vmatprep.mubr.msk.f32.mxu0 %vm2804_vm0, %v2803_v0  ;;  %2589 = vmatprep.mubr.msk.f32.mxu1 %vm2804_vm0, %v2803_v0 }
 0x138   :  { %v2126_v12 = vpop.f32.mrf.mxu0  ;;  %v2444_v13 = vpop.f32.mrf.mxu1 }
 0x139   :  { %v1408_v14 = vmax.f32 %v411_v8, 0.0  ;;  %v1514_v15 = vmax.f32 %v941_v9, 0.0  ;;  %v109_v8 = vld [vmem:[%s4768_s0 + $0x228] sm:$0xff]  ;;  %v215_v9 = vld [vmem:[%s4768_s0 + $0x578] sm:$0xff] }
 0x13a   :  { %v415_v16 = vpop.f32.mrf.mxu0  ;;  %2272 = vmatmul.mubr.f32.gmra.mxu0 %v103_v10  ;;  %v945_v17 = vpop.f32.mrf.mxu1  ;;  %2590 = vmatmul.mubr.f32.gmra.mxu1 %v209_v11 }
 0x13b   :  { %1619 = vst [vmem:[%s4771_s3 + $0x70] sm:$0xff] %v1408_v14  ;;  %1725 = vst [vmem:[%s4771_s3 + $0x3c0] sm:$0xff] %v1514_v15  ;;  %v416_v18 = vadd.f32 %v3353_v52, %v415_v16  ;;  %v946_v19 = vadd.f32 %v3353_v52, %v945_v17  ;;  %2274 = vmatprep.mubr.msk.f32.mxu0 %vm2804_vm0, %v2803_v0  ;;  %2592 = vmatprep.mubr.msk.f32.mxu1 %vm2804_vm0, %v2803_v0 }
 0x13c   :  { %v2129_v22 = vpop.f32.mrf.mxu0  ;;  %v2447_v23 = vpop.f32.mrf.mxu1 }
 0x13d   :  { %v1409_v24 = vmax.f32 %v416_v18, 0.0  ;;  %v1515_v25 = vmax.f32 %v946_v19, 0.0  ;;  %v110_v18 = vld [vmem:[%s4768_s0 + $0x230] sm:$0xff]  ;;  %v216_v19 = vld [vmem:[%s4768_s0 + $0x580] sm:$0xff] }
 0x13e   :  { %v420_v26 = vpop.f32.mrf.mxu0  ;;  %2275 = vmatmul.mubr.f32.gmra.mxu0 %v104_v20  ;;  %v950_v27 = vpop.f32.mrf.mxu1  ;;  %2593 = vmatmul.mubr.f32.gmra.mxu1 %v210_v21 }
 0x13f   :  { %1620 = vst [vmem:[%s4771_s3 + $0x78] sm:$0xff] %v1409_v24  ;;  %1726 = vst [vmem:[%s4771_s3 + $0x3c8] sm:$0xff] %v1515_v25  ;;  %v421_v28 = vadd.f32 %v3353_v52, %v420_v26  ;;  %v951_v29 = vadd.f32 %v3353_v52, %v950_v27  ;;  %2277 = vmatprep.mubr.msk.f32.mxu0 %vm2804_vm0, %v2803_v0  ;;  %2595 = vmatprep.mubr.msk.f32.mxu1 %vm2804_vm0, %v2803_v0 }
 0x140   :  { %v2132_v32 = vpop.f32.mrf.mxu0  ;;  %v2450_v33 = vpop.f32.mrf.mxu1 }
 0x141   :  { %v1410_v34 = vmax.f32 %v421_v28, 0.0  ;;  %v1516_v35 = vmax.f32 %v951_v29, 0.0  ;;  %v111_v28 = vld [vmem:[%s4768_s0 + $0x238] sm:$0xff]  ;;  %v217_v29 = vld [vmem:[%s4768_s0 + $0x588] sm:$0xff] }
 0x142   :  { %v425_v36 = vpop.f32.mrf.mxu0  ;;  %2278 = vmatmul.mubr.f32.gmra.mxu0 %v105_v30  ;;  %v955_v37 = vpop.f32.mrf.mxu1  ;;  %2596 = vmatmul.mubr.f32.gmra.mxu1 %v211_v31 }
 0x143   :  { %1621 = vst [vmem:[%s4771_s3 + $0x80] sm:$0xff] %v1410_v34  ;;  %1727 = vst [vmem:[%s4771_s3 + $0x3d0] sm:$0xff] %v1516_v35  ;;  %v426_v38 = vadd.f32 %v3353_v52, %v425_v36  ;;  %v956_v39 = vadd.f32 %v3353_v52, %v955_v37  ;;  %2280 = vmatprep.mubr.msk.f32.mxu0 %vm2804_vm0, %v2803_v0  ;;  %2598 = vmatprep.mubr.msk.f32.mxu1 %vm2804_vm0, %v2803_v0 }
 0x144   :  { %v2135_v42 = vpop.f32.mrf.mxu0  ;;  %v2453_v43 = vpop.f32.mrf.mxu1 }
 0x145   :  { %v1411_v44 = vmax.f32 %v426_v38, 0.0  ;;  %v1517_v45 = vmax.f32 %v956_v39, 0.0  ;;  %v112_v38 = vld [vmem:[%s4768_s0 + $0x240] sm:$0xff]  ;;  %v218_v39 = vld [vmem:[%s4768_s0 + $0x590] sm:$0xff] }
 0x146   :  { %v430_v46 = vpop.f32.mrf.mxu0  ;;  %2281 = vmatmul.mubr.f32.gmra.mxu0 %v106_v40  ;;  %v960_v47 = vpop.f32.mrf.mxu1  ;;  %2599 = vmatmul.mubr.f32.gmra.mxu1 %v212_v41 }
 0x147   :  { %1622 = vst [vmem:[%s4771_s3 + $0x88] sm:$0xff] %v1411_v44  ;;  %1728 = vst [vmem:[%s4771_s3 + $0x3d8] sm:$0xff] %v1517_v45  ;;  %v431_v48 = vadd.f32 %v3353_v52, %v430_v46  ;;  %v961_v49 = vadd.f32 %v3353_v52, %v960_v47  ;;  %2283 = vmatprep.mubr.msk.f32.mxu0 %vm2804_vm0, %v2803_v0  ;;  %2601 = vmatprep.mubr.msk.f32.mxu1 %vm2804_vm0, %v2803_v0 }
 0x148   :  { %v2138_v53 = vpop.f32.mrf.mxu0  ;;  %v2456_v54 = vpop.f32.mrf.mxu1 }
 0x149   :  { %v1412_v55 = vmax.f32 %v431_v48, 0.0  ;;  %v1518_v56 = vmax.f32 %v961_v49, 0.0  ;;  %v113_v48 = vld [vmem:[%s4768_s0 + $0x248] sm:$0xff]  ;;  %v219_v49 = vld [vmem:[%s4768_s0 + $0x598] sm:$0xff] }
 0x14a   :  { %v435_v57 = vpop.f32.mrf.mxu0  ;;  %2284 = vmatmul.mubr.f32.gmra.mxu0 %v107_v50  ;;  %v965_v58 = vpop.f32.mrf.mxu1  ;;  %2602 = vmatmul.mubr.f32.gmra.mxu1 %v213_v51 }
 0x14b   :  { %1623 = vst [vmem:[%s4771_s3 + $0x90] sm:$0xff] %v1412_v55  ;;  %1729 = vst [vmem:[%s4771_s3 + $0x3e0] sm:$0xff] %v1518_v56  ;;  %v436_v59 = vadd.f32 %v3353_v52, %v435_v57  ;;  %v966_v60 = vadd.f32 %v3353_v52, %v965_v58  ;;  %2286 = vmatprep.mubr.msk.f32.mxu0 %vm2804_vm0, %v2803_v0  ;;  %2604 = vmatprep.mubr.msk.f32.mxu1 %vm2804_vm0, %v2803_v0 }
 0x14c   :  { %v2141_v63 = vpop.f32.mrf.mxu0  ;;  %v2459_v1 = vpop.f32.mrf.mxu1 }
 0x14d   :  { %v1413_v2 = vmax.f32 %v436_v59, 0.0  ;;  %v1519_v3 = vmax.f32 %v966_v60, 0.0  ;;  %v114_v59 = vld [vmem:[%s4768_s0 + $0x250] sm:$0xff]  ;;  %v220_v60 = vld [vmem:[%s4768_s0 + $0x5a0] sm:$0xff] }
 0x14e   :  { %v440_v4 = vpop.f32.mrf.mxu0  ;;  %2287 = vmatmul.mubr.f32.gmra.mxu0 %v108_v61  ;;  %v970_v5 = vpop.f32.mrf.mxu1  ;;  %2605 = vmatmul.mubr.f32.gmra.mxu1 %v214_v62 }
 0x14f   :  { %1624 = vst [vmem:[%s4771_s3 + $0x98] sm:$0xff] %v1413_v2  ;;  %1730 = vst [vmem:[%s4771_s3 + $0x3e8] sm:$0xff] %v1519_v3  ;;  %v441_v6 = vadd.f32 %v3353_v52, %v440_v4  ;;  %v971_v7 = vadd.f32 %v3353_v52, %v970_v5  ;;  %2289 = vmatprep.mubr.msk.f32.mxu0 %vm2804_vm0, %v2803_v0  ;;  %2607 = vmatprep.mubr.msk.f32.mxu1 %vm2804_vm0, %v2803_v0 }
 0x150   :  { %v2144_v10 = vpop.f32.mrf.mxu0  ;;  %v2462_v11 = vpop.f32.mrf.mxu1 }
 0x151   :  { %v1414_v12 = vmax.f32 %v441_v6, 0.0  ;;  %v1520_v13 = vmax.f32 %v971_v7, 0.0  ;;  %v115_v6 = vld [vmem:[%s4768_s0 + $0x258] sm:$0xff]  ;;  %v221_v7 = vld [vmem:[%s4768_s0 + $0x5a8] sm:$0xff] }
 0x152   :  { %v445_v14 = vpop.f32.mrf.mxu0  ;;  %2290 = vmatmul.mubr.f32.gmra.mxu0 %v109_v8  ;;  %v975_v15 = vpop.f32.mrf.mxu1  ;;  %2608 = vmatmul.mubr.f32.gmra.mxu1 %v215_v9 }
 0x153   :  { %1625 = vst [vmem:[%s4771_s3 + $0xa0] sm:$0xff] %v1414_v12  ;;  %1731 = vst [vmem:[%s4771_s3 + $0x3f0] sm:$0xff] %v1520_v13  ;;  %v446_v16 = vadd.f32 %v3353_v52, %v445_v14  ;;  %v976_v17 = vadd.f32 %v3353_v52, %v975_v15  ;;  %2292 = vmatprep.mubr.msk.f32.mxu0 %vm2804_vm0, %v2803_v0  ;;  %2610 = vmatprep.mubr.msk.f32.mxu1 %vm2804_vm0, %v2803_v0 }
 0x154   :  { %v2147_v20 = vpop.f32.mrf.mxu0  ;;  %v2465_v21 = vpop.f32.mrf.mxu1 }
 0x155   :  { %v1415_v22 = vmax.f32 %v446_v16, 0.0  ;;  %v1521_v23 = vmax.f32 %v976_v17, 0.0  ;;  %v116_v16 = vld [vmem:[%s4768_s0 + $0x260] sm:$0xff]  ;;  %v222_v17 = vld [vmem:[%s4768_s0 + $0x5b0] sm:$0xff] }
 0x156   :  { %v450_v24 = vpop.f32.mrf.mxu0  ;;  %2293 = vmatmul.mubr.f32.gmra.mxu0 %v110_v18  ;;  %v980_v25 = vpop.f32.mrf.mxu1  ;;  %2611 = vmatmul.mubr.f32.gmra.mxu1 %v216_v19 }
 0x157   :  { %1626 = vst [vmem:[%s4771_s3 + $0xa8] sm:$0xff] %v1415_v22  ;;  %1732 = vst [vmem:[%s4771_s3 + $0x3f8] sm:$0xff] %v1521_v23  ;;  %v451_v26 = vadd.f32 %v3353_v52, %v450_v24  ;;  %v981_v27 = vadd.f32 %v3353_v52, %v980_v25  ;;  %2295 = vmatprep.mubr.msk.f32.mxu0 %vm2804_vm0, %v2803_v0  ;;  %2613 = vmatprep.mubr.msk.f32.mxu1 %vm2804_vm0, %v2803_v0 }
 0x158   :  { %v2150_v30 = vpop.f32.mrf.mxu0  ;;  %v2468_v31 = vpop.f32.mrf.mxu1 }
 0x159   :  { %v1416_v32 = vmax.f32 %v451_v26, 0.0  ;;  %v1522_v33 = vmax.f32 %v981_v27, 0.0  ;;  %v117_v26 = vld [vmem:[%s4768_s0 + $0x268] sm:$0xff]  ;;  %v223_v27 = vld [vmem:[%s4768_s0 + $0x5b8] sm:$0xff] }
 0x15a   :  { %v455_v34 = vpop.f32.mrf.mxu0  ;;  %2296 = vmatmul.mubr.f32.gmra.mxu0 %v111_v28  ;;  %v985_v35 = vpop.f32.mrf.mxu1  ;;  %2614 = vmatmul.mubr.f32.gmra.mxu1 %v217_v29 }
 0x15b   :  { %1627 = vst [vmem:[%s4771_s3 + $0xb0] sm:$0xff] %v1416_v32  ;;  %1733 = vst [vmem:[%s4771_s3 + $0x400] sm:$0xff] %v1522_v33  ;;  %v456_v36 = vadd.f32 %v3353_v52, %v455_v34  ;;  %v986_v37 = vadd.f32 %v3353_v52, %v985_v35  ;;  %2298 = vmatprep.mubr.msk.f32.mxu0 %vm2804_vm0, %v2803_v0  ;;  %2616 = vmatprep.mubr.msk.f32.mxu1 %vm2804_vm0, %v2803_v0 }
 0x15c   :  { %v2153_v40 = vpop.f32.mrf.mxu0  ;;  %v2471_v41 = vpop.f32.mrf.mxu1 }
 0x15d   :  { %v1417_v42 = vmax.f32 %v456_v36, 0.0  ;;  %v1523_v43 = vmax.f32 %v986_v37, 0.0  ;;  %v118_v36 = vld [vmem:[%s4768_s0 + $0x270] sm:$0xff]  ;;  %v224_v37 = vld [vmem:[%s4768_s0 + $0x5c0] sm:$0xff] }
 0x15e   :  { %v460_v44 = vpop.f32.mrf.mxu0  ;;  %2299 = vmatmul.mubr.f32.gmra.mxu0 %v112_v38  ;;  %v990_v45 = vpop.f32.mrf.mxu1  ;;  %2617 = vmatmul.mubr.f32.gmra.mxu1 %v218_v39 }
 0x15f   :  { %1628 = vst [vmem:[%s4771_s3 + $0xb8] sm:$0xff] %v1417_v42  ;;  %1734 = vst [vmem:[%s4771_s3 + $0x408] sm:$0xff] %v1523_v43  ;;  %v461_v46 = vadd.f32 %v3353_v52, %v460_v44  ;;  %v991_v47 = vadd.f32 %v3353_v52, %v990_v45  ;;  %2301 = vmatprep.mubr.msk.f32.mxu0 %vm2804_vm0, %v2803_v0  ;;  %2619 = vmatprep.mubr.msk.f32.mxu1 %vm2804_vm0, %v2803_v0 }
 0x160   :  { %v2156_v50 = vpop.f32.mrf.mxu0  ;;  %v2474_v51 = vpop.f32.mrf.mxu1 }
 0x161   :  { %v1418_v53 = vmax.f32 %v461_v46, 0.0  ;;  %v1524_v54 = vmax.f32 %v991_v47, 0.0  ;;  %v119_v46 = vld [vmem:[%s4768_s0 + $0x278] sm:$0xff]  ;;  %v225_v47 = vld [vmem:[%s4768_s0 + $0x5c8] sm:$0xff] }
 0x162   :  { %v465_v55 = vpop.f32.mrf.mxu0  ;;  %2302 = vmatmul.mubr.f32.gmra.mxu0 %v113_v48  ;;  %v995_v56 = vpop.f32.mrf.mxu1  ;;  %2620 = vmatmul.mubr.f32.gmra.mxu1 %v219_v49 }
 0x163   :  { %1629 = vst [vmem:[%s4771_s3 + $0xc0] sm:$0xff] %v1418_v53  ;;  %1735 = vst [vmem:[%s4771_s3 + $0x410] sm:$0xff] %v1524_v54  ;;  %v466_v57 = vadd.f32 %v3353_v52, %v465_v55  ;;  %v996_v58 = vadd.f32 %v3353_v52, %v995_v56  ;;  %2304 = vmatprep.mubr.msk.f32.mxu0 %vm2804_vm0, %v2803_v0  ;;  %2622 = vmatprep.mubr.msk.f32.mxu1 %vm2804_vm0, %v2803_v0 }
 0x164   :  { %v2159_v61 = vpop.f32.mrf.mxu0  ;;  %v2477_v62 = vpop.f32.mrf.mxu1 }
 0x165   :  { %v1419_v63 = vmax.f32 %v466_v57, 0.0  ;;  %v1525_v1 = vmax.f32 %v996_v58, 0.0  ;;  %v120_v57 = vld [vmem:[%s4768_s0 + $0x280] sm:$0xff]  ;;  %v226_v58 = vld [vmem:[%s4768_s0 + $0x5d0] sm:$0xff] }
 0x166   :  { %v470_v2 = vpop.f32.mrf.mxu0  ;;  %2305 = vmatmul.mubr.f32.gmra.mxu0 %v114_v59  ;;  %v1000_v3 = vpop.f32.mrf.mxu1  ;;  %2623 = vmatmul.mubr.f32.gmra.mxu1 %v220_v60 }
 0x167   :  { %1630 = vst [vmem:[%s4771_s3 + $0xc8] sm:$0xff] %v1419_v63  ;;  %1736 = vst [vmem:[%s4771_s3 + $0x418] sm:$0xff] %v1525_v1  ;;  %v471_v4 = vadd.f32 %v3353_v52, %v470_v2  ;;  %v1001_v5 = vadd.f32 %v3353_v52, %v1000_v3  ;;  %2307 = vmatprep.mubr.msk.f32.mxu0 %vm2804_vm0, %v2803_v0  ;;  %2625 = vmatprep.mubr.msk.f32.mxu1 %vm2804_vm0, %v2803_v0  ;;  %v3931_v1 = vld [vmem:[#allocation4] ss:$0 sm:$0xff] }
 0x168   :  { %v2162_v8 = vpop.f32.mrf.mxu0  ;;  %v2480_v9 = vpop.f32.mrf.mxu1 }
 0x169   :  { %v1420_v10 = vmax.f32 %v471_v4, 0.0  ;;  %v1526_v11 = vmax.f32 %v1001_v5, 0.0  ;;  %v121_v4 = vld [vmem:[%s4768_s0 + $0x288] sm:$0xff]  ;;  %v227_v5 = vld [vmem:[%s4768_s0 + $0x5d8] sm:$0xff] }
 0x16a   :  { %v475_v12 = vpop.f32.mrf.mxu0  ;;  %2308 = vmatmul.mubr.f32.gmra.mxu0 %v115_v6  ;;  %v1005_v13 = vpop.f32.mrf.mxu1  ;;  %2626 = vmatmul.mubr.f32.gmra.mxu1 %v221_v7 }
 0x16b   :  { %1631 = vst [vmem:[%s4771_s3 + $0xd0] sm:$0xff] %v1420_v10  ;;  %1737 = vst [vmem:[%s4771_s3 + $0x420] sm:$0xff] %v1526_v11  ;;  %v476_v14 = vadd.f32 %v3353_v52, %v475_v12  ;;  %v1006_v15 = vadd.f32 %v3353_v52, %v1005_v13  ;;  %2310 = vmatprep.mubr.msk.f32.mxu0 %vm2804_vm0, %v2803_v0  ;;  %2628 = vmatprep.mubr.msk.f32.mxu1 %vm2804_vm0, %v2803_v0 }
 0x16c   :  { %v2165_v18 = vpop.f32.mrf.mxu0  ;;  %v2483_v19 = vpop.f32.mrf.mxu1 }
 0x16d   :  { %v1421_v20 = vmax.f32 %v476_v14, 0.0  ;;  %v1527_v21 = vmax.f32 %v1006_v15, 0.0  ;;  %v122_v14 = vld [vmem:[%s4768_s0 + $0x290] sm:$0xff]  ;;  %v228_v15 = vld [vmem:[%s4768_s0 + $0x5e0] sm:$0xff] }
 0x16e   :  { %v480_v22 = vpop.f32.mrf.mxu0  ;;  %2311 = vmatmul.mubr.f32.gmra.mxu0 %v116_v16  ;;  %v1010_v23 = vpop.f32.mrf.mxu1  ;;  %2629 = vmatmul.mubr.f32.gmra.mxu1 %v222_v17 }
 0x16f   :  { %1632 = vst [vmem:[%s4771_s3 + $0xd8] sm:$0xff] %v1421_v20  ;;  %1738 = vst [vmem:[%s4771_s3 + $0x428] sm:$0xff] %v1527_v21  ;;  %v481_v24 = vadd.f32 %v3353_v52, %v480_v22  ;;  %v1011_v25 = vadd.f32 %v3353_v52, %v1010_v23  ;;  %2313 = vmatprep.mubr.msk.f32.mxu0 %vm2804_vm0, %v2803_v0  ;;  %2631 = vmatprep.mubr.msk.f32.mxu1 %vm2804_vm0, %v2803_v0 }
 0x170   :  { %v2168_v28 = vpop.f32.mrf.mxu0  ;;  %v2486_v29 = vpop.f32.mrf.mxu1 }
 0x171   :  { %v1422_v30 = vmax.f32 %v481_v24, 0.0  ;;  %v1528_v31 = vmax.f32 %v1011_v25, 0.0  ;;  %v123_v24 = vld [vmem:[%s4768_s0 + $0x298] sm:$0xff]  ;;  %v229_v25 = vld [vmem:[%s4768_s0 + $0x5e8] sm:$0xff] }
 0x172   :  { %v485_v32 = vpop.f32.mrf.mxu0  ;;  %2314 = vmatmul.mubr.f32.gmra.mxu0 %v117_v26  ;;  %v1015_v33 = vpop.f32.mrf.mxu1  ;;  %2632 = vmatmul.mubr.f32.gmra.mxu1 %v223_v27 }
 0x173   :  { %1633 = vst [vmem:[%s4771_s3 + $0xe0] sm:$0xff] %v1422_v30  ;;  %1739 = vst [vmem:[%s4771_s3 + $0x430] sm:$0xff] %v1528_v31  ;;  %v486_v34 = vadd.f32 %v3353_v52, %v485_v32  ;;  %v1016_v35 = vadd.f32 %v3353_v52, %v1015_v33  ;;  %2316 = vmatprep.mubr.msk.f32.mxu0 %vm2804_vm0, %v2803_v0  ;;  %2634 = vmatprep.mubr.msk.f32.mxu1 %vm2804_vm0, %v2803_v0 }
 0x174   :  { %v2171_v38 = vpop.f32.mrf.mxu0  ;;  %v2489_v39 = vpop.f32.mrf.mxu1 }
 0x175   :  { %v1423_v40 = vmax.f32 %v486_v34, 0.0  ;;  %v1529_v41 = vmax.f32 %v1016_v35, 0.0  ;;  %v124_v34 = vld [vmem:[%s4768_s0 + $0x2a0] sm:$0xff]  ;;  %v230_v35 = vld [vmem:[%s4768_s0 + $0x5f0] sm:$0xff] }
 0x176   :  { %v490_v42 = vpop.f32.mrf.mxu0  ;;  %2317 = vmatmul.mubr.f32.gmra.mxu0 %v118_v36  ;;  %v1020_v43 = vpop.f32.mrf.mxu1  ;;  %2635 = vmatmul.mubr.f32.gmra.mxu1 %v224_v37 }
 0x177   :  { %1634 = vst [vmem:[%s4771_s3 + $0xe8] sm:$0xff] %v1423_v40  ;;  %1740 = vst [vmem:[%s4771_s3 + $0x438] sm:$0xff] %v1529_v41  ;;  %v491_v44 = vadd.f32 %v3353_v52, %v490_v42  ;;  %v1021_v45 = vadd.f32 %v3353_v52, %v1020_v43  ;;  %2319 = vmatprep.mubr.msk.f32.mxu0 %vm2804_vm0, %v2803_v0  ;;  %2637 = vmatprep.mubr.msk.f32.mxu1 %vm2804_vm0, %v2803_v0 }
 0x178   :  { %v2174_v48 = vpop.f32.mrf.mxu0  ;;  %v2492_v49 = vpop.f32.mrf.mxu1 }
 0x179   :  { %v1424_v50 = vmax.f32 %v491_v44, 0.0  ;;  %v1530_v51 = vmax.f32 %v1021_v45, 0.0  ;;  %v125_v44 = vld [vmem:[%s4768_s0 + $0x2a8] sm:$0xff]  ;;  %v231_v45 = vld [vmem:[%s4768_s0 + $0x5f8] sm:$0xff] }
 0x17a   :  { %v495_v53 = vpop.f32.mrf.mxu0  ;;  %2320 = vmatmul.mubr.f32.gmra.mxu0 %v119_v46  ;;  %v1025_v54 = vpop.f32.mrf.mxu1  ;;  %2638 = vmatmul.mubr.f32.gmra.mxu1 %v225_v47 }
 0x17b   :  { %1635 = vst [vmem:[%s4771_s3 + $0xf0] sm:$0xff] %v1424_v50  ;;  %1741 = vst [vmem:[%s4771_s3 + $0x440] sm:$0xff] %v1530_v51  ;;  %v496_v55 = vadd.f32 %v3353_v52, %v495_v53  ;;  %v1026_v56 = vadd.f32 %v3353_v52, %v1025_v54  ;;  %2322 = vmatprep.mubr.msk.f32.mxu0 %vm2804_vm0, %v2803_v0  ;;  %2640 = vmatprep.mubr.msk.f32.mxu1 %vm2804_vm0, %v2803_v0 }
 0x17c   :  { %v2177_v59 = vpop.f32.mrf.mxu0  ;;  %v2495_v60 = vpop.f32.mrf.mxu1 }
 0x17d   :  { %v1425_v61 = vmax.f32 %v496_v55, 0.0  ;;  %v1531_v62 = vmax.f32 %v1026_v56, 0.0  ;;  %v126_v55 = vld [vmem:[%s4768_s0 + $0x2b0] sm:$0xff]  ;;  %v232_v56 = vld [vmem:[%s4768_s0 + $0x600] sm:$0xff] }
 0x17e   :  { %v500_v63 = vpop.f32.mrf.mxu0  ;;  %2323 = vmatmul.mubr.f32.gmra.mxu0 %v120_v57  ;;  %v1030_v52 = vpop.f32.mrf.mxu1  ;;  %2641 = vmatmul.mubr.f32.gmra.mxu1 %v226_v58 }
 0x17f   :  { %1636 = vst [vmem:[%s4771_s3 + $0xf8] sm:$0xff] %v1425_v61  ;;  %1742 = vst [vmem:[%s4771_s3 + $0x448] sm:$0xff] %v1531_v62  ;;  %v501_v2 = vadd.f32 %v3931_v1, %v500_v63  ;;  %v1031_v3 = vadd.f32 %v3931_v1, %v1030_v52  ;;  %2325 = vmatprep.mubr.msk.f32.mxu0 %vm2804_vm0, %v2803_v0  ;;  %2643 = vmatprep.mubr.msk.f32.mxu1 %vm2804_vm0, %v2803_v0 }
 0x180   :  { %v2180_v6 = vpop.f32.mrf.mxu0  ;;  %v2498_v7 = vpop.f32.mrf.mxu1 }
 0x181   :  { %v1426_v8 = vmax.f32 %v501_v2, 0.0  ;;  %v1532_v9 = vmax.f32 %v1031_v3, 0.0  ;;  %v127_v2 = vld [vmem:[%s4768_s0 + $0x2b8] sm:$0xff]  ;;  %v233_v3 = vld [vmem:[%s4768_s0 + $0x608] sm:$0xff] }
 0x182   :  { %v505_v10 = vpop.f32.mrf.mxu0  ;;  %2326 = vmatmul.mubr.f32.gmra.mxu0 %v121_v4  ;;  %v1035_v11 = vpop.f32.mrf.mxu1  ;;  %2644 = vmatmul.mubr.f32.gmra.mxu1 %v227_v5 }
 0x183   :  { %1637 = vst [vmem:[%s4771_s3 + $0x100] sm:$0xff] %v1426_v8  ;;  %1743 = vst [vmem:[%s4771_s3 + $0x450] sm:$0xff] %v1532_v9  ;;  %v506_v12 = vadd.f32 %v3931_v1, %v505_v10  ;;  %v1036_v13 = vadd.f32 %v3931_v1, %v1035_v11  ;;  %2328 = vmatprep.mubr.msk.f32.mxu0 %vm2804_vm0, %v2803_v0  ;;  %2646 = vmatprep.mubr.msk.f32.mxu1 %vm2804_vm0, %v2803_v0 }
 0x184   :  { %v2183_v16 = vpop.f32.mrf.mxu0  ;;  %v2501_v17 = vpop.f32.mrf.mxu1 }
 0x185   :  { %v1427_v18 = vmax.f32 %v506_v12, 0.0  ;;  %v1533_v19 = vmax.f32 %v1036_v13, 0.0  ;;  %v128_v12 = vld [vmem:[%s4768_s0 + $0x2c0] sm:$0xff]  ;;  %v234_v13 = vld [vmem:[%s4768_s0 + $0x610] sm:$0xff] }
 0x186   :  { %v510_v20 = vpop.f32.mrf.mxu0  ;;  %2329 = vmatmul.mubr.f32.gmra.mxu0 %v122_v14  ;;  %v1040_v21 = vpop.f32.mrf.mxu1  ;;  %2647 = vmatmul.mubr.f32.gmra.mxu1 %v228_v15 }
 0x187   :  { %1638 = vst [vmem:[%s4771_s3 + $0x108] sm:$0xff] %v1427_v18  ;;  %1744 = vst [vmem:[%s4771_s3 + $0x458] sm:$0xff] %v1533_v19  ;;  %v511_v22 = vadd.f32 %v3931_v1, %v510_v20  ;;  %v1041_v23 = vadd.f32 %v3931_v1, %v1040_v21  ;;  %2331 = vmatprep.mubr.msk.f32.mxu0 %vm2804_vm0, %v2803_v0  ;;  %2649 = vmatprep.mubr.msk.f32.mxu1 %vm2804_vm0, %v2803_v0 }
 0x188   :  { %v2186_v26 = vpop.f32.mrf.mxu0  ;;  %v2504_v27 = vpop.f32.mrf.mxu1 }
 0x189   :  { %v1428_v28 = vmax.f32 %v511_v22, 0.0  ;;  %v1534_v29 = vmax.f32 %v1041_v23, 0.0  ;;  %v129_v22 = vld [vmem:[%s4768_s0 + $0x2c8] sm:$0xff]  ;;  %v235_v23 = vld [vmem:[%s4768_s0 + $0x618] sm:$0xff] }
 0x18a   :  { %v515_v30 = vpop.f32.mrf.mxu0  ;;  %2332 = vmatmul.mubr.f32.gmra.mxu0 %v123_v24  ;;  %v1045_v31 = vpop.f32.mrf.mxu1  ;;  %2650 = vmatmul.mubr.f32.gmra.mxu1 %v229_v25 }
 0x18b   :  { %1639 = vst [vmem:[%s4771_s3 + $0x110] sm:$0xff] %v1428_v28  ;;  %1745 = vst [vmem:[%s4771_s3 + $0x460] sm:$0xff] %v1534_v29  ;;  %v516_v32 = vadd.f32 %v3931_v1, %v515_v30  ;;  %v1046_v33 = vadd.f32 %v3931_v1, %v1045_v31  ;;  %2334 = vmatprep.mubr.msk.f32.mxu0 %vm2804_vm0, %v2803_v0  ;;  %2652 = vmatprep.mubr.msk.f32.mxu1 %vm2804_vm0, %v2803_v0 }
 0x18c   :  { %v2189_v36 = vpop.f32.mrf.mxu0  ;;  %v2507_v37 = vpop.f32.mrf.mxu1 }
 0x18d   :  { %v1429_v38 = vmax.f32 %v516_v32, 0.0  ;;  %v1535_v39 = vmax.f32 %v1046_v33, 0.0  ;;  %v130_v32 = vld [vmem:[%s4768_s0 + $0x2d0] sm:$0xff]  ;;  %v236_v33 = vld [vmem:[%s4768_s0 + $0x620] sm:$0xff] }
 0x18e   :  { %v520_v40 = vpop.f32.mrf.mxu0  ;;  %2335 = vmatmul.mubr.f32.gmra.mxu0 %v124_v34  ;;  %v1050_v41 = vpop.f32.mrf.mxu1  ;;  %2653 = vmatmul.mubr.f32.gmra.mxu1 %v230_v35 }
 0x18f   :  { %1640 = vst [vmem:[%s4771_s3 + $0x118] sm:$0xff] %v1429_v38  ;;  %1746 = vst [vmem:[%s4771_s3 + $0x468] sm:$0xff] %v1535_v39  ;;  %v521_v42 = vadd.f32 %v3931_v1, %v520_v40  ;;  %v1051_v43 = vadd.f32 %v3931_v1, %v1050_v41  ;;  %2337 = vmatprep.mubr.msk.f32.mxu0 %vm2804_vm0, %v2803_v0  ;;  %2655 = vmatprep.mubr.msk.f32.mxu1 %vm2804_vm0, %v2803_v0 }
 0x190   :  { %v2192_v46 = vpop.f32.mrf.mxu0  ;;  %v2510_v47 = vpop.f32.mrf.mxu1 }
 0x191   :  { %v1430_v48 = vmax.f32 %v521_v42, 0.0  ;;  %v1536_v49 = vmax.f32 %v1051_v43, 0.0  ;;  %v131_v42 = vld [vmem:[%s4768_s0 + $0x2d8] sm:$0xff]  ;;  %v237_v43 = vld [vmem:[%s4768_s0 + $0x628] sm:$0xff] }
 0x192   :  { %v525_v50 = vpop.f32.mrf.mxu0  ;;  %2338 = vmatmul.mubr.f32.gmra.mxu0 %v125_v44  ;;  %v1055_v51 = vpop.f32.mrf.mxu1  ;;  %2656 = vmatmul.mubr.f32.gmra.mxu1 %v231_v45 }
 0x193   :  { %1641 = vst [vmem:[%s4771_s3 + $0x120] sm:$0xff] %v1430_v48  ;;  %1747 = vst [vmem:[%s4771_s3 + $0x470] sm:$0xff] %v1536_v49  ;;  %v526_v53 = vadd.f32 %v3931_v1, %v525_v50  ;;  %v1056_v54 = vadd.f32 %v3931_v1, %v1055_v51  ;;  %2340 = vmatprep.mubr.msk.f32.mxu0 %vm2804_vm0, %v2803_v0  ;;  %2658 = vmatprep.mubr.msk.f32.mxu1 %vm2804_vm0, %v2803_v0 }
 0x194   :  { %v2195_v57 = vpop.f32.mrf.mxu0  ;;  %v2513_v58 = vpop.f32.mrf.mxu1 }
 0x195   :  { %v1431_v59 = vmax.f32 %v526_v53, 0.0  ;;  %v1537_v60 = vmax.f32 %v1056_v54, 0.0  ;;  %v132_v53 = vld [vmem:[%s4768_s0 + $0x2e0] sm:$0xff]  ;;  %v238_v54 = vld [vmem:[%s4768_s0 + $0x630] sm:$0xff] }
 0x196   :  { %v530_v61 = vpop.f32.mrf.mxu0  ;;  %2341 = vmatmul.mubr.f32.gmra.mxu0 %v126_v55  ;;  %v1060_v62 = vpop.f32.mrf.mxu1  ;;  %2659 = vmatmul.mubr.f32.gmra.mxu1 %v232_v56 }
 0x197   :  { %1642 = vst [vmem:[%s4771_s3 + $0x128] sm:$0xff] %v1431_v59  ;;  %1748 = vst [vmem:[%s4771_s3 + $0x478] sm:$0xff] %v1537_v60  ;;  %v531_v63 = vadd.f32 %v3931_v1, %v530_v61  ;;  %v1061_v52 = vadd.f32 %v3931_v1, %v1060_v62  ;;  %2343 = vmatprep.mubr.msk.f32.mxu0 %vm2804_vm0, %v2803_v0  ;;  %2661 = vmatprep.mubr.msk.f32.mxu1 %vm2804_vm0, %v2803_v0 }
 0x198   :  { %v2198_v4 = vpop.f32.mrf.mxu0  ;;  %v2516_v5 = vpop.f32.mrf.mxu1 }
 0x199   :  { %v1432_v6 = vmax.f32 %v531_v63, 0.0  ;;  %v1538_v7 = vmax.f32 %v1061_v52, 0.0  ;;  %v133_v63 = vld [vmem:[%s4768_s0 + $0x2e8] sm:$0xff]  ;;  %v239_v52 = vld [vmem:[%s4768_s0 + $0x638] sm:$0xff] }
 0x19a   :  { %v535_v8 = vpop.f32.mrf.mxu0  ;;  %2344 = vmatmul.mubr.f32.gmra.mxu0 %v127_v2  ;;  %v1065_v9 = vpop.f32.mrf.mxu1  ;;  %2662 = vmatmul.mubr.f32.gmra.mxu1 %v233_v3 }
 0x19b   :  { %1643 = vst [vmem:[%s4771_s3 + $0x130] sm:$0xff] %v1432_v6  ;;  %1749 = vst [vmem:[%s4771_s3 + $0x480] sm:$0xff] %v1538_v7  ;;  %v536_v10 = vadd.f32 %v3931_v1, %v535_v8  ;;  %v1066_v11 = vadd.f32 %v3931_v1, %v1065_v9  ;;  %2346 = vmatprep.mubr.msk.f32.mxu0 %vm2804_vm0, %v2803_v0  ;;  %2664 = vmatprep.mubr.msk.f32.mxu1 %vm2804_vm0, %v2803_v0 }
 0x19c   :  { %v2201_v14 = vpop.f32.mrf.mxu0  ;;  %v2519_v15 = vpop.f32.mrf.mxu1 }
 0x19d   :  { %v1433_v16 = vmax.f32 %v536_v10, 0.0  ;;  %v1539_v17 = vmax.f32 %v1066_v11, 0.0  ;;  %v134_v10 = vld [vmem:[%s4768_s0 + $0x2f0] sm:$0xff]  ;;  %v240_v11 = vld [vmem:[%s4768_s0 + $0x640] sm:$0xff] }
 0x19e   :  { %v540_v18 = vpop.f32.mrf.mxu0  ;;  %2347 = vmatmul.mubr.f32.gmra.mxu0 %v128_v12  ;;  %v1070_v19 = vpop.f32.mrf.mxu1  ;;  %2665 = vmatmul.mubr.f32.gmra.mxu1 %v234_v13 }
 0x19f   :  { %1644 = vst [vmem:[%s4771_s3 + $0x138] sm:$0xff] %v1433_v16  ;;  %1750 = vst [vmem:[%s4771_s3 + $0x488] sm:$0xff] %v1539_v17  ;;  %v541_v20 = vadd.f32 %v3931_v1, %v540_v18  ;;  %v1071_v21 = vadd.f32 %v3931_v1, %v1070_v19  ;;  %2349 = vmatprep.mubr.msk.f32.mxu0 %vm2804_vm0, %v2803_v0  ;;  %2667 = vmatprep.mubr.msk.f32.mxu1 %vm2804_vm0, %v2803_v0 }
 0x1a0   :  { %v2204_v24 = vpop.f32.mrf.mxu0  ;;  %v2522_v25 = vpop.f32.mrf.mxu1 }
 0x1a1   :  { %v1434_v26 = vmax.f32 %v541_v20, 0.0  ;;  %v1540_v27 = vmax.f32 %v1071_v21, 0.0  ;;  %v135_v20 = vld [vmem:[%s4768_s0 + $0x2f8] sm:$0xff]  ;;  %v241_v21 = vld [vmem:[%s4768_s0 + $0x648] sm:$0xff] }
 0x1a2   :  { %v545_v28 = vpop.f32.mrf.mxu0  ;;  %2350 = vmatmul.mubr.f32.gmra.mxu0 %v129_v22  ;;  %v1075_v29 = vpop.f32.mrf.mxu1  ;;  %2668 = vmatmul.mubr.f32.gmra.mxu1 %v235_v23 }
 0x1a3   :  { %1645 = vst [vmem:[%s4771_s3 + $0x140] sm:$0xff] %v1434_v26  ;;  %1751 = vst [vmem:[%s4771_s3 + $0x490] sm:$0xff] %v1540_v27  ;;  %v546_v30 = vadd.f32 %v3931_v1, %v545_v28  ;;  %v1076_v31 = vadd.f32 %v3931_v1, %v1075_v29  ;;  %2352 = vmatprep.mubr.msk.f32.mxu0 %vm2804_vm0, %v2803_v0  ;;  %2670 = vmatprep.mubr.msk.f32.mxu1 %vm2804_vm0, %v2803_v0 }
 0x1a4   :  { %v2207_v34 = vpop.f32.mrf.mxu0  ;;  %v2525_v35 = vpop.f32.mrf.mxu1 }
 0x1a5   :  { %v1435_v36 = vmax.f32 %v546_v30, 0.0  ;;  %v1541_v37 = vmax.f32 %v1076_v31, 0.0  ;;  %v136_v30 = vld [vmem:[%s4768_s0 + $0x300] sm:$0xff]  ;;  %v242_v31 = vld [vmem:[%s4768_s0 + $0x650] sm:$0xff] }
 0x1a6   :  { %v550_v38 = vpop.f32.mrf.mxu0  ;;  %2353 = vmatmul.mubr.f32.gmra.mxu0 %v130_v32  ;;  %v1080_v39 = vpop.f32.mrf.mxu1  ;;  %2671 = vmatmul.mubr.f32.gmra.mxu1 %v236_v33 }
 0x1a7   :  { %1646 = vst [vmem:[%s4771_s3 + $0x148] sm:$0xff] %v1435_v36  ;;  %1752 = vst [vmem:[%s4771_s3 + $0x498] sm:$0xff] %v1541_v37  ;;  %v551_v40 = vadd.f32 %v3931_v1, %v550_v38  ;;  %v1081_v41 = vadd.f32 %v3931_v1, %v1080_v39  ;;  %2355 = vmatprep.mubr.msk.f32.mxu0 %vm2804_vm0, %v2803_v0  ;;  %2673 = vmatprep.mubr.msk.f32.mxu1 %vm2804_vm0, %v2803_v0 }
 0x1a8   :  { %v2210_v44 = vpop.f32.mrf.mxu0  ;;  %v2528_v45 = vpop.f32.mrf.mxu1 }
 0x1a9   :  { %v1436_v46 = vmax.f32 %v551_v40, 0.0  ;;  %v1542_v47 = vmax.f32 %v1081_v41, 0.0  ;;  %v137_v40 = vld [vmem:[%s4768_s0 + $0x308] sm:$0xff]  ;;  %v243_v41 = vld [vmem:[%s4768_s0 + $0x658] sm:$0xff] }
 0x1aa   :  { %v555_v48 = vpop.f32.mrf.mxu0  ;;  %2356 = vmatmul.mubr.f32.gmra.mxu0 %v131_v42  ;;  %v1085_v49 = vpop.f32.mrf.mxu1  ;;  %2674 = vmatmul.mubr.f32.gmra.mxu1 %v237_v43 }
 0x1ab   :  { %1647 = vst [vmem:[%s4771_s3 + $0x150] sm:$0xff] %v1436_v46  ;;  %1753 = vst [vmem:[%s4771_s3 + $0x4a0] sm:$0xff] %v1542_v47  ;;  %v556_v50 = vadd.f32 %v3931_v1, %v555_v48  ;;  %v1086_v51 = vadd.f32 %v3931_v1, %v1085_v49  ;;  %2358 = vmatprep.mubr.msk.f32.mxu0 %vm2804_vm0, %v2803_v0  ;;  %2676 = vmatprep.mubr.msk.f32.mxu1 %vm2804_vm0, %v2803_v0 }
 0x1ac   :  { %v2213_v55 = vpop.f32.mrf.mxu0  ;;  %v2531_v56 = vpop.f32.mrf.mxu1 }
 0x1ad   :  { %v1437_v57 = vmax.f32 %v556_v50, 0.0  ;;  %v1543_v58 = vmax.f32 %v1086_v51, 0.0  ;;  %v138_v50 = vld [vmem:[%s4768_s0 + $0x310] sm:$0xff]  ;;  %v244_v51 = vld [vmem:[%s4768_s0 + $0x660] sm:$0xff] }
 0x1ae   :  { %v560_v59 = vpop.f32.mrf.mxu0  ;;  %2359 = vmatmul.mubr.f32.gmra.mxu0 %v132_v53  ;;  %v1090_v60 = vpop.f32.mrf.mxu1  ;;  %2677 = vmatmul.mubr.f32.gmra.mxu1 %v238_v54 }
 0x1af   :  { %1648 = vst [vmem:[%s4771_s3 + $0x158] sm:$0xff] %v1437_v57  ;;  %1754 = vst [vmem:[%s4771_s3 + $0x4a8] sm:$0xff] %v1543_v58  ;;  %v561_v61 = vadd.f32 %v3931_v1, %v560_v59  ;;  %v1091_v62 = vadd.f32 %v3931_v1, %v1090_v60  ;;  %2361 = vmatprep.mubr.msk.f32.mxu0 %vm2804_vm0, %v2803_v0  ;;  %2679 = vmatprep.mubr.msk.f32.mxu1 %vm2804_vm0, %v2803_v0 }
 0x1b0   :  { %v2216_v2 = vpop.f32.mrf.mxu0  ;;  %v2534_v3 = vpop.f32.mrf.mxu1 }
 0x1b1   :  { %v1438_v4 = vmax.f32 %v561_v61, 0.0  ;;  %v1544_v5 = vmax.f32 %v1091_v62, 0.0  ;;  %v139_v61 = vld [vmem:[%s4768_s0 + $0x318] sm:$0xff]  ;;  %v245_v62 = vld [vmem:[%s4768_s0 + $0x668] sm:$0xff] }
 0x1b2   :  { %v565_v6 = vpop.f32.mrf.mxu0  ;;  %2362 = vmatmul.mubr.f32.gmra.mxu0 %v133_v63  ;;  %v1095_v7 = vpop.f32.mrf.mxu1  ;;  %2680 = vmatmul.mubr.f32.gmra.mxu1 %v239_v52 }
 0x1b3   :  { %1649 = vst [vmem:[%s4771_s3 + $0x160] sm:$0xff] %v1438_v4  ;;  %1755 = vst [vmem:[%s4771_s3 + $0x4b0] sm:$0xff] %v1544_v5  ;;  %v566_v8 = vadd.f32 %v3931_v1, %v565_v6  ;;  %v1096_v9 = vadd.f32 %v3931_v1, %v1095_v7  ;;  %2364 = vmatprep.mubr.msk.f32.mxu0 %vm2804_vm0, %v2803_v0  ;;  %2682 = vmatprep.mubr.msk.f32.mxu1 %vm2804_vm0, %v2803_v0 }
 0x1b4   :  { %v2219_v12 = vpop.f32.mrf.mxu0  ;;  %v2537_v13 = vpop.f32.mrf.mxu1 }
 0x1b5   :  { %v1439_v14 = vmax.f32 %v566_v8, 0.0  ;;  %v1545_v15 = vmax.f32 %v1096_v9, 0.0  ;;  %v140_v8 = vld [vmem:[%s4768_s0 + $0x320] sm:$0xff]  ;;  %v246_v9 = vld [vmem:[%s4768_s0 + $0x670] sm:$0xff] }
 0x1b6   :  { %v570_v16 = vpop.f32.mrf.mxu0  ;;  %2365 = vmatmul.mubr.f32.gmra.mxu0 %v134_v10  ;;  %v1100_v17 = vpop.f32.mrf.mxu1  ;;  %2683 = vmatmul.mubr.f32.gmra.mxu1 %v240_v11 }
 0x1b7   :  { %1650 = vst [vmem:[%s4771_s3 + $0x168] sm:$0xff] %v1439_v14  ;;  %1756 = vst [vmem:[%s4771_s3 + $0x4b8] sm:$0xff] %v1545_v15  ;;  %v571_v18 = vadd.f32 %v3931_v1, %v570_v16  ;;  %v1101_v19 = vadd.f32 %v3931_v1, %v1100_v17  ;;  %2367 = vmatprep.mubr.msk.f32.mxu0 %vm2804_vm0, %v2803_v0  ;;  %2685 = vmatprep.mubr.msk.f32.mxu1 %vm2804_vm0, %v2803_v0 }
 0x1b8   :  { %v2222_v22 = vpop.f32.mrf.mxu0  ;;  %v2540_v23 = vpop.f32.mrf.mxu1 }
 0x1b9   :  { %v1440_v24 = vmax.f32 %v571_v18, 0.0  ;;  %v1546_v25 = vmax.f32 %v1101_v19, 0.0  ;;  %v141_v18 = vld [vmem:[%s4768_s0 + $0x328] sm:$0xff]  ;;  %v247_v19 = vld [vmem:[%s4768_s0 + $0x678] sm:$0xff] }
 0x1ba   :  { %v575_v26 = vpop.f32.mrf.mxu0  ;;  %2368 = vmatmul.mubr.f32.gmra.mxu0 %v135_v20  ;;  %v1105_v27 = vpop.f32.mrf.mxu1  ;;  %2686 = vmatmul.mubr.f32.gmra.mxu1 %v241_v21 }
 0x1bb   :  { %1651 = vst [vmem:[%s4771_s3 + $0x170] sm:$0xff] %v1440_v24  ;;  %1757 = vst [vmem:[%s4771_s3 + $0x4c0] sm:$0xff] %v1546_v25  ;;  %v576_v28 = vadd.f32 %v3931_v1, %v575_v26  ;;  %v1106_v29 = vadd.f32 %v3931_v1, %v1105_v27  ;;  %2370 = vmatprep.mubr.msk.f32.mxu0 %vm2804_vm0, %v2803_v0  ;;  %2688 = vmatprep.mubr.msk.f32.mxu1 %vm2804_vm0, %v2803_v0 }
 0x1bc   :  { %v2225_v32 = vpop.f32.mrf.mxu0  ;;  %v2543_v33 = vpop.f32.mrf.mxu1 }
 0x1bd   :  { %v1441_v34 = vmax.f32 %v576_v28, 0.0  ;;  %v1547_v35 = vmax.f32 %v1106_v29, 0.0  ;;  %v142_v28 = vld [vmem:[%s4768_s0 + $0x330] sm:$0xff]  ;;  %v248_v29 = vld [vmem:[%s4768_s0 + $0x680] sm:$0xff] }
 0x1be   :  { %v580_v36 = vpop.f32.mrf.mxu0  ;;  %2371 = vmatmul.mubr.f32.gmra.mxu0 %v136_v30  ;;  %v1110_v37 = vpop.f32.mrf.mxu1  ;;  %2689 = vmatmul.mubr.f32.gmra.mxu1 %v242_v31 }
 0x1bf   :  { %1652 = vst [vmem:[%s4771_s3 + $0x178] sm:$0xff] %v1441_v34  ;;  %1758 = vst [vmem:[%s4771_s3 + $0x4c8] sm:$0xff] %v1547_v35  ;;  %v581_v38 = vadd.f32 %v3931_v1, %v580_v36  ;;  %v1111_v39 = vadd.f32 %v3931_v1, %v1110_v37  ;;  %2373 = vmatprep.mubr.msk.f32.mxu0 %vm2804_vm0, %v2803_v0  ;;  %2691 = vmatprep.mubr.msk.f32.mxu1 %vm2804_vm0, %v2803_v0 }
 0x1c0   :  { %v2228_v42 = vpop.f32.mrf.mxu0  ;;  %v2546_v43 = vpop.f32.mrf.mxu1 }
 0x1c1   :  { %v1442_v44 = vmax.f32 %v581_v38, 0.0  ;;  %v1548_v45 = vmax.f32 %v1111_v39, 0.0  ;;  %v143_v38 = vld [vmem:[%s4768_s0 + $0x338] sm:$0xff]  ;;  %v249_v39 = vld [vmem:[%s4768_s0 + $0x688] sm:$0xff] }
 0x1c2   :  { %v585_v46 = vpop.f32.mrf.mxu0  ;;  %2374 = vmatmul.mubr.f32.gmra.mxu0 %v137_v40  ;;  %v1115_v47 = vpop.f32.mrf.mxu1  ;;  %2692 = vmatmul.mubr.f32.gmra.mxu1 %v243_v41 }
 0x1c3   :  { %1653 = vst [vmem:[%s4771_s3 + $0x180] sm:$0xff] %v1442_v44  ;;  %1759 = vst [vmem:[%s4771_s3 + $0x4d0] sm:$0xff] %v1548_v45  ;;  %v586_v48 = vadd.f32 %v3931_v1, %v585_v46  ;;  %v1116_v49 = vadd.f32 %v3931_v1, %v1115_v47  ;;  %2376 = vmatprep.mubr.msk.f32.mxu0 %vm2804_vm0, %v2803_v0  ;;  %2694 = vmatprep.mubr.msk.f32.mxu1 %vm2804_vm0, %v2803_v0 }
 0x1c4   :  { %v2231_v53 = vpop.f32.mrf.mxu0  ;;  %v2549_v54 = vpop.f32.mrf.mxu1 }
 0x1c5   :  { %v1443_v55 = vmax.f32 %v586_v48, 0.0  ;;  %v1549_v56 = vmax.f32 %v1116_v49, 0.0  ;;  %v144_v48 = vld [vmem:[%s4768_s0 + $0x340] sm:$0xff]  ;;  %v250_v49 = vld [vmem:[%s4768_s0 + $0x690] sm:$0xff] }
 0x1c6   :  { %v590_v57 = vpop.f32.mrf.mxu0  ;;  %2377 = vmatmul.mubr.f32.gmra.mxu0 %v138_v50  ;;  %v1120_v58 = vpop.f32.mrf.mxu1  ;;  %2695 = vmatmul.mubr.f32.gmra.mxu1 %v244_v51 }
 0x1c7   :  { %1654 = vst [vmem:[%s4771_s3 + $0x188] sm:$0xff] %v1443_v55  ;;  %1760 = vst [vmem:[%s4771_s3 + $0x4d8] sm:$0xff] %v1549_v56  ;;  %v591_v59 = vadd.f32 %v3931_v1, %v590_v57  ;;  %v1121_v60 = vadd.f32 %v3931_v1, %v1120_v58  ;;  %2379 = vmatprep.mubr.msk.f32.mxu0 %vm2804_vm0, %v2803_v0  ;;  %2697 = vmatprep.mubr.msk.f32.mxu1 %vm2804_vm0, %v2803_v0 }
 0x1c8   :  { %v2234_v63 = vpop.f32.mrf.mxu0  ;;  %v2552_v52 = vpop.f32.mrf.mxu1 }
 0x1c9   :  { %v1444_v2 = vmax.f32 %v591_v59, 0.0  ;;  %v1550_v3 = vmax.f32 %v1121_v60, 0.0  ;;  %v145_v59 = vld [vmem:[%s4768_s0 + $0x348] sm:$0xff] }
 0x1ca   :  { %v595_v4 = vpop.f32.mrf.mxu0  ;;  %2380 = vmatmul.mubr.f32.gmra.mxu0 %v139_v61  ;;  %v1125_v5 = vpop.f32.mrf.mxu1  ;;  %2698 = vmatmul.mubr.f32.gmra.mxu1 %v245_v62 }
 0x1cb   :  { %1655 = vst [vmem:[%s4771_s3 + $0x190] sm:$0xff] %v1444_v2  ;;  %1761 = vst [vmem:[%s4771_s3 + $0x4e0] sm:$0xff] %v1550_v3  ;;  %v596_v6 = vadd.f32 %v3931_v1, %v595_v4  ;;  %v1126_v7 = vadd.f32 %v3931_v1, %v1125_v5  ;;  %2382 = vmatprep.mubr.msk.f32.mxu0 %vm2804_vm0, %v2803_v0  ;;  %2700 = vmatprep.mubr.msk.f32.mxu1 %vm2804_vm0, %v2803_v0 }
 0x1cc   :  { %v2237_v10 = vpop.f32.mrf.mxu0  ;;  %v2555_v11 = vpop.f32.mrf.mxu1 }
 0x1cd   :  { %v1445_v12 = vmax.f32 %v596_v6, 0.0  ;;  %v1551_v13 = vmax.f32 %v1126_v7, 0.0 }
 0x1ce   :  { %v600_v14 = vpop.f32.mrf.mxu0  ;;  %2383 = vmatmul.mubr.f32.gmra.mxu0 %v140_v8  ;;  %v1130_v15 = vpop.f32.mrf.mxu1  ;;  %2701 = vmatmul.mubr.f32.gmra.mxu1 %v246_v9 }
 0x1cf   :  { %1656 = vst [vmem:[%s4771_s3 + $0x198] sm:$0xff] %v1445_v12  ;;  %1762 = vst [vmem:[%s4771_s3 + $0x4e8] sm:$0xff] %v1551_v13  ;;  %v601_v16 = vadd.f32 %v3931_v1, %v600_v14  ;;  %v1131_v17 = vadd.f32 %v3931_v1, %v1130_v15  ;;  %2385 = vmatprep.mubr.msk.f32.mxu0 %vm2804_vm0, %v2803_v0  ;;  %2703 = vmatprep.mubr.msk.f32.mxu1 %vm2804_vm0, %v2803_v0 }
 0x1d0   :  { %v2240_v20 = vpop.f32.mrf.mxu0  ;;  %v2558_v21 = vpop.f32.mrf.mxu1 }
 0x1d1   :  { %v1446_v22 = vmax.f32 %v601_v16, 0.0  ;;  %v1552_v23 = vmax.f32 %v1131_v17, 0.0 }
 0x1d2   :  { %v605_v24 = vpop.f32.mrf.mxu0  ;;  %2386 = vmatmul.mubr.f32.gmra.mxu0 %v141_v18  ;;  %v1135_v25 = vpop.f32.mrf.mxu1  ;;  %2704 = vmatmul.mubr.f32.gmra.mxu1 %v247_v19 }
 0x1d3   :  { %1657 = vst [vmem:[%s4771_s3 + $0x1a0] sm:$0xff] %v1446_v22  ;;  %1763 = vst [vmem:[%s4771_s3 + $0x4f0] sm:$0xff] %v1552_v23  ;;  %v606_v26 = vadd.f32 %v3931_v1, %v605_v24  ;;  %v1136_v27 = vadd.f32 %v3931_v1, %v1135_v25  ;;  %2388 = vmatprep.mubr.msk.f32.mxu0 %vm2804_vm0, %v2803_v0  ;;  %2706 = vmatprep.mubr.msk.f32.mxu1 %vm2804_vm0, %v2803_v0 }
 0x1d4   :  { %v2243_v30 = vpop.f32.mrf.mxu0  ;;  %v2561_v31 = vpop.f32.mrf.mxu1 }
 0x1d5   :  { %v1447_v32 = vmax.f32 %v606_v26, 0.0  ;;  %v1553_v33 = vmax.f32 %v1136_v27, 0.0 }
 0x1d6   :  { %v610_v34 = vpop.f32.mrf.mxu0  ;;  %2389 = vmatmul.mubr.f32.gmra.mxu0 %v142_v28  ;;  %v1140_v35 = vpop.f32.mrf.mxu1  ;;  %2707 = vmatmul.mubr.f32.gmra.mxu1 %v248_v29 }
 0x1d7   :  { %1658 = vst [vmem:[%s4771_s3 + $0x1a8] sm:$0xff] %v1447_v32  ;;  %1764 = vst [vmem:[%s4771_s3 + $0x4f8] sm:$0xff] %v1553_v33  ;;  %v611_v36 = vadd.f32 %v3931_v1, %v610_v34  ;;  %v1141_v37 = vadd.f32 %v3931_v1, %v1140_v35  ;;  %2391 = vmatprep.mubr.msk.f32.mxu0 %vm2804_vm0, %v2803_v0  ;;  %2709 = vmatprep.mubr.msk.f32.mxu1 %vm2804_vm0, %v2803_v0 }
 0x1d8   :  { %v2246_v40 = vpop.f32.mrf.mxu0  ;;  %v2564_v41 = vpop.f32.mrf.mxu1 }
 0x1d9   :  { %v1448_v42 = vmax.f32 %v611_v36, 0.0  ;;  %v1554_v43 = vmax.f32 %v1141_v37, 0.0 }
 0x1da   :  { %v615_v44 = vpop.f32.mrf.mxu0  ;;  %2392 = vmatmul.mubr.f32.gmra.mxu0 %v143_v38  ;;  %v1145_v45 = vpop.f32.mrf.mxu1  ;;  %2710 = vmatmul.mubr.f32.gmra.mxu1 %v249_v39 }
 0x1db   :  { %1659 = vst [vmem:[%s4771_s3 + $0x1b0] sm:$0xff] %v1448_v42  ;;  %1765 = vst [vmem:[%s4771_s3 + $0x500] sm:$0xff] %v1554_v43  ;;  %v616_v46 = vadd.f32 %v3931_v1, %v615_v44  ;;  %v1146_v47 = vadd.f32 %v3931_v1, %v1145_v45  ;;  %2394 = vmatprep.mubr.msk.f32.mxu0 %vm2804_vm0, %v2803_v0  ;;  %2712 = vmatprep.mubr.msk.f32.mxu1 %vm2804_vm0, %v2803_v0 }
 0x1dc   :  { %v2249_v50 = vpop.f32.mrf.mxu0  ;;  %v2567_v51 = vpop.f32.mrf.mxu1 }
 0x1dd   :  { %v1449_v53 = vmax.f32 %v616_v46, 0.0  ;;  %v1555_v54 = vmax.f32 %v1146_v47, 0.0 }
 0x1de   :  { %v620_v55 = vpop.f32.mrf.mxu0  ;;  %2395 = vmatmul.mubr.f32.gmra.mxu0 %v144_v48  ;;  %v1150_v56 = vpop.f32.mrf.mxu1  ;;  %2713 = vmatmul.mubr.f32.gmra.mxu1 %v250_v49 }
 0x1df   :  { %1660 = vst [vmem:[%s4771_s3 + $0x1b8] sm:$0xff] %v1449_v53  ;;  %1766 = vst [vmem:[%s4771_s3 + $0x508] sm:$0xff] %v1555_v54  ;;  %v621_v57 = vadd.f32 %v3931_v1, %v620_v55  ;;  %v1151_v58 = vadd.f32 %v3931_v1, %v1150_v56  ;;  %2397 = vmatprep.mubr.msk.f32.mxu0 %vm2804_vm0, %v2803_v0 }
 0x1e0   :  { %v2252_v60 = vpop.f32.mrf.mxu0  ;;  %v2570_v61 = vpop.f32.mrf.mxu1 }
 0x1e1   :  { %v1450_v62 = vmax.f32 %v621_v57, 0.0  ;;  %v1556_v63 = vmax.f32 %v1151_v58, 0.0 }
 0x1e2   :  { %v625_v52 = vpop.f32.mrf.mxu0  ;;  %2398 = vmatmul.mubr.f32.gmra.mxu0 %v145_v59  ;;  %v1155_v2 = vpop.f32.mrf.mxu1 }
 0x1e3   :  { %1661 = vst [vmem:[%s4771_s3 + $0x1c0] sm:$0xff] %v1450_v62  ;;  %1767 = vst [vmem:[%s4771_s3 + $0x510] sm:$0xff] %v1556_v63  ;;  %v626_v0 = vadd.f32 %v3931_v1, %v625_v52  ;;  %v1156_v3 = vadd.f32 %v3931_v1, %v1155_v2 }
 0x1e4   :  { %v2255_v4 = vpop.f32.mrf.mxu0  ;;  %v2573_v5 = vpop.f32.mrf.mxu1 }
 0x1e5   :  { %v1451_v6 = vmax.f32 %v626_v0, 0.0  ;;  %v1557_v7 = vmax.f32 %v1156_v3, 0.0 }
 0x1e6   :  { %v630_v8 = vpop.f32.mrf.mxu0  ;;  %v1160_v9 = vpop.f32.mrf.mxu1 }
 0x1e7   :  { %1662 = vst [vmem:[%s4771_s3 + $0x1c8] sm:$0xff] %v1451_v6  ;;  %1768 = vst [vmem:[%s4771_s3 + $0x518] sm:$0xff] %v1557_v7  ;;  %v631_v10 = vadd.f32 %v3931_v1, %v630_v8  ;;  %v1161_v11 = vadd.f32 %v3931_v1, %v1160_v9 }
 0x1e8   :  { %v2258_v12 = vpop.f32.mrf.mxu0  ;;  %v2576_v13 = vpop.f32.mrf.mxu1 }
 0x1e9   :  { %v1452_v14 = vmax.f32 %v631_v10, 0.0  ;;  %v1558_v15 = vmax.f32 %v1161_v11, 0.0 }
 0x1ea   :  { %v635_v16 = vpop.f32.mrf.mxu0  ;;  %v1165_v17 = vpop.f32.mrf.mxu1 }
 0x1eb   :  { %1663 = vst [vmem:[%s4771_s3 + $0x1d0] sm:$0xff] %v1452_v14  ;;  %1769 = vst [vmem:[%s4771_s3 + $0x520] sm:$0xff] %v1558_v15  ;;  %v636_v18 = vadd.f32 %v3931_v1, %v635_v16  ;;  %v1166_v19 = vadd.f32 %v3931_v1, %v1165_v17 }
 0x1ec   :  { %v2261_v20 = vpop.f32.mrf.mxu0  ;;  %v2579_v21 = vpop.f32.mrf.mxu1 }
 0x1ed   :  { %v1453_v22 = vmax.f32 %v636_v18, 0.0  ;;  %v1559_v23 = vmax.f32 %v1166_v19, 0.0 }
 0x1ee   :  { %v640_v24 = vpop.f32.mrf.mxu0  ;;  %v1170_v25 = vpop.f32.mrf.mxu1 }
 0x1ef   :  { %1664 = vst [vmem:[%s4771_s3 + $0x1d8] sm:$0xff] %v1453_v22  ;;  %1770 = vst [vmem:[%s4771_s3 + $0x528] sm:$0xff] %v1559_v23  ;;  %v641_v26 = vadd.f32 %v3931_v1, %v640_v24  ;;  %v1171_v27 = vadd.f32 %v3931_v1, %v1170_v25 }
 0x1f0   :  { %v2264_v28 = vpop.f32.mrf.mxu0  ;;  %v2582_v29 = vpop.f32.mrf.mxu1 }
 0x1f1   :  { %v1454_v30 = vmax.f32 %v641_v26, 0.0  ;;  %v1560_v31 = vmax.f32 %v1171_v27, 0.0 }
 0x1f2   :  { %v645_v32 = vpop.f32.mrf.mxu0  ;;  %v1175_v33 = vpop.f32.mrf.mxu1 }
 0x1f3   :  { %1665 = vst [vmem:[%s4771_s3 + $0x1e0] sm:$0xff] %v1454_v30  ;;  %1771 = vst [vmem:[%s4771_s3 + $0x530] sm:$0xff] %v1560_v31  ;;  %v646_v34 = vadd.f32 %v3931_v1, %v645_v32  ;;  %v1176_v35 = vadd.f32 %v3931_v1, %v1175_v33 }
 0x1f4   :  { %v2267_v36 = vpop.f32.mrf.mxu0  ;;  %v2585_v37 = vpop.f32.mrf.mxu1 }
 0x1f5   :  { %v1455_v38 = vmax.f32 %v646_v34, 0.0  ;;  %v1561_v39 = vmax.f32 %v1176_v35, 0.0  ;;  %v4474_v35 = vld [vmem:[#allocation4] ss:$0 sm:$0xff] }
 0x1f6   :  { %v650_v40 = vpop.f32.mrf.mxu0  ;;  %v1180_v41 = vpop.f32.mrf.mxu1 }
 0x1f7   :  { %1666 = vst [vmem:[%s4771_s3 + $0x1e8] sm:$0xff] %v1455_v38  ;;  %1772 = vst [vmem:[%s4771_s3 + $0x538] sm:$0xff] %v1561_v39  ;;  %v651_v42 = vadd.f32 %v3931_v1, %v650_v40  ;;  %v1181_v43 = vadd.f32 %v3931_v1, %v1180_v41 }
 0x1f8   :  { %v2270_v44 = vpop.f32.mrf.mxu0  ;;  %v2588_v45 = vpop.f32.mrf.mxu1 }
 0x1f9   :  { %v1456_v46 = vmax.f32 %v651_v42, 0.0  ;;  %v1562_v47 = vmax.f32 %v1181_v43, 0.0 }
 0x1fa   :  { %v655_v48 = vpop.f32.mrf.mxu0  ;;  %v1185_v49 = vpop.f32.mrf.mxu1 }
 0x1fb   :  { %1667 = vst [vmem:[%s4771_s3 + $0x1f0] sm:$0xff] %v1456_v46  ;;  %1773 = vst [vmem:[%s4771_s3 + $0x540] sm:$0xff] %v1562_v47  ;;  %v656_v50 = vadd.f32 %v3931_v1, %v655_v48  ;;  %v1186_v51 = vadd.f32 %v3931_v1, %v1185_v49 }
 0x1fc   :  { %v2273_v53 = vpop.f32.mrf.mxu0  ;;  %v2591_v54 = vpop.f32.mrf.mxu1 }
 0x1fd   :  { %v1457_v55 = vmax.f32 %v656_v50, 0.0  ;;  %v1563_v56 = vmax.f32 %v1186_v51, 0.0 }
 0x1fe   :  { %v660_v57 = vpop.f32.mrf.mxu0  ;;  %v1190_v58 = vpop.f32.mrf.mxu1 }
 0x1ff   :  { %1668 = vst [vmem:[%s4771_s3 + $0x1f8] sm:$0xff] %v1457_v55  ;;  %1774 = vst [vmem:[%s4771_s3 + $0x548] sm:$0xff] %v1563_v56  ;;  %v661_v59 = vadd.f32 %v3931_v1, %v660_v57  ;;  %v1191_v60 = vadd.f32 %v3931_v1, %v1190_v58 }
 0x200   :  { %v2276_v61 = vpop.f32.mrf.mxu0  ;;  %v2594_v62 = vpop.f32.mrf.mxu1 }
 0x201   :  { %v1458_v63 = vmax.f32 %v661_v59, 0.0  ;;  %v1564_v52 = vmax.f32 %v1191_v60, 0.0 }
 0x202   :  { %v665_v2 = vpop.f32.mrf.mxu0  ;;  %v1195_v0 = vpop.f32.mrf.mxu1 }
 0x203   :  { %1669 = vst [vmem:[%s4771_s3 + $0x200] sm:$0xff] %v1458_v63  ;;  %1775 = vst [vmem:[%s4771_s3 + $0x550] sm:$0xff] %v1564_v52  ;;  %v666_v3 = vadd.f32 %v3931_v1, %v665_v2  ;;  %v1196_v4 = vadd.f32 %v3931_v1, %v1195_v0 }
 0x204   :  { %v2279_v5 = vpop.f32.mrf.mxu0  ;;  %v2597_v6 = vpop.f32.mrf.mxu1 }
 0x205   :  { %v1459_v7 = vmax.f32 %v666_v3, 0.0  ;;  %v1565_v8 = vmax.f32 %v1196_v4, 0.0 }
 0x206   :  { %v670_v9 = vpop.f32.mrf.mxu0  ;;  %v1200_v10 = vpop.f32.mrf.mxu1 }
 0x207   :  { %1670 = vst [vmem:[%s4771_s3 + $0x208] sm:$0xff] %v1459_v7  ;;  %1776 = vst [vmem:[%s4771_s3 + $0x558] sm:$0xff] %v1565_v8  ;;  %v671_v11 = vadd.f32 %v3931_v1, %v670_v9  ;;  %v1201_v12 = vadd.f32 %v3931_v1, %v1200_v10 }
 0x208   :  { %v2282_v13 = vpop.f32.mrf.mxu0  ;;  %v2600_v14 = vpop.f32.mrf.mxu1 }
 0x209   :  { %v1460_v15 = vmax.f32 %v671_v11, 0.0  ;;  %v1566_v16 = vmax.f32 %v1201_v12, 0.0 }
 0x20a   :  { %v675_v17 = vpop.f32.mrf.mxu0  ;;  %v1205_v18 = vpop.f32.mrf.mxu1 }
 0x20b   :  { %1671 = vst [vmem:[%s4771_s3 + $0x210] sm:$0xff] %v1460_v15  ;;  %1777 = vst [vmem:[%s4771_s3 + $0x560] sm:$0xff] %v1566_v16  ;;  %v676_v19 = vadd.f32 %v3931_v1, %v675_v17  ;;  %v1206_v20 = vadd.f32 %v3931_v1, %v1205_v18 }
 0x20c   :  { %v2285_v21 = vpop.f32.mrf.mxu0  ;;  %v2603_v22 = vpop.f32.mrf.mxu1 }
 0x20d   :  { %v1461_v23 = vmax.f32 %v676_v19, 0.0  ;;  %v1567_v24 = vmax.f32 %v1206_v20, 0.0 }
 0x20e   :  { %v680_v25 = vpop.f32.mrf.mxu0  ;;  %v1210_v26 = vpop.f32.mrf.mxu1 }
 0x20f   :  { %1672 = vst [vmem:[%s4771_s3 + $0x218] sm:$0xff] %v1461_v23  ;;  %1778 = vst [vmem:[%s4771_s3 + $0x568] sm:$0xff] %v1567_v24  ;;  %v681_v27 = vadd.f32 %v3931_v1, %v680_v25  ;;  %v1211_v28 = vadd.f32 %v3931_v1, %v1210_v26 }
 0x210   :  { %v2288_v29 = vpop.f32.mrf.mxu0  ;;  %v2606_v30 = vpop.f32.mrf.mxu1 }
 0x211   :  { %v1462_v31 = vmax.f32 %v681_v27, 0.0  ;;  %v1568_v32 = vmax.f32 %v1211_v28, 0.0 }
 0x212   :  { %v685_v33 = vpop.f32.mrf.mxu0  ;;  %v1215_v34 = vpop.f32.mrf.mxu1 }
 0x213   :  { %1673 = vst [vmem:[%s4771_s3 + $0x220] sm:$0xff] %v1462_v31  ;;  %1779 = vst [vmem:[%s4771_s3 + $0x570] sm:$0xff] %v1568_v32  ;;  %v686_v36 = vadd.f32 %v4474_v35, %v685_v33  ;;  %v1216_v1 = vadd.f32 %v4474_v35, %v1215_v34 }
 0x214   :  { %v2291_v37 = vpop.f32.mrf.mxu0  ;;  %v2609_v38 = vpop.f32.mrf.mxu1 }
 0x215   :  { %v1463_v39 = vmax.f32 %v686_v36, 0.0  ;;  %v1569_v40 = vmax.f32 %v1216_v1, 0.0 }
 0x216   :  { %v690_v41 = vpop.f32.mrf.mxu0  ;;  %v1220_v42 = vpop.f32.mrf.mxu1 }
 0x217   :  { %1674 = vst [vmem:[%s4771_s3 + $0x228] sm:$0xff] %v1463_v39  ;;  %1780 = vst [vmem:[%s4771_s3 + $0x578] sm:$0xff] %v1569_v40  ;;  %v691_v43 = vadd.f32 %v4474_v35, %v690_v41  ;;  %v1221_v44 = vadd.f32 %v4474_v35, %v1220_v42 }
 0x218   :  { %v2294_v45 = vpop.f32.mrf.mxu0  ;;  %v2612_v46 = vpop.f32.mrf.mxu1 }
 0x219   :  { %v1464_v47 = vmax.f32 %v691_v43, 0.0  ;;  %v1570_v48 = vmax.f32 %v1221_v44, 0.0 }
 0x21a   :  { %v695_v49 = vpop.f32.mrf.mxu0  ;;  %v1225_v50 = vpop.f32.mrf.mxu1 }
 0x21b   :  { %1675 = vst [vmem:[%s4771_s3 + $0x230] sm:$0xff] %v1464_v47  ;;  %1781 = vst [vmem:[%s4771_s3 + $0x580] sm:$0xff] %v1570_v48  ;;  %v696_v51 = vadd.f32 %v4474_v35, %v695_v49  ;;  %v1226_v53 = vadd.f32 %v4474_v35, %v1225_v50 }
 0x21c   :  { %v2297_v54 = vpop.f32.mrf.mxu0  ;;  %v2615_v55 = vpop.f32.mrf.mxu1 }
 0x21d   :  { %v1465_v56 = vmax.f32 %v696_v51, 0.0  ;;  %v1571_v57 = vmax.f32 %v1226_v53, 0.0 }
 0x21e   :  { %v700_v58 = vpop.f32.mrf.mxu0  ;;  %v1230_v59 = vpop.f32.mrf.mxu1 }
 0x21f   :  { %1676 = vst [vmem:[%s4771_s3 + $0x238] sm:$0xff] %v1465_v56  ;;  %1782 = vst [vmem:[%s4771_s3 + $0x588] sm:$0xff] %v1571_v57  ;;  %v701_v60 = vadd.f32 %v4474_v35, %v700_v58  ;;  %v1231_v61 = vadd.f32 %v4474_v35, %v1230_v59 }
 0x220   :  { %v2300_v62 = vpop.f32.mrf.mxu0  ;;  %v2618_v63 = vpop.f32.mrf.mxu1 }
 0x221   :  { %v1466_v52 = vmax.f32 %v701_v60, 0.0  ;;  %v1572_v2 = vmax.f32 %v1231_v61, 0.0 }
 0x222   :  { %v705_v0 = vpop.f32.mrf.mxu0  ;;  %v1235_v3 = vpop.f32.mrf.mxu1 }
 0x223   :  { %1677 = vst [vmem:[%s4771_s3 + $0x240] sm:$0xff] %v1466_v52  ;;  %1783 = vst [vmem:[%s4771_s3 + $0x590] sm:$0xff] %v1572_v2  ;;  %v706_v4 = vadd.f32 %v4474_v35, %v705_v0  ;;  %v1236_v5 = vadd.f32 %v4474_v35, %v1235_v3 }
 0x224   :  { %v2303_v6 = vpop.f32.mrf.mxu0  ;;  %v2621_v7 = vpop.f32.mrf.mxu1 }
 0x225   :  { %v1467_v8 = vmax.f32 %v706_v4, 0.0  ;;  %v1573_v9 = vmax.f32 %v1236_v5, 0.0 }
 0x226   :  { %v710_v10 = vpop.f32.mrf.mxu0  ;;  %v1240_v11 = vpop.f32.mrf.mxu1 }
 0x227   :  { %1678 = vst [vmem:[%s4771_s3 + $0x248] sm:$0xff] %v1467_v8  ;;  %1784 = vst [vmem:[%s4771_s3 + $0x598] sm:$0xff] %v1573_v9  ;;  %v711_v12 = vadd.f32 %v4474_v35, %v710_v10  ;;  %v1241_v13 = vadd.f32 %v4474_v35, %v1240_v11 }
 0x228   :  { %v2306_v14 = vpop.f32.mrf.mxu0  ;;  %v2624_v15 = vpop.f32.mrf.mxu1 }
 0x229   :  { %v1468_v16 = vmax.f32 %v711_v12, 0.0  ;;  %v1574_v17 = vmax.f32 %v1241_v13, 0.0 }
 0x22a   :  { %v715_v18 = vpop.f32.mrf.mxu0  ;;  %v1245_v19 = vpop.f32.mrf.mxu1 }
 0x22b   :  { %1679 = vst [vmem:[%s4771_s3 + $0x250] sm:$0xff] %v1468_v16  ;;  %1785 = vst [vmem:[%s4771_s3 + $0x5a0] sm:$0xff] %v1574_v17  ;;  %v716_v20 = vadd.f32 %v4474_v35, %v715_v18  ;;  %v1246_v21 = vadd.f32 %v4474_v35, %v1245_v19 }
 0x22c   :  { %v2309_v22 = vpop.f32.mrf.mxu0  ;;  %v2627_v23 = vpop.f32.mrf.mxu1 }
 0x22d   :  { %v1469_v24 = vmax.f32 %v716_v20, 0.0  ;;  %v1575_v25 = vmax.f32 %v1246_v21, 0.0 }
 0x22e   :  { %v720_v26 = vpop.f32.mrf.mxu0  ;;  %v1250_v27 = vpop.f32.mrf.mxu1 }
 0x22f   :  { %1680 = vst [vmem:[%s4771_s3 + $0x258] sm:$0xff] %v1469_v24  ;;  %1786 = vst [vmem:[%s4771_s3 + $0x5a8] sm:$0xff] %v1575_v25  ;;  %v721_v28 = vadd.f32 %v4474_v35, %v720_v26  ;;  %v1251_v29 = vadd.f32 %v4474_v35, %v1250_v27 }
 0x230   :  { %v2312_v30 = vpop.f32.mrf.mxu0  ;;  %v2630_v31 = vpop.f32.mrf.mxu1 }
 0x231   :  { %v1470_v32 = vmax.f32 %v721_v28, 0.0  ;;  %v1576_v33 = vmax.f32 %v1251_v29, 0.0 }
 0x232   :  { %v725_v34 = vpop.f32.mrf.mxu0  ;;  %v1255_v36 = vpop.f32.mrf.mxu1 }
 0x233   :  { %1681 = vst [vmem:[%s4771_s3 + $0x260] sm:$0xff] %v1470_v32  ;;  %1787 = vst [vmem:[%s4771_s3 + $0x5b0] sm:$0xff] %v1576_v33  ;;  %v726_v1 = vadd.f32 %v4474_v35, %v725_v34  ;;  %v1256_v37 = vadd.f32 %v4474_v35, %v1255_v36 }
 0x234   :  { %v2315_v38 = vpop.f32.mrf.mxu0  ;;  %v2633_v39 = vpop.f32.mrf.mxu1 }
 0x235   :  { %v1471_v40 = vmax.f32 %v726_v1, 0.0  ;;  %v1577_v41 = vmax.f32 %v1256_v37, 0.0 }
 0x236   :  { %v730_v42 = vpop.f32.mrf.mxu0  ;;  %v1260_v43 = vpop.f32.mrf.mxu1 }
 0x237   :  { %1682 = vst [vmem:[%s4771_s3 + $0x268] sm:$0xff] %v1471_v40  ;;  %1788 = vst [vmem:[%s4771_s3 + $0x5b8] sm:$0xff] %v1577_v41  ;;  %v731_v44 = vadd.f32 %v4474_v35, %v730_v42  ;;  %v1261_v45 = vadd.f32 %v4474_v35, %v1260_v43 }
 0x238   :  { %v2318_v46 = vpop.f32.mrf.mxu0  ;;  %v2636_v47 = vpop.f32.mrf.mxu1 }
 0x239   :  { %v1472_v48 = vmax.f32 %v731_v44, 0.0  ;;  %v1578_v49 = vmax.f32 %v1261_v45, 0.0 }
 0x23a   :  { %v735_v50 = vpop.f32.mrf.mxu0  ;;  %v1265_v51 = vpop.f32.mrf.mxu1 }
 0x23b   :  { %1683 = vst [vmem:[%s4771_s3 + $0x270] sm:$0xff] %v1472_v48  ;;  %1789 = vst [vmem:[%s4771_s3 + $0x5c0] sm:$0xff] %v1578_v49  ;;  %v736_v53 = vadd.f32 %v4474_v35, %v735_v50  ;;  %v1266_v54 = vadd.f32 %v4474_v35, %v1265_v51 }
 0x23c   :  { %v2321_v55 = vpop.f32.mrf.mxu0  ;;  %v2639_v56 = vpop.f32.mrf.mxu1 }
 0x23d   :  { %v1473_v57 = vmax.f32 %v736_v53, 0.0  ;;  %v1579_v58 = vmax.f32 %v1266_v54, 0.0 }
 0x23e   :  { %v740_v59 = vpop.f32.mrf.mxu0  ;;  %v1270_v60 = vpop.f32.mrf.mxu1 }
 0x23f   :  { %1684 = vst [vmem:[%s4771_s3 + $0x278] sm:$0xff] %v1473_v57  ;;  %1790 = vst [vmem:[%s4771_s3 + $0x5c8] sm:$0xff] %v1579_v58  ;;  %v741_v61 = vadd.f32 %v4474_v35, %v740_v59  ;;  %v1271_v62 = vadd.f32 %v4474_v35, %v1270_v60 }
 0x240   :  { %v2324_v63 = vpop.f32.mrf.mxu0  ;;  %v2642_v52 = vpop.f32.mrf.mxu1 }
 0x241   :  { %v1474_v2 = vmax.f32 %v741_v61, 0.0  ;;  %v1580_v0 = vmax.f32 %v1271_v62, 0.0 }
 0x242   :  { %v745_v3 = vpop.f32.mrf.mxu0  ;;  %v1275_v4 = vpop.f32.mrf.mxu1 }
 0x243   :  { %1685 = vst [vmem:[%s4771_s3 + $0x280] sm:$0xff] %v1474_v2  ;;  %1791 = vst [vmem:[%s4771_s3 + $0x5d0] sm:$0xff] %v1580_v0  ;;  %v746_v5 = vadd.f32 %v4474_v35, %v745_v3  ;;  %v1276_v6 = vadd.f32 %v4474_v35, %v1275_v4 }
 0x244   :  { %v2327_v7 = vpop.f32.mrf.mxu0  ;;  %v2645_v8 = vpop.f32.mrf.mxu1 }
 0x245   :  { %v1475_v9 = vmax.f32 %v746_v5, 0.0  ;;  %v1581_v10 = vmax.f32 %v1276_v6, 0.0 }
 0x246   :  { %v750_v11 = vpop.f32.mrf.mxu0  ;;  %v1280_v12 = vpop.f32.mrf.mxu1 }
 0x247   :  { %1686 = vst [vmem:[%s4771_s3 + $0x288] sm:$0xff] %v1475_v9  ;;  %1792 = vst [vmem:[%s4771_s3 + $0x5d8] sm:$0xff] %v1581_v10  ;;  %v751_v13 = vadd.f32 %v4474_v35, %v750_v11  ;;  %v1281_v14 = vadd.f32 %v4474_v35, %v1280_v12 }
 0x248   :  { %v2330_v15 = vpop.f32.mrf.mxu0  ;;  %v2648_v16 = vpop.f32.mrf.mxu1 }
 0x249   :  { %v1476_v17 = vmax.f32 %v751_v13, 0.0  ;;  %v1582_v18 = vmax.f32 %v1281_v14, 0.0 }
 0x24a   :  { %v755_v19 = vpop.f32.mrf.mxu0  ;;  %v1285_v20 = vpop.f32.mrf.mxu1 }
 0x24b   :  { %1687 = vst [vmem:[%s4771_s3 + $0x290] sm:$0xff] %v1476_v17  ;;  %1793 = vst [vmem:[%s4771_s3 + $0x5e0] sm:$0xff] %v1582_v18  ;;  %v756_v21 = vadd.f32 %v4474_v35, %v755_v19  ;;  %v1286_v22 = vadd.f32 %v4474_v35, %v1285_v20 }
 0x24c   :  { %v2333_v23 = vpop.f32.mrf.mxu0  ;;  %v2651_v24 = vpop.f32.mrf.mxu1 }
 0x24d   :  { %v1477_v25 = vmax.f32 %v756_v21, 0.0  ;;  %v1583_v26 = vmax.f32 %v1286_v22, 0.0 }
 0x24e   :  { %v760_v27 = vpop.f32.mrf.mxu0  ;;  %v1290_v28 = vpop.f32.mrf.mxu1 }
 0x24f   :  { %1688 = vst [vmem:[%s4771_s3 + $0x298] sm:$0xff] %v1477_v25  ;;  %1794 = vst [vmem:[%s4771_s3 + $0x5e8] sm:$0xff] %v1583_v26  ;;  %v761_v29 = vadd.f32 %v4474_v35, %v760_v27  ;;  %v1291_v30 = vadd.f32 %v4474_v35, %v1290_v28 }
 0x250   :  { %v2336_v31 = vpop.f32.mrf.mxu0  ;;  %v2654_v32 = vpop.f32.mrf.mxu1 }
 0x251   :  { %v1478_v33 = vmax.f32 %v761_v29, 0.0  ;;  %v1584_v34 = vmax.f32 %v1291_v30, 0.0 }
 0x252   :  { %v765_v36 = vpop.f32.mrf.mxu0  ;;  %v1295_v1 = vpop.f32.mrf.mxu1 }
 0x253   :  { %1689 = vst [vmem:[%s4771_s3 + $0x2a0] sm:$0xff] %v1478_v33  ;;  %1795 = vst [vmem:[%s4771_s3 + $0x5f0] sm:$0xff] %v1584_v34  ;;  %v766_v37 = vadd.f32 %v4474_v35, %v765_v36  ;;  %v1296_v38 = vadd.f32 %v4474_v35, %v1295_v1 }
 0x254   :  { %v2339_v39 = vpop.f32.mrf.mxu0  ;;  %v2657_v40 = vpop.f32.mrf.mxu1 }
 0x255   :  { %v1479_v41 = vmax.f32 %v766_v37, 0.0  ;;  %v1585_v42 = vmax.f32 %v1296_v38, 0.0 }
 0x256   :  { %v770_v43 = vpop.f32.mrf.mxu0  ;;  %v1300_v44 = vpop.f32.mrf.mxu1 }
 0x257   :  { %1690 = vst [vmem:[%s4771_s3 + $0x2a8] sm:$0xff] %v1479_v41  ;;  %1796 = vst [vmem:[%s4771_s3 + $0x5f8] sm:$0xff] %v1585_v42  ;;  %v771_v45 = vadd.f32 %v4474_v35, %v770_v43  ;;  %v1301_v46 = vadd.f32 %v4474_v35, %v1300_v44 }
 0x258   :  { %v2342_v47 = vpop.f32.mrf.mxu0  ;;  %v2660_v48 = vpop.f32.mrf.mxu1 }
 0x259   :  { %v1480_v49 = vmax.f32 %v771_v45, 0.0  ;;  %v1586_v50 = vmax.f32 %v1301_v46, 0.0 }
 0x25a   :  { %v775_v51 = vpop.f32.mrf.mxu0  ;;  %v1305_v53 = vpop.f32.mrf.mxu1 }
 0x25b   :  { %1691 = vst [vmem:[%s4771_s3 + $0x2b0] sm:$0xff] %v1480_v49  ;;  %1797 = vst [vmem:[%s4771_s3 + $0x600] sm:$0xff] %v1586_v50  ;;  %v776_v54 = vadd.f32 %v4474_v35, %v775_v51  ;;  %v1306_v55 = vadd.f32 %v4474_v35, %v1305_v53 }
 0x25c   :  { %v2345_v56 = vpop.f32.mrf.mxu0  ;;  %v2663_v57 = vpop.f32.mrf.mxu1 }
 0x25d   :  { %v1481_v58 = vmax.f32 %v776_v54, 0.0  ;;  %v1587_v59 = vmax.f32 %v1306_v55, 0.0 }
 0x25e   :  { %v780_v60 = vpop.f32.mrf.mxu0  ;;  %v1310_v61 = vpop.f32.mrf.mxu1 }
 0x25f   :  { %1692 = vst [vmem:[%s4771_s3 + $0x2b8] sm:$0xff] %v1481_v58  ;;  %1798 = vst [vmem:[%s4771_s3 + $0x608] sm:$0xff] %v1587_v59  ;;  %v781_v62 = vadd.f32 %v4474_v35, %v780_v60  ;;  %v1311_v63 = vadd.f32 %v4474_v35, %v1310_v61 }
 0x260   :  { %v2348_v52 = vpop.f32.mrf.mxu0  ;;  %v2666_v2 = vpop.f32.mrf.mxu1 }
 0x261   :  { %v1482_v0 = vmax.f32 %v781_v62, 0.0  ;;  %v1588_v3 = vmax.f32 %v1311_v63, 0.0 }
 0x262   :  { %v785_v4 = vpop.f32.mrf.mxu0  ;;  %v1315_v5 = vpop.f32.mrf.mxu1 }
 0x263   :  { %1693 = vst [vmem:[%s4771_s3 + $0x2c0] sm:$0xff] %v1482_v0  ;;  %1799 = vst [vmem:[%s4771_s3 + $0x610] sm:$0xff] %v1588_v3  ;;  %v786_v6 = vadd.f32 %v4474_v35, %v785_v4  ;;  %v1316_v7 = vadd.f32 %v4474_v35, %v1315_v5 }
 0x264   :  { %v2351_v8 = vpop.f32.mrf.mxu0  ;;  %v2669_v9 = vpop.f32.mrf.mxu1 }
 0x265   :  { %v1483_v10 = vmax.f32 %v786_v6, 0.0  ;;  %v1589_v11 = vmax.f32 %v1316_v7, 0.0 }
 0x266   :  { %v790_v12 = vpop.f32.mrf.mxu0  ;;  %v1320_v13 = vpop.f32.mrf.mxu1 }
 0x267   :  { %1694 = vst [vmem:[%s4771_s3 + $0x2c8] sm:$0xff] %v1483_v10  ;;  %1800 = vst [vmem:[%s4771_s3 + $0x618] sm:$0xff] %v1589_v11  ;;  %v791_v14 = vadd.f32 %v4474_v35, %v790_v12  ;;  %v1321_v15 = vadd.f32 %v4474_v35, %v1320_v13 }
 0x268   :  { %v2354_v16 = vpop.f32.mrf.mxu0  ;;  %v2672_v17 = vpop.f32.mrf.mxu1 }
 0x269   :  { %v1484_v18 = vmax.f32 %v791_v14, 0.0  ;;  %v1590_v19 = vmax.f32 %v1321_v15, 0.0 }
 0x26a   :  { %v795_v20 = vpop.f32.mrf.mxu0  ;;  %v1325_v21 = vpop.f32.mrf.mxu1 }
 0x26b   :  { %1695 = vst [vmem:[%s4771_s3 + $0x2d0] sm:$0xff] %v1484_v18  ;;  %1801 = vst [vmem:[%s4771_s3 + $0x620] sm:$0xff] %v1590_v19  ;;  %v796_v22 = vadd.f32 %v4474_v35, %v795_v20  ;;  %v1326_v23 = vadd.f32 %v4474_v35, %v1325_v21 }
 0x26c   :  { %v2357_v24 = vpop.f32.mrf.mxu0  ;;  %v2675_v25 = vpop.f32.mrf.mxu1 }
 0x26d   :  { %v1485_v26 = vmax.f32 %v796_v22, 0.0  ;;  %v1591_v27 = vmax.f32 %v1326_v23, 0.0 }
 0x26e   :  { %v800_v28 = vpop.f32.mrf.mxu0  ;;  %v1330_v29 = vpop.f32.mrf.mxu1 }
 0x26f   :  { %1696 = vst [vmem:[%s4771_s3 + $0x2d8] sm:$0xff] %v1485_v26  ;;  %1802 = vst [vmem:[%s4771_s3 + $0x628] sm:$0xff] %v1591_v27  ;;  %v801_v30 = vadd.f32 %v4474_v35, %v800_v28  ;;  %v1331_v31 = vadd.f32 %v4474_v35, %v1330_v29 }
 0x270   :  { %v2360_v32 = vpop.f32.mrf.mxu0  ;;  %v2678_v33 = vpop.f32.mrf.mxu1 }
 0x271   :  { %v1486_v34 = vmax.f32 %v801_v30, 0.0  ;;  %v1592_v36 = vmax.f32 %v1331_v31, 0.0 }
 0x272   :  { %v805_v1 = vpop.f32.mrf.mxu0  ;;  %v1335_v37 = vpop.f32.mrf.mxu1 }
 0x273   :  { %1697 = vst [vmem:[%s4771_s3 + $0x2e0] sm:$0xff] %v1486_v34  ;;  %1803 = vst [vmem:[%s4771_s3 + $0x630] sm:$0xff] %v1592_v36  ;;  %v806_v38 = vadd.f32 %v4474_v35, %v805_v1  ;;  %v1336_v39 = vadd.f32 %v4474_v35, %v1335_v37 }
 0x274   :  { %v2363_v40 = vpop.f32.mrf.mxu0  ;;  %v2681_v41 = vpop.f32.mrf.mxu1 }
 0x275   :  { %v1487_v42 = vmax.f32 %v806_v38, 0.0  ;;  %v1593_v43 = vmax.f32 %v1336_v39, 0.0 }
 0x276   :  { %v810_v44 = vpop.f32.mrf.mxu0  ;;  %v1340_v45 = vpop.f32.mrf.mxu1 }
 0x277   :  { %1698 = vst [vmem:[%s4771_s3 + $0x2e8] sm:$0xff] %v1487_v42  ;;  %1804 = vst [vmem:[%s4771_s3 + $0x638] sm:$0xff] %v1593_v43  ;;  %v811_v46 = vadd.f32 %v4474_v35, %v810_v44  ;;  %v1341_v47 = vadd.f32 %v4474_v35, %v1340_v45 }
 0x278   :  { %v2366_v48 = vpop.f32.mrf.mxu0  ;;  %v2684_v49 = vpop.f32.mrf.mxu1 }
 0x279   :  { %v1488_v50 = vmax.f32 %v811_v46, 0.0  ;;  %v1594_v51 = vmax.f32 %v1341_v47, 0.0 }
 0x27a   :  { %v815_v53 = vpop.f32.mrf.mxu0  ;;  %v1345_v54 = vpop.f32.mrf.mxu1 }
 0x27b   :  { %1699 = vst [vmem:[%s4771_s3 + $0x2f0] sm:$0xff] %v1488_v50  ;;  %1805 = vst [vmem:[%s4771_s3 + $0x640] sm:$0xff] %v1594_v51  ;;  %v816_v55 = vadd.f32 %v4474_v35, %v815_v53  ;;  %v1346_v56 = vadd.f32 %v4474_v35, %v1345_v54 }
 0x27c   :  { %v2369_v57 = vpop.f32.mrf.mxu0  ;;  %v2687_v58 = vpop.f32.mrf.mxu1 }
 0x27d   :  { %v1489_v59 = vmax.f32 %v816_v55, 0.0  ;;  %v1595_v60 = vmax.f32 %v1346_v56, 0.0 }
 0x27e   :  { %v820_v61 = vpop.f32.mrf.mxu0  ;;  %v1350_v62 = vpop.f32.mrf.mxu1 }
 0x27f   :  { %1700 = vst [vmem:[%s4771_s3 + $0x2f8] sm:$0xff] %v1489_v59  ;;  %1806 = vst [vmem:[%s4771_s3 + $0x648] sm:$0xff] %v1595_v60  ;;  %v821_v63 = vadd.f32 %v4474_v35, %v820_v61  ;;  %v1351_v52 = vadd.f32 %v4474_v35, %v1350_v62 }
 0x280   :  { %v2372_v2 = vpop.f32.mrf.mxu0  ;;  %v2690_v0 = vpop.f32.mrf.mxu1 }
 0x281   :  { %v1490_v3 = vmax.f32 %v821_v63, 0.0  ;;  %v1596_v4 = vmax.f32 %v1351_v52, 0.0 }
 0x282   :  { %v825_v5 = vpop.f32.mrf.mxu0  ;;  %v1355_v6 = vpop.f32.mrf.mxu1 }
 0x283   :  { %1701 = vst [vmem:[%s4771_s3 + $0x300] sm:$0xff] %v1490_v3  ;;  %1807 = vst [vmem:[%s4771_s3 + $0x650] sm:$0xff] %v1596_v4  ;;  %v826_v7 = vadd.f32 %v4474_v35, %v825_v5  ;;  %v1356_v8 = vadd.f32 %v4474_v35, %v1355_v6 }
 0x284   :  { %v2375_v9 = vpop.f32.mrf.mxu0  ;;  %v2693_v10 = vpop.f32.mrf.mxu1 }
 0x285   :  { %v1491_v11 = vmax.f32 %v826_v7, 0.0  ;;  %v1597_v12 = vmax.f32 %v1356_v8, 0.0 }
 0x286   :  { %v830_v13 = vpop.f32.mrf.mxu0  ;;  %v1360_v14 = vpop.f32.mrf.mxu1 }
 0x287   :  { %1702 = vst [vmem:[%s4771_s3 + $0x308] sm:$0xff] %v1491_v11  ;;  %1808 = vst [vmem:[%s4771_s3 + $0x658] sm:$0xff] %v1597_v12  ;;  %v831_v15 = vadd.f32 %v4474_v35, %v830_v13  ;;  %v1361_v16 = vadd.f32 %v4474_v35, %v1360_v14 }
 0x288   :  { %v2378_v17 = vpop.f32.mrf.mxu0  ;;  %v2696_v18 = vpop.f32.mrf.mxu1 }
 0x289   :  { %v1492_v19 = vmax.f32 %v831_v15, 0.0  ;;  %v1598_v20 = vmax.f32 %v1361_v16, 0.0 }
 0x28a   :  { %v835_v21 = vpop.f32.mrf.mxu0  ;;  %v1365_v22 = vpop.f32.mrf.mxu1 }
 0x28b   :  { %1703 = vst [vmem:[%s4771_s3 + $0x310] sm:$0xff] %v1492_v19  ;;  %1809 = vst [vmem:[%s4771_s3 + $0x660] sm:$0xff] %v1598_v20  ;;  %v836_v23 = vadd.f32 %v4474_v35, %v835_v21  ;;  %v1366_v24 = vadd.f32 %v4474_v35, %v1365_v22 }
 0x28c   :  { %v2381_v25 = vpop.f32.mrf.mxu0  ;;  %v2699_v26 = vpop.f32.mrf.mxu1 }
 0x28d   :  { %v1493_v27 = vmax.f32 %v836_v23, 0.0  ;;  %v1599_v28 = vmax.f32 %v1366_v24, 0.0 }
 0x28e   :  { %v840_v29 = vpop.f32.mrf.mxu0  ;;  %v1370_v30 = vpop.f32.mrf.mxu1 }
 0x28f   :  { %1704 = vst [vmem:[%s4771_s3 + $0x318] sm:$0xff] %v1493_v27  ;;  %1810 = vst [vmem:[%s4771_s3 + $0x668] sm:$0xff] %v1599_v28  ;;  %v841_v31 = vadd.f32 %v4474_v35, %v840_v29  ;;  %v1371_v32 = vadd.f32 %v4474_v35, %v1370_v30 }
 0x290   :  { %v2384_v33 = vpop.f32.mrf.mxu0  ;;  %v2702_v34 = vpop.f32.mrf.mxu1 }
 0x291   :  { %v1494_v36 = vmax.f32 %v841_v31, 0.0  ;;  %v1600_v1 = vmax.f32 %v1371_v32, 0.0 }
 0x292   :  { %v845_v37 = vpop.f32.mrf.mxu0  ;;  %v1375_v38 = vpop.f32.mrf.mxu1 }
 0x293   :  { %1705 = vst [vmem:[%s4771_s3 + $0x320] sm:$0xff] %v1494_v36  ;;  %1811 = vst [vmem:[%s4771_s3 + $0x670] sm:$0xff] %v1600_v1  ;;  %v846_v39 = vadd.f32 %v4474_v35, %v845_v37  ;;  %v1376_v40 = vadd.f32 %v4474_v35, %v1375_v38 }
 0x294   :  { %v2387_v41 = vpop.f32.mrf.mxu0  ;;  %v2705_v42 = vpop.f32.mrf.mxu1 }
 0x295   :  { %v1495_v43 = vmax.f32 %v846_v39, 0.0  ;;  %v1601_v44 = vmax.f32 %v1376_v40, 0.0 }
 0x296   :  { %v850_v45 = vpop.f32.mrf.mxu0  ;;  %v1380_v46 = vpop.f32.mrf.mxu1 }
 0x297   :  { %1706 = vst [vmem:[%s4771_s3 + $0x328] sm:$0xff] %v1495_v43  ;;  %1812 = vst [vmem:[%s4771_s3 + $0x678] sm:$0xff] %v1601_v44  ;;  %v851_v47 = vadd.f32 %v4474_v35, %v850_v45  ;;  %v1381_v48 = vadd.f32 %v4474_v35, %v1380_v46 }
 0x298   :  { %v2390_v49 = vpop.f32.mrf.mxu0  ;;  %v2708_v50 = vpop.f32.mrf.mxu1 }
 0x299   :  { %v1496_v51 = vmax.f32 %v851_v47, 0.0  ;;  %v1602_v53 = vmax.f32 %v1381_v48, 0.0 }
 0x29a   :  { %v855_v54 = vpop.f32.mrf.mxu0  ;;  %v1385_v55 = vpop.f32.mrf.mxu1 }
 0x29b   :  { %1707 = vst [vmem:[%s4771_s3 + $0x330] sm:$0xff] %v1496_v51  ;;  %1813 = vst [vmem:[%s4771_s3 + $0x680] sm:$0xff] %v1602_v53  ;;  %v856_v56 = vadd.f32 %v4474_v35, %v855_v54  ;;  %v1386_v57 = vadd.f32 %v4474_v35, %v1385_v55 }
 0x29c   :  { %v2393_v58 = vpop.f32.mrf.mxu0  ;;  %v2711_v59 = vpop.f32.mrf.mxu1 }
 0x29d   :  { %v1497_v60 = vmax.f32 %v856_v56, 0.0  ;;  %v1603_v61 = vmax.f32 %v1386_v57, 0.0 }
 0x29e   :  { %v860_v62 = vpop.f32.mrf.mxu0  ;;  %v1390_v63 = vpop.f32.mrf.mxu1 }
 0x29f   :  { %1708 = vst [vmem:[%s4771_s3 + $0x338] sm:$0xff] %v1497_v60  ;;  %1814 = vst [vmem:[%s4771_s3 + $0x688] sm:$0xff] %v1603_v61  ;;  %v861_v52 = vadd.f32 %v4474_v35, %v860_v62  ;;  %v1391_v2 = vadd.f32 %v4474_v35, %v1390_v63 }
 0x2a0   :  { %v2396_v0 = vpop.f32.mrf.mxu0  ;;  %v2714_v3 = vpop.f32.mrf.mxu1 }
 0x2a1   :  { %v1498_v4 = vmax.f32 %v861_v52, 0.0  ;;  %v1604_v5 = vmax.f32 %v1391_v2, 0.0 }
 0x2a2   :  { %v865_v6 = vpop.f32.mrf.mxu0 }
 0x2a3   :  { %1709 = vst [vmem:[%s4771_s3 + $0x340] sm:$0xff] %v1498_v4  ;;  %1815 = vst [vmem:[%s4771_s3 + $0x690] sm:$0xff] %v1604_v5  ;;  %v866_v7 = vadd.f32 %v4474_v35, %v865_v6 }
 0x2a4   :  { %v2399_v8 = vpop.f32.mrf.mxu0 }
 0x2a5   :  { %v1499_v9 = vmax.f32 %v866_v7, 0.0 }
 0x2a7   :  { %1710 = vst [vmem:[%s4771_s3 + $0x348] sm:$0xff] %v1499_v9 }
 0x2a8   :  { %1820 = vsyncpa [#allocation3], 1 }
 0x2a9   :  { %1821 = vsyncpa [#allocation5], 1 }

// kernel: cifar10_model_forward.3
= control target key start
LH: loop header
LB: loop body
LE: loop exit
PB: predicated region body
PF: predicated region fallthrough
CT: control target
= control target key end

     0   :  { %9 = vsyncpa [#allocation3], 0  ;;  %s16037_s0 = inlined_call_operand.vmem [shape: bf16[16,5120], index: 0, kind: input, shape index: {}]   ;;  %s16038_s1 = inlined_call_operand.hbm [shape: bf16[5120,2048], index: 1, kind: input, shape index: {}]   ;;  %s16039_s2 = inlined_call_operand.hbm [shape: f32[1,2048], index: 2, kind: input, shape index: {}]   ;;  %s16040_s3 = inlined_call_operand.hbm [shape: f32[2048,128], index: 3, kind: input, shape index: {}]   ;;  %s16041_s4 = inlined_call_operand.vmem [shape: f32[4,16,128], index: 4, kind: output, shape index: {}]  }
   0x1   :  { %11 = vsyncpa [#allocation3 + $0x1], 0 }
   0x2   :  { %12 = vsyncpa [#allocation5], 0 }
   0x3   :  { %14 = vsyncpa [#allocation5 + $0x1], 0  ;;  %s13844_s15 = smov 0   ;;  %s13846_s16 = smov 0  }
   0x4   :  { %s13848_s17 = smov 0   ;;  %s13850_s18 = smov 0  }
   0x5 LB: > { %s13863_s19 = sadd.s32 4294967295, %s13809_s18   ;;  %s13866_s20 = sadd.s32 1, %s13809_s18   ;;  %s13809_s18 = sphi %s13850_s18, %s16056_s18   ;;  %s13805_s17 = sphi %s13848_s17, %s16055_s17   ;;  %s13801_s16 = sphi %s13846_s16, %s16054_s16   ;;  %s13797_s15 = sphi %s13844_s15, %s16053_s15  }
   0x6   : > { %s45_s21 = ssub.s32 %s13809_s18, %s13866_s20  ;;  %s48_s22 = sadd.s32 1, %s13805_s17 }
   0x7   : > { %p46_p0 = scmp.eq.s32.totalorder %s45_s21, 0  ;;  %p55_p1 = scmp.ne.s32.totalorder %s13805_s17, %s13801_s16 }
   0x8   : > { %p56_p2 = scmp.eq.s32.totalorder %s13809_s18, 0  ;;  %p61_p3 = scmp.ne.s32.totalorder %s13801_s16, %s13797_s15 }
   0x9   : > { %s13876_s23 = scalar_select %p46_p0, %s13805_s17, %s48_s22  }
   0xa   : > { %p57_p4 = por %p56_p2, %p55_p1  ;;  %p62_p5 = scmp.eq.s32.totalorder %s13863_s19, 0 }
   0xb   : > { %p11728_p6 = scmp.lt.s32.totalorder %s13809_s18, 4  ;;  %s13885_s25 = sand.u32 1, %s13805_s17  }
   0xc   : > { %p13880_p7 = por %p62_p5, %p61_p3  ;;  %s11710_s26 = smul.u32 10240, %s13885_s25 }
   0xd   : > { %p13888_p8 = pnand %p11728_p6, %p57_p4  ;;  %s187_s28 = sand.u32 1, %s13809_s18  }
   0xe   : > { %s16043_s24 = scalar_select %p13880_p7, 1, 0 }
   0xf   : > { %s10297_s29 = sshll.u32 %s13885_s25, 2  ;;  %s11631_s30 = sshll.u32 %s13809_s18, 6 }
  0x10   : > { %s13898_s7 = scalar_lea.hbm %s16039_s2, %s11631_s30  ;;  %s191_s8 = scalar_lea.vmem [#allocation4], %s10297_s29 }
  0x11   : > { %s199_s9 = sshll.u32 %s191_s8, 4  ;;  %s10300_s10 = sshll.u32 %s13885_s25, 9  ;;  %s200_s9 = int_to_ptr.vmem [resolvable:$true] %s199_s9 }
  0x12   : > { %s13901_s11 = scalar_lea.sflag [#allocation5], %s187_s28  ;;  %s13687_s12 = scalar_lea.hbm %s13898_s7, 64 }
  0x13   : > { %p13688_p9 = scmp.ne.s32.totalorder %s13898_s7, %s13687_s12  ;;  %p13907_p10 = pneg %p13888_p8 }
  0x14   : > { %s13692_s21 = scalar_lea.hbm %s16039_s2, 256  ;;  %p13693_p13 = scmp.lt.s32.totalorder %s13898_s7, %s16039_s2 }
  0x15   : > { %p13690_p11 = pnand %p13907_p10, %p13688_p9  ;;  %p13694_p0 = scmp.lt.s32.totalorder %s13692_s21, %s13687_s12 }
  0x17   : > { %p13691_p12 = pneg %p13690_p11  ;;  %p13695_p1 = por %p13694_p0, %p13693_p13 }
  0x19   : > { %p13696_p2 = pnand %p13695_p1, %p13691_p12 }
  0x1b   : > { %13699 = shalt.err (!%p13696_p2)
}
  0x1c   : > { %s13700_s28 = scalar_lea.vmem %s200_s9, 64  ;;  %s13811_s30 = smov [#allocation4]  }
  0x1d   : > { %p13701_p3 = scmp.ne.s32.totalorder %s200_s9, %s13700_s28  ;;  %s13705_s5 = sshll.u32 %s13811_s30, 4  ;;  %s13706_s5 = int_to_ptr.vmem [resolvable:$false] %s13705_s5 }
  0x1e   : > { %s13707_s6 = scalar_lea.vmem %s13706_s5, 128  ;;  %p13708_p6 = scmp.lt.s32.totalorder %s200_s9, %s13706_s5 }
  0x1f   : > { %p13703_p4 = pnand %p13701_p3, %p13907_p10  ;;  %p13709_p9 = scmp.lt.s32.totalorder %s13707_s6, %s13700_s28 }
  0x21   : > { %p13704_p5 = pneg %p13703_p4  ;;  %p13710_p11 = por %p13709_p9, %p13708_p6 }
  0x23   : > { %p13711_p7 = pnand %p13710_p11, %p13704_p5 }
  0x25   : > { %13714 = shalt.err (!%p13711_p7)
}
  0x26   : > { %11724 = dma.hbm_to_vmem [thread:$0]  (!%p13888_p8), %s13898_s7, 64, %s200_s9, %s13901_s11  }
  0x27   : > { %p10303_p12 = scmp.ge.s32.totalorder %s13809_s18, 1  ;;  %p225_p13 = scmp.lt.s32.totalorder %s13809_s18, 5 }
  0x28   : > { %s11630_s12 = sshll.u32 %s13809_s18, 8  ;;  %s170_s22 = scalar_lea.vmem [#allocation2], %s11710_s26 }
  0x29   : > { %p13928_p0 = pnand %p10303_p12, %p225_p13  ;;  %s13936_s21 = scalar_lea.hbm %s16038_s1, %s11630_s12 }
  0x2a   : > { %s177_s29 = sshll.u32 %s170_s22, 4  ;;  %s167_s7 = scalar_lea.sflag [#allocation3], %s13885_s25  ;;  %s13940_s29 = int_to_ptr.vmem [resolvable:$true] %s177_s29 }
  0x2b   : > { %s16046_s8 = scalar_select %p13928_p0, 1, 0 }
  0x2c   : > { %s13715_s9 = scalar_lea.hbm %s13936_s21, 163840  ;;  %s13720_s5 = scalar_lea.hbm %s16038_s1, 655360 }
  0x2d   : > { %p13716_p7 = scmp.ne.s32.totalorder %s13936_s21, %s13715_s9  ;;  %p13721_p3 = scmp.lt.s32.totalorder %s13936_s21, %s16038_s1 }
  0x2e   : > { %p13722_p4 = scmp.lt.s32.totalorder %s13720_s5, %s13715_s9 }
  0x2f   : > { %p13718_p1 = pnand %p13716_p7, %p13907_p10 }
  0x30   : > { %p13723_p5 = por %p13722_p4, %p13721_p3 }
  0x31   : > { %p13719_p2 = pneg %p13718_p1 }
  0x33   : > { %p13724_p6 = pnand %p13723_p5, %p13719_p2 }
  0x35   : > { %13727 = shalt.err (!%p13724_p6)
}
  0x36   : > { %s13728_s26 = scalar_lea.vmem %s13940_s29, 163840  ;;  %s13812_s14 = smov [#allocation2]  }
  0x37   : > { %p13729_p9 = scmp.ne.s32.totalorder %s13940_s29, %s13728_s26  ;;  %s13733_s15 = sshll.u32 %s13812_s14, 4  ;;  %s13734_s15 = int_to_ptr.vmem [resolvable:$false] %s13733_s15 }
  0x38   : > { %s13735_s22 = scalar_lea.vmem %s13734_s15, 327680  ;;  %p13736_p13 = scmp.lt.s32.totalorder %s13940_s29, %s13734_s15 }
  0x39   : > { %p13731_p11 = pnand %p13729_p9, %p13907_p10  ;;  %p13737_p7 = scmp.lt.s32.totalorder %s13735_s22, %s13728_s26 }
  0x3b   : > { %p13732_p12 = pneg %p13731_p11  ;;  %p13738_p1 = por %p13737_p7, %p13736_p13 }
  0x3d   : > { %p13739_p0 = pnand %p13738_p1, %p13732_p12 }
  0x3f   : > { %13742 = shalt.err (!%p13739_p0)
}
  0x40   : > { %s13813_s9 = smov 1024   ;;  %s13814_s28 = smov 256  }
  0x41   : > { %s13815_s30 = smov 16   ;;  %s11632_s5 = sshll.u32 %s13809_s18, 13 }
  0x42   : > { %11721 = dma.hbm_to_vmem [thread:$0]  (!%p13888_p8), %s13936_s21, 163840, %s13940_s29, %s167_s7, %s13813_s9, %s13814_s28, %s13815_s30  }
  0x43   : > { %s13969_s26 = scalar_lea.hbm %s16040_s3, %s11632_s5  ;;  %s210_s14 = scalar_lea.vmem [#allocation6], %s10300_s10 }
  0x44   : > { %s217_s15 = sshll.u32 %s210_s14, 4  ;;  %s13743_s22 = scalar_lea.hbm %s13969_s26, 8192  ;;  %s13973_s15 = int_to_ptr.vmem [resolvable:$true] %s217_s15 }
  0x45   : > { %p13744_p0 = scmp.ne.s32.totalorder %s13969_s26, %s13743_s22  ;;  %s13748_s29 = scalar_lea.hbm %s16040_s3, 32768 }
  0x46   : > { %p13749_p4 = scmp.lt.s32.totalorder %s13969_s26, %s16040_s3  ;;  %p13750_p5 = scmp.lt.s32.totalorder %s13748_s29, %s13743_s22 }
  0x47   : > { %p13746_p2 = pnand %p13744_p0, %p13907_p10 }
  0x48   : > { %p13751_p6 = por %p13750_p5, %p13749_p4 }
  0x49   : > { %p13747_p3 = pneg %p13746_p2 }
  0x4b   : > { %p13752_p9 = pnand %p13751_p6, %p13747_p3 }
  0x4d   : > { %13755 = shalt.err (!%p13752_p9)
}
  0x4e   : > { %s13756_s25 = scalar_lea.vmem %s13973_s15, 8192  ;;  %s13816_s10 = smov [#allocation6]  }
  0x4f   : > { %p13757_p11 = scmp.ne.s32.totalorder %s13973_s15, %s13756_s25  ;;  %s13761_s28 = sshll.u32 %s13816_s10, 4  ;;  %s13762_s28 = int_to_ptr.vmem [resolvable:$false] %s13761_s28 }
  0x50   : > { %s13763_s30 = scalar_lea.vmem %s13762_s28, 16384  ;;  %p13764_p7 = scmp.lt.s32.totalorder %s13973_s15, %s13762_s28 }
  0x51   : > { %p13759_p12 = pnand %p13757_p11, %p13907_p10  ;;  %p13765_p1 = scmp.lt.s32.totalorder %s13763_s30, %s13756_s25 }
  0x53   : > { %p13760_p13 = pneg %p13759_p12  ;;  %p13766_p0 = por %p13765_p1, %p13764_p7 }
  0x55   : > { %p13767_p2 = pnand %p13766_p0, %p13760_p13 }
  0x57   : > { %13770 = shalt.err (!%p13767_p2)
}
  0x58   : > { %s13817_s5 = smov 128   ;;  %s13818_s6 = smov 8  }
  0x59   : > { %11727 = dma.hbm_to_vmem [thread:$0]  (!%p13888_p8), %s13969_s26, 8192, %s13973_s15, %s13901_s11, %s13817_s5, %s13817_s5, %s13818_s6  }
  0x5a   : > { %p16047_p10 = scmp.ne.s32.totalorder %s16046_s8, 0 }
  0x5c   : > { %229 = sbr.rel (%p16047_p10) target bundleno = 1792 (0x700), region = 36 }
  0x61   : > { %s13999_s13 = sand.u32 1, %s13801_s16   ;;  %p16048_p3 = scmp.ne.s32.totalorder %s16043_s24, 0 }
  0x62   : > { %s11711_s12 = smul.u32 10240, %s13999_s13  ;;  %s232_s14 = scalar_lea.sflag [#allocation3], %s13999_s13 }
  0x64   : > { %s14003_s22 = scalar_lea.vmem [#allocation2], %s11711_s12 }
  0x65   : > { %13788 = dma.done.wait (%p16048_p3), %s232_s14, 163840  }
  0x66   : > { %13790 = vsyncadd (%p16048_p3), %s232_s14, 4294803456  ;;  %s240_s27 = sand.u32 1, %s13863_s19   ;;  %s10304_s11 = sshll.u32 %s13999_s13, 2 }
  0x67   : > { %s241_s8 = scalar_lea.sflag [#allocation5], %s240_s27  ;;  %s14011_s26 = scalar_lea.vmem [#allocation4], %s10304_s11 }
  0x68   : > { %13792 = dma.done.wait (%p16048_p3), %s241_s8, 8256  }
  0x69   : > { %13794 = vsyncadd (%p16048_p3), %s241_s8, 4294959040  ;;  %v11766_v0 = vld [vmem:[%s14003_s22 + $0xe4] ss:$16 sps:$4 sm:$0xff]   ;;  %v11770_v2 = vld [vmem:[%s14003_s22 + $0xe0] ss:$16 sps:$4 sm:$0xff]   ;;  %s10305_s10 = sshll.u32 %s13999_s13, 9 }
  0x6a   : > { %v11768_v1 = vld [vmem:[%s14003_s22 + $0x2e4] ss:$16 sps:$4 sm:$0xff]   ;;  %8238 = vmatprep.subr.bf16.mxu0 %v11766_v0  ;;  %v11771_v3 = vld [vmem:[%s14003_s22 + $0x2e0] ss:$16 sps:$4 sm:$0xff]   ;;  %v297_v50 = vld [vmem:[%s16037_s0 + $0x8] sm:$0xff]  ;;  %s15894_s13 = scalar_lea.vmem [#allocation6], %s10305_s10 }
  0x6b   : > { %8281 = vmatprep.subr.bf16.mxu1 %v11768_v1  ;;  %v11772_v4 = vld [vmem:[%s14003_s22 + $0xc4] ss:$16 sps:$4 sm:$0xff]   ;;  %8239 = vmatpush1.bf16.msra.mxu0 %v11770_v2  ;;  %v11776_v6 = vld [vmem:[%s14003_s22 + $0xc0] ss:$16 sps:$4 sm:$0xff]   ;;  %v317_v51 = vld [vmem:[%s16037_s0 + $0xa8] sm:$0xff]  ;;  %p291_p8 = scmp.lt.s32.totalorder %s13863_s19, 3 }
  0x6c   : > { %8282 = vmatpush1.bf16.msra.mxu1 %v11771_v3  ;;  %v11774_v5 = vld [vmem:[%s14003_s22 + $0x2c4] ss:$16 sps:$4 sm:$0xff]   ;;  %8240 = vmatprep.subr.bf16.mxu0 %v11772_v4  ;;  %v11777_v7 = vld [vmem:[%s14003_s22 + $0x2c0] ss:$16 sps:$4 sm:$0xff]   ;;  %v14081_v55 = vcombine.high %v297_v50, %v317_v51 }
  0x6d   : > { %8283 = vmatprep.subr.bf16.mxu1 %v11774_v5  ;;  %v11778_v8 = vld [vmem:[%s14003_s22 + $0xa4] ss:$16 sps:$4 sm:$0xff]   ;;  %v11782_v10 = vld [vmem:[%s14003_s22 + $0xa0] ss:$16 sps:$4 sm:$0xff]   ;;  %s16058_s19 = smov (!%p291_p8, %s13863_s19), 3 }
  0x6e   : > { %v11780_v9 = vld [vmem:[%s14003_s22 + $0x2a4] ss:$16 sps:$4 sm:$0xff]   ;;  %v11783_v11 = vld [vmem:[%s14003_s22 + $0x2a0] ss:$16 sps:$4 sm:$0xff]   ;;  %8313 = vmatprep.mubr.bf16.mxu1 %v14081_v55 }
  0x6f   : > { %8241 = vmatpush1.bf16.msra.mxu0 %v11776_v6  ;;  %v11784_v12 = vld [vmem:[%s14003_s22 + $0x84] ss:$16 sps:$4 sm:$0xff]   ;;  %v11788_v14 = vld [vmem:[%s14003_s22 + $0x80] ss:$16 sps:$4 sm:$0xff]  }
  0x70   : > { %8284 = vmatpush1.bf16.msra.mxu1 %v11777_v7  ;;  %8242 = vmatprep.subr.bf16.mxu0 %v11778_v8  ;;  %v11786_v13 = vld [vmem:[%s14003_s22 + $0x284] ss:$16 sps:$4 sm:$0xff]   ;;  %v11789_v15 = vld [vmem:[%s14003_s22 + $0x280] ss:$16 sps:$4 sm:$0xff]  }
  0x71   : > { %8285 = vmatprep.subr.bf16.mxu1 %v11780_v9  ;;  %v11790_v16 = vld [vmem:[%s14003_s22 + $0x64] ss:$16 sps:$4 sm:$0xff]   ;;  %v11794_v18 = vld [vmem:[%s14003_s22 + $0x60] ss:$16 sps:$4 sm:$0xff]   ;;  %v14103_v9 = vcombine.low %v297_v50, %v317_v51 }
  0x72   : > { %v11792_v17 = vld [vmem:[%s14003_s22 + $0x264] ss:$16 sps:$4 sm:$0xff]   ;;  %v11795_v19 = vld [vmem:[%s14003_s22 + $0x260] ss:$16 sps:$4 sm:$0xff]  }
  0x73   : > { %8243 = vmatpush1.bf16.msra.mxu0 %v11782_v10  ;;  %v11796_v20 = vld [vmem:[%s14003_s22 + $0x44] ss:$16 sps:$4 sm:$0xff]   ;;  %v11800_v22 = vld [vmem:[%s14003_s22 + $0x40] ss:$16 sps:$4 sm:$0xff]  }
  0x74   : > { %8286 = vmatpush1.bf16.msra.mxu1 %v11783_v11  ;;  %8244 = vmatprep.subr.bf16.mxu0 %v11784_v12  ;;  %v11798_v21 = vld [vmem:[%s14003_s22 + $0x244] ss:$16 sps:$4 sm:$0xff]   ;;  %v11801_v23 = vld [vmem:[%s14003_s22 + $0x240] ss:$16 sps:$4 sm:$0xff]  }
  0x75   : > { %8287 = vmatprep.subr.bf16.mxu1 %v11786_v13  ;;  %v11802_v24 = vld [vmem:[%s14003_s22 + $0x24] ss:$16 sps:$4 sm:$0xff]   ;;  %v11806_v26 = vld [vmem:[%s14003_s22 + $0x20] ss:$16 sps:$4 sm:$0xff]  }
  0x76   : > { %v11804_v25 = vld [vmem:[%s14003_s22 + $0x224] ss:$16 sps:$4 sm:$0xff]   ;;  %v11807_v27 = vld [vmem:[%s14003_s22 + $0x220] ss:$16 sps:$4 sm:$0xff]  }
  0x77   : > { %8245 = vmatpush1.bf16.msra.mxu0 %v11788_v14  ;;  %v11808_v28 = vld [vmem:[%s14003_s22 + $0x4] ss:$16 sps:$4 sm:$0xff]   ;;  %v11812_v30 = vld [vmem:[%s14003_s22] ss:$16 sps:$4 sm:$0xff]  }
  0x78   : > { %8288 = vmatpush1.bf16.msra.mxu1 %v11789_v15  ;;  %8246 = vmatprep.subr.bf16.mxu0 %v11790_v16  ;;  %v11810_v29 = vld [vmem:[%s14003_s22 + $0x204] ss:$16 sps:$4 sm:$0xff]   ;;  %v11813_v31 = vld [vmem:[%s14003_s22 + $0x200] ss:$16 sps:$4 sm:$0xff]  }
  0x79   : > { %8289 = vmatprep.subr.bf16.mxu1 %v11792_v17  ;;  %v11814_v32 = vld [vmem:[%s14003_s22 + $0x1e4] ss:$16 sps:$4 sm:$0xff]   ;;  %v11818_v34 = vld [vmem:[%s14003_s22 + $0x1e0] ss:$16 sps:$4 sm:$0xff]  }
  0x7a   : > { %v11816_v33 = vld [vmem:[%s14003_s22 + $0x3e4] ss:$16 sps:$4 sm:$0xff]   ;;  %v11819_v35 = vld [vmem:[%s14003_s22 + $0x3e0] ss:$16 sps:$4 sm:$0xff]  }
  0x7b   : > { %8247 = vmatpush1.bf16.msra.mxu0 %v11794_v18  ;;  %v11820_v36 = vld [vmem:[%s14003_s22 + $0x1c4] ss:$16 sps:$4 sm:$0xff]   ;;  %v11824_v38 = vld [vmem:[%s14003_s22 + $0x1c0] ss:$16 sps:$4 sm:$0xff]  }
  0x7c   : > { %8290 = vmatpush1.bf16.msra.mxu1 %v11795_v19  ;;  %8248 = vmatprep.subr.bf16.mxu0 %v11796_v20  ;;  %v11822_v37 = vld [vmem:[%s14003_s22 + $0x3c4] ss:$16 sps:$4 sm:$0xff]   ;;  %v11825_v39 = vld [vmem:[%s14003_s22 + $0x3c0] ss:$16 sps:$4 sm:$0xff]  }
  0x7d   : > { %8291 = vmatprep.subr.bf16.mxu1 %v11798_v21  ;;  %v11826_v40 = vld [vmem:[%s14003_s22 + $0x1a4] ss:$16 sps:$4 sm:$0xff]   ;;  %v11830_v42 = vld [vmem:[%s14003_s22 + $0x1a0] ss:$16 sps:$4 sm:$0xff]  }
  0x7e   : > { %v11828_v41 = vld [vmem:[%s14003_s22 + $0x3a4] ss:$16 sps:$4 sm:$0xff]   ;;  %v11831_v43 = vld [vmem:[%s14003_s22 + $0x3a0] ss:$16 sps:$4 sm:$0xff]  }
  0x7f   : > { %8249 = vmatpush1.bf16.msra.mxu0 %v11800_v22  ;;  %v11832_v44 = vld [vmem:[%s14003_s22 + $0x184] ss:$16 sps:$4 sm:$0xff]   ;;  %v11836_v46 = vld [vmem:[%s14003_s22 + $0x180] ss:$16 sps:$4 sm:$0xff]  }
  0x80   : > { %8292 = vmatpush1.bf16.msra.mxu1 %v11801_v23  ;;  %8250 = vmatprep.subr.bf16.mxu0 %v11802_v24  ;;  %v11834_v45 = vld [vmem:[%s14003_s22 + $0x384] ss:$16 sps:$4 sm:$0xff]   ;;  %v11837_v47 = vld [vmem:[%s14003_s22 + $0x380] ss:$16 sps:$4 sm:$0xff]  }
  0x81   : > { %8293 = vmatprep.subr.bf16.mxu1 %v11804_v25  ;;  %v296_v48 = vld [vmem:[%s16037_s0] sm:$0xff] }
  0x82   : > { %v316_v49 = vld [vmem:[%s16037_s0 + $0xa0] sm:$0xff] }
  0x83   : > { %8251 = vmatpush1.bf16.msra.mxu0 %v11806_v26  ;;  %v11838_v52 = vld [vmem:[%s14003_s22 + $0x164] ss:$16 sps:$4 sm:$0xff]   ;;  %v14078_v53 = vcombine.high %v296_v48, %v316_v49  ;;  %v11842_v56 = vld [vmem:[%s14003_s22 + $0x160] ss:$16 sps:$4 sm:$0xff]   ;;  %v14101_v8 = vcombine.low %v296_v48, %v316_v49 }
  0x84   : > { %8294 = vmatpush1.bf16.msra.mxu1 %v11807_v27  ;;  %8252 = vmatprep.subr.bf16.mxu0 %v11808_v28  ;;  %v11840_v54 = vld [vmem:[%s14003_s22 + $0x364] ss:$16 sps:$4 sm:$0xff]   ;;  %v11843_v57 = vld [vmem:[%s14003_s22 + $0x360] ss:$16 sps:$4 sm:$0xff]  }
  0x85   : > { %8295 = vmatprep.subr.bf16.mxu1 %v11810_v29  ;;  %8270 = vmatprep.mubr.bf16.mxu0 %v14078_v53  ;;  %v11844_v58 = vld [vmem:[%s14003_s22 + $0x144] ss:$16 sps:$4 sm:$0xff]   ;;  %v11848_v60 = vld [vmem:[%s14003_s22 + $0x140] ss:$16 sps:$4 sm:$0xff]  }
  0x86   : > { %v11846_v59 = vld [vmem:[%s14003_s22 + $0x344] ss:$16 sps:$4 sm:$0xff]   ;;  %v11849_v61 = vld [vmem:[%s14003_s22 + $0x340] ss:$16 sps:$4 sm:$0xff]  }
  0x87   : > { %8253 = vmatpush1.bf16.msra.mxu0 %v11812_v30  ;;  %v11850_v62 = vld [vmem:[%s14003_s22 + $0x124] ss:$16 sps:$4 sm:$0xff]   ;;  %v11854_v0 = vld [vmem:[%s14003_s22 + $0x120] ss:$16 sps:$4 sm:$0xff]  }
  0x88   : > { %8296 = vmatpush1.bf16.msra.mxu1 %v11813_v31  ;;  %8254 = vmatprep.subr.bf16.mxu0 %v11814_v32  ;;  %v11852_v63 = vld [vmem:[%s14003_s22 + $0x324] ss:$16 sps:$4 sm:$0xff]   ;;  %v11855_v1 = vld [vmem:[%s14003_s22 + $0x320] ss:$16 sps:$4 sm:$0xff]  }
  0x89   : > { %8297 = vmatprep.subr.bf16.mxu1 %v11816_v33  ;;  %v11856_v2 = vld [vmem:[%s14003_s22 + $0x104] ss:$16 sps:$4 sm:$0xff]   ;;  %v11860_v4 = vld [vmem:[%s14003_s22 + $0x100] ss:$16 sps:$4 sm:$0xff]  }
  0x8a   : > { %v11858_v3 = vld [vmem:[%s14003_s22 + $0x304] ss:$16 sps:$4 sm:$0xff]   ;;  %v11861_v5 = vld [vmem:[%s14003_s22 + $0x300] ss:$16 sps:$4 sm:$0xff]  }
  0x8b   : > { %8255 = vmatpush2.bf16.msra.mxu0 %v11818_v34  ;;  %v11864_v6 = vld [vmem:[%s14003_s22 + $0x4e4] ss:$16 sps:$4 sm:$0xff]   ;;  %v11862_v10 = vld [vmem:[%s14003_s22 + $0x4e0] ss:$16 sps:$4 sm:$0xff]  }
  0x8c   : > { %8298 = vmatpush2.bf16.msra.mxu1 %v11819_v35  ;;  %8256 = vmatprep.subr.bf16.mxu0 %v11820_v36  ;;  %v11867_v7 = vld [vmem:[%s14003_s22 + $0x6e4] ss:$16 sps:$4 sm:$0xff]   ;;  %v11865_v11 = vld [vmem:[%s14003_s22 + $0x6e0] ss:$16 sps:$4 sm:$0xff]  }
  0x8d   : > { %8299 = vmatprep.subr.bf16.mxu1 %v11822_v37  ;;  %v11870_v12 = vld [vmem:[%s14003_s22 + $0x4c4] ss:$16 sps:$4 sm:$0xff]   ;;  %v11868_v14 = vld [vmem:[%s14003_s22 + $0x4c0] ss:$16 sps:$4 sm:$0xff]  }
  0x8e   : > { %v11873_v13 = vld [vmem:[%s14003_s22 + $0x6c4] ss:$16 sps:$4 sm:$0xff]   ;;  %v11871_v15 = vld [vmem:[%s14003_s22 + $0x6c0] ss:$16 sps:$4 sm:$0xff]  }
  0x8f   : > { %8257 = vmatpush2.bf16.msra.mxu0 %v11824_v38  ;;  %v11876_v16 = vld [vmem:[%s14003_s22 + $0x4a4] ss:$16 sps:$4 sm:$0xff]   ;;  %v11874_v18 = vld [vmem:[%s14003_s22 + $0x4a0] ss:$16 sps:$4 sm:$0xff]   ;;  %v14146_v38 = vld [vmem:[%s16037_s0 + $0x18] sm:$0xff] }
  0x90   : > { %8300 = vmatpush2.bf16.msra.mxu1 %v11825_v39  ;;  %8258 = vmatprep.subr.bf16.mxu0 %v11826_v40  ;;  %v11879_v17 = vld [vmem:[%s14003_s22 + $0x6a4] ss:$16 sps:$4 sm:$0xff]   ;;  %v11877_v19 = vld [vmem:[%s14003_s22 + $0x6a0] ss:$16 sps:$4 sm:$0xff]   ;;  %v14151_v39 = vld [vmem:[%s16037_s0 + $0xb8] sm:$0xff] }
  0x91   : > { %8301 = vmatprep.subr.bf16.mxu1 %v11828_v41  ;;  %v11882_v20 = vld [vmem:[%s14003_s22 + $0x484] ss:$16 sps:$4 sm:$0xff]   ;;  %v11880_v22 = vld [vmem:[%s14003_s22 + $0x480] ss:$16 sps:$4 sm:$0xff]  }
  0x92   : > { %v11885_v21 = vld [vmem:[%s14003_s22 + $0x684] ss:$16 sps:$4 sm:$0xff]   ;;  %v11883_v23 = vld [vmem:[%s14003_s22 + $0x680] ss:$16 sps:$4 sm:$0xff]  }
  0x93   : > { %8259 = vmatpush2.bf16.msra.mxu0 %v11830_v42  ;;  %v11888_v24 = vld [vmem:[%s14003_s22 + $0x464] ss:$16 sps:$4 sm:$0xff]   ;;  %v11886_v26 = vld [vmem:[%s14003_s22 + $0x460] ss:$16 sps:$4 sm:$0xff]  }
  0x94   : > { %8302 = vmatpush2.bf16.msra.mxu1 %v11831_v43  ;;  %8260 = vmatprep.subr.bf16.mxu0 %v11832_v44  ;;  %v11891_v25 = vld [vmem:[%s14003_s22 + $0x664] ss:$16 sps:$4 sm:$0xff]   ;;  %v11889_v27 = vld [vmem:[%s14003_s22 + $0x660] ss:$16 sps:$4 sm:$0xff]   ;;  %v14161_v43 = vcombine.high %v14146_v38, %v14151_v39 }
  0x95   : > { %8303 = vmatprep.subr.bf16.mxu1 %v11834_v45  ;;  %v11894_v28 = vld [vmem:[%s14003_s22 + $0x444] ss:$16 sps:$4 sm:$0xff]   ;;  %v11892_v30 = vld [vmem:[%s14003_s22 + $0x440] ss:$16 sps:$4 sm:$0xff]  }
  0x96   : > { %v11897_v29 = vld [vmem:[%s14003_s22 + $0x644] ss:$16 sps:$4 sm:$0xff]   ;;  %v11895_v31 = vld [vmem:[%s14003_s22 + $0x640] ss:$16 sps:$4 sm:$0xff]  }
  0x97   : > { %8261 = vmatpush2.bf16.msra.mxu0 %v11836_v46  ;;  %v11900_v32 = vld [vmem:[%s14003_s22 + $0x424] ss:$16 sps:$4 sm:$0xff]   ;;  %v11898_v34 = vld [vmem:[%s14003_s22 + $0x420] ss:$16 sps:$4 sm:$0xff]  }
  0x98   : > { %8304 = vmatpush2.bf16.msra.mxu1 %v11837_v47  ;;  %8262 = vmatprep.subr.bf16.mxu0 %v11838_v52  ;;  %v11903_v33 = vld [vmem:[%s14003_s22 + $0x624] ss:$16 sps:$4 sm:$0xff]   ;;  %v11901_v35 = vld [vmem:[%s14003_s22 + $0x620] ss:$16 sps:$4 sm:$0xff]  }
  0x99   : > { %8305 = vmatprep.subr.bf16.mxu1 %v11840_v54  ;;  %v14136_v36 = vld [vmem:[%s16037_s0 + $0x10] sm:$0xff] }
  0x9a   : > { %v14141_v37 = vld [vmem:[%s16037_s0 + $0xb0] sm:$0xff] }
  0x9b   : > { %8263 = vmatpush2.bf16.msra.mxu0 %v11842_v56  ;;  %v11906_v40 = vld [vmem:[%s14003_s22 + $0x404] ss:$16 sps:$4 sm:$0xff]   ;;  %v14156_v41 = vcombine.high %v14136_v36, %v14141_v37  ;;  %v11904_v44 = vld [vmem:[%s14003_s22 + $0x400] ss:$16 sps:$4 sm:$0xff]  }
  0x9c   : > { %8306 = vmatpush2.bf16.msra.mxu1 %v11843_v57  ;;  %8264 = vmatprep.subr.bf16.mxu0 %v11844_v58  ;;  %v11909_v42 = vld [vmem:[%s14003_s22 + $0x604] ss:$16 sps:$4 sm:$0xff]   ;;  %v11907_v45 = vld [vmem:[%s14003_s22 + $0x600] ss:$16 sps:$4 sm:$0xff]  }
  0x9d   : > { %8307 = vmatprep.subr.bf16.mxu1 %v11846_v59  ;;  %v11912_v46 = vld [vmem:[%s14003_s22 + $0x5e4] ss:$16 sps:$4 sm:$0xff]   ;;  %v11910_v48 = vld [vmem:[%s14003_s22 + $0x5e0] ss:$16 sps:$4 sm:$0xff]  }
  0x9e   : > { %v11915_v47 = vld [vmem:[%s14003_s22 + $0x7e4] ss:$16 sps:$4 sm:$0xff]   ;;  %v11913_v49 = vld [vmem:[%s14003_s22 + $0x7e0] ss:$16 sps:$4 sm:$0xff]  }
  0x9f   : > { %8265 = vmatpush2.bf16.msra.mxu0 %v11848_v60  ;;  %v11918_v50 = vld [vmem:[%s14003_s22 + $0x5c4] ss:$16 sps:$4 sm:$0xff]   ;;  %v11916_v52 = vld [vmem:[%s14003_s22 + $0x5c0] ss:$16 sps:$4 sm:$0xff]  }
  0xa0   : > { %8308 = vmatpush2.bf16.msra.mxu1 %v11849_v61  ;;  %8266 = vmatprep.subr.bf16.mxu0 %v11850_v62  ;;  %v11921_v51 = vld [vmem:[%s14003_s22 + $0x7c4] ss:$16 sps:$4 sm:$0xff]   ;;  %v11919_v54 = vld [vmem:[%s14003_s22 + $0x7c0] ss:$16 sps:$4 sm:$0xff]  }
  0xa1   : > { %8309 = vmatprep.subr.bf16.mxu1 %v11852_v63  ;;  %v11924_v56 = vld [vmem:[%s14003_s22 + $0x5a4] ss:$16 sps:$4 sm:$0xff]   ;;  %v11922_v58 = vld [vmem:[%s14003_s22 + $0x5a0] ss:$16 sps:$4 sm:$0xff]  }
  0xa2   : > { %v11927_v57 = vld [vmem:[%s14003_s22 + $0x7a4] ss:$16 sps:$4 sm:$0xff]   ;;  %v11925_v59 = vld [vmem:[%s14003_s22 + $0x7a0] ss:$16 sps:$4 sm:$0xff]  }
  0xa3   : > { %8267 = vmatpush2.bf16.msra.mxu0 %v11854_v0  ;;  %v11930_v60 = vld [vmem:[%s14003_s22 + $0x584] ss:$16 sps:$4 sm:$0xff]   ;;  %v11928_v62 = vld [vmem:[%s14003_s22 + $0x580] ss:$16 sps:$4 sm:$0xff]  }
  0xa4   : > { %8310 = vmatpush2.bf16.msra.mxu1 %v11855_v1  ;;  %8268 = vmatprep.subr.bf16.mxu0 %v11856_v2  ;;  %v11933_v61 = vld [vmem:[%s14003_s22 + $0x784] ss:$16 sps:$4 sm:$0xff]   ;;  %v11931_v63 = vld [vmem:[%s14003_s22 + $0x780] ss:$16 sps:$4 sm:$0xff]  }
  0xa5   : > { %8311 = vmatprep.subr.bf16.mxu1 %v11858_v3  ;;  %v11936_v0 = vld [vmem:[%s14003_s22 + $0x564] ss:$16 sps:$4 sm:$0xff]   ;;  %v11934_v2 = vld [vmem:[%s14003_s22 + $0x560] ss:$16 sps:$4 sm:$0xff]  }
  0xa6   : > { %v11939_v1 = vld [vmem:[%s14003_s22 + $0x764] ss:$16 sps:$4 sm:$0xff]   ;;  %v11937_v3 = vld [vmem:[%s14003_s22 + $0x760] ss:$16 sps:$4 sm:$0xff]  }
  0xa7   : > { %8269 = vmatpush2.bf16.msra.mxu0 %v11860_v4  ;;  %v11942_v4 = vld [vmem:[%s14003_s22 + $0x544] ss:$16 sps:$4 sm:$0xff]  }
  0xa8   : > { %8312 = vmatpush2.bf16.msra.mxu1 %v11861_v5  ;;  %8324 = vmatprep.subr.bf16.mxu0 %v11864_v6  ;;  %v11945_v5 = vld [vmem:[%s14003_s22 + $0x744] ss:$16 sps:$4 sm:$0xff]   ;;  %v11940_v6 = vld [vmem:[%s14003_s22 + $0x540] ss:$16 sps:$4 sm:$0xff]  }
  0xa9   : > { %8367 = vmatprep.subr.bf16.mxu1 %v11867_v7  ;;  %v11943_v7 = vld [vmem:[%s14003_s22 + $0x740] ss:$16 sps:$4 sm:$0xff]  }
  0xaa   : > { %8271 = vmatmul.mubr.bf16.vlgmr.msra.gmra.mxu0 %v14101_v8 }
  0xab   : > { %8314 = vmatmul.mubr.bf16.vlgmr.msra.gmra.mxu1 %v14103_v9  ;;  %8325 = vmatpush1.bf16.msra.mxu0 %v11862_v10  ;;  %v11948_v10 = vld [vmem:[%s14003_s22 + $0x524] ss:$16 sps:$4 sm:$0xff]  }
  0xac   : > { %8368 = vmatpush1.bf16.msra.mxu1 %v11865_v11  ;;  %8326 = vmatprep.subr.bf16.mxu0 %v11870_v12  ;;  %v11951_v11 = vld [vmem:[%s14003_s22 + $0x724] ss:$16 sps:$4 sm:$0xff]   ;;  %v11946_v12 = vld [vmem:[%s14003_s22 + $0x520] ss:$16 sps:$4 sm:$0xff]  }
  0xad   : > { %8369 = vmatprep.subr.bf16.mxu1 %v11873_v13  ;;  %8356 = vmatprep.mubr.bf16.mxu0 %v14156_v41  ;;  %v11949_v13 = vld [vmem:[%s14003_s22 + $0x720] ss:$16 sps:$4 sm:$0xff]  }
  0xae   : > { %8399 = vmatprep.mubr.bf16.mxu1 %v14161_v43 }
  0xaf   : > { %8327 = vmatpush1.bf16.msra.mxu0 %v11868_v14  ;;  %v11954_v14 = vld [vmem:[%s14003_s22 + $0x504] ss:$16 sps:$4 sm:$0xff]  }
  0xb0   : > { %8370 = vmatpush1.bf16.msra.mxu1 %v11871_v15  ;;  %8328 = vmatprep.subr.bf16.mxu0 %v11876_v16  ;;  %v11957_v15 = vld [vmem:[%s14003_s22 + $0x704] ss:$16 sps:$4 sm:$0xff]   ;;  %v11952_v16 = vld [vmem:[%s14003_s22 + $0x500] ss:$16 sps:$4 sm:$0xff]  }
  0xb1   : > { %8371 = vmatprep.subr.bf16.mxu1 %v11879_v17  ;;  %v11955_v17 = vld [vmem:[%s14003_s22 + $0x700] ss:$16 sps:$4 sm:$0xff]  }
  0xb3   : > { %8329 = vmatpush1.bf16.msra.mxu0 %v11874_v18  ;;  %v11960_v18 = vld [vmem:[%s14003_s22 + $0x8e4] ss:$16 sps:$4 sm:$0xff]  }
  0xb4   : > { %8372 = vmatpush1.bf16.msra.mxu1 %v11877_v19  ;;  %8330 = vmatprep.subr.bf16.mxu0 %v11882_v20  ;;  %v11963_v19 = vld [vmem:[%s14003_s22 + $0xae4] ss:$16 sps:$4 sm:$0xff]   ;;  %v14203_v20 = vcombine.low %v14136_v36, %v14141_v37  ;;  %v11970_v36 = vld [vmem:[%s14003_s22 + $0x8a0] ss:$16 sps:$4 sm:$0xff]  }
  0xb5   : > { %8373 = vmatprep.subr.bf16.mxu1 %v11885_v21  ;;  %v14207_v21 = vcombine.low %v14146_v38, %v14151_v39  ;;  %v11973_v37 = vld [vmem:[%s14003_s22 + $0xaa0] ss:$16 sps:$4 sm:$0xff]   ;;  %v11978_v38 = vld [vmem:[%s14003_s22 + $0x884] ss:$16 sps:$4 sm:$0xff]  }
  0xb6   : > { %v11981_v39 = vld [vmem:[%s14003_s22 + $0xa84] ss:$16 sps:$4 sm:$0xff]  }
  0xb7   : > { %8331 = vmatpush1.bf16.msra.mxu0 %v11880_v22  ;;  %v11958_v22 = vld [vmem:[%s14003_s22 + $0x8e0] ss:$16 sps:$4 sm:$0xff]  }
  0xb8   : > { %8374 = vmatpush1.bf16.msra.mxu1 %v11883_v23  ;;  %8332 = vmatprep.subr.bf16.mxu0 %v11888_v24  ;;  %v11961_v23 = vld [vmem:[%s14003_s22 + $0xae0] ss:$16 sps:$4 sm:$0xff]   ;;  %v11966_v24 = vld [vmem:[%s14003_s22 + $0x8c4] ss:$16 sps:$4 sm:$0xff]  }
  0xb9   : > { %8375 = vmatprep.subr.bf16.mxu1 %v11891_v25  ;;  %v11969_v25 = vld [vmem:[%s14003_s22 + $0xac4] ss:$16 sps:$4 sm:$0xff]  }
  0xbb   : > { %8333 = vmatpush1.bf16.msra.mxu0 %v11886_v26  ;;  %v11964_v26 = vld [vmem:[%s14003_s22 + $0x8c0] ss:$16 sps:$4 sm:$0xff]  }
  0xbc   : > { %8376 = vmatpush1.bf16.msra.mxu1 %v11889_v27  ;;  %8334 = vmatprep.subr.bf16.mxu0 %v11894_v28  ;;  %v11967_v27 = vld [vmem:[%s14003_s22 + $0xac0] ss:$16 sps:$4 sm:$0xff]  }
  0xbd   : > { %8377 = vmatprep.subr.bf16.mxu1 %v11897_v29  ;;  %v14218_v28 = vld [vmem:[%s16037_s0 + $0x20] sm:$0xff] }
  0xbe   : > { %v14225_v29 = vld [vmem:[%s16037_s0 + $0xc0] sm:$0xff] }
  0xbf   : > { %8335 = vmatpush1.bf16.msra.mxu0 %v11892_v30  ;;  %v14230_v30 = vld [vmem:[%s16037_s0 + $0x28] sm:$0xff] }
  0xc0   : > { %8378 = vmatpush1.bf16.msra.mxu1 %v11895_v31  ;;  %8336 = vmatprep.subr.bf16.mxu0 %v11900_v32  ;;  %v14235_v31 = vld [vmem:[%s16037_s0 + $0xc8] sm:$0xff]  ;;  %v11972_v32 = vld [vmem:[%s14003_s22 + $0x8a4] ss:$16 sps:$4 sm:$0xff]  }
  0xc1   : > { %8379 = vmatprep.subr.bf16.mxu1 %v11903_v33  ;;  %v14240_v33 = vcombine.high %v14218_v28, %v14225_v29 }
  0xc3   : > { %8337 = vmatpush1.bf16.msra.mxu0 %v11898_v34  ;;  %v11975_v34 = vld [vmem:[%s14003_s22 + $0xaa4] ss:$16 sps:$4 sm:$0xff]  }
  0xc4   : > { %8380 = vmatpush1.bf16.msra.mxu1 %v11901_v35  ;;  %8338 = vmatprep.subr.bf16.mxu0 %v11906_v40  ;;  %v14245_v35 = vcombine.high %v14230_v30, %v14235_v31  ;;  %v11976_v40 = vld [vmem:[%s14003_s22 + $0x880] ss:$16 sps:$4 sm:$0xff]  }
  0xc5   : > { %8381 = vmatprep.subr.bf16.mxu1 %v11909_v42  ;;  %v11979_v42 = vld [vmem:[%s14003_s22 + $0xa80] ss:$16 sps:$4 sm:$0xff]  }
  0xc7   : > { %8339 = vmatpush1.bf16.msra.mxu0 %v11904_v44  ;;  %v11984_v44 = vld [vmem:[%s14003_s22 + $0x864] ss:$16 sps:$4 sm:$0xff]  }
  0xc8   : > { %8382 = vmatpush1.bf16.msra.mxu1 %v11907_v45  ;;  %8340 = vmatprep.subr.bf16.mxu0 %v11912_v46  ;;  %v11987_v45 = vld [vmem:[%s14003_s22 + $0xa64] ss:$16 sps:$4 sm:$0xff]   ;;  %v11982_v46 = vld [vmem:[%s14003_s22 + $0x860] ss:$16 sps:$4 sm:$0xff]  }
  0xc9   : > { %8383 = vmatprep.subr.bf16.mxu1 %v11915_v47  ;;  %v11985_v47 = vld [vmem:[%s14003_s22 + $0xa60] ss:$16 sps:$4 sm:$0xff]  }
  0xcb   : > { %8341 = vmatpush2.bf16.msra.mxu0 %v11910_v48  ;;  %v11990_v48 = vld [vmem:[%s14003_s22 + $0x844] ss:$16 sps:$4 sm:$0xff]  }
  0xcc   : > { %8384 = vmatpush2.bf16.msra.mxu1 %v11913_v49  ;;  %8342 = vmatprep.subr.bf16.mxu0 %v11918_v50  ;;  %v11993_v49 = vld [vmem:[%s14003_s22 + $0xa44] ss:$16 sps:$4 sm:$0xff]   ;;  %v11988_v50 = vld [vmem:[%s14003_s22 + $0x840] ss:$16 sps:$4 sm:$0xff]  }
  0xcd   : > { %8385 = vmatprep.subr.bf16.mxu1 %v11921_v51  ;;  %v11991_v51 = vld [vmem:[%s14003_s22 + $0xa40] ss:$16 sps:$4 sm:$0xff]  }
  0xcf   : > { %8343 = vmatpush2.bf16.msra.mxu0 %v11916_v52  ;;  %v11996_v52 = vld [vmem:[%s14003_s22 + $0x824] ss:$16 sps:$4 sm:$0xff]  }
  0xd0   : > { %8386 = vmatpush2.bf16.msra.mxu1 %v11919_v54  ;;  %8344 = vmatprep.subr.bf16.mxu0 %v11924_v56  ;;  %v11999_v54 = vld [vmem:[%s14003_s22 + $0xa24] ss:$16 sps:$4 sm:$0xff]   ;;  %v11994_v56 = vld [vmem:[%s14003_s22 + $0x820] ss:$16 sps:$4 sm:$0xff]  }
  0xd1   : > { %8387 = vmatprep.subr.bf16.mxu1 %v11927_v57  ;;  %v11997_v57 = vld [vmem:[%s14003_s22 + $0xa20] ss:$16 sps:$4 sm:$0xff]  }
  0xd3   : > { %8345 = vmatpush2.bf16.msra.mxu0 %v11922_v58  ;;  %v12002_v58 = vld [vmem:[%s14003_s22 + $0x804] ss:$16 sps:$4 sm:$0xff]  }
  0xd4   : > { %8388 = vmatpush2.bf16.msra.mxu1 %v11925_v59  ;;  %8346 = vmatprep.subr.bf16.mxu0 %v11930_v60  ;;  %v12005_v59 = vld [vmem:[%s14003_s22 + $0xa04] ss:$16 sps:$4 sm:$0xff]   ;;  %v12000_v60 = vld [vmem:[%s14003_s22 + $0x800] ss:$16 sps:$4 sm:$0xff]  }
  0xd5   : > { %8389 = vmatprep.subr.bf16.mxu1 %v11933_v61  ;;  %v12003_v61 = vld [vmem:[%s14003_s22 + $0xa00] ss:$16 sps:$4 sm:$0xff]  }
  0xd7   : > { %8347 = vmatpush2.bf16.msra.mxu0 %v11928_v62  ;;  %v12008_v62 = vld [vmem:[%s14003_s22 + $0x9e4] ss:$16 sps:$4 sm:$0xff]  }
  0xd8   : > { %8390 = vmatpush2.bf16.msra.mxu1 %v11931_v63  ;;  %8348 = vmatprep.subr.bf16.mxu0 %v11936_v0  ;;  %v12011_v63 = vld [vmem:[%s14003_s22 + $0xbe4] ss:$16 sps:$4 sm:$0xff]   ;;  %v12006_v0 = vld [vmem:[%s14003_s22 + $0x9e0] ss:$16 sps:$4 sm:$0xff]  }
  0xd9   : > { %8391 = vmatprep.subr.bf16.mxu1 %v11939_v1  ;;  %v12009_v1 = vld [vmem:[%s14003_s22 + $0xbe0] ss:$16 sps:$4 sm:$0xff]  }
  0xdb   : > { %8349 = vmatpush2.bf16.msra.mxu0 %v11934_v2  ;;  %v12014_v2 = vld [vmem:[%s14003_s22 + $0x9c4] ss:$16 sps:$4 sm:$0xff]  }
  0xdc   : > { %8392 = vmatpush2.bf16.msra.mxu1 %v11937_v3  ;;  %8350 = vmatprep.subr.bf16.mxu0 %v11942_v4  ;;  %v12017_v3 = vld [vmem:[%s14003_s22 + $0xbc4] ss:$16 sps:$4 sm:$0xff]   ;;  %v12012_v4 = vld [vmem:[%s14003_s22 + $0x9c0] ss:$16 sps:$4 sm:$0xff]  }
  0xdd   : > { %8393 = vmatprep.subr.bf16.mxu1 %v11945_v5  ;;  %v12015_v5 = vld [vmem:[%s14003_s22 + $0xbc0] ss:$16 sps:$4 sm:$0xff]  }
  0xdf   : > { %8351 = vmatpush2.bf16.msra.mxu0 %v11940_v6  ;;  %v12020_v6 = vld [vmem:[%s14003_s22 + $0x9a4] ss:$16 sps:$4 sm:$0xff]  }
  0xe0   : > { %8394 = vmatpush2.bf16.msra.mxu1 %v11943_v7  ;;  %8352 = vmatprep.subr.bf16.mxu0 %v11948_v10  ;;  %v12023_v7 = vld [vmem:[%s14003_s22 + $0xba4] ss:$16 sps:$4 sm:$0xff]   ;;  %v12018_v10 = vld [vmem:[%s14003_s22 + $0x9a0] ss:$16 sps:$4 sm:$0xff]  }
  0xe1   : > { %8395 = vmatprep.subr.bf16.mxu1 %v11951_v11  ;;  %v12021_v11 = vld [vmem:[%s14003_s22 + $0xba0] ss:$16 sps:$4 sm:$0xff]  }
  0xe3   : > { %8353 = vmatpush2.bf16.msra.mxu0 %v11946_v12  ;;  %v12026_v12 = vld [vmem:[%s14003_s22 + $0x984] ss:$16 sps:$4 sm:$0xff]  }
  0xe4   : > { %8396 = vmatpush2.bf16.msra.mxu1 %v11949_v13  ;;  %8354 = vmatprep.subr.bf16.mxu0 %v11954_v14  ;;  %v12029_v13 = vld [vmem:[%s14003_s22 + $0xb84] ss:$16 sps:$4 sm:$0xff]   ;;  %v12024_v14 = vld [vmem:[%s14003_s22 + $0x980] ss:$16 sps:$4 sm:$0xff]  }
  0xe5   : > { %8397 = vmatprep.subr.bf16.mxu1 %v11957_v15  ;;  %v12027_v15 = vld [vmem:[%s14003_s22 + $0xb80] ss:$16 sps:$4 sm:$0xff]  }
  0xe7   : > { %8355 = vmatpush2.bf16.msra.mxu0 %v11952_v16  ;;  %v12032_v16 = vld [vmem:[%s14003_s22 + $0x964] ss:$16 sps:$4 sm:$0xff]  }
  0xe8   : > { %8398 = vmatpush2.bf16.msra.mxu1 %v11955_v17  ;;  %8410 = vmatprep.subr.bf16.mxu0 %v11960_v18  ;;  %v12035_v17 = vld [vmem:[%s14003_s22 + $0xb64] ss:$16 sps:$4 sm:$0xff]   ;;  %v12030_v18 = vld [vmem:[%s14003_s22 + $0x960] ss:$16 sps:$4 sm:$0xff]  }
  0xe9   : > { %8453 = vmatprep.subr.bf16.mxu1 %v11963_v19  ;;  %v12033_v19 = vld [vmem:[%s14003_s22 + $0xb60] ss:$16 sps:$4 sm:$0xff]  }
  0xea   : > { %8357 = vmatmul.mubr.bf16.vlgmr.msra.gmra.mxu0 %v14203_v20 }
  0xeb   : > { %8400 = vmatmul.mubr.bf16.vlgmr.msra.gmra.mxu1 %v14207_v21  ;;  %8411 = vmatpush1.bf16.msra.mxu0 %v11958_v22  ;;  %v12038_v22 = vld [vmem:[%s14003_s22 + $0x944] ss:$16 sps:$4 sm:$0xff]  }
  0xec   : > { %8454 = vmatpush1.bf16.msra.mxu1 %v11961_v23  ;;  %8412 = vmatprep.subr.bf16.mxu0 %v11966_v24  ;;  %v12041_v23 = vld [vmem:[%s14003_s22 + $0xb44] ss:$16 sps:$4 sm:$0xff]   ;;  %v12036_v24 = vld [vmem:[%s14003_s22 + $0x940] ss:$16 sps:$4 sm:$0xff]  }
  0xed   : > { %8455 = vmatprep.subr.bf16.mxu1 %v11969_v25  ;;  %8442 = vmatprep.mubr.bf16.mxu0 %v14240_v33  ;;  %v12039_v25 = vld [vmem:[%s14003_s22 + $0xb40] ss:$16 sps:$4 sm:$0xff]  }
  0xee   : > { %8485 = vmatprep.mubr.bf16.mxu1 %v14245_v35 }
  0xef   : > { %8413 = vmatpush1.bf16.msra.mxu0 %v11964_v26  ;;  %v12044_v26 = vld [vmem:[%s14003_s22 + $0x924] ss:$16 sps:$4 sm:$0xff]  }
  0xf0   : > { %8456 = vmatpush1.bf16.msra.mxu1 %v11967_v27  ;;  %8414 = vmatprep.subr.bf16.mxu0 %v11972_v32  ;;  %v12047_v27 = vld [vmem:[%s14003_s22 + $0xb24] ss:$16 sps:$4 sm:$0xff]   ;;  %v12042_v32 = vld [vmem:[%s14003_s22 + $0x920] ss:$16 sps:$4 sm:$0xff]  }
  0xf1   : > { %8457 = vmatprep.subr.bf16.mxu1 %v11975_v34  ;;  %v12045_v34 = vld [vmem:[%s14003_s22 + $0xb20] ss:$16 sps:$4 sm:$0xff]  }
  0xf3   : > { %8415 = vmatpush1.bf16.msra.mxu0 %v11970_v36  ;;  %v12050_v36 = vld [vmem:[%s14003_s22 + $0x904] ss:$16 sps:$4 sm:$0xff]  }
  0xf4   : > { %8458 = vmatpush1.bf16.msra.mxu1 %v11973_v37  ;;  %8416 = vmatprep.subr.bf16.mxu0 %v11978_v38  ;;  %v12053_v37 = vld [vmem:[%s14003_s22 + $0xb04] ss:$16 sps:$4 sm:$0xff]   ;;  %v12048_v38 = vld [vmem:[%s14003_s22 + $0x900] ss:$16 sps:$4 sm:$0xff]  }
  0xf5   : > { %8459 = vmatprep.subr.bf16.mxu1 %v11981_v39  ;;  %v12051_v39 = vld [vmem:[%s14003_s22 + $0xb00] ss:$16 sps:$4 sm:$0xff]  }
  0xf7   : > { %8417 = vmatpush1.bf16.msra.mxu0 %v11976_v40  ;;  %v12056_v40 = vld [vmem:[%s14003_s22 + $0xce4] ss:$16 sps:$4 sm:$0xff]  }
  0xf8   : > { %8460 = vmatpush1.bf16.msra.mxu1 %v11979_v42  ;;  %8418 = vmatprep.subr.bf16.mxu0 %v11984_v44  ;;  %v12059_v42 = vld [vmem:[%s14003_s22 + $0xee4] ss:$16 sps:$4 sm:$0xff]  }
  0xf9   : > { %8461 = vmatprep.subr.bf16.mxu1 %v11987_v45  ;;  %v14308_v44 = vld [vmem:[%s16037_s0 + $0x30] sm:$0xff] }
  0xfa   : > { %v12054_v45 = vld [vmem:[%s14003_s22 + $0xce0] ss:$16 sps:$4 sm:$0xff]  }
  0xfb   : > { %8419 = vmatpush1.bf16.msra.mxu0 %v11982_v46  ;;  %v14314_v46 = vld [vmem:[%s16037_s0 + $0xd0] sm:$0xff] }
  0xfc   : > { %8462 = vmatpush1.bf16.msra.mxu1 %v11985_v47  ;;  %8420 = vmatprep.subr.bf16.mxu0 %v11990_v48  ;;  %v14319_v47 = vld [vmem:[%s16037_s0 + $0x38] sm:$0xff]  ;;  %v14323_v48 = vcombine.low %v14218_v28, %v14225_v29  ;;  %v12065_v28 = vld [vmem:[%s14003_s22 + $0xec4] ss:$16 sps:$4 sm:$0xff]   ;;  %v14339_v29 = vcombine.high %v14308_v44, %v14314_v46 }
  0xfd   : > { %8463 = vmatprep.subr.bf16.mxu1 %v11993_v49  ;;  %v14327_v49 = vcombine.low %v14230_v30, %v14235_v31  ;;  %v12060_v31 = vld [vmem:[%s14003_s22 + $0xcc0] ss:$16 sps:$4 sm:$0xff]  }
  0xff   : > { %8421 = vmatpush1.bf16.msra.mxu0 %v11988_v50  ;;  %v14332_v50 = vld [vmem:[%s16037_s0 + $0xd8] sm:$0xff] }
 0x100   : > { %8464 = vmatpush1.bf16.msra.mxu1 %v11991_v51  ;;  %8422 = vmatprep.subr.bf16.mxu0 %v11996_v52  ;;  %v12057_v51 = vld [vmem:[%s14003_s22 + $0xee0] ss:$16 sps:$4 sm:$0xff]   ;;  %v12062_v52 = vld [vmem:[%s14003_s22 + $0xcc4] ss:$16 sps:$4 sm:$0xff]   ;;  %v14343_v30 = vcombine.high %v14319_v47, %v14332_v50 }
 0x101   : > { %8465 = vmatprep.subr.bf16.mxu1 %v11999_v54  ;;  %v12063_v54 = vld [vmem:[%s14003_s22 + $0xec0] ss:$16 sps:$4 sm:$0xff]  }
 0x103   : > { %8423 = vmatpush1.bf16.msra.mxu0 %v11994_v56  ;;  %v12068_v56 = vld [vmem:[%s14003_s22 + $0xca4] ss:$16 sps:$4 sm:$0xff]  }
 0x104   : > { %8466 = vmatpush1.bf16.msra.mxu1 %v11997_v57  ;;  %8424 = vmatprep.subr.bf16.mxu0 %v12002_v58  ;;  %v12071_v57 = vld [vmem:[%s14003_s22 + $0xea4] ss:$16 sps:$4 sm:$0xff]   ;;  %v12066_v58 = vld [vmem:[%s14003_s22 + $0xca0] ss:$16 sps:$4 sm:$0xff]  }
 0x105   : > { %8467 = vmatprep.subr.bf16.mxu1 %v12005_v59  ;;  %v12069_v59 = vld [vmem:[%s14003_s22 + $0xea0] ss:$16 sps:$4 sm:$0xff]  }
 0x107   : > { %8425 = vmatpush1.bf16.msra.mxu0 %v12000_v60  ;;  %v12074_v60 = vld [vmem:[%s14003_s22 + $0xc84] ss:$16 sps:$4 sm:$0xff]  }
 0x108   : > { %8468 = vmatpush1.bf16.msra.mxu1 %v12003_v61  ;;  %8426 = vmatprep.subr.bf16.mxu0 %v12008_v62  ;;  %v12077_v61 = vld [vmem:[%s14003_s22 + $0xe84] ss:$16 sps:$4 sm:$0xff]   ;;  %v12072_v62 = vld [vmem:[%s14003_s22 + $0xc80] ss:$16 sps:$4 sm:$0xff]  }
 0x109   : > { %8469 = vmatprep.subr.bf16.mxu1 %v12011_v63  ;;  %v12075_v63 = vld [vmem:[%s14003_s22 + $0xe80] ss:$16 sps:$4 sm:$0xff]  }
 0x10b   : > { %8427 = vmatpush2.bf16.msra.mxu0 %v12006_v0  ;;  %v12080_v0 = vld [vmem:[%s14003_s22 + $0xc64] ss:$16 sps:$4 sm:$0xff]  }
 0x10c   : > { %8470 = vmatpush2.bf16.msra.mxu1 %v12009_v1  ;;  %8428 = vmatprep.subr.bf16.mxu0 %v12014_v2  ;;  %v12083_v1 = vld [vmem:[%s14003_s22 + $0xe64] ss:$16 sps:$4 sm:$0xff]   ;;  %v12078_v2 = vld [vmem:[%s14003_s22 + $0xc60] ss:$16 sps:$4 sm:$0xff]  }
 0x10d   : > { %8471 = vmatprep.subr.bf16.mxu1 %v12017_v3  ;;  %v12081_v3 = vld [vmem:[%s14003_s22 + $0xe60] ss:$16 sps:$4 sm:$0xff]  }
 0x10f   : > { %8429 = vmatpush2.bf16.msra.mxu0 %v12012_v4  ;;  %v12086_v4 = vld [vmem:[%s14003_s22 + $0xc44] ss:$16 sps:$4 sm:$0xff]  }
 0x110   : > { %8472 = vmatpush2.bf16.msra.mxu1 %v12015_v5  ;;  %8430 = vmatprep.subr.bf16.mxu0 %v12020_v6  ;;  %v12089_v5 = vld [vmem:[%s14003_s22 + $0xe44] ss:$16 sps:$4 sm:$0xff]   ;;  %v12084_v6 = vld [vmem:[%s14003_s22 + $0xc40] ss:$16 sps:$4 sm:$0xff]  }
 0x111   : > { %8473 = vmatprep.subr.bf16.mxu1 %v12023_v7  ;;  %v12087_v7 = vld [vmem:[%s14003_s22 + $0xe40] ss:$16 sps:$4 sm:$0xff]  }
 0x113   : > { %8431 = vmatpush2.bf16.msra.mxu0 %v12018_v10  ;;  %v12092_v10 = vld [vmem:[%s14003_s22 + $0xc24] ss:$16 sps:$4 sm:$0xff]  }
 0x114   : > { %8474 = vmatpush2.bf16.msra.mxu1 %v12021_v11  ;;  %8432 = vmatprep.subr.bf16.mxu0 %v12026_v12  ;;  %v12095_v11 = vld [vmem:[%s14003_s22 + $0xe24] ss:$16 sps:$4 sm:$0xff]   ;;  %v12090_v12 = vld [vmem:[%s14003_s22 + $0xc20] ss:$16 sps:$4 sm:$0xff]  }
 0x115   : > { %8475 = vmatprep.subr.bf16.mxu1 %v12029_v13  ;;  %v12093_v13 = vld [vmem:[%s14003_s22 + $0xe20] ss:$16 sps:$4 sm:$0xff]  }
 0x117   : > { %8433 = vmatpush2.bf16.msra.mxu0 %v12024_v14  ;;  %v12098_v14 = vld [vmem:[%s14003_s22 + $0xc04] ss:$16 sps:$4 sm:$0xff]  }
 0x118   : > { %8476 = vmatpush2.bf16.msra.mxu1 %v12027_v15  ;;  %8434 = vmatprep.subr.bf16.mxu0 %v12032_v16  ;;  %v12101_v15 = vld [vmem:[%s14003_s22 + $0xe04] ss:$16 sps:$4 sm:$0xff]   ;;  %v12096_v16 = vld [vmem:[%s14003_s22 + $0xc00] ss:$16 sps:$4 sm:$0xff]  }
 0x119   : > { %8477 = vmatprep.subr.bf16.mxu1 %v12035_v17  ;;  %v12099_v17 = vld [vmem:[%s14003_s22 + $0xe00] ss:$16 sps:$4 sm:$0xff]  }
 0x11b   : > { %8435 = vmatpush2.bf16.msra.mxu0 %v12030_v18  ;;  %v12104_v18 = vld [vmem:[%s14003_s22 + $0xde4] ss:$16 sps:$4 sm:$0xff]  }
 0x11c   : > { %8478 = vmatpush2.bf16.msra.mxu1 %v12033_v19  ;;  %8436 = vmatprep.subr.bf16.mxu0 %v12038_v22  ;;  %v12107_v19 = vld [vmem:[%s14003_s22 + $0xfe4] ss:$16 sps:$4 sm:$0xff]   ;;  %v12102_v22 = vld [vmem:[%s14003_s22 + $0xde0] ss:$16 sps:$4 sm:$0xff]  }
 0x11d   : > { %8479 = vmatprep.subr.bf16.mxu1 %v12041_v23  ;;  %v12105_v23 = vld [vmem:[%s14003_s22 + $0xfe0] ss:$16 sps:$4 sm:$0xff]  }
 0x11f   : > { %8437 = vmatpush2.bf16.msra.mxu0 %v12036_v24  ;;  %v12110_v24 = vld [vmem:[%s14003_s22 + $0xdc4] ss:$16 sps:$4 sm:$0xff]  }
 0x120   : > { %8480 = vmatpush2.bf16.msra.mxu1 %v12039_v25  ;;  %8438 = vmatprep.subr.bf16.mxu0 %v12044_v26  ;;  %v12113_v25 = vld [vmem:[%s14003_s22 + $0xfc4] ss:$16 sps:$4 sm:$0xff]   ;;  %v12108_v26 = vld [vmem:[%s14003_s22 + $0xdc0] ss:$16 sps:$4 sm:$0xff]  }
 0x121   : > { %8481 = vmatprep.subr.bf16.mxu1 %v12047_v27  ;;  %v12111_v27 = vld [vmem:[%s14003_s22 + $0xfc0] ss:$16 sps:$4 sm:$0xff]  }
 0x123   : > { %8439 = vmatpush2.bf16.msra.mxu0 %v12042_v32  ;;  %v12116_v32 = vld [vmem:[%s14003_s22 + $0xda4] ss:$16 sps:$4 sm:$0xff]  }
 0x124   : > { %8482 = vmatpush2.bf16.msra.mxu1 %v12045_v34  ;;  %8440 = vmatprep.subr.bf16.mxu0 %v12050_v36  ;;  %v12119_v34 = vld [vmem:[%s14003_s22 + $0xfa4] ss:$16 sps:$4 sm:$0xff]   ;;  %v12114_v36 = vld [vmem:[%s14003_s22 + $0xda0] ss:$16 sps:$4 sm:$0xff]  }
 0x125   : > { %8483 = vmatprep.subr.bf16.mxu1 %v12053_v37  ;;  %v12117_v37 = vld [vmem:[%s14003_s22 + $0xfa0] ss:$16 sps:$4 sm:$0xff]  }
 0x127   : > { %8441 = vmatpush2.bf16.msra.mxu0 %v12048_v38  ;;  %v12122_v38 = vld [vmem:[%s14003_s22 + $0xd84] ss:$16 sps:$4 sm:$0xff]  }
 0x128   : > { %8484 = vmatpush2.bf16.msra.mxu1 %v12051_v39  ;;  %8496 = vmatprep.subr.bf16.mxu0 %v12056_v40  ;;  %v12125_v39 = vld [vmem:[%s14003_s22 + $0xf84] ss:$16 sps:$4 sm:$0xff]   ;;  %v12120_v40 = vld [vmem:[%s14003_s22 + $0xd80] ss:$16 sps:$4 sm:$0xff]  }
 0x129   : > { %8539 = vmatprep.subr.bf16.mxu1 %v12059_v42  ;;  %v12123_v42 = vld [vmem:[%s14003_s22 + $0xf80] ss:$16 sps:$4 sm:$0xff]  }
 0x12a   : > { %8443 = vmatmul.mubr.bf16.vlgmr.msra.gmra.mxu0 %v14323_v48 }
 0x12b   : > { %8486 = vmatmul.mubr.bf16.vlgmr.msra.gmra.mxu1 %v14327_v49  ;;  %8497 = vmatpush1.bf16.msra.mxu0 %v12054_v45  ;;  %v12128_v45 = vld [vmem:[%s14003_s22 + $0xd64] ss:$16 sps:$4 sm:$0xff]  }
 0x12c   : > { %8540 = vmatpush1.bf16.msra.mxu1 %v12057_v51  ;;  %8498 = vmatprep.subr.bf16.mxu0 %v12062_v52  ;;  %v12131_v51 = vld [vmem:[%s14003_s22 + $0xf64] ss:$16 sps:$4 sm:$0xff]   ;;  %v12126_v52 = vld [vmem:[%s14003_s22 + $0xd60] ss:$16 sps:$4 sm:$0xff]  }
 0x12d   : > { %8541 = vmatprep.subr.bf16.mxu1 %v12065_v28  ;;  %8528 = vmatprep.mubr.bf16.mxu0 %v14339_v29  ;;  %v12129_v28 = vld [vmem:[%s14003_s22 + $0xf60] ss:$16 sps:$4 sm:$0xff]  }
 0x12e   : > { %8571 = vmatprep.mubr.bf16.mxu1 %v14343_v30 }
 0x12f   : > { %8499 = vmatpush1.bf16.msra.mxu0 %v12060_v31  ;;  %v12134_v31 = vld [vmem:[%s14003_s22 + $0xd44] ss:$16 sps:$4 sm:$0xff]  }
 0x130   : > { %8542 = vmatpush1.bf16.msra.mxu1 %v12063_v54  ;;  %8500 = vmatprep.subr.bf16.mxu0 %v12068_v56  ;;  %v12137_v54 = vld [vmem:[%s14003_s22 + $0xf44] ss:$16 sps:$4 sm:$0xff]   ;;  %v12132_v56 = vld [vmem:[%s14003_s22 + $0xd40] ss:$16 sps:$4 sm:$0xff]  }
 0x131   : > { %8543 = vmatprep.subr.bf16.mxu1 %v12071_v57  ;;  %v12135_v57 = vld [vmem:[%s14003_s22 + $0xf40] ss:$16 sps:$4 sm:$0xff]  }
 0x133   : > { %8501 = vmatpush1.bf16.msra.mxu0 %v12066_v58  ;;  %v1618_v58 = vlaneseq }
 0x134   : > { %8544 = vmatpush1.bf16.msra.mxu1 %v12069_v59  ;;  %8502 = vmatprep.subr.bf16.mxu0 %v12074_v60  ;;  %v12140_v59 = vld [vmem:[%s14003_s22 + $0xd24] ss:$16 sps:$4 sm:$0xff]  }
 0x135   : > { %8545 = vmatprep.subr.bf16.mxu1 %v12077_v61  ;;  %v12143_v60 = vld [vmem:[%s14003_s22 + $0xf24] ss:$16 sps:$4 sm:$0xff]   ;;  %v12138_v61 = vld [vmem:[%s14003_s22 + $0xd20] ss:$16 sps:$4 sm:$0xff]  }
 0x137   : > { %8503 = vmatpush1.bf16.msra.mxu0 %v12072_v62  ;;  %v12141_v62 = vld [vmem:[%s14003_s22 + $0xf20] ss:$16 sps:$4 sm:$0xff]  }
 0x138   : > { %8546 = vmatpush1.bf16.msra.mxu1 %v12075_v63  ;;  %8504 = vmatprep.subr.bf16.mxu0 %v12080_v0  ;;  %v14403_v63 = vshrl.u32 %v1618_v58, 7  ;;  %v12146_v0 = vld [vmem:[%s14003_s22 + $0xd04] ss:$16 sps:$4 sm:$0xff]   ;;  %v12168_v58 = vld [vmem:[%s14003_s22 + $0x1080] ss:$16 sps:$4 sm:$0xff]  }
 0x139   : > { %8547 = vmatprep.subr.bf16.mxu1 %v12083_v1  ;;  %v12149_v1 = vld [vmem:[%s14003_s22 + $0xf04] ss:$16 sps:$4 sm:$0xff]  }
 0x13b   : > { %8505 = vmatpush1.bf16.msra.mxu0 %v12078_v2  ;;  %v12144_v2 = vld [vmem:[%s14003_s22 + $0xd00] ss:$16 sps:$4 sm:$0xff]  }
 0x13c   : > { %8548 = vmatpush1.bf16.msra.mxu1 %v12081_v3  ;;  %8506 = vmatprep.subr.bf16.mxu0 %v12086_v4  ;;  %v12147_v3 = vld [vmem:[%s14003_s22 + $0xf00] ss:$16 sps:$4 sm:$0xff]  }
 0x13d   : > { %8549 = vmatprep.subr.bf16.mxu1 %v12089_v5  ;;  %v1616_v4 = vld [vmem:[%s14011_s26] sm:$0xf]  ;;  %v1620_v5 = vsub.s32 0, %v14403_v63 }
 0x13f   : > { %8507 = vmatpush1.bf16.msra.mxu0 %v12084_v6  ;;  %v12152_v6 = vld [vmem:[%s14003_s22 + $0x10e4] ss:$16 sps:$4 sm:$0xff]  }
 0x140   : > { %8550 = vmatpush1.bf16.msra.mxu1 %v12087_v7  ;;  %8508 = vmatprep.subr.bf16.mxu0 %v12092_v10  ;;  %v12155_v7 = vld [vmem:[%s14003_s22 + $0x12e4] ss:$16 sps:$4 sm:$0xff]  }
 0x141   : > { %8551 = vmatprep.subr.bf16.mxu1 %v12095_v11  ;;  %v14416_v10 = vld [vmem:[%s16037_s0 + $0x40] sm:$0xff] }
 0x142   : > { %v12150_v11 = vld [vmem:[%s14003_s22 + $0x10e0] ss:$16 sps:$4 sm:$0xff]  }
 0x143   : > { %8509 = vmatpush1.bf16.msra.mxu0 %v12090_v12  ;;  %v14422_v12 = vld [vmem:[%s16037_s0 + $0xe0] sm:$0xff] }
 0x144   : > { %8552 = vmatpush1.bf16.msra.mxu1 %v12093_v13  ;;  %8510 = vmatprep.subr.bf16.mxu0 %v12098_v14  ;;  %v14427_v13 = vld [vmem:[%s16037_s0 + $0x48] sm:$0xff]  ;;  %v14431_v14 = vcombine.low %v14308_v44, %v14314_v46  ;;  %v12161_v44 = vld [vmem:[%s14003_s22 + $0x12c4] ss:$16 sps:$4 sm:$0xff]   ;;  %v14447_v46 = vcombine.high %v14416_v10, %v14422_v12 }
 0x145   : > { %8553 = vmatprep.subr.bf16.mxu1 %v12101_v15  ;;  %v14435_v15 = vcombine.low %v14319_v47, %v14332_v50 }
 0x147   : > { %8511 = vmatpush1.bf16.msra.mxu0 %v12096_v16  ;;  %v14440_v16 = vld [vmem:[%s16037_s0 + $0xe8] sm:$0xff] }
 0x148   : > { %8554 = vmatpush1.bf16.msra.mxu1 %v12099_v17  ;;  %8512 = vmatprep.subr.bf16.mxu0 %v12104_v18  ;;  %v1621_v17 = vrot.slane %v1616_v4, %v1620_v5  ;;  %v12153_v18 = vld [vmem:[%s14003_s22 + $0x12e0] ss:$16 sps:$4 sm:$0xff]   ;;  %v14451_v47 = vcombine.high %v14427_v13, %v14440_v16 }
 0x149   : > { %8555 = vmatprep.subr.bf16.mxu1 %v12107_v19  ;;  %v12158_v19 = vld [vmem:[%s14003_s22 + $0x10c4] ss:$16 sps:$4 sm:$0xff]   ;;  %v12183_v5 = vld [vmem:[%s14003_s22 + $0x1240] ss:$16 sps:$4 sm:$0xff]  }
 0x14b   : > { %8513 = vmatpush2.bf16.msra.mxu0 %v12102_v22 }
 0x14c   : > { %8556 = vmatpush2.bf16.msra.mxu1 %v12105_v23  ;;  %8514 = vmatprep.subr.bf16.mxu0 %v12110_v24  ;;  %v12156_v23 = vld [vmem:[%s14003_s22 + $0x10c0] ss:$16 sps:$4 sm:$0xff]  }
 0x14d   : > { %8557 = vmatprep.subr.bf16.mxu1 %v12113_v25  ;;  %v1624_v25 = vsub.s32 1, %v14403_v63 }
 0x14f   : > { %8515 = vmatpush2.bf16.msra.mxu0 %v12108_v26  ;;  %v12159_v26 = vld [vmem:[%s14003_s22 + $0x12c0] ss:$16 sps:$4 sm:$0xff]  }
 0x150   : > { %8558 = vmatpush2.bf16.msra.mxu1 %v12111_v27  ;;  %8516 = vmatprep.subr.bf16.mxu0 %v12116_v32 }
 0x151   : > { %8559 = vmatprep.subr.bf16.mxu1 %v12119_v34  ;;  %v12164_v34 = vld [vmem:[%s14003_s22 + $0x10a4] ss:$16 sps:$4 sm:$0xff]  }
 0x153   : > { %8517 = vmatpush2.bf16.msra.mxu0 %v12114_v36  ;;  %v12167_v36 = vld [vmem:[%s14003_s22 + $0x12a4] ss:$16 sps:$4 sm:$0xff]  }
 0x154   : > { %8560 = vmatpush2.bf16.msra.mxu1 %v12117_v37  ;;  %8518 = vmatprep.subr.bf16.mxu0 %v12122_v38 }
 0x155   : > { %8561 = vmatprep.subr.bf16.mxu1 %v12125_v39 }
 0x157   : > { %8519 = vmatpush2.bf16.msra.mxu0 %v12120_v40  ;;  %v12162_v40 = vld [vmem:[%s14003_s22 + $0x10a0] ss:$16 sps:$4 sm:$0xff]  }
 0x158   : > { %8562 = vmatpush2.bf16.msra.mxu1 %v12123_v42  ;;  %8520 = vmatprep.subr.bf16.mxu0 %v12128_v45  ;;  %v14469_v42 = vrot.slane %v1616_v4, %v1624_v25  ;;  %v12180_v4 = vld [vmem:[%s14003_s22 + $0x1040] ss:$16 sps:$4 sm:$0xff]  }
 0x159   : > { %8563 = vmatprep.subr.bf16.mxu1 %v12131_v51  ;;  %v12165_v51 = vld [vmem:[%s14003_s22 + $0x12a0] ss:$16 sps:$4 sm:$0xff]  }
 0x15a   : > { %v12201_v25 = vld [vmem:[%s14003_s22 + $0x13e0] ss:$16 sps:$4 sm:$0xff]  }
 0x15b   : > { %8521 = vmatpush2.bf16.msra.mxu0 %v12126_v52 }
 0x15c   : > { %8564 = vmatpush2.bf16.msra.mxu1 %v12129_v28  ;;  %8522 = vmatprep.subr.bf16.mxu0 %v12134_v31  ;;  %v12170_v28 = vld [vmem:[%s14003_s22 + $0x1084] ss:$16 sps:$4 sm:$0xff]  }
 0x15d   : > { %8565 = vmatprep.subr.bf16.mxu1 %v12137_v54  ;;  %v12173_v31 = vld [vmem:[%s14003_s22 + $0x1284] ss:$16 sps:$4 sm:$0xff]  }
 0x15f   : > { %8523 = vmatpush2.bf16.msra.mxu0 %v12132_v56 }
 0x160   : > { %8566 = vmatpush2.bf16.msra.mxu1 %v12135_v57  ;;  %8524 = vmatprep.subr.bf16.mxu0 %v12140_v59 }
 0x161   : > { %8567 = vmatprep.subr.bf16.mxu1 %v12143_v60  ;;  %v12171_v60 = vld [vmem:[%s14003_s22 + $0x1280] ss:$16 sps:$4 sm:$0xff]  }
 0x163   : > { %8525 = vmatpush2.bf16.msra.mxu0 %v12138_v61  ;;  %v12176_v61 = vld [vmem:[%s14003_s22 + $0x1064] ss:$16 sps:$4 sm:$0xff]  }
 0x164   : > { %8568 = vmatpush2.bf16.msra.mxu1 %v12141_v62  ;;  %8526 = vmatprep.subr.bf16.mxu0 %v12146_v0  ;;  %v12179_v62 = vld [vmem:[%s14003_s22 + $0x1264] ss:$16 sps:$4 sm:$0xff]   ;;  %v12174_v0 = vld [vmem:[%s14003_s22 + $0x1060] ss:$16 sps:$4 sm:$0xff]  }
 0x165   : > { %8569 = vmatprep.subr.bf16.mxu1 %v12149_v1  ;;  %v12177_v1 = vld [vmem:[%s14003_s22 + $0x1260] ss:$16 sps:$4 sm:$0xff]  }
 0x167   : > { %8527 = vmatpush2.bf16.msra.mxu0 %v12144_v2  ;;  %v12182_v2 = vld [vmem:[%s14003_s22 + $0x1044] ss:$16 sps:$4 sm:$0xff]  }
 0x168   : > { %8570 = vmatpush2.bf16.msra.mxu1 %v12147_v3  ;;  %8582 = vmatprep.subr.bf16.mxu0 %v12152_v6  ;;  %v12185_v3 = vld [vmem:[%s14003_s22 + $0x1244] ss:$16 sps:$4 sm:$0xff]  }
 0x169   : > { %8625 = vmatprep.subr.bf16.mxu1 %v12155_v7  ;;  %v12188_v6 = vld [vmem:[%s14003_s22 + $0x1024] ss:$16 sps:$4 sm:$0xff]  }
 0x16a   : > { %v8272_v50 = vpop.f32.mrf.mxu0  ;;  %8529 = vmatmul.mubr.bf16.vlgmr.msra.gmra.mxu0 %v14431_v14  ;;  %v12191_v7 = vld [vmem:[%s14003_s22 + $0x1224] ss:$16 sps:$4 sm:$0xff]  }
 0x16b   : > { %v8315_v22 = vpop.f32.mrf.mxu1  ;;  %8572 = vmatmul.mubr.bf16.vlgmr.msra.gmra.mxu1 %v14435_v15  ;;  %v8273_v24 = vadd.f32 %v8272_v50, %v1621_v17  ;;  %8583 = vmatpush1.bf16.msra.mxu0 %v12150_v11  ;;  %v12186_v11 = vld [vmem:[%s14003_s22 + $0x1020] ss:$16 sps:$4 sm:$0xff]  }
 0x16c   : > { %8626 = vmatpush1.bf16.msra.mxu1 %v12153_v18  ;;  %v14458_v27 = vpop.f32.mrf.mxu0  ;;  %8584 = vmatprep.subr.bf16.mxu0 %v12158_v19  ;;  %v12194_v18 = vld [vmem:[%s14003_s22 + $0x1004] ss:$16 sps:$4 sm:$0xff]   ;;  %v12195_v50 = vld [vmem:[%s14003_s22 + $0x1200] ss:$16 sps:$4 sm:$0xff]  }
 0x16d   : > { %v14460_v32 = vpop.f32.mrf.mxu1  ;;  %8627 = vmatprep.subr.bf16.mxu1 %v12161_v44  ;;  %v14464_v37 = vadd.f32 %v8315_v22, %v8273_v24  ;;  %8614 = vmatprep.mubr.bf16.mxu0 %v14447_v46  ;;  %v12197_v19 = vld [vmem:[%s14003_s22 + $0x1204] ss:$16 sps:$4 sm:$0xff]   ;;  %v12192_v44 = vld [vmem:[%s14003_s22 + $0x1000] ss:$16 sps:$4 sm:$0xff]  }
 0x16e   : > { %8657 = vmatprep.mubr.bf16.mxu1 %v14451_v47  ;;  %v8276_v38 = vpop.f32.mrf.mxu0  ;;  %v12200_v22 = vld [vmem:[%s14003_s22 + $0x11e4] ss:$16 sps:$4 sm:$0xff]   ;;  %v12198_v24 = vld [vmem:[%s14003_s22 + $0x11e0] ss:$16 sps:$4 sm:$0xff]  }
 0x16f   : > { %v8319_v39 = vpop.f32.mrf.mxu1  ;;  %v8277_v45 = vadd.f32 %v8276_v38, %v1621_v17  ;;  %8585 = vmatpush1.bf16.msra.mxu0 %v12156_v23  ;;  %v12189_v17 = vld [vmem:[%s14003_s22 + $0x1220] ss:$16 sps:$4 sm:$0xff]   ;;  %v12203_v23 = vld [vmem:[%s14003_s22 + $0x13e4] ss:$16 sps:$4 sm:$0xff]  }
 0x170   : > { %8628 = vmatpush1.bf16.msra.mxu1 %v12159_v26  ;;  %v8278_v52 = vpop.f32.mrf.mxu0  ;;  %8586 = vmatprep.subr.bf16.mxu0 %v12164_v34  ;;  %v12206_v26 = vld [vmem:[%s14003_s22 + $0x11c4] ss:$16 sps:$4 sm:$0xff]   ;;  %v12207_v38 = vld [vmem:[%s14003_s22 + $0x13c0] ss:$16 sps:$4 sm:$0xff]  }
 0x171   : > { %8629 = vmatprep.subr.bf16.mxu1 %v12167_v36  ;;  %v14474_v54 = vadd.f32 %v8319_v39, %v8277_v45  ;;  %v8279_v56 = vadd.f32 %v8278_v52, %v14469_v42  ;;  %v8321_v57 = vpop.f32.mrf.mxu1  ;;  %v12209_v34 = vld [vmem:[%s14003_s22 + $0x13c4] ss:$16 sps:$4 sm:$0xff]   ;;  %v12204_v36 = vld [vmem:[%s14003_s22 + $0x11c0] ss:$16 sps:$4 sm:$0xff]  }
 0x172   : > { %v12212_v39 = vld [vmem:[%s14003_s22 + $0x11a4] ss:$16 sps:$4 sm:$0xff]   ;;  %v12210_v45 = vld [vmem:[%s14003_s22 + $0x11a0] ss:$16 sps:$4 sm:$0xff]  }
 0x173   : > { %v14478_v59 = vadd.f32 %v8321_v57, %v8279_v56  ;;  %8587 = vmatpush1.bf16.msra.mxu0 %v12162_v40  ;;  %v12215_v40 = vld [vmem:[%s14003_s22 + $0x13a4] ss:$16 sps:$4 sm:$0xff]   ;;  %v12219_v56 = vld [vmem:[%s14003_s22 + $0x1380] ss:$16 sps:$4 sm:$0xff]  }
 0x174   : > { %8630 = vmatpush1.bf16.msra.mxu1 %v12165_v51  ;;  %8588 = vmatprep.subr.bf16.mxu0 %v12170_v28  ;;  %v12213_v51 = vld [vmem:[%s14003_s22 + $0x13a0] ss:$16 sps:$4 sm:$0xff]   ;;  %v12218_v52 = vld [vmem:[%s14003_s22 + $0x1184] ss:$16 sps:$4 sm:$0xff]  }
 0x175   : > { %8631 = vmatprep.subr.bf16.mxu1 %v12173_v31  ;;  %v12221_v28 = vld [vmem:[%s14003_s22 + $0x1384] ss:$16 sps:$4 sm:$0xff]   ;;  %v12216_v31 = vld [vmem:[%s14003_s22 + $0x1180] ss:$16 sps:$4 sm:$0xff]  }
 0x176   : > { %v12224_v57 = vld [vmem:[%s14003_s22 + $0x1164] ss:$16 sps:$4 sm:$0xff]  }
 0x177   : > { %8589 = vmatpush1.bf16.msra.mxu0 %v12168_v58  ;;  %v12227_v58 = vld [vmem:[%s14003_s22 + $0x1364] ss:$16 sps:$4 sm:$0xff]  }
 0x178   : > { %8632 = vmatpush1.bf16.msra.mxu1 %v12171_v60  ;;  %8590 = vmatprep.subr.bf16.mxu0 %v12176_v61  ;;  %v12222_v60 = vld [vmem:[%s14003_s22 + $0x1160] ss:$16 sps:$4 sm:$0xff]  }
 0x179   : > { %8633 = vmatprep.subr.bf16.mxu1 %v12179_v62  ;;  %v12225_v61 = vld [vmem:[%s14003_s22 + $0x1360] ss:$16 sps:$4 sm:$0xff]   ;;  %v12230_v62 = vld [vmem:[%s14003_s22 + $0x1144] ss:$16 sps:$4 sm:$0xff]  }
 0x17b   : > { %8591 = vmatpush1.bf16.msra.mxu0 %v12174_v0  ;;  %v12233_v0 = vld [vmem:[%s14003_s22 + $0x1344] ss:$16 sps:$4 sm:$0xff]  }
 0x17c   : > { %8634 = vmatpush1.bf16.msra.mxu1 %v12177_v1  ;;  %8592 = vmatprep.subr.bf16.mxu0 %v12182_v2  ;;  %v12228_v1 = vld [vmem:[%s14003_s22 + $0x1140] ss:$16 sps:$4 sm:$0xff]  }
 0x17d   : > { %8635 = vmatprep.subr.bf16.mxu1 %v12185_v3  ;;  %v12231_v2 = vld [vmem:[%s14003_s22 + $0x1340] ss:$16 sps:$4 sm:$0xff]   ;;  %v12236_v3 = vld [vmem:[%s14003_s22 + $0x1124] ss:$16 sps:$4 sm:$0xff]  }
 0x17f   : > { %8593 = vmatpush1.bf16.msra.mxu0 %v12180_v4  ;;  %v12239_v4 = vld [vmem:[%s14003_s22 + $0x1324] ss:$16 sps:$4 sm:$0xff]  }
 0x180   : > { %8636 = vmatpush1.bf16.msra.mxu1 %v12183_v5  ;;  %8594 = vmatprep.subr.bf16.mxu0 %v12188_v6  ;;  %v12234_v5 = vld [vmem:[%s14003_s22 + $0x1120] ss:$16 sps:$4 sm:$0xff]  }
 0x181   : > { %8637 = vmatprep.subr.bf16.mxu1 %v12191_v7  ;;  %v12237_v6 = vld [vmem:[%s14003_s22 + $0x1320] ss:$16 sps:$4 sm:$0xff]   ;;  %v12242_v7 = vld [vmem:[%s14003_s22 + $0x1104] ss:$16 sps:$4 sm:$0xff]  }
 0x183   : > { %8595 = vmatpush1.bf16.msra.mxu0 %v12186_v11  ;;  %v12245_v11 = vld [vmem:[%s14003_s22 + $0x1304] ss:$16 sps:$4 sm:$0xff]  }
 0x184   : > { %8638 = vmatpush1.bf16.msra.mxu1 %v12189_v17  ;;  %8596 = vmatprep.subr.bf16.mxu0 %v12194_v18  ;;  %v12240_v17 = vld [vmem:[%s14003_s22 + $0x1100] ss:$16 sps:$4 sm:$0xff]  }
 0x185   : > { %8639 = vmatprep.subr.bf16.mxu1 %v12197_v19  ;;  %v12243_v18 = vld [vmem:[%s14003_s22 + $0x1300] ss:$16 sps:$4 sm:$0xff]   ;;  %v12248_v19 = vld [vmem:[%s14003_s22 + $0x14e4] ss:$16 sps:$4 sm:$0xff]  }
 0x187   : > { %8597 = vmatpush1.bf16.msra.mxu0 %v12192_v44  ;;  %v12251_v44 = vld [vmem:[%s14003_s22 + $0x16e4] ss:$16 sps:$4 sm:$0xff]  }
 0x188   : > { %8640 = vmatpush1.bf16.msra.mxu1 %v12195_v50  ;;  %8598 = vmatprep.subr.bf16.mxu0 %v12200_v22  ;;  %v14534_v50 = vld [vmem:[%s16037_s0 + $0x50] sm:$0xff] }
 0x189   : > { %8641 = vmatprep.subr.bf16.mxu1 %v12203_v23  ;;  %v12246_v22 = vld [vmem:[%s14003_s22 + $0x14e0] ss:$16 sps:$4 sm:$0xff]   ;;  %v14539_v23 = vcombine.low %v14416_v10, %v14422_v12  ;;  %v12254_v12 = vld [vmem:[%s14003_s22 + $0x14c4] ss:$16 sps:$4 sm:$0xff]  }
 0x18a   : > { %v12249_v10 = vld [vmem:[%s14003_s22 + $0x16e0] ss:$16 sps:$4 sm:$0xff]  }
 0x18b   : > { %8599 = vmatpush2.bf16.msra.mxu0 %v12198_v24  ;;  %v14543_v24 = vcombine.low %v14427_v13, %v14440_v16  ;;  %v12257_v13 = vld [vmem:[%s14003_s22 + $0x16c4] ss:$16 sps:$4 sm:$0xff]   ;;  %v12252_v16 = vld [vmem:[%s14003_s22 + $0x14c0] ss:$16 sps:$4 sm:$0xff]  }
 0x18c   : > { %8642 = vmatpush2.bf16.msra.mxu1 %v12201_v25  ;;  %8600 = vmatprep.subr.bf16.mxu0 %v12206_v26  ;;  %v14548_v25 = vld [vmem:[%s16037_s0 + $0xf0] sm:$0xff]  ;;  %v14553_v26 = vld [vmem:[%s16037_s0 + $0x58] sm:$0xff] }
 0x18d   : > { %8643 = vmatprep.subr.bf16.mxu1 %v12209_v34  ;;  %v14558_v34 = vld [vmem:[%s16037_s0 + $0xf8] sm:$0xff] }
 0x18f   : > { %8601 = vmatpush2.bf16.msra.mxu0 %v12204_v36  ;;  %v12255_v36 = vld [vmem:[%s14003_s22 + $0x16c0] ss:$16 sps:$4 sm:$0xff]  }
 0x190   : > { %8644 = vmatpush2.bf16.msra.mxu1 %v12207_v38  ;;  %8602 = vmatprep.subr.bf16.mxu0 %v12212_v39  ;;  %v14567_v38 = vcombine.high %v14534_v50, %v14548_v25  ;;  %v14571_v39 = vcombine.high %v14553_v26, %v14558_v34 }
 0x191   : > { %8645 = vmatprep.subr.bf16.mxu1 %v12215_v40 }
 0x193   : > { %8603 = vmatpush2.bf16.msra.mxu0 %v12210_v45 }
 0x194   : > { %8646 = vmatpush2.bf16.msra.mxu1 %v12213_v51  ;;  %8604 = vmatprep.subr.bf16.mxu0 %v12218_v52 }
 0x195   : > { %8647 = vmatprep.subr.bf16.mxu1 %v12221_v28 }
 0x197   : > { %8605 = vmatpush2.bf16.msra.mxu0 %v12216_v31  ;;  %v12260_v31 = vld [vmem:[%s14003_s22 + $0x14a4] ss:$16 sps:$4 sm:$0xff]  }
 0x198   : > { %8648 = vmatpush2.bf16.msra.mxu1 %v12219_v56  ;;  %8606 = vmatprep.subr.bf16.mxu0 %v12224_v57  ;;  %v12263_v56 = vld [vmem:[%s14003_s22 + $0x16a4] ss:$16 sps:$4 sm:$0xff]  }
 0x199   : > { %8649 = vmatprep.subr.bf16.mxu1 %v12227_v58  ;;  %v12258_v58 = vld [vmem:[%s14003_s22 + $0x14a0] ss:$16 sps:$4 sm:$0xff]  }
 0x19b   : > { %8607 = vmatpush2.bf16.msra.mxu0 %v12222_v60  ;;  %v12261_v60 = vld [vmem:[%s14003_s22 + $0x16a0] ss:$16 sps:$4 sm:$0xff]  }
 0x19c   : > { %8650 = vmatpush2.bf16.msra.mxu1 %v12225_v61  ;;  %8608 = vmatprep.subr.bf16.mxu0 %v12230_v62 }
 0x19d   : > { %8651 = vmatprep.subr.bf16.mxu1 %v12233_v0  ;;  %v12266_v0 = vld [vmem:[%s14003_s22 + $0x1484] ss:$16 sps:$4 sm:$0xff]  }
 0x19f   : > { %8609 = vmatpush2.bf16.msra.mxu0 %v12228_v1  ;;  %v12269_v1 = vld [vmem:[%s14003_s22 + $0x1684] ss:$16 sps:$4 sm:$0xff]  }
 0x1a0   : > { %8652 = vmatpush2.bf16.msra.mxu1 %v12231_v2  ;;  %8610 = vmatprep.subr.bf16.mxu0 %v12236_v3  ;;  %v12264_v3 = vld [vmem:[%s14003_s22 + $0x1480] ss:$16 sps:$4 sm:$0xff]  }
 0x1a1   : > { %8653 = vmatprep.subr.bf16.mxu1 %v12239_v4  ;;  %v12267_v4 = vld [vmem:[%s14003_s22 + $0x1680] ss:$16 sps:$4 sm:$0xff]  }
 0x1a3   : > { %8611 = vmatpush2.bf16.msra.mxu0 %v12234_v5  ;;  %v12275_v5 = vld [vmem:[%s14003_s22 + $0x1664] ss:$16 sps:$4 sm:$0xff]  }
 0x1a4   : > { %8654 = vmatpush2.bf16.msra.mxu1 %v12237_v6  ;;  %8612 = vmatprep.subr.bf16.mxu0 %v12242_v7  ;;  %v12270_v6 = vld [vmem:[%s14003_s22 + $0x1460] ss:$16 sps:$4 sm:$0xff]  }
 0x1a5   : > { %8655 = vmatprep.subr.bf16.mxu1 %v12245_v11  ;;  %v12273_v7 = vld [vmem:[%s14003_s22 + $0x1660] ss:$16 sps:$4 sm:$0xff]   ;;  %v12278_v11 = vld [vmem:[%s14003_s22 + $0x1444] ss:$16 sps:$4 sm:$0xff]  }
 0x1a7   : > { %8613 = vmatpush2.bf16.msra.mxu0 %v12240_v17  ;;  %v12281_v17 = vld [vmem:[%s14003_s22 + $0x1644] ss:$16 sps:$4 sm:$0xff]  }
 0x1a8   : > { %8656 = vmatpush2.bf16.msra.mxu1 %v12243_v18  ;;  %8668 = vmatprep.subr.bf16.mxu0 %v12248_v19  ;;  %v12276_v18 = vld [vmem:[%s14003_s22 + $0x1440] ss:$16 sps:$4 sm:$0xff]  }
 0x1a9   : > { %8711 = vmatprep.subr.bf16.mxu1 %v12251_v44  ;;  %v12279_v19 = vld [vmem:[%s14003_s22 + $0x1640] ss:$16 sps:$4 sm:$0xff]   ;;  %v12284_v44 = vld [vmem:[%s14003_s22 + $0x1424] ss:$16 sps:$4 sm:$0xff]  }
 0x1aa   : > { %v8358_v40 = vpop.f32.mrf.mxu0  ;;  %8615 = vmatmul.mubr.bf16.vlgmr.msra.gmra.mxu0 %v14539_v23 }
 0x1ab   : > { %v8401_v45 = vpop.f32.mrf.mxu1  ;;  %8658 = vmatmul.mubr.bf16.vlgmr.msra.gmra.mxu1 %v14543_v24  ;;  %v8359_v51 = vadd.f32 %v8358_v40, %v14464_v37  ;;  %8669 = vmatpush1.bf16.msra.mxu0 %v12246_v22  ;;  %v12287_v22 = vld [vmem:[%s14003_s22 + $0x1624] ss:$16 sps:$4 sm:$0xff]   ;;  %v12291_v40 = vld [vmem:[%s14003_s22 + $0x1600] ss:$16 sps:$4 sm:$0xff]  }
 0x1ac   : > { %8712 = vmatpush1.bf16.msra.mxu1 %v12249_v10  ;;  %v14576_v52 = vpop.f32.mrf.mxu0  ;;  %8670 = vmatprep.subr.bf16.mxu0 %v12254_v12  ;;  %v12282_v10 = vld [vmem:[%s14003_s22 + $0x1420] ss:$16 sps:$4 sm:$0xff]  }
 0x1ad   : > { %v14578_v28 = vpop.f32.mrf.mxu1  ;;  %8713 = vmatprep.subr.bf16.mxu1 %v12257_v13  ;;  %v14582_v57 = vadd.f32 %v8401_v45, %v8359_v51  ;;  %8700 = vmatprep.mubr.bf16.mxu0 %v14567_v38  ;;  %v12285_v12 = vld [vmem:[%s14003_s22 + $0x1620] ss:$16 sps:$4 sm:$0xff]   ;;  %v12290_v13 = vld [vmem:[%s14003_s22 + $0x1404] ss:$16 sps:$4 sm:$0xff]  }
 0x1ae   : > { %8743 = vmatprep.mubr.bf16.mxu1 %v14571_v39  ;;  %v8362_v37 = vpop.f32.mrf.mxu0  ;;  %v12296_v45 = vld [vmem:[%s14003_s22 + $0x15e4] ss:$16 sps:$4 sm:$0xff]  }
 0x1af   : > { %v8363_v61 = vadd.f32 %v8362_v37, %v14474_v54  ;;  %8671 = vmatpush1.bf16.msra.mxu0 %v12252_v16  ;;  %v8405_v62 = vpop.f32.mrf.mxu1  ;;  %v12272_v54 = vld [vmem:[%s14003_s22 + $0x1464] ss:$16 sps:$4 sm:$0xff]   ;;  %v12300_v37 = vld [vmem:[%s14003_s22 + $0x15c0] ss:$16 sps:$4 sm:$0xff]  }
 0x1b0   : > { %8714 = vmatpush1.bf16.msra.mxu1 %v12255_v36  ;;  %8672 = vmatprep.subr.bf16.mxu0 %v12260_v31  ;;  %v12293_v16 = vld [vmem:[%s14003_s22 + $0x1604] ss:$16 sps:$4 sm:$0xff]   ;;  %v12288_v36 = vld [vmem:[%s14003_s22 + $0x1400] ss:$16 sps:$4 sm:$0xff]  }
 0x1b1   : > { %8715 = vmatprep.subr.bf16.mxu1 %v12263_v56  ;;  %v14591_v2 = vadd.f32 %v8405_v62, %v8363_v61  ;;  %v12299_v51 = vld [vmem:[%s14003_s22 + $0x17e4] ss:$16 sps:$4 sm:$0xff]   ;;  %v12294_v31 = vld [vmem:[%s14003_s22 + $0x15e0] ss:$16 sps:$4 sm:$0xff]  }
 0x1b2   : > { %v12297_v56 = vld [vmem:[%s14003_s22 + $0x17e0] ss:$16 sps:$4 sm:$0xff]   ;;  %v12308_v62 = vld [vmem:[%s14003_s22 + $0x15a4] ss:$16 sps:$4 sm:$0xff]  }
 0x1b3   : > { %8673 = vmatpush1.bf16.msra.mxu0 %v12258_v58  ;;  %v12302_v58 = vld [vmem:[%s14003_s22 + $0x15c4] ss:$16 sps:$4 sm:$0xff]   ;;  %v12303_v61 = vld [vmem:[%s14003_s22 + $0x17c0] ss:$16 sps:$4 sm:$0xff]  }
 0x1b4   : > { %8716 = vmatpush1.bf16.msra.mxu1 %v12261_v60  ;;  %8674 = vmatprep.subr.bf16.mxu0 %v12266_v0  ;;  %v12305_v60 = vld [vmem:[%s14003_s22 + $0x17c4] ss:$16 sps:$4 sm:$0xff]  }
 0x1b5   : > { %8717 = vmatprep.subr.bf16.mxu1 %v12269_v1  ;;  %v12311_v0 = vld [vmem:[%s14003_s22 + $0x17a4] ss:$16 sps:$4 sm:$0xff]   ;;  %v12306_v1 = vld [vmem:[%s14003_s22 + $0x15a0] ss:$16 sps:$4 sm:$0xff]  }
 0x1b7   : > { %8675 = vmatpush1.bf16.msra.mxu0 %v12264_v3  ;;  %v12309_v3 = vld [vmem:[%s14003_s22 + $0x17a0] ss:$16 sps:$4 sm:$0xff]  }
 0x1b8   : > { %8718 = vmatpush1.bf16.msra.mxu1 %v12267_v4  ;;  %8676 = vmatprep.subr.bf16.mxu0 %v12272_v54  ;;  %v12314_v4 = vld [vmem:[%s14003_s22 + $0x1584] ss:$16 sps:$4 sm:$0xff]  }
 0x1b9   : > { %8719 = vmatprep.subr.bf16.mxu1 %v12275_v5  ;;  %v12317_v54 = vld [vmem:[%s14003_s22 + $0x1784] ss:$16 sps:$4 sm:$0xff]   ;;  %v12312_v5 = vld [vmem:[%s14003_s22 + $0x1580] ss:$16 sps:$4 sm:$0xff]  }
 0x1bb   : > { %8677 = vmatpush1.bf16.msra.mxu0 %v12270_v6  ;;  %v12315_v6 = vld [vmem:[%s14003_s22 + $0x1780] ss:$16 sps:$4 sm:$0xff]  }
 0x1bc   : > { %8720 = vmatpush1.bf16.msra.mxu1 %v12273_v7  ;;  %8678 = vmatprep.subr.bf16.mxu0 %v12278_v11  ;;  %v12320_v7 = vld [vmem:[%s14003_s22 + $0x1564] ss:$16 sps:$4 sm:$0xff]  }
 0x1bd   : > { %8721 = vmatprep.subr.bf16.mxu1 %v12281_v17  ;;  %v12323_v11 = vld [vmem:[%s14003_s22 + $0x1764] ss:$16 sps:$4 sm:$0xff]   ;;  %v12318_v17 = vld [vmem:[%s14003_s22 + $0x1560] ss:$16 sps:$4 sm:$0xff]  }
 0x1bf   : > { %8679 = vmatpush1.bf16.msra.mxu0 %v12276_v18  ;;  %v12321_v18 = vld [vmem:[%s14003_s22 + $0x1760] ss:$16 sps:$4 sm:$0xff]  }
 0x1c0   : > { %8722 = vmatpush1.bf16.msra.mxu1 %v12279_v19  ;;  %8680 = vmatprep.subr.bf16.mxu0 %v12284_v44  ;;  %v12326_v19 = vld [vmem:[%s14003_s22 + $0x1544] ss:$16 sps:$4 sm:$0xff]  }
 0x1c1   : > { %8723 = vmatprep.subr.bf16.mxu1 %v12287_v22  ;;  %v12329_v44 = vld [vmem:[%s14003_s22 + $0x1744] ss:$16 sps:$4 sm:$0xff]   ;;  %v12324_v22 = vld [vmem:[%s14003_s22 + $0x1540] ss:$16 sps:$4 sm:$0xff]  }
 0x1c3   : > { %8681 = vmatpush1.bf16.msra.mxu0 %v12282_v10  ;;  %v12327_v10 = vld [vmem:[%s14003_s22 + $0x1740] ss:$16 sps:$4 sm:$0xff]  }
 0x1c4   : > { %8724 = vmatpush1.bf16.msra.mxu1 %v12285_v12  ;;  %8682 = vmatprep.subr.bf16.mxu0 %v12290_v13  ;;  %v12332_v12 = vld [vmem:[%s14003_s22 + $0x1524] ss:$16 sps:$4 sm:$0xff]  }
 0x1c5   : > { %8725 = vmatprep.subr.bf16.mxu1 %v12293_v16  ;;  %v12335_v13 = vld [vmem:[%s14003_s22 + $0x1724] ss:$16 sps:$4 sm:$0xff]   ;;  %v12330_v16 = vld [vmem:[%s14003_s22 + $0x1520] ss:$16 sps:$4 sm:$0xff]  }
 0x1c7   : > { %8683 = vmatpush1.bf16.msra.mxu0 %v12288_v36  ;;  %v12333_v36 = vld [vmem:[%s14003_s22 + $0x1720] ss:$16 sps:$4 sm:$0xff]  }
 0x1c8   : > { %8726 = vmatpush1.bf16.msra.mxu1 %v12291_v40  ;;  %8684 = vmatprep.subr.bf16.mxu0 %v12296_v45  ;;  %v12338_v40 = vld [vmem:[%s14003_s22 + $0x1504] ss:$16 sps:$4 sm:$0xff]  }
 0x1c9   : > { %8727 = vmatprep.subr.bf16.mxu1 %v12299_v51  ;;  %v12341_v45 = vld [vmem:[%s14003_s22 + $0x1704] ss:$16 sps:$4 sm:$0xff]   ;;  %v12336_v51 = vld [vmem:[%s14003_s22 + $0x1500] ss:$16 sps:$4 sm:$0xff]  }
 0x1cb   : > { %8685 = vmatpush2.bf16.msra.mxu0 %v12294_v31  ;;  %v12339_v31 = vld [vmem:[%s14003_s22 + $0x1700] ss:$16 sps:$4 sm:$0xff]  }
 0x1cc   : > { %8728 = vmatpush2.bf16.msra.mxu1 %v12297_v56  ;;  %8686 = vmatprep.subr.bf16.mxu0 %v12302_v58  ;;  %v12344_v56 = vld [vmem:[%s14003_s22 + $0x18e4] ss:$16 sps:$4 sm:$0xff]  }
 0x1cd   : > { %8729 = vmatprep.subr.bf16.mxu1 %v12305_v60  ;;  %v12347_v58 = vld [vmem:[%s14003_s22 + $0x1ae4] ss:$16 sps:$4 sm:$0xff]  }
 0x1ce   : > { %v14648_v60 = vld [vmem:[%s16037_s0 + $0x60] sm:$0xff] }
 0x1cf   : > { %8687 = vmatpush2.bf16.msra.mxu0 %v12300_v37  ;;  %v12342_v37 = vld [vmem:[%s14003_s22 + $0x18e0] ss:$16 sps:$4 sm:$0xff]  }
 0x1d0   : > { %8730 = vmatpush2.bf16.msra.mxu1 %v12303_v61  ;;  %8688 = vmatprep.subr.bf16.mxu0 %v12308_v62  ;;  %v14653_v61 = vcombine.low %v14534_v50, %v14548_v25  ;;  %v14657_v62 = vcombine.low %v14553_v26, %v14558_v34  ;;  %v12345_v50 = vld [vmem:[%s14003_s22 + $0x1ae0] ss:$16 sps:$4 sm:$0xff]   ;;  %v12350_v25 = vld [vmem:[%s14003_s22 + $0x18c4] ss:$16 sps:$4 sm:$0xff]  }
 0x1d1   : > { %8731 = vmatprep.subr.bf16.mxu1 %v12311_v0  ;;  %v14662_v0 = vld [vmem:[%s16037_s0 + $0x100] sm:$0xff] }
 0x1d2   : > { %v12353_v26 = vld [vmem:[%s14003_s22 + $0x1ac4] ss:$16 sps:$4 sm:$0xff]   ;;  %v12348_v34 = vld [vmem:[%s14003_s22 + $0x18c0] ss:$16 sps:$4 sm:$0xff]  }
 0x1d3   : > { %8689 = vmatpush2.bf16.msra.mxu0 %v12306_v1  ;;  %v14667_v1 = vld [vmem:[%s16037_s0 + $0x68] sm:$0xff] }
 0x1d4   : > { %8732 = vmatpush2.bf16.msra.mxu1 %v12309_v3  ;;  %8690 = vmatprep.subr.bf16.mxu0 %v12314_v4  ;;  %v14672_v3 = vld [vmem:[%s16037_s0 + $0x108] sm:$0xff]  ;;  %v12351_v4 = vld [vmem:[%s14003_s22 + $0x1ac0] ss:$16 sps:$4 sm:$0xff]  }
 0x1d5   : > { %8733 = vmatprep.subr.bf16.mxu1 %v12317_v54  ;;  %v14681_v54 = vcombine.high %v14648_v60, %v14662_v0 }
 0x1d7   : > { %8691 = vmatpush2.bf16.msra.mxu0 %v12312_v5  ;;  %v14685_v5 = vcombine.high %v14667_v1, %v14672_v3 }
 0x1d8   : > { %8734 = vmatpush2.bf16.msra.mxu1 %v12315_v6  ;;  %8692 = vmatprep.subr.bf16.mxu0 %v12320_v7  ;;  %v12356_v6 = vld [vmem:[%s14003_s22 + $0x18a4] ss:$16 sps:$4 sm:$0xff]  }
 0x1d9   : > { %8735 = vmatprep.subr.bf16.mxu1 %v12323_v11  ;;  %v12359_v7 = vld [vmem:[%s14003_s22 + $0x1aa4] ss:$16 sps:$4 sm:$0xff]   ;;  %v12354_v11 = vld [vmem:[%s14003_s22 + $0x18a0] ss:$16 sps:$4 sm:$0xff]  }
 0x1db   : > { %8693 = vmatpush2.bf16.msra.mxu0 %v12318_v17  ;;  %v12357_v17 = vld [vmem:[%s14003_s22 + $0x1aa0] ss:$16 sps:$4 sm:$0xff]  }
 0x1dc   : > { %8736 = vmatpush2.bf16.msra.mxu1 %v12321_v18  ;;  %8694 = vmatprep.subr.bf16.mxu0 %v12326_v19  ;;  %v12362_v18 = vld [vmem:[%s14003_s22 + $0x1884] ss:$16 sps:$4 sm:$0xff]  }
 0x1dd   : > { %8737 = vmatprep.subr.bf16.mxu1 %v12329_v44  ;;  %v12365_v19 = vld [vmem:[%s14003_s22 + $0x1a84] ss:$16 sps:$4 sm:$0xff]   ;;  %v12360_v44 = vld [vmem:[%s14003_s22 + $0x1880] ss:$16 sps:$4 sm:$0xff]  }
 0x1df   : > { %8695 = vmatpush2.bf16.msra.mxu0 %v12324_v22  ;;  %v12363_v22 = vld [vmem:[%s14003_s22 + $0x1a80] ss:$16 sps:$4 sm:$0xff]  }
 0x1e0   : > { %8738 = vmatpush2.bf16.msra.mxu1 %v12327_v10  ;;  %8696 = vmatprep.subr.bf16.mxu0 %v12332_v12  ;;  %v12368_v10 = vld [vmem:[%s14003_s22 + $0x1864] ss:$16 sps:$4 sm:$0xff]  }
 0x1e1   : > { %8739 = vmatprep.subr.bf16.mxu1 %v12335_v13  ;;  %v12371_v12 = vld [vmem:[%s14003_s22 + $0x1a64] ss:$16 sps:$4 sm:$0xff]   ;;  %v12366_v13 = vld [vmem:[%s14003_s22 + $0x1860] ss:$16 sps:$4 sm:$0xff]  }
 0x1e3   : > { %8697 = vmatpush2.bf16.msra.mxu0 %v12330_v16  ;;  %v12369_v16 = vld [vmem:[%s14003_s22 + $0x1a60] ss:$16 sps:$4 sm:$0xff]  }
 0x1e4   : > { %8740 = vmatpush2.bf16.msra.mxu1 %v12333_v36  ;;  %8698 = vmatprep.subr.bf16.mxu0 %v12338_v40  ;;  %v12374_v36 = vld [vmem:[%s14003_s22 + $0x1844] ss:$16 sps:$4 sm:$0xff]  }
 0x1e5   : > { %8741 = vmatprep.subr.bf16.mxu1 %v12341_v45  ;;  %v12377_v40 = vld [vmem:[%s14003_s22 + $0x1a44] ss:$16 sps:$4 sm:$0xff]   ;;  %v12372_v45 = vld [vmem:[%s14003_s22 + $0x1840] ss:$16 sps:$4 sm:$0xff]  }
 0x1e7   : > { %8699 = vmatpush2.bf16.msra.mxu0 %v12336_v51  ;;  %v12375_v51 = vld [vmem:[%s14003_s22 + $0x1a40] ss:$16 sps:$4 sm:$0xff]  }
 0x1e8   : > { %8742 = vmatpush2.bf16.msra.mxu1 %v12339_v31  ;;  %8754 = vmatprep.subr.bf16.mxu0 %v12344_v56  ;;  %v12380_v31 = vld [vmem:[%s14003_s22 + $0x1824] ss:$16 sps:$4 sm:$0xff]  }
 0x1e9   : > { %8797 = vmatprep.subr.bf16.mxu1 %v12347_v58  ;;  %v12383_v56 = vld [vmem:[%s14003_s22 + $0x1a24] ss:$16 sps:$4 sm:$0xff]   ;;  %v12378_v58 = vld [vmem:[%s14003_s22 + $0x1820] ss:$16 sps:$4 sm:$0xff]  }
 0x1ea   : > { %8701 = vmatmul.mubr.bf16.vlgmr.msra.gmra.mxu0 %v14653_v61 }
 0x1eb   : > { %8744 = vmatmul.mubr.bf16.vlgmr.msra.gmra.mxu1 %v14657_v62  ;;  %8755 = vmatpush1.bf16.msra.mxu0 %v12342_v37  ;;  %v12381_v37 = vld [vmem:[%s14003_s22 + $0x1a20] ss:$16 sps:$4 sm:$0xff]  }
 0x1ec   : > { %8798 = vmatpush1.bf16.msra.mxu1 %v12345_v50  ;;  %8756 = vmatprep.subr.bf16.mxu0 %v12350_v25  ;;  %v12386_v50 = vld [vmem:[%s14003_s22 + $0x1804] ss:$16 sps:$4 sm:$0xff]  }
 0x1ed   : > { %8799 = vmatprep.subr.bf16.mxu1 %v12353_v26  ;;  %8786 = vmatprep.mubr.bf16.mxu0 %v14681_v54  ;;  %v12389_v25 = vld [vmem:[%s14003_s22 + $0x1a04] ss:$16 sps:$4 sm:$0xff]   ;;  %v12384_v26 = vld [vmem:[%s14003_s22 + $0x1800] ss:$16 sps:$4 sm:$0xff]  }
 0x1ee   : > { %8829 = vmatprep.mubr.bf16.mxu1 %v14685_v5 }
 0x1ef   : > { %8757 = vmatpush1.bf16.msra.mxu0 %v12348_v34  ;;  %v12387_v34 = vld [vmem:[%s14003_s22 + $0x1a00] ss:$16 sps:$4 sm:$0xff]  }
 0x1f0   : > { %8800 = vmatpush1.bf16.msra.mxu1 %v12351_v4  ;;  %8758 = vmatprep.subr.bf16.mxu0 %v12356_v6  ;;  %v12392_v4 = vld [vmem:[%s14003_s22 + $0x19e4] ss:$16 sps:$4 sm:$0xff]  }
 0x1f1   : > { %8801 = vmatprep.subr.bf16.mxu1 %v12359_v7  ;;  %v12395_v6 = vld [vmem:[%s14003_s22 + $0x1be4] ss:$16 sps:$4 sm:$0xff]   ;;  %v12390_v7 = vld [vmem:[%s14003_s22 + $0x19e0] ss:$16 sps:$4 sm:$0xff]  }
 0x1f3   : > { %8759 = vmatpush1.bf16.msra.mxu0 %v12354_v11  ;;  %v12393_v11 = vld [vmem:[%s14003_s22 + $0x1be0] ss:$16 sps:$4 sm:$0xff]  }
 0x1f4   : > { %8802 = vmatpush1.bf16.msra.mxu1 %v12357_v17  ;;  %8760 = vmatprep.subr.bf16.mxu0 %v12362_v18  ;;  %v12398_v17 = vld [vmem:[%s14003_s22 + $0x19c4] ss:$16 sps:$4 sm:$0xff]  }
 0x1f5   : > { %8803 = vmatprep.subr.bf16.mxu1 %v12365_v19  ;;  %v12401_v18 = vld [vmem:[%s14003_s22 + $0x1bc4] ss:$16 sps:$4 sm:$0xff]   ;;  %v12396_v19 = vld [vmem:[%s14003_s22 + $0x19c0] ss:$16 sps:$4 sm:$0xff]  }
 0x1f7   : > { %8761 = vmatpush1.bf16.msra.mxu0 %v12360_v44  ;;  %v12399_v44 = vld [vmem:[%s14003_s22 + $0x1bc0] ss:$16 sps:$4 sm:$0xff]  }
 0x1f8   : > { %8804 = vmatpush1.bf16.msra.mxu1 %v12363_v22  ;;  %8762 = vmatprep.subr.bf16.mxu0 %v12368_v10  ;;  %v12404_v22 = vld [vmem:[%s14003_s22 + $0x19a4] ss:$16 sps:$4 sm:$0xff]  }
 0x1f9   : > { %8805 = vmatprep.subr.bf16.mxu1 %v12371_v12  ;;  %v12407_v10 = vld [vmem:[%s14003_s22 + $0x1ba4] ss:$16 sps:$4 sm:$0xff]   ;;  %v12402_v12 = vld [vmem:[%s14003_s22 + $0x19a0] ss:$16 sps:$4 sm:$0xff]  }
 0x1fb   : > { %8763 = vmatpush1.bf16.msra.mxu0 %v12366_v13  ;;  %v12405_v13 = vld [vmem:[%s14003_s22 + $0x1ba0] ss:$16 sps:$4 sm:$0xff]  }
 0x1fc   : > { %8806 = vmatpush1.bf16.msra.mxu1 %v12369_v16  ;;  %8764 = vmatprep.subr.bf16.mxu0 %v12374_v36  ;;  %v12410_v16 = vld [vmem:[%s14003_s22 + $0x1984] ss:$16 sps:$4 sm:$0xff]  }
 0x1fd   : > { %8807 = vmatprep.subr.bf16.mxu1 %v12377_v40  ;;  %v12413_v36 = vld [vmem:[%s14003_s22 + $0x1b84] ss:$16 sps:$4 sm:$0xff]   ;;  %v12408_v40 = vld [vmem:[%s14003_s22 + $0x1980] ss:$16 sps:$4 sm:$0xff]  }
 0x1ff   : > { %8765 = vmatpush1.bf16.msra.mxu0 %v12372_v45  ;;  %v12411_v45 = vld [vmem:[%s14003_s22 + $0x1b80] ss:$16 sps:$4 sm:$0xff]  }
 0x200   : > { %8808 = vmatpush1.bf16.msra.mxu1 %v12375_v51  ;;  %8766 = vmatprep.subr.bf16.mxu0 %v12380_v31  ;;  %v12416_v51 = vld [vmem:[%s14003_s22 + $0x1964] ss:$16 sps:$4 sm:$0xff]  }
 0x201   : > { %8809 = vmatprep.subr.bf16.mxu1 %v12383_v56  ;;  %v12419_v31 = vld [vmem:[%s14003_s22 + $0x1b64] ss:$16 sps:$4 sm:$0xff]   ;;  %v12414_v56 = vld [vmem:[%s14003_s22 + $0x1960] ss:$16 sps:$4 sm:$0xff]  }
 0x203   : > { %8767 = vmatpush1.bf16.msra.mxu0 %v12378_v58  ;;  %v12417_v58 = vld [vmem:[%s14003_s22 + $0x1b60] ss:$16 sps:$4 sm:$0xff]  }
 0x204   : > { %8810 = vmatpush1.bf16.msra.mxu1 %v12381_v37  ;;  %8768 = vmatprep.subr.bf16.mxu0 %v12386_v50  ;;  %v12422_v37 = vld [vmem:[%s14003_s22 + $0x1944] ss:$16 sps:$4 sm:$0xff]  }
 0x205   : > { %8811 = vmatprep.subr.bf16.mxu1 %v12389_v25  ;;  %v12425_v50 = vld [vmem:[%s14003_s22 + $0x1b44] ss:$16 sps:$4 sm:$0xff]   ;;  %v12420_v25 = vld [vmem:[%s14003_s22 + $0x1940] ss:$16 sps:$4 sm:$0xff]  }
 0x207   : > { %8769 = vmatpush1.bf16.msra.mxu0 %v12384_v26  ;;  %v12423_v26 = vld [vmem:[%s14003_s22 + $0x1b40] ss:$16 sps:$4 sm:$0xff]  }
 0x208   : > { %8812 = vmatpush1.bf16.msra.mxu1 %v12387_v34  ;;  %8770 = vmatprep.subr.bf16.mxu0 %v12392_v4  ;;  %v12428_v34 = vld [vmem:[%s14003_s22 + $0x1924] ss:$16 sps:$4 sm:$0xff]  }
 0x209   : > { %8813 = vmatprep.subr.bf16.mxu1 %v12395_v6  ;;  %v12431_v4 = vld [vmem:[%s14003_s22 + $0x1b24] ss:$16 sps:$4 sm:$0xff]   ;;  %v12426_v6 = vld [vmem:[%s14003_s22 + $0x1920] ss:$16 sps:$4 sm:$0xff]  }
 0x20b   : > { %8771 = vmatpush2.bf16.msra.mxu0 %v12390_v7  ;;  %v12429_v7 = vld [vmem:[%s14003_s22 + $0x1b20] ss:$16 sps:$4 sm:$0xff]  }
 0x20c   : > { %8814 = vmatpush2.bf16.msra.mxu1 %v12393_v11  ;;  %8772 = vmatprep.subr.bf16.mxu0 %v12398_v17  ;;  %v12434_v11 = vld [vmem:[%s14003_s22 + $0x1904] ss:$16 sps:$4 sm:$0xff]  }
 0x20d   : > { %8815 = vmatprep.subr.bf16.mxu1 %v12401_v18  ;;  %v12437_v17 = vld [vmem:[%s14003_s22 + $0x1b04] ss:$16 sps:$4 sm:$0xff]   ;;  %v12432_v18 = vld [vmem:[%s14003_s22 + $0x1900] ss:$16 sps:$4 sm:$0xff]  }
 0x20f   : > { %8773 = vmatpush2.bf16.msra.mxu0 %v12396_v19  ;;  %v12435_v19 = vld [vmem:[%s14003_s22 + $0x1b00] ss:$16 sps:$4 sm:$0xff]  }
 0x210   : > { %8816 = vmatpush2.bf16.msra.mxu1 %v12399_v44  ;;  %8774 = vmatprep.subr.bf16.mxu0 %v12404_v22  ;;  %v12440_v44 = vld [vmem:[%s14003_s22 + $0x1ce4] ss:$16 sps:$4 sm:$0xff]  }
 0x211   : > { %8817 = vmatprep.subr.bf16.mxu1 %v12407_v10  ;;  %v12443_v22 = vld [vmem:[%s14003_s22 + $0x1ee4] ss:$16 sps:$4 sm:$0xff]  }
 0x212   : > { %v14752_v10 = vld [vmem:[%s16037_s0 + $0x70] sm:$0xff] }
 0x213   : > { %8775 = vmatpush2.bf16.msra.mxu0 %v12402_v12  ;;  %v12438_v12 = vld [vmem:[%s14003_s22 + $0x1ce0] ss:$16 sps:$4 sm:$0xff]  }
 0x214   : > { %8818 = vmatpush2.bf16.msra.mxu1 %v12405_v13  ;;  %8776 = vmatprep.subr.bf16.mxu0 %v12410_v16  ;;  %v14757_v13 = vcombine.low %v14648_v60, %v14662_v0  ;;  %v14761_v16 = vcombine.low %v14667_v1, %v14672_v3  ;;  %v12441_v60 = vld [vmem:[%s14003_s22 + $0x1ee0] ss:$16 sps:$4 sm:$0xff]   ;;  %v12446_v0 = vld [vmem:[%s14003_s22 + $0x1cc4] ss:$16 sps:$4 sm:$0xff]  }
 0x215   : > { %8819 = vmatprep.subr.bf16.mxu1 %v12413_v36  ;;  %v14766_v36 = vld [vmem:[%s16037_s0 + $0x110] sm:$0xff] }
 0x216   : > { %v12449_v1 = vld [vmem:[%s14003_s22 + $0x1ec4] ss:$16 sps:$4 sm:$0xff]   ;;  %v12444_v3 = vld [vmem:[%s14003_s22 + $0x1cc0] ss:$16 sps:$4 sm:$0xff]  }
 0x217   : > { %8777 = vmatpush2.bf16.msra.mxu0 %v12408_v40  ;;  %v14771_v40 = vld [vmem:[%s16037_s0 + $0x78] sm:$0xff] }
 0x218   : > { %8820 = vmatpush2.bf16.msra.mxu1 %v12411_v45  ;;  %8778 = vmatprep.subr.bf16.mxu0 %v12416_v51  ;;  %v14776_v45 = vld [vmem:[%s16037_s0 + $0x118] sm:$0xff]  ;;  %v12447_v51 = vld [vmem:[%s14003_s22 + $0x1ec0] ss:$16 sps:$4 sm:$0xff]  }
 0x219   : > { %8821 = vmatprep.subr.bf16.mxu1 %v12419_v31  ;;  %v14785_v31 = vcombine.high %v14752_v10, %v14766_v36 }
 0x21b   : > { %8779 = vmatpush2.bf16.msra.mxu0 %v12414_v56  ;;  %v14789_v56 = vcombine.high %v14771_v40, %v14776_v45 }
 0x21c   : > { %8822 = vmatpush2.bf16.msra.mxu1 %v12417_v58  ;;  %8780 = vmatprep.subr.bf16.mxu0 %v12422_v37  ;;  %v12452_v58 = vld [vmem:[%s14003_s22 + $0x1ca4] ss:$16 sps:$4 sm:$0xff]  }
 0x21d   : > { %8823 = vmatprep.subr.bf16.mxu1 %v12425_v50  ;;  %v12455_v37 = vld [vmem:[%s14003_s22 + $0x1ea4] ss:$16 sps:$4 sm:$0xff]   ;;  %v12450_v50 = vld [vmem:[%s14003_s22 + $0x1ca0] ss:$16 sps:$4 sm:$0xff]  }
 0x21f   : > { %8781 = vmatpush2.bf16.msra.mxu0 %v12420_v25  ;;  %v12453_v25 = vld [vmem:[%s14003_s22 + $0x1ea0] ss:$16 sps:$4 sm:$0xff]  }
 0x220   : > { %8824 = vmatpush2.bf16.msra.mxu1 %v12423_v26  ;;  %8782 = vmatprep.subr.bf16.mxu0 %v12428_v34  ;;  %v12458_v26 = vld [vmem:[%s14003_s22 + $0x1c84] ss:$16 sps:$4 sm:$0xff]  }
 0x221   : > { %8825 = vmatprep.subr.bf16.mxu1 %v12431_v4  ;;  %v12461_v34 = vld [vmem:[%s14003_s22 + $0x1e84] ss:$16 sps:$4 sm:$0xff]   ;;  %v12456_v4 = vld [vmem:[%s14003_s22 + $0x1c80] ss:$16 sps:$4 sm:$0xff]  }
 0x223   : > { %8783 = vmatpush2.bf16.msra.mxu0 %v12426_v6  ;;  %v12459_v6 = vld [vmem:[%s14003_s22 + $0x1e80] ss:$16 sps:$4 sm:$0xff]  }
 0x224   : > { %8826 = vmatpush2.bf16.msra.mxu1 %v12429_v7  ;;  %8784 = vmatprep.subr.bf16.mxu0 %v12434_v11  ;;  %v12464_v7 = vld [vmem:[%s14003_s22 + $0x1c64] ss:$16 sps:$4 sm:$0xff]  }
 0x225   : > { %8827 = vmatprep.subr.bf16.mxu1 %v12437_v17  ;;  %v12467_v11 = vld [vmem:[%s14003_s22 + $0x1e64] ss:$16 sps:$4 sm:$0xff]   ;;  %v12462_v17 = vld [vmem:[%s14003_s22 + $0x1c60] ss:$16 sps:$4 sm:$0xff]  }
 0x227   : > { %8785 = vmatpush2.bf16.msra.mxu0 %v12432_v18  ;;  %v12465_v18 = vld [vmem:[%s14003_s22 + $0x1e60] ss:$16 sps:$4 sm:$0xff]  }
 0x228   : > { %8828 = vmatpush2.bf16.msra.mxu1 %v12435_v19  ;;  %8840 = vmatprep.subr.bf16.mxu0 %v12440_v44  ;;  %v12470_v19 = vld [vmem:[%s14003_s22 + $0x1c44] ss:$16 sps:$4 sm:$0xff]  }
 0x229   : > { %8883 = vmatprep.subr.bf16.mxu1 %v12443_v22  ;;  %v12473_v44 = vld [vmem:[%s14003_s22 + $0x1e44] ss:$16 sps:$4 sm:$0xff]   ;;  %v12468_v22 = vld [vmem:[%s14003_s22 + $0x1c40] ss:$16 sps:$4 sm:$0xff]  }
 0x22a   : > { %8787 = vmatmul.mubr.bf16.vlgmr.msra.gmra.mxu0 %v14757_v13 }
 0x22b   : > { %8830 = vmatmul.mubr.bf16.vlgmr.msra.gmra.mxu1 %v14761_v16  ;;  %8841 = vmatpush1.bf16.msra.mxu0 %v12438_v12  ;;  %v12471_v12 = vld [vmem:[%s14003_s22 + $0x1e40] ss:$16 sps:$4 sm:$0xff]  }
 0x22c   : > { %8884 = vmatpush1.bf16.msra.mxu1 %v12441_v60  ;;  %8842 = vmatprep.subr.bf16.mxu0 %v12446_v0  ;;  %v12476_v60 = vld [vmem:[%s14003_s22 + $0x1c24] ss:$16 sps:$4 sm:$0xff]  }
 0x22d   : > { %8885 = vmatprep.subr.bf16.mxu1 %v12449_v1  ;;  %8872 = vmatprep.mubr.bf16.mxu0 %v14785_v31  ;;  %v12479_v0 = vld [vmem:[%s14003_s22 + $0x1e24] ss:$16 sps:$4 sm:$0xff]   ;;  %v12474_v1 = vld [vmem:[%s14003_s22 + $0x1c20] ss:$16 sps:$4 sm:$0xff]  }
 0x22e   : > { %8915 = vmatprep.mubr.bf16.mxu1 %v14789_v56 }
 0x22f   : > { %8843 = vmatpush1.bf16.msra.mxu0 %v12444_v3  ;;  %v12477_v3 = vld [vmem:[%s14003_s22 + $0x1e20] ss:$16 sps:$4 sm:$0xff]  }
 0x230   : > { %8886 = vmatpush1.bf16.msra.mxu1 %v12447_v51  ;;  %8844 = vmatprep.subr.bf16.mxu0 %v12452_v58  ;;  %v12482_v51 = vld [vmem:[%s14003_s22 + $0x1c04] ss:$16 sps:$4 sm:$0xff]  }
 0x231   : > { %8887 = vmatprep.subr.bf16.mxu1 %v12455_v37  ;;  %v12485_v58 = vld [vmem:[%s14003_s22 + $0x1e04] ss:$16 sps:$4 sm:$0xff]   ;;  %v12480_v37 = vld [vmem:[%s14003_s22 + $0x1c00] ss:$16 sps:$4 sm:$0xff]  }
 0x233   : > { %8845 = vmatpush1.bf16.msra.mxu0 %v12450_v50  ;;  %v12483_v50 = vld [vmem:[%s14003_s22 + $0x1e00] ss:$16 sps:$4 sm:$0xff]  }
 0x234   : > { %8888 = vmatpush1.bf16.msra.mxu1 %v12453_v25  ;;  %8846 = vmatprep.subr.bf16.mxu0 %v12458_v26  ;;  %v12488_v25 = vld [vmem:[%s14003_s22 + $0x1de4] ss:$16 sps:$4 sm:$0xff]  }
 0x235   : > { %8889 = vmatprep.subr.bf16.mxu1 %v12461_v34  ;;  %v12491_v26 = vld [vmem:[%s14003_s22 + $0x1fe4] ss:$16 sps:$4 sm:$0xff]   ;;  %v12486_v34 = vld [vmem:[%s14003_s22 + $0x1de0] ss:$16 sps:$4 sm:$0xff]  }
 0x237   : > { %8847 = vmatpush1.bf16.msra.mxu0 %v12456_v4  ;;  %v12489_v4 = vld [vmem:[%s14003_s22 + $0x1fe0] ss:$16 sps:$4 sm:$0xff]  }
 0x238   : > { %8890 = vmatpush1.bf16.msra.mxu1 %v12459_v6  ;;  %8848 = vmatprep.subr.bf16.mxu0 %v12464_v7  ;;  %v12494_v6 = vld [vmem:[%s14003_s22 + $0x1dc4] ss:$16 sps:$4 sm:$0xff]  }
 0x239   : > { %8891 = vmatprep.subr.bf16.mxu1 %v12467_v11  ;;  %v12497_v7 = vld [vmem:[%s14003_s22 + $0x1fc4] ss:$16 sps:$4 sm:$0xff]   ;;  %v12492_v11 = vld [vmem:[%s14003_s22 + $0x1dc0] ss:$16 sps:$4 sm:$0xff]  }
 0x23b   : > { %8849 = vmatpush1.bf16.msra.mxu0 %v12462_v17  ;;  %v12495_v17 = vld [vmem:[%s14003_s22 + $0x1fc0] ss:$16 sps:$4 sm:$0xff]  }
 0x23c   : > { %8892 = vmatpush1.bf16.msra.mxu1 %v12465_v18  ;;  %8850 = vmatprep.subr.bf16.mxu0 %v12470_v19  ;;  %v12500_v18 = vld [vmem:[%s14003_s22 + $0x1da4] ss:$16 sps:$4 sm:$0xff]  }
 0x23d   : > { %8893 = vmatprep.subr.bf16.mxu1 %v12473_v44  ;;  %v12503_v19 = vld [vmem:[%s14003_s22 + $0x1fa4] ss:$16 sps:$4 sm:$0xff]   ;;  %v12498_v44 = vld [vmem:[%s14003_s22 + $0x1da0] ss:$16 sps:$4 sm:$0xff]  }
 0x23f   : > { %8851 = vmatpush1.bf16.msra.mxu0 %v12468_v22  ;;  %v12501_v22 = vld [vmem:[%s14003_s22 + $0x1fa0] ss:$16 sps:$4 sm:$0xff]  }
 0x240   : > { %8894 = vmatpush1.bf16.msra.mxu1 %v12471_v12  ;;  %8852 = vmatprep.subr.bf16.mxu0 %v12476_v60  ;;  %v12506_v12 = vld [vmem:[%s14003_s22 + $0x1d84] ss:$16 sps:$4 sm:$0xff]  }
 0x241   : > { %8895 = vmatprep.subr.bf16.mxu1 %v12479_v0  ;;  %v12509_v60 = vld [vmem:[%s14003_s22 + $0x1f84] ss:$16 sps:$4 sm:$0xff]   ;;  %v12504_v0 = vld [vmem:[%s14003_s22 + $0x1d80] ss:$16 sps:$4 sm:$0xff]  }
 0x243   : > { %8853 = vmatpush1.bf16.msra.mxu0 %v12474_v1  ;;  %v12507_v1 = vld [vmem:[%s14003_s22 + $0x1f80] ss:$16 sps:$4 sm:$0xff]  }
 0x244   : > { %8896 = vmatpush1.bf16.msra.mxu1 %v12477_v3  ;;  %8854 = vmatprep.subr.bf16.mxu0 %v12482_v51  ;;  %v12512_v3 = vld [vmem:[%s14003_s22 + $0x1d64] ss:$16 sps:$4 sm:$0xff]  }
 0x245   : > { %8897 = vmatprep.subr.bf16.mxu1 %v12485_v58  ;;  %v12515_v51 = vld [vmem:[%s14003_s22 + $0x1f64] ss:$16 sps:$4 sm:$0xff]   ;;  %v12510_v58 = vld [vmem:[%s14003_s22 + $0x1d60] ss:$16 sps:$4 sm:$0xff]  }
 0x247   : > { %8855 = vmatpush1.bf16.msra.mxu0 %v12480_v37  ;;  %v12513_v37 = vld [vmem:[%s14003_s22 + $0x1f60] ss:$16 sps:$4 sm:$0xff]  }
 0x248   : > { %8898 = vmatpush1.bf16.msra.mxu1 %v12483_v50  ;;  %8856 = vmatprep.subr.bf16.mxu0 %v12488_v25  ;;  %v12518_v50 = vld [vmem:[%s14003_s22 + $0x1d44] ss:$16 sps:$4 sm:$0xff]  }
 0x249   : > { %8899 = vmatprep.subr.bf16.mxu1 %v12491_v26  ;;  %v12521_v25 = vld [vmem:[%s14003_s22 + $0x1f44] ss:$16 sps:$4 sm:$0xff]   ;;  %v12516_v26 = vld [vmem:[%s14003_s22 + $0x1d40] ss:$16 sps:$4 sm:$0xff]  }
 0x24b   : > { %8857 = vmatpush2.bf16.msra.mxu0 %v12486_v34  ;;  %v12519_v34 = vld [vmem:[%s14003_s22 + $0x1f40] ss:$16 sps:$4 sm:$0xff]  }
 0x24c   : > { %8900 = vmatpush2.bf16.msra.mxu1 %v12489_v4  ;;  %8858 = vmatprep.subr.bf16.mxu0 %v12494_v6  ;;  %v12524_v4 = vld [vmem:[%s14003_s22 + $0x1d24] ss:$16 sps:$4 sm:$0xff]  }
 0x24d   : > { %8901 = vmatprep.subr.bf16.mxu1 %v12497_v7  ;;  %v12527_v6 = vld [vmem:[%s14003_s22 + $0x1f24] ss:$16 sps:$4 sm:$0xff]   ;;  %v12522_v7 = vld [vmem:[%s14003_s22 + $0x1d20] ss:$16 sps:$4 sm:$0xff]  }
 0x24f   : > { %8859 = vmatpush2.bf16.msra.mxu0 %v12492_v11  ;;  %v12525_v11 = vld [vmem:[%s14003_s22 + $0x1f20] ss:$16 sps:$4 sm:$0xff]  }
 0x250   : > { %8902 = vmatpush2.bf16.msra.mxu1 %v12495_v17  ;;  %8860 = vmatprep.subr.bf16.mxu0 %v12500_v18  ;;  %v12530_v17 = vld [vmem:[%s14003_s22 + $0x1d04] ss:$16 sps:$4 sm:$0xff]  }
 0x251   : > { %8903 = vmatprep.subr.bf16.mxu1 %v12503_v19  ;;  %v12533_v18 = vld [vmem:[%s14003_s22 + $0x1f04] ss:$16 sps:$4 sm:$0xff]   ;;  %v12528_v19 = vld [vmem:[%s14003_s22 + $0x1d00] ss:$16 sps:$4 sm:$0xff]  }
 0x253   : > { %8861 = vmatpush2.bf16.msra.mxu0 %v12498_v44  ;;  %v12531_v44 = vld [vmem:[%s14003_s22 + $0x1f00] ss:$16 sps:$4 sm:$0xff]  }
 0x254   : > { %8904 = vmatpush2.bf16.msra.mxu1 %v12501_v22  ;;  %8862 = vmatprep.subr.bf16.mxu0 %v12506_v12  ;;  %v12536_v22 = vld [vmem:[%s14003_s22 + $0x20e4] ss:$16 sps:$4 sm:$0xff]  }
 0x255   : > { %8905 = vmatprep.subr.bf16.mxu1 %v12509_v60  ;;  %v12539_v12 = vld [vmem:[%s14003_s22 + $0x22e4] ss:$16 sps:$4 sm:$0xff]  }
 0x256   : > { %v14856_v60 = vld [vmem:[%s16037_s0 + $0x80] sm:$0xff] }
 0x257   : > { %8863 = vmatpush2.bf16.msra.mxu0 %v12504_v0  ;;  %v12534_v0 = vld [vmem:[%s14003_s22 + $0x20e0] ss:$16 sps:$4 sm:$0xff]  }
 0x258   : > { %8906 = vmatpush2.bf16.msra.mxu1 %v12507_v1  ;;  %8864 = vmatprep.subr.bf16.mxu0 %v12512_v3  ;;  %v14861_v1 = vcombine.low %v14752_v10, %v14766_v36  ;;  %v14865_v3 = vcombine.low %v14771_v40, %v14776_v45  ;;  %v12537_v10 = vld [vmem:[%s14003_s22 + $0x22e0] ss:$16 sps:$4 sm:$0xff]   ;;  %v12542_v36 = vld [vmem:[%s14003_s22 + $0x20c4] ss:$16 sps:$4 sm:$0xff]  }
 0x259   : > { %8907 = vmatprep.subr.bf16.mxu1 %v12515_v51  ;;  %v14870_v51 = vld [vmem:[%s16037_s0 + $0x120] sm:$0xff] }
 0x25a   : > { %v12545_v40 = vld [vmem:[%s14003_s22 + $0x22c4] ss:$16 sps:$4 sm:$0xff]   ;;  %v12540_v45 = vld [vmem:[%s14003_s22 + $0x20c0] ss:$16 sps:$4 sm:$0xff]  }
 0x25b   : > { %8865 = vmatpush2.bf16.msra.mxu0 %v12510_v58  ;;  %v14875_v58 = vld [vmem:[%s16037_s0 + $0x88] sm:$0xff] }
 0x25c   : > { %8908 = vmatpush2.bf16.msra.mxu1 %v12513_v37  ;;  %8866 = vmatprep.subr.bf16.mxu0 %v12518_v50  ;;  %v14880_v37 = vld [vmem:[%s16037_s0 + $0x128] sm:$0xff]  ;;  %v12543_v50 = vld [vmem:[%s14003_s22 + $0x22c0] ss:$16 sps:$4 sm:$0xff]  }
 0x25d   : > { %8909 = vmatprep.subr.bf16.mxu1 %v12521_v25  ;;  %v14889_v25 = vcombine.high %v14856_v60, %v14870_v51 }
 0x25f   : > { %8867 = vmatpush2.bf16.msra.mxu0 %v12516_v26  ;;  %v14893_v26 = vcombine.high %v14875_v58, %v14880_v37 }
 0x260   : > { %8910 = vmatpush2.bf16.msra.mxu1 %v12519_v34  ;;  %8868 = vmatprep.subr.bf16.mxu0 %v12524_v4  ;;  %v12548_v34 = vld [vmem:[%s14003_s22 + $0x20a4] ss:$16 sps:$4 sm:$0xff]  }
 0x261   : > { %8911 = vmatprep.subr.bf16.mxu1 %v12527_v6  ;;  %v12551_v4 = vld [vmem:[%s14003_s22 + $0x22a4] ss:$16 sps:$4 sm:$0xff]   ;;  %v12546_v6 = vld [vmem:[%s14003_s22 + $0x20a0] ss:$16 sps:$4 sm:$0xff]  }
 0x263   : > { %8869 = vmatpush2.bf16.msra.mxu0 %v12522_v7  ;;  %v12549_v7 = vld [vmem:[%s14003_s22 + $0x22a0] ss:$16 sps:$4 sm:$0xff]  }
 0x264   : > { %8912 = vmatpush2.bf16.msra.mxu1 %v12525_v11  ;;  %8870 = vmatprep.subr.bf16.mxu0 %v12530_v17  ;;  %v12554_v11 = vld [vmem:[%s14003_s22 + $0x2084] ss:$16 sps:$4 sm:$0xff]  }
 0x265   : > { %8913 = vmatprep.subr.bf16.mxu1 %v12533_v18  ;;  %v12557_v17 = vld [vmem:[%s14003_s22 + $0x2284] ss:$16 sps:$4 sm:$0xff]   ;;  %v12552_v18 = vld [vmem:[%s14003_s22 + $0x2080] ss:$16 sps:$4 sm:$0xff]  }
 0x267   : > { %8871 = vmatpush2.bf16.msra.mxu0 %v12528_v19  ;;  %v12555_v19 = vld [vmem:[%s14003_s22 + $0x2280] ss:$16 sps:$4 sm:$0xff]  }
 0x268   : > { %8914 = vmatpush2.bf16.msra.mxu1 %v12531_v44  ;;  %8926 = vmatprep.subr.bf16.mxu0 %v12536_v22  ;;  %v12560_v44 = vld [vmem:[%s14003_s22 + $0x2064] ss:$16 sps:$4 sm:$0xff]  }
 0x269   : > { %8969 = vmatprep.subr.bf16.mxu1 %v12539_v12  ;;  %v12563_v22 = vld [vmem:[%s14003_s22 + $0x2264] ss:$16 sps:$4 sm:$0xff]   ;;  %v12558_v12 = vld [vmem:[%s14003_s22 + $0x2060] ss:$16 sps:$4 sm:$0xff]  }
 0x26a   : > { %8873 = vmatmul.mubr.bf16.vlgmr.msra.gmra.mxu0 %v14861_v1 }
 0x26b   : > { %8916 = vmatmul.mubr.bf16.vlgmr.msra.gmra.mxu1 %v14865_v3  ;;  %8927 = vmatpush1.bf16.msra.mxu0 %v12534_v0  ;;  %v12561_v0 = vld [vmem:[%s14003_s22 + $0x2260] ss:$16 sps:$4 sm:$0xff]  }
 0x26c   : > { %8970 = vmatpush1.bf16.msra.mxu1 %v12537_v10  ;;  %8928 = vmatprep.subr.bf16.mxu0 %v12542_v36  ;;  %v12566_v10 = vld [vmem:[%s14003_s22 + $0x2044] ss:$16 sps:$4 sm:$0xff]  }
 0x26d   : > { %8971 = vmatprep.subr.bf16.mxu1 %v12545_v40  ;;  %8958 = vmatprep.mubr.bf16.mxu0 %v14889_v25  ;;  %v12569_v36 = vld [vmem:[%s14003_s22 + $0x2244] ss:$16 sps:$4 sm:$0xff]   ;;  %v12564_v40 = vld [vmem:[%s14003_s22 + $0x2040] ss:$16 sps:$4 sm:$0xff]  }
 0x26e   : > { %9001 = vmatprep.mubr.bf16.mxu1 %v14893_v26 }
 0x26f   : > { %8929 = vmatpush1.bf16.msra.mxu0 %v12540_v45  ;;  %v12567_v45 = vld [vmem:[%s14003_s22 + $0x2240] ss:$16 sps:$4 sm:$0xff]  }
 0x270   : > { %8972 = vmatpush1.bf16.msra.mxu1 %v12543_v50  ;;  %8930 = vmatprep.subr.bf16.mxu0 %v12548_v34  ;;  %v12572_v50 = vld [vmem:[%s14003_s22 + $0x2024] ss:$16 sps:$4 sm:$0xff]  }
 0x271   : > { %8973 = vmatprep.subr.bf16.mxu1 %v12551_v4  ;;  %v12575_v34 = vld [vmem:[%s14003_s22 + $0x2224] ss:$16 sps:$4 sm:$0xff]   ;;  %v12570_v4 = vld [vmem:[%s14003_s22 + $0x2020] ss:$16 sps:$4 sm:$0xff]  }
 0x273   : > { %8931 = vmatpush1.bf16.msra.mxu0 %v12546_v6  ;;  %v12573_v6 = vld [vmem:[%s14003_s22 + $0x2220] ss:$16 sps:$4 sm:$0xff]  }
 0x274   : > { %8974 = vmatpush1.bf16.msra.mxu1 %v12549_v7  ;;  %8932 = vmatprep.subr.bf16.mxu0 %v12554_v11  ;;  %v12578_v7 = vld [vmem:[%s14003_s22 + $0x2004] ss:$16 sps:$4 sm:$0xff]  }
 0x275   : > { %8975 = vmatprep.subr.bf16.mxu1 %v12557_v17  ;;  %v12581_v11 = vld [vmem:[%s14003_s22 + $0x2204] ss:$16 sps:$4 sm:$0xff]   ;;  %v12576_v17 = vld [vmem:[%s14003_s22 + $0x2000] ss:$16 sps:$4 sm:$0xff]  }
 0x277   : > { %8933 = vmatpush1.bf16.msra.mxu0 %v12552_v18  ;;  %v12579_v18 = vld [vmem:[%s14003_s22 + $0x2200] ss:$16 sps:$4 sm:$0xff]  }
 0x278   : > { %8976 = vmatpush1.bf16.msra.mxu1 %v12555_v19  ;;  %8934 = vmatprep.subr.bf16.mxu0 %v12560_v44  ;;  %v12584_v19 = vld [vmem:[%s14003_s22 + $0x21e4] ss:$16 sps:$4 sm:$0xff]  }
 0x279   : > { %8977 = vmatprep.subr.bf16.mxu1 %v12563_v22  ;;  %v12587_v44 = vld [vmem:[%s14003_s22 + $0x23e4] ss:$16 sps:$4 sm:$0xff]   ;;  %v12582_v22 = vld [vmem:[%s14003_s22 + $0x21e0] ss:$16 sps:$4 sm:$0xff]  }
 0x27b   : > { %8935 = vmatpush1.bf16.msra.mxu0 %v12558_v12  ;;  %v12585_v12 = vld [vmem:[%s14003_s22 + $0x23e0] ss:$16 sps:$4 sm:$0xff]  }
 0x27c   : > { %8978 = vmatpush1.bf16.msra.mxu1 %v12561_v0  ;;  %8936 = vmatprep.subr.bf16.mxu0 %v12566_v10  ;;  %v12590_v0 = vld [vmem:[%s14003_s22 + $0x21c4] ss:$16 sps:$4 sm:$0xff]  }
 0x27d   : > { %8979 = vmatprep.subr.bf16.mxu1 %v12569_v36  ;;  %v12593_v10 = vld [vmem:[%s14003_s22 + $0x23c4] ss:$16 sps:$4 sm:$0xff]   ;;  %v12588_v36 = vld [vmem:[%s14003_s22 + $0x21c0] ss:$16 sps:$4 sm:$0xff]  }
 0x27f   : > { %8937 = vmatpush1.bf16.msra.mxu0 %v12564_v40  ;;  %v12591_v40 = vld [vmem:[%s14003_s22 + $0x23c0] ss:$16 sps:$4 sm:$0xff]  }
 0x280   : > { %8980 = vmatpush1.bf16.msra.mxu1 %v12567_v45  ;;  %8938 = vmatprep.subr.bf16.mxu0 %v12572_v50  ;;  %v12596_v45 = vld [vmem:[%s14003_s22 + $0x21a4] ss:$16 sps:$4 sm:$0xff]  }
 0x281   : > { %8981 = vmatprep.subr.bf16.mxu1 %v12575_v34  ;;  %v12599_v50 = vld [vmem:[%s14003_s22 + $0x23a4] ss:$16 sps:$4 sm:$0xff]   ;;  %v12594_v34 = vld [vmem:[%s14003_s22 + $0x21a0] ss:$16 sps:$4 sm:$0xff]  }
 0x283   : > { %8939 = vmatpush1.bf16.msra.mxu0 %v12570_v4  ;;  %v12597_v4 = vld [vmem:[%s14003_s22 + $0x23a0] ss:$16 sps:$4 sm:$0xff]  }
 0x284   : > { %8982 = vmatpush1.bf16.msra.mxu1 %v12573_v6  ;;  %8940 = vmatprep.subr.bf16.mxu0 %v12578_v7  ;;  %v12602_v6 = vld [vmem:[%s14003_s22 + $0x2184] ss:$16 sps:$4 sm:$0xff]  }
 0x285   : > { %8983 = vmatprep.subr.bf16.mxu1 %v12581_v11  ;;  %v12605_v7 = vld [vmem:[%s14003_s22 + $0x2384] ss:$16 sps:$4 sm:$0xff]   ;;  %v12600_v11 = vld [vmem:[%s14003_s22 + $0x2180] ss:$16 sps:$4 sm:$0xff]  }
 0x287   : > { %8941 = vmatpush1.bf16.msra.mxu0 %v12576_v17  ;;  %v12603_v17 = vld [vmem:[%s14003_s22 + $0x2380] ss:$16 sps:$4 sm:$0xff]  }
 0x288   : > { %8984 = vmatpush1.bf16.msra.mxu1 %v12579_v18  ;;  %8942 = vmatprep.subr.bf16.mxu0 %v12584_v19  ;;  %v12608_v18 = vld [vmem:[%s14003_s22 + $0x2164] ss:$16 sps:$4 sm:$0xff]  }
 0x289   : > { %8985 = vmatprep.subr.bf16.mxu1 %v12587_v44  ;;  %v12611_v19 = vld [vmem:[%s14003_s22 + $0x2364] ss:$16 sps:$4 sm:$0xff]   ;;  %v12606_v44 = vld [vmem:[%s14003_s22 + $0x2160] ss:$16 sps:$4 sm:$0xff]  }
 0x28b   : > { %8943 = vmatpush2.bf16.msra.mxu0 %v12582_v22  ;;  %v12609_v22 = vld [vmem:[%s14003_s22 + $0x2360] ss:$16 sps:$4 sm:$0xff]  }
 0x28c   : > { %8986 = vmatpush2.bf16.msra.mxu1 %v12585_v12  ;;  %8944 = vmatprep.subr.bf16.mxu0 %v12590_v0  ;;  %v12614_v12 = vld [vmem:[%s14003_s22 + $0x2144] ss:$16 sps:$4 sm:$0xff]  }
 0x28d   : > { %8987 = vmatprep.subr.bf16.mxu1 %v12593_v10  ;;  %v12617_v0 = vld [vmem:[%s14003_s22 + $0x2344] ss:$16 sps:$4 sm:$0xff]   ;;  %v12612_v10 = vld [vmem:[%s14003_s22 + $0x2140] ss:$16 sps:$4 sm:$0xff]  }
 0x28f   : > { %8945 = vmatpush2.bf16.msra.mxu0 %v12588_v36  ;;  %v12615_v36 = vld [vmem:[%s14003_s22 + $0x2340] ss:$16 sps:$4 sm:$0xff]  }
 0x290   : > { %8988 = vmatpush2.bf16.msra.mxu1 %v12591_v40  ;;  %8946 = vmatprep.subr.bf16.mxu0 %v12596_v45  ;;  %v12620_v40 = vld [vmem:[%s14003_s22 + $0x2124] ss:$16 sps:$4 sm:$0xff]  }
 0x291   : > { %8989 = vmatprep.subr.bf16.mxu1 %v12599_v50  ;;  %v12623_v45 = vld [vmem:[%s14003_s22 + $0x2324] ss:$16 sps:$4 sm:$0xff]   ;;  %v12618_v50 = vld [vmem:[%s14003_s22 + $0x2120] ss:$16 sps:$4 sm:$0xff]  }
 0x293   : > { %8947 = vmatpush2.bf16.msra.mxu0 %v12594_v34  ;;  %v12621_v34 = vld [vmem:[%s14003_s22 + $0x2320] ss:$16 sps:$4 sm:$0xff]  }
 0x294   : > { %8990 = vmatpush2.bf16.msra.mxu1 %v12597_v4  ;;  %8948 = vmatprep.subr.bf16.mxu0 %v12602_v6  ;;  %v12626_v4 = vld [vmem:[%s14003_s22 + $0x2104] ss:$16 sps:$4 sm:$0xff]  }
 0x295   : > { %8991 = vmatprep.subr.bf16.mxu1 %v12605_v7  ;;  %v12629_v6 = vld [vmem:[%s14003_s22 + $0x2304] ss:$16 sps:$4 sm:$0xff]   ;;  %v12624_v7 = vld [vmem:[%s14003_s22 + $0x2100] ss:$16 sps:$4 sm:$0xff]  }
 0x297   : > { %8949 = vmatpush2.bf16.msra.mxu0 %v12600_v11  ;;  %v12627_v11 = vld [vmem:[%s14003_s22 + $0x2300] ss:$16 sps:$4 sm:$0xff]  }
 0x298   : > { %8992 = vmatpush2.bf16.msra.mxu1 %v12603_v17  ;;  %8950 = vmatprep.subr.bf16.mxu0 %v12608_v18  ;;  %v12632_v17 = vld [vmem:[%s14003_s22 + $0x24e4] ss:$16 sps:$4 sm:$0xff]  }
 0x299   : > { %8993 = vmatprep.subr.bf16.mxu1 %v12611_v19  ;;  %v12635_v18 = vld [vmem:[%s14003_s22 + $0x26e4] ss:$16 sps:$4 sm:$0xff]  }
 0x29a   : > { %v14960_v19 = vld [vmem:[%s16037_s0 + $0x90] sm:$0xff] }
 0x29b   : > { %8951 = vmatpush2.bf16.msra.mxu0 %v12606_v44  ;;  %v14965_v44 = vld [vmem:[%s16037_s0 + $0x130] sm:$0xff] }
 0x29c   : > { %8994 = vmatpush2.bf16.msra.mxu1 %v12609_v22  ;;  %8952 = vmatprep.subr.bf16.mxu0 %v12614_v12  ;;  %v14970_v22 = vld [vmem:[%s16037_s0 + $0x98] sm:$0xff] }
 0x29d   : > { %8995 = vmatprep.subr.bf16.mxu1 %v12617_v0  ;;  %v14975_v12 = vld [vmem:[%s16037_s0 + $0x138] sm:$0xff]  ;;  %v12630_v0 = vld [vmem:[%s14003_s22 + $0x24e0] ss:$16 sps:$4 sm:$0xff]  }
 0x29f   : > { %8953 = vmatpush2.bf16.msra.mxu0 %v12612_v10  ;;  %v12633_v10 = vld [vmem:[%s14003_s22 + $0x26e0] ss:$16 sps:$4 sm:$0xff]  }
 0x2a0   : > { %8996 = vmatpush2.bf16.msra.mxu1 %v12615_v36  ;;  %8954 = vmatprep.subr.bf16.mxu0 %v12620_v40  ;;  %v14981_v36 = vcombine.low %v14856_v60, %v14870_v51  ;;  %v14985_v40 = vcombine.low %v14875_v58, %v14880_v37  ;;  %v14993_v60 = vcombine.high %v14960_v19, %v14965_v44  ;;  %v12644_v58 = vld [vmem:[%s14003_s22 + $0x24a4] ss:$16 sps:$4 sm:$0xff]  }
 0x2a1   : > { %8997 = vmatprep.subr.bf16.mxu1 %v12623_v45  ;;  %v12638_v45 = vld [vmem:[%s14003_s22 + $0x24c4] ss:$16 sps:$4 sm:$0xff]   ;;  %v14997_v51 = vcombine.high %v14970_v22, %v14975_v12 }
 0x2a2   : > { %v12647_v37 = vld [vmem:[%s14003_s22 + $0x26a4] ss:$16 sps:$4 sm:$0xff]  }
 0x2a3   : > { %8955 = vmatpush2.bf16.msra.mxu0 %v12618_v50  ;;  %v12641_v50 = vld [vmem:[%s14003_s22 + $0x26c4] ss:$16 sps:$4 sm:$0xff]  }
 0x2a4   : > { %8998 = vmatpush2.bf16.msra.mxu1 %v12621_v34  ;;  %8956 = vmatprep.subr.bf16.mxu0 %v12626_v4  ;;  %v12636_v34 = vld [vmem:[%s14003_s22 + $0x24c0] ss:$16 sps:$4 sm:$0xff]  }
 0x2a5   : > { %8999 = vmatprep.subr.bf16.mxu1 %v12629_v6  ;;  %v12639_v4 = vld [vmem:[%s14003_s22 + $0x26c0] ss:$16 sps:$4 sm:$0xff]  }
 0x2a6   : > { %v12642_v6 = vld [vmem:[%s14003_s22 + $0x24a0] ss:$16 sps:$4 sm:$0xff]  }
 0x2a7   : > { %8957 = vmatpush2.bf16.msra.mxu0 %v12624_v7  ;;  %v12645_v7 = vld [vmem:[%s14003_s22 + $0x26a0] ss:$16 sps:$4 sm:$0xff]  }
 0x2a8   : > { %9000 = vmatpush2.bf16.msra.mxu1 %v12627_v11  ;;  %9012 = vmatprep.subr.bf16.mxu0 %v12632_v17  ;;  %v12650_v11 = vld [vmem:[%s14003_s22 + $0x2484] ss:$16 sps:$4 sm:$0xff]  }
 0x2a9   : > { %9055 = vmatprep.subr.bf16.mxu1 %v12635_v18  ;;  %v12653_v17 = vld [vmem:[%s14003_s22 + $0x2684] ss:$16 sps:$4 sm:$0xff]   ;;  %v12648_v18 = vld [vmem:[%s14003_s22 + $0x2480] ss:$16 sps:$4 sm:$0xff]  }
 0x2aa   : > { %8959 = vmatmul.mubr.bf16.vlgmr.msra.gmra.mxu0 %v14981_v36 }
 0x2ab   : > { %9002 = vmatmul.mubr.bf16.vlgmr.msra.gmra.mxu1 %v14985_v40  ;;  %9013 = vmatpush1.bf16.msra.mxu0 %v12630_v0  ;;  %v12651_v0 = vld [vmem:[%s14003_s22 + $0x2680] ss:$16 sps:$4 sm:$0xff]  }
 0x2ac   : > { %9056 = vmatpush1.bf16.msra.mxu1 %v12633_v10  ;;  %9014 = vmatprep.subr.bf16.mxu0 %v12638_v45  ;;  %v12656_v10 = vld [vmem:[%s14003_s22 + $0x2464] ss:$16 sps:$4 sm:$0xff]  }
 0x2ad   : > { %9057 = vmatprep.subr.bf16.mxu1 %v12641_v50  ;;  %9044 = vmatprep.mubr.bf16.mxu0 %v14993_v60  ;;  %v12659_v45 = vld [vmem:[%s14003_s22 + $0x2664] ss:$16 sps:$4 sm:$0xff]   ;;  %v12654_v50 = vld [vmem:[%s14003_s22 + $0x2460] ss:$16 sps:$4 sm:$0xff]  }
 0x2ae   : > { %9087 = vmatprep.mubr.bf16.mxu1 %v14997_v51 }
 0x2af   : > { %9015 = vmatpush1.bf16.msra.mxu0 %v12636_v34  ;;  %v12657_v34 = vld [vmem:[%s14003_s22 + $0x2660] ss:$16 sps:$4 sm:$0xff]  }
 0x2b0   : > { %9058 = vmatpush1.bf16.msra.mxu1 %v12639_v4  ;;  %9016 = vmatprep.subr.bf16.mxu0 %v12644_v58  ;;  %v12662_v4 = vld [vmem:[%s14003_s22 + $0x2444] ss:$16 sps:$4 sm:$0xff]  }
 0x2b1   : > { %9059 = vmatprep.subr.bf16.mxu1 %v12647_v37  ;;  %v12665_v58 = vld [vmem:[%s14003_s22 + $0x2644] ss:$16 sps:$4 sm:$0xff]   ;;  %v12660_v37 = vld [vmem:[%s14003_s22 + $0x2440] ss:$16 sps:$4 sm:$0xff]  }
 0x2b3   : > { %9017 = vmatpush1.bf16.msra.mxu0 %v12642_v6  ;;  %v12663_v6 = vld [vmem:[%s14003_s22 + $0x2640] ss:$16 sps:$4 sm:$0xff]  }
 0x2b4   : > { %9060 = vmatpush1.bf16.msra.mxu1 %v12645_v7  ;;  %9018 = vmatprep.subr.bf16.mxu0 %v12650_v11  ;;  %v12668_v7 = vld [vmem:[%s14003_s22 + $0x2424] ss:$16 sps:$4 sm:$0xff]  }
 0x2b5   : > { %9061 = vmatprep.subr.bf16.mxu1 %v12653_v17  ;;  %v12671_v11 = vld [vmem:[%s14003_s22 + $0x2624] ss:$16 sps:$4 sm:$0xff]   ;;  %v12666_v17 = vld [vmem:[%s14003_s22 + $0x2420] ss:$16 sps:$4 sm:$0xff]  }
 0x2b7   : > { %9019 = vmatpush1.bf16.msra.mxu0 %v12648_v18  ;;  %v12669_v18 = vld [vmem:[%s14003_s22 + $0x2620] ss:$16 sps:$4 sm:$0xff]  }
 0x2b8   : > { %9062 = vmatpush1.bf16.msra.mxu1 %v12651_v0  ;;  %9020 = vmatprep.subr.bf16.mxu0 %v12656_v10  ;;  %v12674_v0 = vld [vmem:[%s14003_s22 + $0x2404] ss:$16 sps:$4 sm:$0xff]  }
 0x2b9   : > { %9063 = vmatprep.subr.bf16.mxu1 %v12659_v45  ;;  %v12677_v10 = vld [vmem:[%s14003_s22 + $0x2604] ss:$16 sps:$4 sm:$0xff]   ;;  %v12672_v45 = vld [vmem:[%s14003_s22 + $0x2400] ss:$16 sps:$4 sm:$0xff]  }
 0x2bb   : > { %9021 = vmatpush1.bf16.msra.mxu0 %v12654_v50  ;;  %v12675_v50 = vld [vmem:[%s14003_s22 + $0x2600] ss:$16 sps:$4 sm:$0xff]  }
 0x2bc   : > { %9064 = vmatpush1.bf16.msra.mxu1 %v12657_v34  ;;  %9022 = vmatprep.subr.bf16.mxu0 %v12662_v4  ;;  %v12680_v34 = vld [vmem:[%s14003_s22 + $0x25e4] ss:$16 sps:$4 sm:$0xff]  }
 0x2bd   : > { %9065 = vmatprep.subr.bf16.mxu1 %v12665_v58  ;;  %v12683_v4 = vld [vmem:[%s14003_s22 + $0x27e4] ss:$16 sps:$4 sm:$0xff]   ;;  %v12678_v58 = vld [vmem:[%s14003_s22 + $0x25e0] ss:$16 sps:$4 sm:$0xff]  }
 0x2bf   : > { %9023 = vmatpush1.bf16.msra.mxu0 %v12660_v37  ;;  %v12681_v37 = vld [vmem:[%s14003_s22 + $0x27e0] ss:$16 sps:$4 sm:$0xff]  }
 0x2c0   : > { %9066 = vmatpush1.bf16.msra.mxu1 %v12663_v6  ;;  %9024 = vmatprep.subr.bf16.mxu0 %v12668_v7  ;;  %v12686_v6 = vld [vmem:[%s14003_s22 + $0x25c4] ss:$16 sps:$4 sm:$0xff]  }
 0x2c1   : > { %9067 = vmatprep.subr.bf16.mxu1 %v12671_v11  ;;  %v12689_v7 = vld [vmem:[%s14003_s22 + $0x27c4] ss:$16 sps:$4 sm:$0xff]   ;;  %v12684_v11 = vld [vmem:[%s14003_s22 + $0x25c0] ss:$16 sps:$4 sm:$0xff]  }
 0x2c3   : > { %9025 = vmatpush1.bf16.msra.mxu0 %v12666_v17  ;;  %v12687_v17 = vld [vmem:[%s14003_s22 + $0x27c0] ss:$16 sps:$4 sm:$0xff]  }
 0x2c4   : > { %9068 = vmatpush1.bf16.msra.mxu1 %v12669_v18  ;;  %9026 = vmatprep.subr.bf16.mxu0 %v12674_v0  ;;  %v12692_v18 = vld [vmem:[%s14003_s22 + $0x25a4] ss:$16 sps:$4 sm:$0xff]  }
 0x2c5   : > { %9069 = vmatprep.subr.bf16.mxu1 %v12677_v10  ;;  %v12695_v0 = vld [vmem:[%s14003_s22 + $0x27a4] ss:$16 sps:$4 sm:$0xff]   ;;  %v12690_v10 = vld [vmem:[%s14003_s22 + $0x25a0] ss:$16 sps:$4 sm:$0xff]  }
 0x2c7   : > { %9027 = vmatpush1.bf16.msra.mxu0 %v12672_v45  ;;  %v12693_v45 = vld [vmem:[%s14003_s22 + $0x27a0] ss:$16 sps:$4 sm:$0xff]  }
 0x2c8   : > { %9070 = vmatpush1.bf16.msra.mxu1 %v12675_v50  ;;  %9028 = vmatprep.subr.bf16.mxu0 %v12680_v34  ;;  %v12698_v50 = vld [vmem:[%s14003_s22 + $0x2584] ss:$16 sps:$4 sm:$0xff]  }
 0x2c9   : > { %9071 = vmatprep.subr.bf16.mxu1 %v12683_v4  ;;  %v12701_v34 = vld [vmem:[%s14003_s22 + $0x2784] ss:$16 sps:$4 sm:$0xff]   ;;  %v12696_v4 = vld [vmem:[%s14003_s22 + $0x2580] ss:$16 sps:$4 sm:$0xff]  }
 0x2cb   : > { %9029 = vmatpush2.bf16.msra.mxu0 %v12678_v58  ;;  %v12699_v58 = vld [vmem:[%s14003_s22 + $0x2780] ss:$16 sps:$4 sm:$0xff]  }
 0x2cc   : > { %9072 = vmatpush2.bf16.msra.mxu1 %v12681_v37  ;;  %9030 = vmatprep.subr.bf16.mxu0 %v12686_v6  ;;  %v12704_v37 = vld [vmem:[%s14003_s22 + $0x2564] ss:$16 sps:$4 sm:$0xff]  }
 0x2cd   : > { %9073 = vmatprep.subr.bf16.mxu1 %v12689_v7  ;;  %v12707_v6 = vld [vmem:[%s14003_s22 + $0x2764] ss:$16 sps:$4 sm:$0xff]   ;;  %v12702_v7 = vld [vmem:[%s14003_s22 + $0x2560] ss:$16 sps:$4 sm:$0xff]  }
 0x2cf   : > { %9031 = vmatpush2.bf16.msra.mxu0 %v12684_v11  ;;  %v12705_v11 = vld [vmem:[%s14003_s22 + $0x2760] ss:$16 sps:$4 sm:$0xff]  }
 0x2d0   : > { %9074 = vmatpush2.bf16.msra.mxu1 %v12687_v17  ;;  %9032 = vmatprep.subr.bf16.mxu0 %v12692_v18  ;;  %v12710_v17 = vld [vmem:[%s14003_s22 + $0x2544] ss:$16 sps:$4 sm:$0xff]  }
 0x2d1   : > { %9075 = vmatprep.subr.bf16.mxu1 %v12695_v0  ;;  %v12713_v18 = vld [vmem:[%s14003_s22 + $0x2744] ss:$16 sps:$4 sm:$0xff]   ;;  %v12708_v0 = vld [vmem:[%s14003_s22 + $0x2540] ss:$16 sps:$4 sm:$0xff]  }
 0x2d3   : > { %9033 = vmatpush2.bf16.msra.mxu0 %v12690_v10  ;;  %v12711_v10 = vld [vmem:[%s14003_s22 + $0x2740] ss:$16 sps:$4 sm:$0xff]  }
 0x2d4   : > { %9076 = vmatpush2.bf16.msra.mxu1 %v12693_v45  ;;  %9034 = vmatprep.subr.bf16.mxu0 %v12698_v50  ;;  %v12716_v45 = vld [vmem:[%s14003_s22 + $0x2524] ss:$16 sps:$4 sm:$0xff]  }
 0x2d5   : > { %9077 = vmatprep.subr.bf16.mxu1 %v12701_v34  ;;  %v12719_v50 = vld [vmem:[%s14003_s22 + $0x2724] ss:$16 sps:$4 sm:$0xff]   ;;  %v12714_v34 = vld [vmem:[%s14003_s22 + $0x2520] ss:$16 sps:$4 sm:$0xff]  }
 0x2d7   : > { %9035 = vmatpush2.bf16.msra.mxu0 %v12696_v4  ;;  %v12717_v4 = vld [vmem:[%s14003_s22 + $0x2720] ss:$16 sps:$4 sm:$0xff]  }
 0x2d8   : > { %9078 = vmatpush2.bf16.msra.mxu1 %v12699_v58  ;;  %9036 = vmatprep.subr.bf16.mxu0 %v12704_v37  ;;  %v12722_v58 = vld [vmem:[%s14003_s22 + $0x2504] ss:$16 sps:$4 sm:$0xff]  }
 0x2d9   : > { %9079 = vmatprep.subr.bf16.mxu1 %v12707_v6  ;;  %v12725_v37 = vld [vmem:[%s14003_s22 + $0x2704] ss:$16 sps:$4 sm:$0xff]   ;;  %v12720_v6 = vld [vmem:[%s14003_s22 + $0x2500] ss:$16 sps:$4 sm:$0xff]  }
 0x2db   : > { %9037 = vmatpush2.bf16.msra.mxu0 %v12702_v7  ;;  %v12723_v7 = vld [vmem:[%s14003_s22 + $0x2700] ss:$16 sps:$4 sm:$0xff]  }
 0x2dc   : > { %9080 = vmatpush2.bf16.msra.mxu1 %v12705_v11  ;;  %9038 = vmatprep.subr.bf16.mxu0 %v12710_v17  ;;  %v12728_v11 = vld [vmem:[%s14003_s22 + $0xec] ss:$16 sps:$4 sm:$0xff]  }
 0x2dd   : > { %9081 = vmatprep.subr.bf16.mxu1 %v12713_v18  ;;  %v12731_v17 = vld [vmem:[%s14003_s22 + $0x2ec] ss:$16 sps:$4 sm:$0xff]   ;;  %v12726_v18 = vld [vmem:[%s14003_s22 + $0xe8] ss:$16 sps:$4 sm:$0xff]  }
 0x2df   : > { %9039 = vmatpush2.bf16.msra.mxu0 %v12708_v0  ;;  %v12729_v0 = vld [vmem:[%s14003_s22 + $0x2e8] ss:$16 sps:$4 sm:$0xff]  }
 0x2e0   : > { %9082 = vmatpush2.bf16.msra.mxu1 %v12711_v10  ;;  %9040 = vmatprep.subr.bf16.mxu0 %v12716_v45  ;;  %v15065_v10 = vcombine.low %v14960_v19, %v14965_v44  ;;  %v15069_v45 = vcombine.low %v14970_v22, %v14975_v12  ;;  %v12740_v19 = vld [vmem:[%s14003_s22 + $0xac] ss:$16 sps:$4 sm:$0xff]   ;;  %v12738_v22 = vld [vmem:[%s14003_s22 + $0xa8] ss:$16 sps:$4 sm:$0xff]  }
 0x2e1   : > { %9083 = vmatprep.subr.bf16.mxu1 %v12719_v50  ;;  %v12734_v50 = vld [vmem:[%s14003_s22 + $0xcc] ss:$16 sps:$4 sm:$0xff]   ;;  %v12741_v12 = vld [vmem:[%s14003_s22 + $0x2a8] ss:$16 sps:$4 sm:$0xff]  }
 0x2e2   : > { %v12743_v44 = vld [vmem:[%s14003_s22 + $0x2ac] ss:$16 sps:$4 sm:$0xff]  }
 0x2e3   : > { %9041 = vmatpush2.bf16.msra.mxu0 %v12714_v34  ;;  %v12737_v34 = vld [vmem:[%s14003_s22 + $0x2cc] ss:$16 sps:$4 sm:$0xff]  }
 0x2e4   : > { %9084 = vmatpush2.bf16.msra.mxu1 %v12717_v4  ;;  %9042 = vmatprep.subr.bf16.mxu0 %v12722_v58  ;;  %v12732_v4 = vld [vmem:[%s14003_s22 + $0xc8] ss:$16 sps:$4 sm:$0xff]  }
 0x2e5   : > { %9085 = vmatprep.subr.bf16.mxu1 %v12725_v37  ;;  %v12735_v58 = vld [vmem:[%s14003_s22 + $0x2c8] ss:$16 sps:$4 sm:$0xff]   ;;  %v12746_v37 = vld [vmem:[%s14003_s22 + $0x8c] ss:$16 sps:$4 sm:$0xff]  }
 0x2e7   : > { %9043 = vmatpush2.bf16.msra.mxu0 %v12720_v6  ;;  %v12749_v6 = vld [vmem:[%s14003_s22 + $0x28c] ss:$16 sps:$4 sm:$0xff]  }
 0x2e8   : > { %9086 = vmatpush2.bf16.msra.mxu1 %v12723_v7  ;;  %9098 = vmatprep.subr.bf16.mxu0 %v12728_v11  ;;  %v12744_v7 = vld [vmem:[%s14003_s22 + $0x88] ss:$16 sps:$4 sm:$0xff]  }
 0x2e9   : > { %9141 = vmatprep.subr.bf16.mxu1 %v12731_v17  ;;  %v12747_v11 = vld [vmem:[%s14003_s22 + $0x288] ss:$16 sps:$4 sm:$0xff]  }
 0x2ea   : > { %9045 = vmatmul.mubr.bf16.vlgmr.msra.gmra.mxu0 %v15065_v10  ;;  %v12750_v17 = vld [vmem:[%s14003_s22 + $0x68] ss:$16 sps:$4 sm:$0xff]  }
 0x2eb   : > { %9088 = vmatmul.mubr.bf16.vlgmr.msra.gmra.mxu1 %v15069_v45  ;;  %9099 = vmatpush1.bf16.msra.mxu0 %v12726_v18  ;;  %v12753_v18 = vld [vmem:[%s14003_s22 + $0x268] ss:$16 sps:$4 sm:$0xff]  }
 0x2ec   : > { %9142 = vmatpush1.bf16.msra.mxu1 %v12729_v0  ;;  %9100 = vmatprep.subr.bf16.mxu0 %v12734_v50  ;;  %v12758_v0 = vld [vmem:[%s14003_s22 + $0x4c] ss:$16 sps:$4 sm:$0xff]  }
 0x2ed   : > { %9143 = vmatprep.subr.bf16.mxu1 %v12737_v34  ;;  %9130 = vmatprep.mubr.bf16.mxu0 %v14078_v53  ;;  %v12752_v53 = vld [vmem:[%s14003_s22 + $0x6c] ss:$16 sps:$4 sm:$0xff]   ;;  %v12756_v34 = vld [vmem:[%s14003_s22 + $0x48] ss:$16 sps:$4 sm:$0xff]  }
 0x2ee   : > { %9173 = vmatprep.mubr.bf16.mxu1 %v14081_v55  ;;  %v12755_v55 = vld [vmem:[%s14003_s22 + $0x26c] ss:$16 sps:$4 sm:$0xff]  }
 0x2ef   : > { %9101 = vmatpush1.bf16.msra.mxu0 %v12732_v4  ;;  %v12761_v50 = vld [vmem:[%s14003_s22 + $0x24c] ss:$16 sps:$4 sm:$0xff]   ;;  %v12759_v4 = vld [vmem:[%s14003_s22 + $0x248] ss:$16 sps:$4 sm:$0xff]  }
 0x2f0   : > { %9144 = vmatpush1.bf16.msra.mxu1 %v12735_v58  ;;  %9102 = vmatprep.subr.bf16.mxu0 %v12740_v19  ;;  %v12764_v58 = vld [vmem:[%s14003_s22 + $0x2c] ss:$16 sps:$4 sm:$0xff]  }
 0x2f1   : > { %9145 = vmatprep.subr.bf16.mxu1 %v12743_v44  ;;  %v12767_v19 = vld [vmem:[%s14003_s22 + $0x22c] ss:$16 sps:$4 sm:$0xff]   ;;  %v12762_v44 = vld [vmem:[%s14003_s22 + $0x28] ss:$16 sps:$4 sm:$0xff]  }
 0x2f3   : > { %9103 = vmatpush1.bf16.msra.mxu0 %v12738_v22  ;;  %v12765_v22 = vld [vmem:[%s14003_s22 + $0x228] ss:$16 sps:$4 sm:$0xff]  }
 0x2f4   : > { %9146 = vmatpush1.bf16.msra.mxu1 %v12741_v12  ;;  %9104 = vmatprep.subr.bf16.mxu0 %v12746_v37  ;;  %v12770_v12 = vld [vmem:[%s14003_s22 + $0xc] ss:$16 sps:$4 sm:$0xff]  }
 0x2f5   : > { %9147 = vmatprep.subr.bf16.mxu1 %v12749_v6  ;;  %v12773_v37 = vld [vmem:[%s14003_s22 + $0x20c] ss:$16 sps:$4 sm:$0xff]   ;;  %v12768_v6 = vld [vmem:[%s14003_s22 + $0x8] ss:$16 sps:$4 sm:$0xff]  }
 0x2f7   : > { %9105 = vmatpush1.bf16.msra.mxu0 %v12744_v7  ;;  %v12771_v7 = vld [vmem:[%s14003_s22 + $0x208] ss:$16 sps:$4 sm:$0xff]  }
 0x2f8   : > { %9148 = vmatpush1.bf16.msra.mxu1 %v12747_v11  ;;  %9106 = vmatprep.subr.bf16.mxu0 %v12752_v53  ;;  %v12776_v11 = vld [vmem:[%s14003_s22 + $0x1ec] ss:$16 sps:$4 sm:$0xff]  }
 0x2f9   : > { %9149 = vmatprep.subr.bf16.mxu1 %v12755_v55  ;;  %v12779_v53 = vld [vmem:[%s14003_s22 + $0x3ec] ss:$16 sps:$4 sm:$0xff]   ;;  %v12774_v55 = vld [vmem:[%s14003_s22 + $0x1e8] ss:$16 sps:$4 sm:$0xff]  }
 0x2fb   : > { %9107 = vmatpush1.bf16.msra.mxu0 %v12750_v17  ;;  %v12777_v17 = vld [vmem:[%s14003_s22 + $0x3e8] ss:$16 sps:$4 sm:$0xff]  }
 0x2fc   : > { %9150 = vmatpush1.bf16.msra.mxu1 %v12753_v18  ;;  %9108 = vmatprep.subr.bf16.mxu0 %v12758_v0  ;;  %v12782_v18 = vld [vmem:[%s14003_s22 + $0x1cc] ss:$16 sps:$4 sm:$0xff]  }
 0x2fd   : > { %9151 = vmatprep.subr.bf16.mxu1 %v12761_v50  ;;  %v12785_v0 = vld [vmem:[%s14003_s22 + $0x3cc] ss:$16 sps:$4 sm:$0xff]   ;;  %v12780_v50 = vld [vmem:[%s14003_s22 + $0x1c8] ss:$16 sps:$4 sm:$0xff]  }
 0x2ff   : > { %9109 = vmatpush1.bf16.msra.mxu0 %v12756_v34  ;;  %v12783_v34 = vld [vmem:[%s14003_s22 + $0x3c8] ss:$16 sps:$4 sm:$0xff]  }
 0x300   : > { %9152 = vmatpush1.bf16.msra.mxu1 %v12759_v4  ;;  %9110 = vmatprep.subr.bf16.mxu0 %v12764_v58  ;;  %v12788_v4 = vld [vmem:[%s14003_s22 + $0x1ac] ss:$16 sps:$4 sm:$0xff]  }
 0x301   : > { %9153 = vmatprep.subr.bf16.mxu1 %v12767_v19  ;;  %v12791_v58 = vld [vmem:[%s14003_s22 + $0x3ac] ss:$16 sps:$4 sm:$0xff]   ;;  %v12786_v19 = vld [vmem:[%s14003_s22 + $0x1a8] ss:$16 sps:$4 sm:$0xff]  }
 0x303   : > { %9111 = vmatpush1.bf16.msra.mxu0 %v12762_v44  ;;  %v12789_v44 = vld [vmem:[%s14003_s22 + $0x3a8] ss:$16 sps:$4 sm:$0xff]  }
 0x304   : > { %9154 = vmatpush1.bf16.msra.mxu1 %v12765_v22  ;;  %9112 = vmatprep.subr.bf16.mxu0 %v12770_v12  ;;  %v12794_v22 = vld [vmem:[%s14003_s22 + $0x18c] ss:$16 sps:$4 sm:$0xff]  }
 0x305   : > { %9155 = vmatprep.subr.bf16.mxu1 %v12773_v37  ;;  %v12797_v12 = vld [vmem:[%s14003_s22 + $0x38c] ss:$16 sps:$4 sm:$0xff]   ;;  %v12792_v37 = vld [vmem:[%s14003_s22 + $0x188] ss:$16 sps:$4 sm:$0xff]  }
 0x307   : > { %9113 = vmatpush1.bf16.msra.mxu0 %v12768_v6  ;;  %v12795_v6 = vld [vmem:[%s14003_s22 + $0x388] ss:$16 sps:$4 sm:$0xff]  }
 0x308   : > { %9156 = vmatpush1.bf16.msra.mxu1 %v12771_v7  ;;  %9114 = vmatprep.subr.bf16.mxu0 %v12776_v11  ;;  %v12800_v7 = vld [vmem:[%s14003_s22 + $0x16c] ss:$16 sps:$4 sm:$0xff]  }
 0x309   : > { %9157 = vmatprep.subr.bf16.mxu1 %v12779_v53  ;;  %v12803_v11 = vld [vmem:[%s14003_s22 + $0x36c] ss:$16 sps:$4 sm:$0xff]   ;;  %v12798_v53 = vld [vmem:[%s14003_s22 + $0x168] ss:$16 sps:$4 sm:$0xff]  }
 0x30b   : > { %9115 = vmatpush2.bf16.msra.mxu0 %v12774_v55  ;;  %v12801_v55 = vld [vmem:[%s14003_s22 + $0x368] ss:$16 sps:$4 sm:$0xff]  }
 0x30c   : > { %9158 = vmatpush2.bf16.msra.mxu1 %v12777_v17  ;;  %9116 = vmatprep.subr.bf16.mxu0 %v12782_v18  ;;  %v12806_v17 = vld [vmem:[%s14003_s22 + $0x14c] ss:$16 sps:$4 sm:$0xff]  }
 0x30d   : > { %9159 = vmatprep.subr.bf16.mxu1 %v12785_v0  ;;  %v12809_v18 = vld [vmem:[%s14003_s22 + $0x34c] ss:$16 sps:$4 sm:$0xff]   ;;  %v12804_v0 = vld [vmem:[%s14003_s22 + $0x148] ss:$16 sps:$4 sm:$0xff]  }
 0x30f   : > { %9117 = vmatpush2.bf16.msra.mxu0 %v12780_v50  ;;  %v12807_v50 = vld [vmem:[%s14003_s22 + $0x348] ss:$16 sps:$4 sm:$0xff]  }
 0x310   : > { %9160 = vmatpush2.bf16.msra.mxu1 %v12783_v34  ;;  %9118 = vmatprep.subr.bf16.mxu0 %v12788_v4  ;;  %v12812_v34 = vld [vmem:[%s14003_s22 + $0x12c] ss:$16 sps:$4 sm:$0xff]  }
 0x311   : > { %9161 = vmatprep.subr.bf16.mxu1 %v12791_v58  ;;  %v12815_v4 = vld [vmem:[%s14003_s22 + $0x32c] ss:$16 sps:$4 sm:$0xff]   ;;  %v12810_v58 = vld [vmem:[%s14003_s22 + $0x128] ss:$16 sps:$4 sm:$0xff]  }
 0x313   : > { %9119 = vmatpush2.bf16.msra.mxu0 %v12786_v19  ;;  %v12813_v19 = vld [vmem:[%s14003_s22 + $0x328] ss:$16 sps:$4 sm:$0xff]  }
 0x314   : > { %9162 = vmatpush2.bf16.msra.mxu1 %v12789_v44  ;;  %9120 = vmatprep.subr.bf16.mxu0 %v12794_v22  ;;  %v12818_v44 = vld [vmem:[%s14003_s22 + $0x10c] ss:$16 sps:$4 sm:$0xff]  }
 0x315   : > { %9163 = vmatprep.subr.bf16.mxu1 %v12797_v12  ;;  %v12821_v22 = vld [vmem:[%s14003_s22 + $0x30c] ss:$16 sps:$4 sm:$0xff]   ;;  %v12816_v12 = vld [vmem:[%s14003_s22 + $0x108] ss:$16 sps:$4 sm:$0xff]  }
 0x317   : > { %9121 = vmatpush2.bf16.msra.mxu0 %v12792_v37  ;;  %v12819_v37 = vld [vmem:[%s14003_s22 + $0x308] ss:$16 sps:$4 sm:$0xff]  }
 0x318   : > { %9164 = vmatpush2.bf16.msra.mxu1 %v12795_v6  ;;  %9122 = vmatprep.subr.bf16.mxu0 %v12800_v7  ;;  %v12824_v6 = vld [vmem:[%s14003_s22 + $0x4ec] ss:$16 sps:$4 sm:$0xff]  }
 0x319   : > { %9165 = vmatprep.subr.bf16.mxu1 %v12803_v11  ;;  %v12827_v7 = vld [vmem:[%s14003_s22 + $0x6ec] ss:$16 sps:$4 sm:$0xff]   ;;  %v12822_v11 = vld [vmem:[%s14003_s22 + $0x4e8] ss:$16 sps:$4 sm:$0xff]  }
 0x31b   : > { %9123 = vmatpush2.bf16.msra.mxu0 %v12798_v53  ;;  %v12825_v53 = vld [vmem:[%s14003_s22 + $0x6e8] ss:$16 sps:$4 sm:$0xff]  }
 0x31c   : > { %9166 = vmatpush2.bf16.msra.mxu1 %v12801_v55  ;;  %9124 = vmatprep.subr.bf16.mxu0 %v12806_v17  ;;  %v12830_v55 = vld [vmem:[%s14003_s22 + $0x4cc] ss:$16 sps:$4 sm:$0xff]  }
 0x31d   : > { %9167 = vmatprep.subr.bf16.mxu1 %v12809_v18  ;;  %v12833_v17 = vld [vmem:[%s14003_s22 + $0x6cc] ss:$16 sps:$4 sm:$0xff]   ;;  %v12828_v18 = vld [vmem:[%s14003_s22 + $0x4c8] ss:$16 sps:$4 sm:$0xff]  }
 0x31f   : > { %9125 = vmatpush2.bf16.msra.mxu0 %v12804_v0  ;;  %v12831_v0 = vld [vmem:[%s14003_s22 + $0x6c8] ss:$16 sps:$4 sm:$0xff]  }
 0x320   : > { %9168 = vmatpush2.bf16.msra.mxu1 %v12807_v50  ;;  %9126 = vmatprep.subr.bf16.mxu0 %v12812_v34  ;;  %v12836_v50 = vld [vmem:[%s14003_s22 + $0x4ac] ss:$16 sps:$4 sm:$0xff]  }
 0x321   : > { %9169 = vmatprep.subr.bf16.mxu1 %v12815_v4  ;;  %v12839_v34 = vld [vmem:[%s14003_s22 + $0x6ac] ss:$16 sps:$4 sm:$0xff]   ;;  %v12834_v4 = vld [vmem:[%s14003_s22 + $0x4a8] ss:$16 sps:$4 sm:$0xff]  }
 0x323   : > { %9127 = vmatpush2.bf16.msra.mxu0 %v12810_v58  ;;  %v12837_v58 = vld [vmem:[%s14003_s22 + $0x6a8] ss:$16 sps:$4 sm:$0xff]  }
 0x324   : > { %9170 = vmatpush2.bf16.msra.mxu1 %v12813_v19  ;;  %9128 = vmatprep.subr.bf16.mxu0 %v12818_v44  ;;  %v12840_v19 = vld [vmem:[%s14003_s22 + $0x488] ss:$16 sps:$4 sm:$0xff]  }
 0x325   : > { %9171 = vmatprep.subr.bf16.mxu1 %v12821_v22  ;;  %v12843_v44 = vld [vmem:[%s14003_s22 + $0x688] ss:$16 sps:$4 sm:$0xff]  }
 0x326   : > { %v12846_v22 = vld [vmem:[%s14003_s22 + $0x468] ss:$16 sps:$4 sm:$0xff]  }
 0x327   : > { %9129 = vmatpush2.bf16.msra.mxu0 %v12816_v12  ;;  %v12849_v12 = vld [vmem:[%s14003_s22 + $0x668] ss:$16 sps:$4 sm:$0xff]  }
 0x328   : > { %9172 = vmatpush2.bf16.msra.mxu1 %v12819_v37  ;;  %9184 = vmatprep.subr.bf16.mxu0 %v12824_v6  ;;  %v12854_v37 = vld [vmem:[%s14003_s22 + $0x44c] ss:$16 sps:$4 sm:$0xff]  }
 0x329   : > { %9227 = vmatprep.subr.bf16.mxu1 %v12827_v7  ;;  %v12857_v6 = vld [vmem:[%s14003_s22 + $0x64c] ss:$16 sps:$4 sm:$0xff]   ;;  %v12852_v7 = vld [vmem:[%s14003_s22 + $0x448] ss:$16 sps:$4 sm:$0xff]  }
 0x32a   : > { %9131 = vmatmul.mubr.bf16.vlgmr.msra.gmra.mxu0 %v14101_v8  ;;  %v12842_v8 = vld [vmem:[%s14003_s22 + $0x48c] ss:$16 sps:$4 sm:$0xff]  }
 0x32b   : > { %9174 = vmatmul.mubr.bf16.vlgmr.msra.gmra.mxu1 %v14103_v9  ;;  %9185 = vmatpush1.bf16.msra.mxu0 %v12822_v11  ;;  %v12845_v9 = vld [vmem:[%s14003_s22 + $0x68c] ss:$16 sps:$4 sm:$0xff]   ;;  %v12855_v11 = vld [vmem:[%s14003_s22 + $0x648] ss:$16 sps:$4 sm:$0xff]  }
 0x32c   : > { %9228 = vmatpush1.bf16.msra.mxu1 %v12825_v53  ;;  %9186 = vmatprep.subr.bf16.mxu0 %v12830_v55  ;;  %v12860_v53 = vld [vmem:[%s14003_s22 + $0x42c] ss:$16 sps:$4 sm:$0xff]  }
 0x32d   : > { %9229 = vmatprep.subr.bf16.mxu1 %v12833_v17  ;;  %9216 = vmatprep.mubr.bf16.mxu0 %v14156_v41  ;;  %v12848_v41 = vld [vmem:[%s14003_s22 + $0x46c] ss:$16 sps:$4 sm:$0xff]   ;;  %v12858_v17 = vld [vmem:[%s14003_s22 + $0x428] ss:$16 sps:$4 sm:$0xff]  }
 0x32e   : > { %9259 = vmatprep.mubr.bf16.mxu1 %v14161_v43  ;;  %v12851_v43 = vld [vmem:[%s14003_s22 + $0x66c] ss:$16 sps:$4 sm:$0xff]  }
 0x32f   : > { %9187 = vmatpush1.bf16.msra.mxu0 %v12828_v18  ;;  %v12863_v55 = vld [vmem:[%s14003_s22 + $0x62c] ss:$16 sps:$4 sm:$0xff]   ;;  %v12861_v18 = vld [vmem:[%s14003_s22 + $0x628] ss:$16 sps:$4 sm:$0xff]  }
 0x330   : > { %9230 = vmatpush1.bf16.msra.mxu1 %v12831_v0  ;;  %9188 = vmatprep.subr.bf16.mxu0 %v12836_v50  ;;  %v12866_v0 = vld [vmem:[%s14003_s22 + $0x40c] ss:$16 sps:$4 sm:$0xff]  }
 0x331   : > { %9231 = vmatprep.subr.bf16.mxu1 %v12839_v34  ;;  %v12869_v50 = vld [vmem:[%s14003_s22 + $0x60c] ss:$16 sps:$4 sm:$0xff]   ;;  %v12864_v34 = vld [vmem:[%s14003_s22 + $0x408] ss:$16 sps:$4 sm:$0xff]  }
 0x333   : > { %9189 = vmatpush1.bf16.msra.mxu0 %v12834_v4  ;;  %v12867_v4 = vld [vmem:[%s14003_s22 + $0x608] ss:$16 sps:$4 sm:$0xff]  }
 0x334   : > { %9232 = vmatpush1.bf16.msra.mxu1 %v12837_v58  ;;  %9190 = vmatprep.subr.bf16.mxu0 %v12842_v8  ;;  %v12872_v58 = vld [vmem:[%s14003_s22 + $0x5ec] ss:$16 sps:$4 sm:$0xff]  }
 0x335   : > { %9233 = vmatprep.subr.bf16.mxu1 %v12845_v9  ;;  %v12875_v8 = vld [vmem:[%s14003_s22 + $0x7ec] ss:$16 sps:$4 sm:$0xff]   ;;  %v12870_v9 = vld [vmem:[%s14003_s22 + $0x5e8] ss:$16 sps:$4 sm:$0xff]  }
 0x337   : > { %9191 = vmatpush1.bf16.msra.mxu0 %v12840_v19  ;;  %v12873_v19 = vld [vmem:[%s14003_s22 + $0x7e8] ss:$16 sps:$4 sm:$0xff]  }
 0x338   : > { %9234 = vmatpush1.bf16.msra.mxu1 %v12843_v44  ;;  %9192 = vmatprep.subr.bf16.mxu0 %v12848_v41  ;;  %v12878_v44 = vld [vmem:[%s14003_s22 + $0x5cc] ss:$16 sps:$4 sm:$0xff]  }
 0x339   : > { %9235 = vmatprep.subr.bf16.mxu1 %v12851_v43  ;;  %v12881_v41 = vld [vmem:[%s14003_s22 + $0x7cc] ss:$16 sps:$4 sm:$0xff]   ;;  %v12876_v43 = vld [vmem:[%s14003_s22 + $0x5c8] ss:$16 sps:$4 sm:$0xff]  }
 0x33b   : > { %9193 = vmatpush1.bf16.msra.mxu0 %v12846_v22  ;;  %v12879_v22 = vld [vmem:[%s14003_s22 + $0x7c8] ss:$16 sps:$4 sm:$0xff]  }
 0x33c   : > { %9236 = vmatpush1.bf16.msra.mxu1 %v12849_v12  ;;  %9194 = vmatprep.subr.bf16.mxu0 %v12854_v37  ;;  %v12884_v12 = vld [vmem:[%s14003_s22 + $0x5ac] ss:$16 sps:$4 sm:$0xff]  }
 0x33d   : > { %9237 = vmatprep.subr.bf16.mxu1 %v12857_v6  ;;  %v12887_v37 = vld [vmem:[%s14003_s22 + $0x7ac] ss:$16 sps:$4 sm:$0xff]   ;;  %v12882_v6 = vld [vmem:[%s14003_s22 + $0x5a8] ss:$16 sps:$4 sm:$0xff]  }
 0x33f   : > { %9195 = vmatpush1.bf16.msra.mxu0 %v12852_v7  ;;  %v12885_v7 = vld [vmem:[%s14003_s22 + $0x7a8] ss:$16 sps:$4 sm:$0xff]  }
 0x340   : > { %9238 = vmatpush1.bf16.msra.mxu1 %v12855_v11  ;;  %9196 = vmatprep.subr.bf16.mxu0 %v12860_v53  ;;  %v12890_v11 = vld [vmem:[%s14003_s22 + $0x58c] ss:$16 sps:$4 sm:$0xff]  }
 0x341   : > { %9239 = vmatprep.subr.bf16.mxu1 %v12863_v55  ;;  %v12893_v53 = vld [vmem:[%s14003_s22 + $0x78c] ss:$16 sps:$4 sm:$0xff]   ;;  %v12888_v55 = vld [vmem:[%s14003_s22 + $0x588] ss:$16 sps:$4 sm:$0xff]  }
 0x343   : > { %9197 = vmatpush1.bf16.msra.mxu0 %v12858_v17  ;;  %v12891_v17 = vld [vmem:[%s14003_s22 + $0x788] ss:$16 sps:$4 sm:$0xff]  }
 0x344   : > { %9240 = vmatpush1.bf16.msra.mxu1 %v12861_v18  ;;  %9198 = vmatprep.subr.bf16.mxu0 %v12866_v0  ;;  %v12896_v18 = vld [vmem:[%s14003_s22 + $0x56c] ss:$16 sps:$4 sm:$0xff]  }
 0x345   : > { %9241 = vmatprep.subr.bf16.mxu1 %v12869_v50  ;;  %v12899_v0 = vld [vmem:[%s14003_s22 + $0x76c] ss:$16 sps:$4 sm:$0xff]   ;;  %v12894_v50 = vld [vmem:[%s14003_s22 + $0x568] ss:$16 sps:$4 sm:$0xff]  }
 0x347   : > { %9199 = vmatpush1.bf16.msra.mxu0 %v12864_v34  ;;  %v12897_v34 = vld [vmem:[%s14003_s22 + $0x768] ss:$16 sps:$4 sm:$0xff]  }
 0x348   : > { %9242 = vmatpush1.bf16.msra.mxu1 %v12867_v4  ;;  %9200 = vmatprep.subr.bf16.mxu0 %v12872_v58  ;;  %v12902_v4 = vld [vmem:[%s14003_s22 + $0x54c] ss:$16 sps:$4 sm:$0xff]  }
 0x349   : > { %9243 = vmatprep.subr.bf16.mxu1 %v12875_v8  ;;  %v12905_v58 = vld [vmem:[%s14003_s22 + $0x74c] ss:$16 sps:$4 sm:$0xff]   ;;  %v12900_v8 = vld [vmem:[%s14003_s22 + $0x548] ss:$16 sps:$4 sm:$0xff]  }
 0x34b   : > { %9201 = vmatpush2.bf16.msra.mxu0 %v12870_v9  ;;  %v12903_v9 = vld [vmem:[%s14003_s22 + $0x748] ss:$16 sps:$4 sm:$0xff]  }
 0x34c   : > { %9244 = vmatpush2.bf16.msra.mxu1 %v12873_v19  ;;  %9202 = vmatprep.subr.bf16.mxu0 %v12878_v44  ;;  %v12908_v19 = vld [vmem:[%s14003_s22 + $0x52c] ss:$16 sps:$4 sm:$0xff]  }
 0x34d   : > { %9245 = vmatprep.subr.bf16.mxu1 %v12881_v41  ;;  %v12911_v44 = vld [vmem:[%s14003_s22 + $0x72c] ss:$16 sps:$4 sm:$0xff]   ;;  %v12906_v41 = vld [vmem:[%s14003_s22 + $0x528] ss:$16 sps:$4 sm:$0xff]  }
 0x34f   : > { %9203 = vmatpush2.bf16.msra.mxu0 %v12876_v43  ;;  %v12909_v43 = vld [vmem:[%s14003_s22 + $0x728] ss:$16 sps:$4 sm:$0xff]  }
 0x350   : > { %9246 = vmatpush2.bf16.msra.mxu1 %v12879_v22  ;;  %9204 = vmatprep.subr.bf16.mxu0 %v12884_v12  ;;  %v12914_v22 = vld [vmem:[%s14003_s22 + $0x50c] ss:$16 sps:$4 sm:$0xff]  }
 0x351   : > { %9247 = vmatprep.subr.bf16.mxu1 %v12887_v37  ;;  %v12917_v12 = vld [vmem:[%s14003_s22 + $0x70c] ss:$16 sps:$4 sm:$0xff]   ;;  %v12912_v37 = vld [vmem:[%s14003_s22 + $0x508] ss:$16 sps:$4 sm:$0xff]  }
 0x353   : > { %9205 = vmatpush2.bf16.msra.mxu0 %v12882_v6  ;;  %v12915_v6 = vld [vmem:[%s14003_s22 + $0x708] ss:$16 sps:$4 sm:$0xff]  }
 0x354   : > { %9248 = vmatpush2.bf16.msra.mxu1 %v12885_v7  ;;  %9206 = vmatprep.subr.bf16.mxu0 %v12890_v11  ;;  %v12920_v7 = vld [vmem:[%s14003_s22 + $0x8ec] ss:$16 sps:$4 sm:$0xff]  }
 0x355   : > { %9249 = vmatprep.subr.bf16.mxu1 %v12893_v53  ;;  %v12923_v11 = vld [vmem:[%s14003_s22 + $0xaec] ss:$16 sps:$4 sm:$0xff]   ;;  %v12918_v53 = vld [vmem:[%s14003_s22 + $0x8e8] ss:$16 sps:$4 sm:$0xff]  }
 0x357   : > { %9207 = vmatpush2.bf16.msra.mxu0 %v12888_v55  ;;  %v12921_v55 = vld [vmem:[%s14003_s22 + $0xae8] ss:$16 sps:$4 sm:$0xff]  }
 0x358   : > { %9250 = vmatpush2.bf16.msra.mxu1 %v12891_v17  ;;  %9208 = vmatprep.subr.bf16.mxu0 %v12896_v18  ;;  %v12926_v17 = vld [vmem:[%s14003_s22 + $0x8cc] ss:$16 sps:$4 sm:$0xff]  }
 0x359   : > { %9251 = vmatprep.subr.bf16.mxu1 %v12899_v0  ;;  %v12929_v18 = vld [vmem:[%s14003_s22 + $0xacc] ss:$16 sps:$4 sm:$0xff]   ;;  %v12924_v0 = vld [vmem:[%s14003_s22 + $0x8c8] ss:$16 sps:$4 sm:$0xff]  }
 0x35b   : > { %9209 = vmatpush2.bf16.msra.mxu0 %v12894_v50  ;;  %v12927_v50 = vld [vmem:[%s14003_s22 + $0xac8] ss:$16 sps:$4 sm:$0xff]  }
 0x35c   : > { %9252 = vmatpush2.bf16.msra.mxu1 %v12897_v34  ;;  %9210 = vmatprep.subr.bf16.mxu0 %v12902_v4  ;;  %v12932_v34 = vld [vmem:[%s14003_s22 + $0x8ac] ss:$16 sps:$4 sm:$0xff]  }
 0x35d   : > { %9253 = vmatprep.subr.bf16.mxu1 %v12905_v58  ;;  %v12935_v4 = vld [vmem:[%s14003_s22 + $0xaac] ss:$16 sps:$4 sm:$0xff]  }
 0x35e   : > { %v12938_v58 = vld [vmem:[%s14003_s22 + $0x88c] ss:$16 sps:$4 sm:$0xff]  }
 0x35f   : > { %9211 = vmatpush2.bf16.msra.mxu0 %v12900_v8  ;;  %v12941_v8 = vld [vmem:[%s14003_s22 + $0xa8c] ss:$16 sps:$4 sm:$0xff]  }
 0x360   : > { %9254 = vmatpush2.bf16.msra.mxu1 %v12903_v9  ;;  %9212 = vmatprep.subr.bf16.mxu0 %v12908_v19  ;;  %v12936_v9 = vld [vmem:[%s14003_s22 + $0x888] ss:$16 sps:$4 sm:$0xff]   ;;  %v12947_v19 = vld [vmem:[%s14003_s22 + $0xa6c] ss:$16 sps:$4 sm:$0xff]  }
 0x361   : > { %9255 = vmatprep.subr.bf16.mxu1 %v12911_v44  ;;  %v12942_v44 = vld [vmem:[%s14003_s22 + $0x868] ss:$16 sps:$4 sm:$0xff]  }
 0x363   : > { %9213 = vmatpush2.bf16.msra.mxu0 %v12906_v41  ;;  %v12945_v41 = vld [vmem:[%s14003_s22 + $0xa68] ss:$16 sps:$4 sm:$0xff]  }
 0x364   : > { %9256 = vmatpush2.bf16.msra.mxu1 %v12909_v43  ;;  %9214 = vmatprep.subr.bf16.mxu0 %v12914_v22  ;;  %v12950_v43 = vld [vmem:[%s14003_s22 + $0x84c] ss:$16 sps:$4 sm:$0xff]  }
 0x365   : > { %9257 = vmatprep.subr.bf16.mxu1 %v12917_v12  ;;  %v12953_v22 = vld [vmem:[%s14003_s22 + $0xa4c] ss:$16 sps:$4 sm:$0xff]   ;;  %v12948_v12 = vld [vmem:[%s14003_s22 + $0x848] ss:$16 sps:$4 sm:$0xff]  }
 0x367   : > { %9215 = vmatpush2.bf16.msra.mxu0 %v12912_v37  ;;  %v12951_v37 = vld [vmem:[%s14003_s22 + $0xa48] ss:$16 sps:$4 sm:$0xff]  }
 0x368   : > { %9258 = vmatpush2.bf16.msra.mxu1 %v12915_v6  ;;  %9270 = vmatprep.subr.bf16.mxu0 %v12920_v7  ;;  %v12956_v6 = vld [vmem:[%s14003_s22 + $0x82c] ss:$16 sps:$4 sm:$0xff]  }
 0x369   : > { %9313 = vmatprep.subr.bf16.mxu1 %v12923_v11  ;;  %v12959_v7 = vld [vmem:[%s14003_s22 + $0xa2c] ss:$16 sps:$4 sm:$0xff]   ;;  %v12954_v11 = vld [vmem:[%s14003_s22 + $0x828] ss:$16 sps:$4 sm:$0xff]  }
 0x36a   : > { %9217 = vmatmul.mubr.bf16.vlgmr.msra.gmra.mxu0 %v14203_v20  ;;  %v12930_v20 = vld [vmem:[%s14003_s22 + $0x8a8] ss:$16 sps:$4 sm:$0xff]  }
 0x36b   : > { %9260 = vmatmul.mubr.bf16.vlgmr.msra.gmra.mxu1 %v14207_v21  ;;  %9271 = vmatpush1.bf16.msra.mxu0 %v12918_v53  ;;  %v12933_v21 = vld [vmem:[%s14003_s22 + $0xaa8] ss:$16 sps:$4 sm:$0xff]  }
 0x36c   : > { %9314 = vmatpush1.bf16.msra.mxu1 %v12921_v55  ;;  %9272 = vmatprep.subr.bf16.mxu0 %v12926_v17  ;;  %v12957_v53 = vld [vmem:[%s14003_s22 + $0xa28] ss:$16 sps:$4 sm:$0xff]   ;;  %v12962_v55 = vld [vmem:[%s14003_s22 + $0x80c] ss:$16 sps:$4 sm:$0xff]  }
 0x36d   : > { %9315 = vmatprep.subr.bf16.mxu1 %v12929_v18  ;;  %9302 = vmatprep.mubr.bf16.mxu0 %v14240_v33  ;;  %v12939_v33 = vld [vmem:[%s14003_s22 + $0xa88] ss:$16 sps:$4 sm:$0xff]   ;;  %v12965_v17 = vld [vmem:[%s14003_s22 + $0xa0c] ss:$16 sps:$4 sm:$0xff]  }
 0x36e   : > { %9345 = vmatprep.mubr.bf16.mxu1 %v14245_v35  ;;  %v12944_v35 = vld [vmem:[%s14003_s22 + $0x86c] ss:$16 sps:$4 sm:$0xff]   ;;  %v12960_v18 = vld [vmem:[%s14003_s22 + $0x808] ss:$16 sps:$4 sm:$0xff]  }
 0x36f   : > { %9273 = vmatpush1.bf16.msra.mxu0 %v12924_v0  ;;  %v12963_v0 = vld [vmem:[%s14003_s22 + $0xa08] ss:$16 sps:$4 sm:$0xff]  }
 0x370   : > { %9316 = vmatpush1.bf16.msra.mxu1 %v12927_v50  ;;  %9274 = vmatprep.subr.bf16.mxu0 %v12932_v34  ;;  %v12968_v50 = vld [vmem:[%s14003_s22 + $0x9ec] ss:$16 sps:$4 sm:$0xff]  }
 0x371   : > { %9317 = vmatprep.subr.bf16.mxu1 %v12935_v4  ;;  %v12971_v34 = vld [vmem:[%s14003_s22 + $0xbec] ss:$16 sps:$4 sm:$0xff]   ;;  %v12966_v4 = vld [vmem:[%s14003_s22 + $0x9e8] ss:$16 sps:$4 sm:$0xff]  }
 0x373   : > { %9275 = vmatpush1.bf16.msra.mxu0 %v12930_v20  ;;  %v12969_v20 = vld [vmem:[%s14003_s22 + $0xbe8] ss:$16 sps:$4 sm:$0xff]  }
 0x374   : > { %9318 = vmatpush1.bf16.msra.mxu1 %v12933_v21  ;;  %9276 = vmatprep.subr.bf16.mxu0 %v12938_v58  ;;  %v12974_v21 = vld [vmem:[%s14003_s22 + $0x9cc] ss:$16 sps:$4 sm:$0xff]  }
 0x375   : > { %9319 = vmatprep.subr.bf16.mxu1 %v12941_v8  ;;  %v12977_v58 = vld [vmem:[%s14003_s22 + $0xbcc] ss:$16 sps:$4 sm:$0xff]   ;;  %v12972_v8 = vld [vmem:[%s14003_s22 + $0x9c8] ss:$16 sps:$4 sm:$0xff]  }
 0x377   : > { %9277 = vmatpush1.bf16.msra.mxu0 %v12936_v9  ;;  %v12975_v9 = vld [vmem:[%s14003_s22 + $0xbc8] ss:$16 sps:$4 sm:$0xff]  }
 0x378   : > { %9320 = vmatpush1.bf16.msra.mxu1 %v12939_v33  ;;  %9278 = vmatprep.subr.bf16.mxu0 %v12944_v35  ;;  %v12980_v33 = vld [vmem:[%s14003_s22 + $0x9ac] ss:$16 sps:$4 sm:$0xff]  }
 0x379   : > { %9321 = vmatprep.subr.bf16.mxu1 %v12947_v19  ;;  %v12983_v35 = vld [vmem:[%s14003_s22 + $0xbac] ss:$16 sps:$4 sm:$0xff]   ;;  %v12978_v19 = vld [vmem:[%s14003_s22 + $0x9a8] ss:$16 sps:$4 sm:$0xff]  }
 0x37b   : > { %9279 = vmatpush1.bf16.msra.mxu0 %v12942_v44  ;;  %v12981_v44 = vld [vmem:[%s14003_s22 + $0xba8] ss:$16 sps:$4 sm:$0xff]  }
 0x37c   : > { %9322 = vmatpush1.bf16.msra.mxu1 %v12945_v41  ;;  %9280 = vmatprep.subr.bf16.mxu0 %v12950_v43  ;;  %v12986_v41 = vld [vmem:[%s14003_s22 + $0x98c] ss:$16 sps:$4 sm:$0xff]  }
 0x37d   : > { %9323 = vmatprep.subr.bf16.mxu1 %v12953_v22  ;;  %v12989_v43 = vld [vmem:[%s14003_s22 + $0xb8c] ss:$16 sps:$4 sm:$0xff]   ;;  %v12984_v22 = vld [vmem:[%s14003_s22 + $0x988] ss:$16 sps:$4 sm:$0xff]  }
 0x37f   : > { %9281 = vmatpush1.bf16.msra.mxu0 %v12948_v12  ;;  %v12987_v12 = vld [vmem:[%s14003_s22 + $0xb88] ss:$16 sps:$4 sm:$0xff]  }
 0x380   : > { %9324 = vmatpush1.bf16.msra.mxu1 %v12951_v37  ;;  %9282 = vmatprep.subr.bf16.mxu0 %v12956_v6  ;;  %v12992_v37 = vld [vmem:[%s14003_s22 + $0x96c] ss:$16 sps:$4 sm:$0xff]  }
 0x381   : > { %9325 = vmatprep.subr.bf16.mxu1 %v12959_v7  ;;  %v12995_v6 = vld [vmem:[%s14003_s22 + $0xb6c] ss:$16 sps:$4 sm:$0xff]   ;;  %v12990_v7 = vld [vmem:[%s14003_s22 + $0x968] ss:$16 sps:$4 sm:$0xff]  }
 0x383   : > { %9283 = vmatpush1.bf16.msra.mxu0 %v12954_v11  ;;  %v12993_v11 = vld [vmem:[%s14003_s22 + $0xb68] ss:$16 sps:$4 sm:$0xff]  }
 0x384   : > { %9326 = vmatpush1.bf16.msra.mxu1 %v12957_v53  ;;  %9284 = vmatprep.subr.bf16.mxu0 %v12962_v55  ;;  %v12998_v53 = vld [vmem:[%s14003_s22 + $0x94c] ss:$16 sps:$4 sm:$0xff]  }
 0x385   : > { %9327 = vmatprep.subr.bf16.mxu1 %v12965_v17  ;;  %v13001_v55 = vld [vmem:[%s14003_s22 + $0xb4c] ss:$16 sps:$4 sm:$0xff]   ;;  %v12996_v17 = vld [vmem:[%s14003_s22 + $0x948] ss:$16 sps:$4 sm:$0xff]  }
 0x387   : > { %9285 = vmatpush1.bf16.msra.mxu0 %v12960_v18  ;;  %v12999_v18 = vld [vmem:[%s14003_s22 + $0xb48] ss:$16 sps:$4 sm:$0xff]  }
 0x388   : > { %9328 = vmatpush1.bf16.msra.mxu1 %v12963_v0  ;;  %9286 = vmatprep.subr.bf16.mxu0 %v12968_v50  ;;  %v13004_v0 = vld [vmem:[%s14003_s22 + $0x92c] ss:$16 sps:$4 sm:$0xff]  }
 0x389   : > { %9329 = vmatprep.subr.bf16.mxu1 %v12971_v34  ;;  %v13007_v50 = vld [vmem:[%s14003_s22 + $0xb2c] ss:$16 sps:$4 sm:$0xff]   ;;  %v13002_v34 = vld [vmem:[%s14003_s22 + $0x928] ss:$16 sps:$4 sm:$0xff]  }
 0x38b   : > { %9287 = vmatpush2.bf16.msra.mxu0 %v12966_v4  ;;  %v13005_v4 = vld [vmem:[%s14003_s22 + $0xb28] ss:$16 sps:$4 sm:$0xff]  }
 0x38c   : > { %9330 = vmatpush2.bf16.msra.mxu1 %v12969_v20  ;;  %9288 = vmatprep.subr.bf16.mxu0 %v12974_v21  ;;  %v13010_v20 = vld [vmem:[%s14003_s22 + $0x90c] ss:$16 sps:$4 sm:$0xff]  }
 0x38d   : > { %9331 = vmatprep.subr.bf16.mxu1 %v12977_v58  ;;  %v13013_v21 = vld [vmem:[%s14003_s22 + $0xb0c] ss:$16 sps:$4 sm:$0xff]   ;;  %v13008_v58 = vld [vmem:[%s14003_s22 + $0x908] ss:$16 sps:$4 sm:$0xff]  }
 0x38f   : > { %9289 = vmatpush2.bf16.msra.mxu0 %v12972_v8  ;;  %v13011_v8 = vld [vmem:[%s14003_s22 + $0xb08] ss:$16 sps:$4 sm:$0xff]  }
 0x390   : > { %9332 = vmatpush2.bf16.msra.mxu1 %v12975_v9  ;;  %9290 = vmatprep.subr.bf16.mxu0 %v12980_v33  ;;  %v13016_v9 = vld [vmem:[%s14003_s22 + $0xcec] ss:$16 sps:$4 sm:$0xff]  }
 0x391   : > { %9333 = vmatprep.subr.bf16.mxu1 %v12983_v35  ;;  %v13019_v33 = vld [vmem:[%s14003_s22 + $0xeec] ss:$16 sps:$4 sm:$0xff]   ;;  %v13014_v35 = vld [vmem:[%s14003_s22 + $0xce8] ss:$16 sps:$4 sm:$0xff]  }
 0x393   : > { %9291 = vmatpush2.bf16.msra.mxu0 %v12978_v19  ;;  %v13017_v19 = vld [vmem:[%s14003_s22 + $0xee8] ss:$16 sps:$4 sm:$0xff]  }
 0x394   : > { %9334 = vmatpush2.bf16.msra.mxu1 %v12981_v44  ;;  %9292 = vmatprep.subr.bf16.mxu0 %v12986_v41  ;;  %v13022_v44 = vld [vmem:[%s14003_s22 + $0xccc] ss:$16 sps:$4 sm:$0xff]  }
 0x395   : > { %9335 = vmatprep.subr.bf16.mxu1 %v12989_v43  ;;  %v13025_v41 = vld [vmem:[%s14003_s22 + $0xecc] ss:$16 sps:$4 sm:$0xff]   ;;  %v13020_v43 = vld [vmem:[%s14003_s22 + $0xcc8] ss:$16 sps:$4 sm:$0xff]  }
 0x397   : > { %9293 = vmatpush2.bf16.msra.mxu0 %v12984_v22  ;;  %v13023_v22 = vld [vmem:[%s14003_s22 + $0xec8] ss:$16 sps:$4 sm:$0xff]  }
 0x398   : > { %9336 = vmatpush2.bf16.msra.mxu1 %v12987_v12  ;;  %9294 = vmatprep.subr.bf16.mxu0 %v12992_v37  ;;  %v13028_v12 = vld [vmem:[%s14003_s22 + $0xcac] ss:$16 sps:$4 sm:$0xff]  }
 0x399   : > { %9337 = vmatprep.subr.bf16.mxu1 %v12995_v6  ;;  %v13031_v37 = vld [vmem:[%s14003_s22 + $0xeac] ss:$16 sps:$4 sm:$0xff]  }
 0x39a   : > { %v13034_v6 = vld [vmem:[%s14003_s22 + $0xc8c] ss:$16 sps:$4 sm:$0xff]  }
 0x39b   : > { %9295 = vmatpush2.bf16.msra.mxu0 %v12990_v7  ;;  %v13037_v7 = vld [vmem:[%s14003_s22 + $0xe8c] ss:$16 sps:$4 sm:$0xff]  }
 0x39c   : > { %9338 = vmatpush2.bf16.msra.mxu1 %v12993_v11  ;;  %9296 = vmatprep.subr.bf16.mxu0 %v12998_v53  ;;  %v13032_v11 = vld [vmem:[%s14003_s22 + $0xc88] ss:$16 sps:$4 sm:$0xff]   ;;  %v13043_v53 = vld [vmem:[%s14003_s22 + $0xe6c] ss:$16 sps:$4 sm:$0xff]  }
 0x39d   : > { %9339 = vmatprep.subr.bf16.mxu1 %v13001_v55  ;;  %v13038_v55 = vld [vmem:[%s14003_s22 + $0xc68] ss:$16 sps:$4 sm:$0xff]  }
 0x39f   : > { %9297 = vmatpush2.bf16.msra.mxu0 %v12996_v17  ;;  %v13041_v17 = vld [vmem:[%s14003_s22 + $0xe68] ss:$16 sps:$4 sm:$0xff]  }
 0x3a0   : > { %9340 = vmatpush2.bf16.msra.mxu1 %v12999_v18  ;;  %9298 = vmatprep.subr.bf16.mxu0 %v13004_v0  ;;  %v13046_v18 = vld [vmem:[%s14003_s22 + $0xc4c] ss:$16 sps:$4 sm:$0xff]  }
 0x3a1   : > { %9341 = vmatprep.subr.bf16.mxu1 %v13007_v50  ;;  %v13049_v0 = vld [vmem:[%s14003_s22 + $0xe4c] ss:$16 sps:$4 sm:$0xff]   ;;  %v13044_v50 = vld [vmem:[%s14003_s22 + $0xc48] ss:$16 sps:$4 sm:$0xff]  }
 0x3a3   : > { %9299 = vmatpush2.bf16.msra.mxu0 %v13002_v34  ;;  %v13047_v34 = vld [vmem:[%s14003_s22 + $0xe48] ss:$16 sps:$4 sm:$0xff]  }
 0x3a4   : > { %9342 = vmatpush2.bf16.msra.mxu1 %v13005_v4  ;;  %9300 = vmatprep.subr.bf16.mxu0 %v13010_v20  ;;  %v13052_v4 = vld [vmem:[%s14003_s22 + $0xc2c] ss:$16 sps:$4 sm:$0xff]  }
 0x3a5   : > { %9343 = vmatprep.subr.bf16.mxu1 %v13013_v21  ;;  %v13055_v20 = vld [vmem:[%s14003_s22 + $0xe2c] ss:$16 sps:$4 sm:$0xff]   ;;  %v13050_v21 = vld [vmem:[%s14003_s22 + $0xc28] ss:$16 sps:$4 sm:$0xff]  }
 0x3a7   : > { %9301 = vmatpush2.bf16.msra.mxu0 %v13008_v58  ;;  %v13053_v58 = vld [vmem:[%s14003_s22 + $0xe28] ss:$16 sps:$4 sm:$0xff]  }
 0x3a8   : > { %9344 = vmatpush2.bf16.msra.mxu1 %v13011_v8  ;;  %9356 = vmatprep.subr.bf16.mxu0 %v13016_v9  ;;  %v13058_v8 = vld [vmem:[%s14003_s22 + $0xc0c] ss:$16 sps:$4 sm:$0xff]  }
 0x3a9   : > { %9399 = vmatprep.subr.bf16.mxu1 %v13019_v33  ;;  %v13061_v9 = vld [vmem:[%s14003_s22 + $0xe0c] ss:$16 sps:$4 sm:$0xff]   ;;  %v13056_v33 = vld [vmem:[%s14003_s22 + $0xc08] ss:$16 sps:$4 sm:$0xff]  }
 0x3aa   : > { %9303 = vmatmul.mubr.bf16.vlgmr.msra.gmra.mxu0 %v14323_v48  ;;  %v13026_v48 = vld [vmem:[%s14003_s22 + $0xca8] ss:$16 sps:$4 sm:$0xff]  }
 0x3ab   : > { %9346 = vmatmul.mubr.bf16.vlgmr.msra.gmra.mxu1 %v14327_v49  ;;  %9357 = vmatpush1.bf16.msra.mxu0 %v13014_v35  ;;  %v13029_v49 = vld [vmem:[%s14003_s22 + $0xea8] ss:$16 sps:$4 sm:$0xff]  }
 0x3ac   : > { %9400 = vmatpush1.bf16.msra.mxu1 %v13017_v19  ;;  %9358 = vmatprep.subr.bf16.mxu0 %v13022_v44  ;;  %v13059_v35 = vld [vmem:[%s14003_s22 + $0xe08] ss:$16 sps:$4 sm:$0xff]   ;;  %v13064_v19 = vld [vmem:[%s14003_s22 + $0xdec] ss:$16 sps:$4 sm:$0xff]  }
 0x3ad   : > { %9401 = vmatprep.subr.bf16.mxu1 %v13025_v41  ;;  %9388 = vmatprep.mubr.bf16.mxu0 %v14339_v29  ;;  %v13035_v29 = vld [vmem:[%s14003_s22 + $0xe88] ss:$16 sps:$4 sm:$0xff]   ;;  %v13067_v44 = vld [vmem:[%s14003_s22 + $0xfec] ss:$16 sps:$4 sm:$0xff]  }
 0x3ae   : > { %9431 = vmatprep.mubr.bf16.mxu1 %v14343_v30  ;;  %v13040_v30 = vld [vmem:[%s14003_s22 + $0xc6c] ss:$16 sps:$4 sm:$0xff]   ;;  %v13062_v41 = vld [vmem:[%s14003_s22 + $0xde8] ss:$16 sps:$4 sm:$0xff]  }
 0x3af   : > { %9359 = vmatpush1.bf16.msra.mxu0 %v13020_v43  ;;  %v13065_v43 = vld [vmem:[%s14003_s22 + $0xfe8] ss:$16 sps:$4 sm:$0xff]  }
 0x3b0   : > { %9402 = vmatpush1.bf16.msra.mxu1 %v13023_v22  ;;  %9360 = vmatprep.subr.bf16.mxu0 %v13028_v12  ;;  %v13070_v22 = vld [vmem:[%s14003_s22 + $0xdcc] ss:$16 sps:$4 sm:$0xff]  }
 0x3b1   : > { %9403 = vmatprep.subr.bf16.mxu1 %v13031_v37  ;;  %v13073_v12 = vld [vmem:[%s14003_s22 + $0xfcc] ss:$16 sps:$4 sm:$0xff]   ;;  %v13068_v37 = vld [vmem:[%s14003_s22 + $0xdc8] ss:$16 sps:$4 sm:$0xff]  }
 0x3b3   : > { %9361 = vmatpush1.bf16.msra.mxu0 %v13026_v48  ;;  %v13071_v48 = vld [vmem:[%s14003_s22 + $0xfc8] ss:$16 sps:$4 sm:$0xff]  }
 0x3b4   : > { %9404 = vmatpush1.bf16.msra.mxu1 %v13029_v49  ;;  %9362 = vmatprep.subr.bf16.mxu0 %v13034_v6  ;;  %v13076_v49 = vld [vmem:[%s14003_s22 + $0xdac] ss:$16 sps:$4 sm:$0xff]  }
 0x3b5   : > { %9405 = vmatprep.subr.bf16.mxu1 %v13037_v7  ;;  %v13079_v6 = vld [vmem:[%s14003_s22 + $0xfac] ss:$16 sps:$4 sm:$0xff]   ;;  %v13074_v7 = vld [vmem:[%s14003_s22 + $0xda8] ss:$16 sps:$4 sm:$0xff]  }
 0x3b7   : > { %9363 = vmatpush1.bf16.msra.mxu0 %v13032_v11  ;;  %v13077_v11 = vld [vmem:[%s14003_s22 + $0xfa8] ss:$16 sps:$4 sm:$0xff]  }
 0x3b8   : > { %9406 = vmatpush1.bf16.msra.mxu1 %v13035_v29  ;;  %9364 = vmatprep.subr.bf16.mxu0 %v13040_v30  ;;  %v13082_v29 = vld [vmem:[%s14003_s22 + $0xd8c] ss:$16 sps:$4 sm:$0xff]  }
 0x3b9   : > { %9407 = vmatprep.subr.bf16.mxu1 %v13043_v53  ;;  %v13085_v30 = vld [vmem:[%s14003_s22 + $0xf8c] ss:$16 sps:$4 sm:$0xff]   ;;  %v13080_v53 = vld [vmem:[%s14003_s22 + $0xd88] ss:$16 sps:$4 sm:$0xff]  }
 0x3bb   : > { %9365 = vmatpush1.bf16.msra.mxu0 %v13038_v55  ;;  %v13083_v55 = vld [vmem:[%s14003_s22 + $0xf88] ss:$16 sps:$4 sm:$0xff]  }
 0x3bc   : > { %9408 = vmatpush1.bf16.msra.mxu1 %v13041_v17  ;;  %9366 = vmatprep.subr.bf16.mxu0 %v13046_v18  ;;  %v13088_v17 = vld [vmem:[%s14003_s22 + $0xd6c] ss:$16 sps:$4 sm:$0xff]  }
 0x3bd   : > { %9409 = vmatprep.subr.bf16.mxu1 %v13049_v0  ;;  %v13091_v18 = vld [vmem:[%s14003_s22 + $0xf6c] ss:$16 sps:$4 sm:$0xff]   ;;  %v13086_v0 = vld [vmem:[%s14003_s22 + $0xd68] ss:$16 sps:$4 sm:$0xff]  }
 0x3bf   : > { %9367 = vmatpush1.bf16.msra.mxu0 %v13044_v50  ;;  %v13089_v50 = vld [vmem:[%s14003_s22 + $0xf68] ss:$16 sps:$4 sm:$0xff]  }
 0x3c0   : > { %9410 = vmatpush1.bf16.msra.mxu1 %v13047_v34  ;;  %9368 = vmatprep.subr.bf16.mxu0 %v13052_v4  ;;  %v13094_v34 = vld [vmem:[%s14003_s22 + $0xd4c] ss:$16 sps:$4 sm:$0xff]  }
 0x3c1   : > { %9411 = vmatprep.subr.bf16.mxu1 %v13055_v20  ;;  %v13097_v4 = vld [vmem:[%s14003_s22 + $0xf4c] ss:$16 sps:$4 sm:$0xff]   ;;  %v13092_v20 = vld [vmem:[%s14003_s22 + $0xd48] ss:$16 sps:$4 sm:$0xff]  }
 0x3c3   : > { %9369 = vmatpush1.bf16.msra.mxu0 %v13050_v21  ;;  %v13095_v21 = vld [vmem:[%s14003_s22 + $0xf48] ss:$16 sps:$4 sm:$0xff]  }
 0x3c4   : > { %9412 = vmatpush1.bf16.msra.mxu1 %v13053_v58  ;;  %9370 = vmatprep.subr.bf16.mxu0 %v13058_v8  ;;  %v13100_v58 = vld [vmem:[%s14003_s22 + $0xd2c] ss:$16 sps:$4 sm:$0xff]  }
 0x3c5   : > { %9413 = vmatprep.subr.bf16.mxu1 %v13061_v9  ;;  %v13103_v8 = vld [vmem:[%s14003_s22 + $0xf2c] ss:$16 sps:$4 sm:$0xff]   ;;  %v13098_v9 = vld [vmem:[%s14003_s22 + $0xd28] ss:$16 sps:$4 sm:$0xff]  }
 0x3c7   : > { %9371 = vmatpush1.bf16.msra.mxu0 %v13056_v33  ;;  %v13101_v33 = vld [vmem:[%s14003_s22 + $0xf28] ss:$16 sps:$4 sm:$0xff]  }
 0x3c8   : > { %9414 = vmatpush1.bf16.msra.mxu1 %v13059_v35  ;;  %9372 = vmatprep.subr.bf16.mxu0 %v13064_v19  ;;  %v13106_v35 = vld [vmem:[%s14003_s22 + $0xd0c] ss:$16 sps:$4 sm:$0xff]  }
 0x3c9   : > { %9415 = vmatprep.subr.bf16.mxu1 %v13067_v44  ;;  %v13109_v19 = vld [vmem:[%s14003_s22 + $0xf0c] ss:$16 sps:$4 sm:$0xff]   ;;  %v13104_v44 = vld [vmem:[%s14003_s22 + $0xd08] ss:$16 sps:$4 sm:$0xff]  }
 0x3cb   : > { %9373 = vmatpush2.bf16.msra.mxu0 %v13062_v41  ;;  %v13107_v41 = vld [vmem:[%s14003_s22 + $0xf08] ss:$16 sps:$4 sm:$0xff]  }
 0x3cc   : > { %9416 = vmatpush2.bf16.msra.mxu1 %v13065_v43  ;;  %9374 = vmatprep.subr.bf16.mxu0 %v13070_v22  ;;  %v13112_v43 = vld [vmem:[%s14003_s22 + $0x10ec] ss:$16 sps:$4 sm:$0xff]  }
 0x3cd   : > { %9417 = vmatprep.subr.bf16.mxu1 %v13073_v12  ;;  %v13115_v22 = vld [vmem:[%s14003_s22 + $0x12ec] ss:$16 sps:$4 sm:$0xff]   ;;  %v13110_v12 = vld [vmem:[%s14003_s22 + $0x10e8] ss:$16 sps:$4 sm:$0xff]  }
 0x3cf   : > { %9375 = vmatpush2.bf16.msra.mxu0 %v13068_v37  ;;  %v13113_v37 = vld [vmem:[%s14003_s22 + $0x12e8] ss:$16 sps:$4 sm:$0xff]  }
 0x3d0   : > { %9418 = vmatpush2.bf16.msra.mxu1 %v13071_v48  ;;  %9376 = vmatprep.subr.bf16.mxu0 %v13076_v49  ;;  %v13118_v48 = vld [vmem:[%s14003_s22 + $0x10cc] ss:$16 sps:$4 sm:$0xff]  }
 0x3d1   : > { %9419 = vmatprep.subr.bf16.mxu1 %v13079_v6  ;;  %v13121_v49 = vld [vmem:[%s14003_s22 + $0x12cc] ss:$16 sps:$4 sm:$0xff]   ;;  %v13116_v6 = vld [vmem:[%s14003_s22 + $0x10c8] ss:$16 sps:$4 sm:$0xff]  }
 0x3d3   : > { %9377 = vmatpush2.bf16.msra.mxu0 %v13074_v7  ;;  %v13119_v7 = vld [vmem:[%s14003_s22 + $0x12c8] ss:$16 sps:$4 sm:$0xff]  }
 0x3d4   : > { %9420 = vmatpush2.bf16.msra.mxu1 %v13077_v11  ;;  %9378 = vmatprep.subr.bf16.mxu0 %v13082_v29  ;;  %v13124_v11 = vld [vmem:[%s14003_s22 + $0x10ac] ss:$16 sps:$4 sm:$0xff]  }
 0x3d5   : > { %9421 = vmatprep.subr.bf16.mxu1 %v13085_v30  ;;  %v13127_v29 = vld [vmem:[%s14003_s22 + $0x12ac] ss:$16 sps:$4 sm:$0xff]  }
 0x3d6   : > { %v13130_v30 = vld [vmem:[%s14003_s22 + $0x108c] ss:$16 sps:$4 sm:$0xff]  }
 0x3d7   : > { %9379 = vmatpush2.bf16.msra.mxu0 %v13080_v53  ;;  %v13133_v53 = vld [vmem:[%s14003_s22 + $0x128c] ss:$16 sps:$4 sm:$0xff]  }
 0x3d8   : > { %9422 = vmatpush2.bf16.msra.mxu1 %v13083_v55  ;;  %9380 = vmatprep.subr.bf16.mxu0 %v13088_v17  ;;  %v13128_v55 = vld [vmem:[%s14003_s22 + $0x1088] ss:$16 sps:$4 sm:$0xff]   ;;  %v13139_v17 = vld [vmem:[%s14003_s22 + $0x126c] ss:$16 sps:$4 sm:$0xff]  }
 0x3d9   : > { %9423 = vmatprep.subr.bf16.mxu1 %v13091_v18  ;;  %v13134_v18 = vld [vmem:[%s14003_s22 + $0x1068] ss:$16 sps:$4 sm:$0xff]  }
 0x3db   : > { %9381 = vmatpush2.bf16.msra.mxu0 %v13086_v0  ;;  %v13137_v0 = vld [vmem:[%s14003_s22 + $0x1268] ss:$16 sps:$4 sm:$0xff]  }
 0x3dc   : > { %9424 = vmatpush2.bf16.msra.mxu1 %v13089_v50  ;;  %9382 = vmatprep.subr.bf16.mxu0 %v13094_v34  ;;  %v13142_v50 = vld [vmem:[%s14003_s22 + $0x104c] ss:$16 sps:$4 sm:$0xff]  }
 0x3dd   : > { %9425 = vmatprep.subr.bf16.mxu1 %v13097_v4  ;;  %v13145_v34 = vld [vmem:[%s14003_s22 + $0x124c] ss:$16 sps:$4 sm:$0xff]   ;;  %v13140_v4 = vld [vmem:[%s14003_s22 + $0x1048] ss:$16 sps:$4 sm:$0xff]  }
 0x3df   : > { %9383 = vmatpush2.bf16.msra.mxu0 %v13092_v20  ;;  %v13143_v20 = vld [vmem:[%s14003_s22 + $0x1248] ss:$16 sps:$4 sm:$0xff]  }
 0x3e0   : > { %9426 = vmatpush2.bf16.msra.mxu1 %v13095_v21  ;;  %9384 = vmatprep.subr.bf16.mxu0 %v13100_v58  ;;  %v13148_v21 = vld [vmem:[%s14003_s22 + $0x102c] ss:$16 sps:$4 sm:$0xff]  }
 0x3e1   : > { %9427 = vmatprep.subr.bf16.mxu1 %v13103_v8  ;;  %v13151_v58 = vld [vmem:[%s14003_s22 + $0x122c] ss:$16 sps:$4 sm:$0xff]   ;;  %v13146_v8 = vld [vmem:[%s14003_s22 + $0x1028] ss:$16 sps:$4 sm:$0xff]  }
 0x3e3   : > { %9385 = vmatpush2.bf16.msra.mxu0 %v13098_v9  ;;  %v13149_v9 = vld [vmem:[%s14003_s22 + $0x1228] ss:$16 sps:$4 sm:$0xff]  }
 0x3e4   : > { %9428 = vmatpush2.bf16.msra.mxu1 %v13101_v33  ;;  %9386 = vmatprep.subr.bf16.mxu0 %v13106_v35  ;;  %v13154_v33 = vld [vmem:[%s14003_s22 + $0x100c] ss:$16 sps:$4 sm:$0xff]  }
 0x3e5   : > { %9429 = vmatprep.subr.bf16.mxu1 %v13109_v19  ;;  %v13157_v35 = vld [vmem:[%s14003_s22 + $0x120c] ss:$16 sps:$4 sm:$0xff]   ;;  %v13152_v19 = vld [vmem:[%s14003_s22 + $0x1008] ss:$16 sps:$4 sm:$0xff]  }
 0x3e7   : > { %9387 = vmatpush2.bf16.msra.mxu0 %v13104_v44  ;;  %v13155_v44 = vld [vmem:[%s14003_s22 + $0x1208] ss:$16 sps:$4 sm:$0xff]  }
 0x3e8   : > { %9430 = vmatpush2.bf16.msra.mxu1 %v13107_v41  ;;  %9442 = vmatprep.subr.bf16.mxu0 %v13112_v43  ;;  %v13160_v41 = vld [vmem:[%s14003_s22 + $0x11ec] ss:$16 sps:$4 sm:$0xff]  }
 0x3e9   : > { %9485 = vmatprep.subr.bf16.mxu1 %v13115_v22  ;;  %v13163_v43 = vld [vmem:[%s14003_s22 + $0x13ec] ss:$16 sps:$4 sm:$0xff]   ;;  %v13158_v22 = vld [vmem:[%s14003_s22 + $0x11e8] ss:$16 sps:$4 sm:$0xff]  }
 0x3ea   : > { %9389 = vmatmul.mubr.bf16.vlgmr.msra.gmra.mxu0 %v14431_v14  ;;  %v13122_v14 = vld [vmem:[%s14003_s22 + $0x10a8] ss:$16 sps:$4 sm:$0xff]  }
 0x3eb   : > { %9432 = vmatmul.mubr.bf16.vlgmr.msra.gmra.mxu1 %v14435_v15  ;;  %9443 = vmatpush1.bf16.msra.mxu0 %v13110_v12  ;;  %v13125_v15 = vld [vmem:[%s14003_s22 + $0x12a8] ss:$16 sps:$4 sm:$0xff]  }
 0x3ec   : > { %9486 = vmatpush1.bf16.msra.mxu1 %v13113_v37  ;;  %9444 = vmatprep.subr.bf16.mxu0 %v13118_v48  ;;  %v13161_v12 = vld [vmem:[%s14003_s22 + $0x13e8] ss:$16 sps:$4 sm:$0xff]   ;;  %v13166_v37 = vld [vmem:[%s14003_s22 + $0x11cc] ss:$16 sps:$4 sm:$0xff]  }
 0x3ed   : > { %9487 = vmatprep.subr.bf16.mxu1 %v13121_v49  ;;  %9474 = vmatprep.mubr.bf16.mxu0 %v14447_v46  ;;  %v13131_v46 = vld [vmem:[%s14003_s22 + $0x1288] ss:$16 sps:$4 sm:$0xff]   ;;  %v13169_v48 = vld [vmem:[%s14003_s22 + $0x13cc] ss:$16 sps:$4 sm:$0xff]  }
 0x3ee   : > { %9517 = vmatprep.mubr.bf16.mxu1 %v14451_v47  ;;  %v13136_v47 = vld [vmem:[%s14003_s22 + $0x106c] ss:$16 sps:$4 sm:$0xff]   ;;  %v13164_v49 = vld [vmem:[%s14003_s22 + $0x11c8] ss:$16 sps:$4 sm:$0xff]  }
 0x3ef   : > { %9445 = vmatpush1.bf16.msra.mxu0 %v13116_v6  ;;  %v13167_v6 = vld [vmem:[%s14003_s22 + $0x13c8] ss:$16 sps:$4 sm:$0xff]  }
 0x3f0   : > { %9488 = vmatpush1.bf16.msra.mxu1 %v13119_v7  ;;  %9446 = vmatprep.subr.bf16.mxu0 %v13124_v11  ;;  %v13172_v7 = vld [vmem:[%s14003_s22 + $0x11ac] ss:$16 sps:$4 sm:$0xff]  }
 0x3f1   : > { %9489 = vmatprep.subr.bf16.mxu1 %v13127_v29  ;;  %v13175_v11 = vld [vmem:[%s14003_s22 + $0x13ac] ss:$16 sps:$4 sm:$0xff]   ;;  %v13170_v29 = vld [vmem:[%s14003_s22 + $0x11a8] ss:$16 sps:$4 sm:$0xff]  }
 0x3f3   : > { %9447 = vmatpush1.bf16.msra.mxu0 %v13122_v14  ;;  %v13173_v14 = vld [vmem:[%s14003_s22 + $0x13a8] ss:$16 sps:$4 sm:$0xff]  }
 0x3f4   : > { %9490 = vmatpush1.bf16.msra.mxu1 %v13125_v15  ;;  %9448 = vmatprep.subr.bf16.mxu0 %v13130_v30  ;;  %v13178_v15 = vld [vmem:[%s14003_s22 + $0x118c] ss:$16 sps:$4 sm:$0xff]  }
 0x3f5   : > { %9491 = vmatprep.subr.bf16.mxu1 %v13133_v53  ;;  %v13181_v30 = vld [vmem:[%s14003_s22 + $0x138c] ss:$16 sps:$4 sm:$0xff]   ;;  %v13176_v53 = vld [vmem:[%s14003_s22 + $0x1188] ss:$16 sps:$4 sm:$0xff]  }
 0x3f7   : > { %9449 = vmatpush1.bf16.msra.mxu0 %v13128_v55  ;;  %v13179_v55 = vld [vmem:[%s14003_s22 + $0x1388] ss:$16 sps:$4 sm:$0xff]  }
 0x3f8   : > { %9492 = vmatpush1.bf16.msra.mxu1 %v13131_v46  ;;  %9450 = vmatprep.subr.bf16.mxu0 %v13136_v47  ;;  %v13184_v46 = vld [vmem:[%s14003_s22 + $0x116c] ss:$16 sps:$4 sm:$0xff]  }
 0x3f9   : > { %9493 = vmatprep.subr.bf16.mxu1 %v13139_v17  ;;  %v13187_v47 = vld [vmem:[%s14003_s22 + $0x136c] ss:$16 sps:$4 sm:$0xff]   ;;  %v13182_v17 = vld [vmem:[%s14003_s22 + $0x1168] ss:$16 sps:$4 sm:$0xff]  }
 0x3fb   : > { %9451 = vmatpush1.bf16.msra.mxu0 %v13134_v18  ;;  %v13185_v18 = vld [vmem:[%s14003_s22 + $0x1368] ss:$16 sps:$4 sm:$0xff]  }
 0x3fc   : > { %9494 = vmatpush1.bf16.msra.mxu1 %v13137_v0  ;;  %9452 = vmatprep.subr.bf16.mxu0 %v13142_v50  ;;  %v13190_v0 = vld [vmem:[%s14003_s22 + $0x114c] ss:$16 sps:$4 sm:$0xff]  }
 0x3fd   : > { %9495 = vmatprep.subr.bf16.mxu1 %v13145_v34  ;;  %v13193_v50 = vld [vmem:[%s14003_s22 + $0x134c] ss:$16 sps:$4 sm:$0xff]   ;;  %v13188_v34 = vld [vmem:[%s14003_s22 + $0x1148] ss:$16 sps:$4 sm:$0xff]  }
 0x3ff   : > { %9453 = vmatpush1.bf16.msra.mxu0 %v13140_v4  ;;  %v13191_v4 = vld [vmem:[%s14003_s22 + $0x1348] ss:$16 sps:$4 sm:$0xff]  }
 0x400   : > { %9496 = vmatpush1.bf16.msra.mxu1 %v13143_v20  ;;  %9454 = vmatprep.subr.bf16.mxu0 %v13148_v21  ;;  %v13196_v20 = vld [vmem:[%s14003_s22 + $0x112c] ss:$16 sps:$4 sm:$0xff]  }
 0x401   : > { %9497 = vmatprep.subr.bf16.mxu1 %v13151_v58  ;;  %v13199_v21 = vld [vmem:[%s14003_s22 + $0x132c] ss:$16 sps:$4 sm:$0xff]   ;;  %v13194_v58 = vld [vmem:[%s14003_s22 + $0x1128] ss:$16 sps:$4 sm:$0xff]  }
 0x403   : > { %9455 = vmatpush1.bf16.msra.mxu0 %v13146_v8  ;;  %v13197_v8 = vld [vmem:[%s14003_s22 + $0x1328] ss:$16 sps:$4 sm:$0xff]  }
 0x404   : > { %9498 = vmatpush1.bf16.msra.mxu1 %v13149_v9  ;;  %9456 = vmatprep.subr.bf16.mxu0 %v13154_v33  ;;  %v13202_v9 = vld [vmem:[%s14003_s22 + $0x110c] ss:$16 sps:$4 sm:$0xff]  }
 0x405   : > { %9499 = vmatprep.subr.bf16.mxu1 %v13157_v35  ;;  %v13205_v33 = vld [vmem:[%s14003_s22 + $0x130c] ss:$16 sps:$4 sm:$0xff]   ;;  %v13200_v35 = vld [vmem:[%s14003_s22 + $0x1108] ss:$16 sps:$4 sm:$0xff]  }
 0x407   : > { %9457 = vmatpush1.bf16.msra.mxu0 %v13152_v19  ;;  %v13203_v19 = vld [vmem:[%s14003_s22 + $0x1308] ss:$16 sps:$4 sm:$0xff]  }
 0x408   : > { %9500 = vmatpush1.bf16.msra.mxu1 %v13155_v44  ;;  %9458 = vmatprep.subr.bf16.mxu0 %v13160_v41  ;;  %v13208_v44 = vld [vmem:[%s14003_s22 + $0x14ec] ss:$16 sps:$4 sm:$0xff]  }
 0x409   : > { %9501 = vmatprep.subr.bf16.mxu1 %v13163_v43  ;;  %v13211_v41 = vld [vmem:[%s14003_s22 + $0x16ec] ss:$16 sps:$4 sm:$0xff]   ;;  %v13206_v43 = vld [vmem:[%s14003_s22 + $0x14e8] ss:$16 sps:$4 sm:$0xff]  }
 0x40b   : > { %9459 = vmatpush2.bf16.msra.mxu0 %v13158_v22  ;;  %v13209_v22 = vld [vmem:[%s14003_s22 + $0x16e8] ss:$16 sps:$4 sm:$0xff]  }
 0x40c   : > { %9502 = vmatpush2.bf16.msra.mxu1 %v13161_v12  ;;  %9460 = vmatprep.subr.bf16.mxu0 %v13166_v37  ;;  %v13214_v12 = vld [vmem:[%s14003_s22 + $0x14cc] ss:$16 sps:$4 sm:$0xff]  }
 0x40d   : > { %9503 = vmatprep.subr.bf16.mxu1 %v13169_v48  ;;  %v13217_v37 = vld [vmem:[%s14003_s22 + $0x16cc] ss:$16 sps:$4 sm:$0xff]   ;;  %v13212_v48 = vld [vmem:[%s14003_s22 + $0x14c8] ss:$16 sps:$4 sm:$0xff]  }
 0x40f   : > { %9461 = vmatpush2.bf16.msra.mxu0 %v13164_v49  ;;  %v13215_v49 = vld [vmem:[%s14003_s22 + $0x16c8] ss:$16 sps:$4 sm:$0xff]  }
 0x410   : > { %9504 = vmatpush2.bf16.msra.mxu1 %v13167_v6  ;;  %9462 = vmatprep.subr.bf16.mxu0 %v13172_v7  ;;  %v13220_v6 = vld [vmem:[%s14003_s22 + $0x14ac] ss:$16 sps:$4 sm:$0xff]  }
 0x411   : > { %9505 = vmatprep.subr.bf16.mxu1 %v13175_v11  ;;  %v13223_v7 = vld [vmem:[%s14003_s22 + $0x16ac] ss:$16 sps:$4 sm:$0xff]  }
 0x412   : > { %v13226_v11 = vld [vmem:[%s14003_s22 + $0x148c] ss:$16 sps:$4 sm:$0xff]  }
 0x413   : > { %9463 = vmatpush2.bf16.msra.mxu0 %v13170_v29  ;;  %v13229_v29 = vld [vmem:[%s14003_s22 + $0x168c] ss:$16 sps:$4 sm:$0xff]  }
 0x414   : > { %9506 = vmatpush2.bf16.msra.mxu1 %v13173_v14  ;;  %9464 = vmatprep.subr.bf16.mxu0 %v13178_v15  ;;  %v13224_v14 = vld [vmem:[%s14003_s22 + $0x1488] ss:$16 sps:$4 sm:$0xff]   ;;  %v13235_v15 = vld [vmem:[%s14003_s22 + $0x166c] ss:$16 sps:$4 sm:$0xff]  }
 0x415   : > { %9507 = vmatprep.subr.bf16.mxu1 %v13181_v30  ;;  %v13230_v30 = vld [vmem:[%s14003_s22 + $0x1468] ss:$16 sps:$4 sm:$0xff]  }
 0x417   : > { %9465 = vmatpush2.bf16.msra.mxu0 %v13176_v53  ;;  %v13233_v53 = vld [vmem:[%s14003_s22 + $0x1668] ss:$16 sps:$4 sm:$0xff]  }
 0x418   : > { %9508 = vmatpush2.bf16.msra.mxu1 %v13179_v55  ;;  %9466 = vmatprep.subr.bf16.mxu0 %v13184_v46  ;;  %v13238_v55 = vld [vmem:[%s14003_s22 + $0x144c] ss:$16 sps:$4 sm:$0xff]  }
 0x419   : > { %9509 = vmatprep.subr.bf16.mxu1 %v13187_v47  ;;  %v13241_v46 = vld [vmem:[%s14003_s22 + $0x164c] ss:$16 sps:$4 sm:$0xff]   ;;  %v13236_v47 = vld [vmem:[%s14003_s22 + $0x1448] ss:$16 sps:$4 sm:$0xff]  }
 0x41b   : > { %9467 = vmatpush2.bf16.msra.mxu0 %v13182_v17  ;;  %v13239_v17 = vld [vmem:[%s14003_s22 + $0x1648] ss:$16 sps:$4 sm:$0xff]  }
 0x41c   : > { %9510 = vmatpush2.bf16.msra.mxu1 %v13185_v18  ;;  %9468 = vmatprep.subr.bf16.mxu0 %v13190_v0  ;;  %v13244_v18 = vld [vmem:[%s14003_s22 + $0x142c] ss:$16 sps:$4 sm:$0xff]  }
 0x41d   : > { %9511 = vmatprep.subr.bf16.mxu1 %v13193_v50  ;;  %v13247_v0 = vld [vmem:[%s14003_s22 + $0x162c] ss:$16 sps:$4 sm:$0xff]   ;;  %v13242_v50 = vld [vmem:[%s14003_s22 + $0x1428] ss:$16 sps:$4 sm:$0xff]  }
 0x41f   : > { %9469 = vmatpush2.bf16.msra.mxu0 %v13188_v34  ;;  %v13245_v34 = vld [vmem:[%s14003_s22 + $0x1628] ss:$16 sps:$4 sm:$0xff]  }
 0x420   : > { %9512 = vmatpush2.bf16.msra.mxu1 %v13191_v4  ;;  %9470 = vmatprep.subr.bf16.mxu0 %v13196_v20  ;;  %v13250_v4 = vld [vmem:[%s14003_s22 + $0x140c] ss:$16 sps:$4 sm:$0xff]  }
 0x421   : > { %9513 = vmatprep.subr.bf16.mxu1 %v13199_v21  ;;  %v13253_v20 = vld [vmem:[%s14003_s22 + $0x160c] ss:$16 sps:$4 sm:$0xff]   ;;  %v13248_v21 = vld [vmem:[%s14003_s22 + $0x1408] ss:$16 sps:$4 sm:$0xff]  }
 0x423   : > { %9471 = vmatpush2.bf16.msra.mxu0 %v13194_v58  ;;  %v13251_v58 = vld [vmem:[%s14003_s22 + $0x1608] ss:$16 sps:$4 sm:$0xff]  }
 0x424   : > { %9514 = vmatpush2.bf16.msra.mxu1 %v13197_v8  ;;  %9472 = vmatprep.subr.bf16.mxu0 %v13202_v9  ;;  %v13256_v8 = vld [vmem:[%s14003_s22 + $0x15ec] ss:$16 sps:$4 sm:$0xff]  }
 0x425   : > { %9515 = vmatprep.subr.bf16.mxu1 %v13205_v33  ;;  %v13259_v9 = vld [vmem:[%s14003_s22 + $0x17ec] ss:$16 sps:$4 sm:$0xff]   ;;  %v13254_v33 = vld [vmem:[%s14003_s22 + $0x15e8] ss:$16 sps:$4 sm:$0xff]  }
 0x427   : > { %9473 = vmatpush2.bf16.msra.mxu0 %v13200_v35  ;;  %v13257_v35 = vld [vmem:[%s14003_s22 + $0x17e8] ss:$16 sps:$4 sm:$0xff]  }
 0x428   : > { %9516 = vmatpush2.bf16.msra.mxu1 %v13203_v19  ;;  %9528 = vmatprep.subr.bf16.mxu0 %v13208_v44  ;;  %v13262_v19 = vld [vmem:[%s14003_s22 + $0x15cc] ss:$16 sps:$4 sm:$0xff]  }
 0x429   : > { %9571 = vmatprep.subr.bf16.mxu1 %v13211_v41  ;;  %v13265_v44 = vld [vmem:[%s14003_s22 + $0x17cc] ss:$16 sps:$4 sm:$0xff]   ;;  %v13260_v41 = vld [vmem:[%s14003_s22 + $0x15c8] ss:$16 sps:$4 sm:$0xff]  }
 0x42a   : > { %9475 = vmatmul.mubr.bf16.vlgmr.msra.gmra.mxu0 %v14539_v23  ;;  %v13218_v23 = vld [vmem:[%s14003_s22 + $0x14a8] ss:$16 sps:$4 sm:$0xff]  }
 0x42b   : > { %9518 = vmatmul.mubr.bf16.vlgmr.msra.gmra.mxu1 %v14543_v24  ;;  %9529 = vmatpush1.bf16.msra.mxu0 %v13206_v43  ;;  %v13221_v24 = vld [vmem:[%s14003_s22 + $0x16a8] ss:$16 sps:$4 sm:$0xff]  }
 0x42c   : > { %9572 = vmatpush1.bf16.msra.mxu1 %v13209_v22  ;;  %9530 = vmatprep.subr.bf16.mxu0 %v13214_v12  ;;  %v13263_v43 = vld [vmem:[%s14003_s22 + $0x17c8] ss:$16 sps:$4 sm:$0xff]   ;;  %v13268_v22 = vld [vmem:[%s14003_s22 + $0x15ac] ss:$16 sps:$4 sm:$0xff]  }
 0x42d   : > { %9573 = vmatprep.subr.bf16.mxu1 %v13217_v37  ;;  %9560 = vmatprep.mubr.bf16.mxu0 %v14567_v38  ;;  %v13227_v38 = vld [vmem:[%s14003_s22 + $0x1688] ss:$16 sps:$4 sm:$0xff]   ;;  %v13271_v12 = vld [vmem:[%s14003_s22 + $0x17ac] ss:$16 sps:$4 sm:$0xff]  }
 0x42e   : > { %9603 = vmatprep.mubr.bf16.mxu1 %v14571_v39  ;;  %v13232_v39 = vld [vmem:[%s14003_s22 + $0x146c] ss:$16 sps:$4 sm:$0xff]   ;;  %v13266_v37 = vld [vmem:[%s14003_s22 + $0x15a8] ss:$16 sps:$4 sm:$0xff]  }
 0x42f   : > { %9531 = vmatpush1.bf16.msra.mxu0 %v13212_v48  ;;  %v13269_v48 = vld [vmem:[%s14003_s22 + $0x17a8] ss:$16 sps:$4 sm:$0xff]  }
 0x430   : > { %9574 = vmatpush1.bf16.msra.mxu1 %v13215_v49  ;;  %9532 = vmatprep.subr.bf16.mxu0 %v13220_v6  ;;  %v13274_v49 = vld [vmem:[%s14003_s22 + $0x158c] ss:$16 sps:$4 sm:$0xff]  }
 0x431   : > { %9575 = vmatprep.subr.bf16.mxu1 %v13223_v7  ;;  %v13277_v6 = vld [vmem:[%s14003_s22 + $0x178c] ss:$16 sps:$4 sm:$0xff]   ;;  %v13272_v7 = vld [vmem:[%s14003_s22 + $0x1588] ss:$16 sps:$4 sm:$0xff]  }
 0x433   : > { %9533 = vmatpush1.bf16.msra.mxu0 %v13218_v23  ;;  %v13275_v23 = vld [vmem:[%s14003_s22 + $0x1788] ss:$16 sps:$4 sm:$0xff]  }
 0x434   : > { %9576 = vmatpush1.bf16.msra.mxu1 %v13221_v24  ;;  %9534 = vmatprep.subr.bf16.mxu0 %v13226_v11  ;;  %v13280_v24 = vld [vmem:[%s14003_s22 + $0x156c] ss:$16 sps:$4 sm:$0xff]  }
 0x435   : > { %9577 = vmatprep.subr.bf16.mxu1 %v13229_v29  ;;  %v13283_v11 = vld [vmem:[%s14003_s22 + $0x176c] ss:$16 sps:$4 sm:$0xff]   ;;  %v13278_v29 = vld [vmem:[%s14003_s22 + $0x1568] ss:$16 sps:$4 sm:$0xff]  }
 0x437   : > { %9535 = vmatpush1.bf16.msra.mxu0 %v13224_v14  ;;  %v13281_v14 = vld [vmem:[%s14003_s22 + $0x1768] ss:$16 sps:$4 sm:$0xff]  }
 0x438   : > { %9578 = vmatpush1.bf16.msra.mxu1 %v13227_v38  ;;  %9536 = vmatprep.subr.bf16.mxu0 %v13232_v39  ;;  %v13286_v38 = vld [vmem:[%s14003_s22 + $0x154c] ss:$16 sps:$4 sm:$0xff]  }
 0x439   : > { %9579 = vmatprep.subr.bf16.mxu1 %v13235_v15  ;;  %v13289_v39 = vld [vmem:[%s14003_s22 + $0x174c] ss:$16 sps:$4 sm:$0xff]   ;;  %v13284_v15 = vld [vmem:[%s14003_s22 + $0x1548] ss:$16 sps:$4 sm:$0xff]  }
 0x43b   : > { %9537 = vmatpush1.bf16.msra.mxu0 %v13230_v30  ;;  %v13287_v30 = vld [vmem:[%s14003_s22 + $0x1748] ss:$16 sps:$4 sm:$0xff]  }
 0x43c   : > { %9580 = vmatpush1.bf16.msra.mxu1 %v13233_v53  ;;  %9538 = vmatprep.subr.bf16.mxu0 %v13238_v55  ;;  %v13292_v53 = vld [vmem:[%s14003_s22 + $0x152c] ss:$16 sps:$4 sm:$0xff]  }
 0x43d   : > { %9581 = vmatprep.subr.bf16.mxu1 %v13241_v46  ;;  %v13295_v55 = vld [vmem:[%s14003_s22 + $0x172c] ss:$16 sps:$4 sm:$0xff]   ;;  %v13290_v46 = vld [vmem:[%s14003_s22 + $0x1528] ss:$16 sps:$4 sm:$0xff]  }
 0x43f   : > { %9539 = vmatpush1.bf16.msra.mxu0 %v13236_v47  ;;  %v13293_v47 = vld [vmem:[%s14003_s22 + $0x1728] ss:$16 sps:$4 sm:$0xff]  }
 0x440   : > { %9582 = vmatpush1.bf16.msra.mxu1 %v13239_v17  ;;  %9540 = vmatprep.subr.bf16.mxu0 %v13244_v18  ;;  %v13298_v17 = vld [vmem:[%s14003_s22 + $0x150c] ss:$16 sps:$4 sm:$0xff]  }
 0x441   : > { %9583 = vmatprep.subr.bf16.mxu1 %v13247_v0  ;;  %v13301_v18 = vld [vmem:[%s14003_s22 + $0x170c] ss:$16 sps:$4 sm:$0xff]   ;;  %v13296_v0 = vld [vmem:[%s14003_s22 + $0x1508] ss:$16 sps:$4 sm:$0xff]  }
 0x443   : > { %9541 = vmatpush1.bf16.msra.mxu0 %v13242_v50  ;;  %v13299_v50 = vld [vmem:[%s14003_s22 + $0x1708] ss:$16 sps:$4 sm:$0xff]  }
 0x444   : > { %9584 = vmatpush1.bf16.msra.mxu1 %v13245_v34  ;;  %9542 = vmatprep.subr.bf16.mxu0 %v13250_v4  ;;  %v13304_v34 = vld [vmem:[%s14003_s22 + $0x18ec] ss:$16 sps:$4 sm:$0xff]  }
 0x445   : > { %9585 = vmatprep.subr.bf16.mxu1 %v13253_v20  ;;  %v13307_v4 = vld [vmem:[%s14003_s22 + $0x1aec] ss:$16 sps:$4 sm:$0xff]   ;;  %v13302_v20 = vld [vmem:[%s14003_s22 + $0x18e8] ss:$16 sps:$4 sm:$0xff]  }
 0x447   : > { %9543 = vmatpush1.bf16.msra.mxu0 %v13248_v21  ;;  %v13305_v21 = vld [vmem:[%s14003_s22 + $0x1ae8] ss:$16 sps:$4 sm:$0xff]  }
 0x448   : > { %9586 = vmatpush1.bf16.msra.mxu1 %v13251_v58  ;;  %9544 = vmatprep.subr.bf16.mxu0 %v13256_v8  ;;  %v13310_v58 = vld [vmem:[%s14003_s22 + $0x18cc] ss:$16 sps:$4 sm:$0xff]  }
 0x449   : > { %9587 = vmatprep.subr.bf16.mxu1 %v13259_v9  ;;  %v13313_v8 = vld [vmem:[%s14003_s22 + $0x1acc] ss:$16 sps:$4 sm:$0xff]   ;;  %v13308_v9 = vld [vmem:[%s14003_s22 + $0x18c8] ss:$16 sps:$4 sm:$0xff]  }
 0x44b   : > { %9545 = vmatpush2.bf16.msra.mxu0 %v13254_v33  ;;  %v13311_v33 = vld [vmem:[%s14003_s22 + $0x1ac8] ss:$16 sps:$4 sm:$0xff]  }
 0x44c   : > { %9588 = vmatpush2.bf16.msra.mxu1 %v13257_v35  ;;  %9546 = vmatprep.subr.bf16.mxu0 %v13262_v19  ;;  %v13316_v35 = vld [vmem:[%s14003_s22 + $0x18ac] ss:$16 sps:$4 sm:$0xff]  }
 0x44d   : > { %9589 = vmatprep.subr.bf16.mxu1 %v13265_v44  ;;  %v13319_v19 = vld [vmem:[%s14003_s22 + $0x1aac] ss:$16 sps:$4 sm:$0xff]  }
 0x44e   : > { %v13322_v44 = vld [vmem:[%s14003_s22 + $0x188c] ss:$16 sps:$4 sm:$0xff]  }
 0x44f   : > { %9547 = vmatpush2.bf16.msra.mxu0 %v13260_v41  ;;  %v13325_v41 = vld [vmem:[%s14003_s22 + $0x1a8c] ss:$16 sps:$4 sm:$0xff]  }
 0x450   : > { %9590 = vmatpush2.bf16.msra.mxu1 %v13263_v43  ;;  %9548 = vmatprep.subr.bf16.mxu0 %v13268_v22  ;;  %v13320_v43 = vld [vmem:[%s14003_s22 + $0x1888] ss:$16 sps:$4 sm:$0xff]   ;;  %v13331_v22 = vld [vmem:[%s14003_s22 + $0x1a6c] ss:$16 sps:$4 sm:$0xff]  }
 0x451   : > { %9591 = vmatprep.subr.bf16.mxu1 %v13271_v12  ;;  %v13326_v12 = vld [vmem:[%s14003_s22 + $0x1868] ss:$16 sps:$4 sm:$0xff]  }
 0x453   : > { %9549 = vmatpush2.bf16.msra.mxu0 %v13266_v37  ;;  %v13329_v37 = vld [vmem:[%s14003_s22 + $0x1a68] ss:$16 sps:$4 sm:$0xff]  }
 0x454   : > { %9592 = vmatpush2.bf16.msra.mxu1 %v13269_v48  ;;  %9550 = vmatprep.subr.bf16.mxu0 %v13274_v49  ;;  %v13334_v48 = vld [vmem:[%s14003_s22 + $0x184c] ss:$16 sps:$4 sm:$0xff]  }
 0x455   : > { %9593 = vmatprep.subr.bf16.mxu1 %v13277_v6  ;;  %v13337_v49 = vld [vmem:[%s14003_s22 + $0x1a4c] ss:$16 sps:$4 sm:$0xff]   ;;  %v13332_v6 = vld [vmem:[%s14003_s22 + $0x1848] ss:$16 sps:$4 sm:$0xff]  }
 0x457   : > { %9551 = vmatpush2.bf16.msra.mxu0 %v13272_v7  ;;  %v13335_v7 = vld [vmem:[%s14003_s22 + $0x1a48] ss:$16 sps:$4 sm:$0xff]  }
 0x458   : > { %9594 = vmatpush2.bf16.msra.mxu1 %v13275_v23  ;;  %9552 = vmatprep.subr.bf16.mxu0 %v13280_v24  ;;  %v13340_v23 = vld [vmem:[%s14003_s22 + $0x182c] ss:$16 sps:$4 sm:$0xff]  }
 0x459   : > { %9595 = vmatprep.subr.bf16.mxu1 %v13283_v11  ;;  %v13343_v24 = vld [vmem:[%s14003_s22 + $0x1a2c] ss:$16 sps:$4 sm:$0xff]   ;;  %v13338_v11 = vld [vmem:[%s14003_s22 + $0x1828] ss:$16 sps:$4 sm:$0xff]  }
 0x45b   : > { %9553 = vmatpush2.bf16.msra.mxu0 %v13278_v29  ;;  %v13341_v29 = vld [vmem:[%s14003_s22 + $0x1a28] ss:$16 sps:$4 sm:$0xff]  }
 0x45c   : > { %9596 = vmatpush2.bf16.msra.mxu1 %v13281_v14  ;;  %9554 = vmatprep.subr.bf16.mxu0 %v13286_v38  ;;  %v13346_v14 = vld [vmem:[%s14003_s22 + $0x180c] ss:$16 sps:$4 sm:$0xff]  }
 0x45d   : > { %9597 = vmatprep.subr.bf16.mxu1 %v13289_v39  ;;  %v13349_v38 = vld [vmem:[%s14003_s22 + $0x1a0c] ss:$16 sps:$4 sm:$0xff]   ;;  %v13344_v39 = vld [vmem:[%s14003_s22 + $0x1808] ss:$16 sps:$4 sm:$0xff]  }
 0x45f   : > { %9555 = vmatpush2.bf16.msra.mxu0 %v13284_v15  ;;  %v13347_v15 = vld [vmem:[%s14003_s22 + $0x1a08] ss:$16 sps:$4 sm:$0xff]  }
 0x460   : > { %9598 = vmatpush2.bf16.msra.mxu1 %v13287_v30  ;;  %9556 = vmatprep.subr.bf16.mxu0 %v13292_v53  ;;  %v13352_v30 = vld [vmem:[%s14003_s22 + $0x19ec] ss:$16 sps:$4 sm:$0xff]  }
 0x461   : > { %9599 = vmatprep.subr.bf16.mxu1 %v13295_v55  ;;  %v13355_v53 = vld [vmem:[%s14003_s22 + $0x1bec] ss:$16 sps:$4 sm:$0xff]   ;;  %v13350_v55 = vld [vmem:[%s14003_s22 + $0x19e8] ss:$16 sps:$4 sm:$0xff]  }
 0x463   : > { %9557 = vmatpush2.bf16.msra.mxu0 %v13290_v46  ;;  %v13353_v46 = vld [vmem:[%s14003_s22 + $0x1be8] ss:$16 sps:$4 sm:$0xff]  }
 0x464   : > { %9600 = vmatpush2.bf16.msra.mxu1 %v13293_v47  ;;  %9558 = vmatprep.subr.bf16.mxu0 %v13298_v17  ;;  %v13358_v47 = vld [vmem:[%s14003_s22 + $0x19cc] ss:$16 sps:$4 sm:$0xff]  }
 0x465   : > { %9601 = vmatprep.subr.bf16.mxu1 %v13301_v18  ;;  %v13361_v17 = vld [vmem:[%s14003_s22 + $0x1bcc] ss:$16 sps:$4 sm:$0xff]   ;;  %v13356_v18 = vld [vmem:[%s14003_s22 + $0x19c8] ss:$16 sps:$4 sm:$0xff]  }
 0x467   : > { %9559 = vmatpush2.bf16.msra.mxu0 %v13296_v0  ;;  %v13359_v0 = vld [vmem:[%s14003_s22 + $0x1bc8] ss:$16 sps:$4 sm:$0xff]  }
 0x468   : > { %9602 = vmatpush2.bf16.msra.mxu1 %v13299_v50  ;;  %9614 = vmatprep.subr.bf16.mxu0 %v13304_v34  ;;  %v13364_v50 = vld [vmem:[%s14003_s22 + $0x19ac] ss:$16 sps:$4 sm:$0xff]  }
 0x469   : > { %9657 = vmatprep.subr.bf16.mxu1 %v13307_v4  ;;  %v13367_v34 = vld [vmem:[%s14003_s22 + $0x1bac] ss:$16 sps:$4 sm:$0xff]   ;;  %v13362_v4 = vld [vmem:[%s14003_s22 + $0x19a8] ss:$16 sps:$4 sm:$0xff]  }
 0x46a   : > { %9561 = vmatmul.mubr.bf16.vlgmr.msra.gmra.mxu0 %v14653_v61  ;;  %v13314_v61 = vld [vmem:[%s14003_s22 + $0x18a8] ss:$16 sps:$4 sm:$0xff]  }
 0x46b   : > { %9604 = vmatmul.mubr.bf16.vlgmr.msra.gmra.mxu1 %v14657_v62  ;;  %9615 = vmatpush1.bf16.msra.mxu0 %v13302_v20  ;;  %v13317_v62 = vld [vmem:[%s14003_s22 + $0x1aa8] ss:$16 sps:$4 sm:$0xff]  }
 0x46c   : > { %9658 = vmatpush1.bf16.msra.mxu1 %v13305_v21  ;;  %9616 = vmatprep.subr.bf16.mxu0 %v13310_v58  ;;  %v13365_v20 = vld [vmem:[%s14003_s22 + $0x1ba8] ss:$16 sps:$4 sm:$0xff]   ;;  %v13370_v21 = vld [vmem:[%s14003_s22 + $0x198c] ss:$16 sps:$4 sm:$0xff]  }
 0x46d   : > { %9659 = vmatprep.subr.bf16.mxu1 %v13313_v8  ;;  %9646 = vmatprep.mubr.bf16.mxu0 %v14681_v54  ;;  %v13323_v54 = vld [vmem:[%s14003_s22 + $0x1a88] ss:$16 sps:$4 sm:$0xff]   ;;  %v13373_v58 = vld [vmem:[%s14003_s22 + $0x1b8c] ss:$16 sps:$4 sm:$0xff]  }
 0x46e   : > { %9689 = vmatprep.mubr.bf16.mxu1 %v14685_v5  ;;  %v13328_v5 = vld [vmem:[%s14003_s22 + $0x186c] ss:$16 sps:$4 sm:$0xff]   ;;  %v13368_v8 = vld [vmem:[%s14003_s22 + $0x1988] ss:$16 sps:$4 sm:$0xff]  }
 0x46f   : > { %9617 = vmatpush1.bf16.msra.mxu0 %v13308_v9  ;;  %v13371_v9 = vld [vmem:[%s14003_s22 + $0x1b88] ss:$16 sps:$4 sm:$0xff]  }
 0x470   : > { %9660 = vmatpush1.bf16.msra.mxu1 %v13311_v33  ;;  %9618 = vmatprep.subr.bf16.mxu0 %v13316_v35  ;;  %v13376_v33 = vld [vmem:[%s14003_s22 + $0x196c] ss:$16 sps:$4 sm:$0xff]  }
 0x471   : > { %9661 = vmatprep.subr.bf16.mxu1 %v13319_v19  ;;  %v13379_v35 = vld [vmem:[%s14003_s22 + $0x1b6c] ss:$16 sps:$4 sm:$0xff]   ;;  %v13374_v19 = vld [vmem:[%s14003_s22 + $0x1968] ss:$16 sps:$4 sm:$0xff]  }
 0x473   : > { %9619 = vmatpush1.bf16.msra.mxu0 %v13314_v61  ;;  %v13377_v61 = vld [vmem:[%s14003_s22 + $0x1b68] ss:$16 sps:$4 sm:$0xff]  }
 0x474   : > { %9662 = vmatpush1.bf16.msra.mxu1 %v13317_v62  ;;  %9620 = vmatprep.subr.bf16.mxu0 %v13322_v44  ;;  %v13382_v62 = vld [vmem:[%s14003_s22 + $0x194c] ss:$16 sps:$4 sm:$0xff]  }
 0x475   : > { %9663 = vmatprep.subr.bf16.mxu1 %v13325_v41  ;;  %v13385_v44 = vld [vmem:[%s14003_s22 + $0x1b4c] ss:$16 sps:$4 sm:$0xff]   ;;  %v13380_v41 = vld [vmem:[%s14003_s22 + $0x1948] ss:$16 sps:$4 sm:$0xff]  }
 0x477   : > { %9621 = vmatpush1.bf16.msra.mxu0 %v13320_v43  ;;  %v13383_v43 = vld [vmem:[%s14003_s22 + $0x1b48] ss:$16 sps:$4 sm:$0xff]  }
 0x478   : > { %9664 = vmatpush1.bf16.msra.mxu1 %v13323_v54  ;;  %9622 = vmatprep.subr.bf16.mxu0 %v13328_v5  ;;  %v13388_v54 = vld [vmem:[%s14003_s22 + $0x192c] ss:$16 sps:$4 sm:$0xff]  }
 0x479   : > { %9665 = vmatprep.subr.bf16.mxu1 %v13331_v22  ;;  %v13391_v5 = vld [vmem:[%s14003_s22 + $0x1b2c] ss:$16 sps:$4 sm:$0xff]   ;;  %v13386_v22 = vld [vmem:[%s14003_s22 + $0x1928] ss:$16 sps:$4 sm:$0xff]  }
 0x47b   : > { %9623 = vmatpush1.bf16.msra.mxu0 %v13326_v12  ;;  %v13389_v12 = vld [vmem:[%s14003_s22 + $0x1b28] ss:$16 sps:$4 sm:$0xff]  }
 0x47c   : > { %9666 = vmatpush1.bf16.msra.mxu1 %v13329_v37  ;;  %9624 = vmatprep.subr.bf16.mxu0 %v13334_v48  ;;  %v13394_v37 = vld [vmem:[%s14003_s22 + $0x190c] ss:$16 sps:$4 sm:$0xff]  }
 0x47d   : > { %9667 = vmatprep.subr.bf16.mxu1 %v13337_v49  ;;  %v13397_v48 = vld [vmem:[%s14003_s22 + $0x1b0c] ss:$16 sps:$4 sm:$0xff]   ;;  %v13392_v49 = vld [vmem:[%s14003_s22 + $0x1908] ss:$16 sps:$4 sm:$0xff]  }
 0x47f   : > { %9625 = vmatpush1.bf16.msra.mxu0 %v13332_v6  ;;  %v13395_v6 = vld [vmem:[%s14003_s22 + $0x1b08] ss:$16 sps:$4 sm:$0xff]  }
 0x480   : > { %9668 = vmatpush1.bf16.msra.mxu1 %v13335_v7  ;;  %9626 = vmatprep.subr.bf16.mxu0 %v13340_v23  ;;  %v13400_v7 = vld [vmem:[%s14003_s22 + $0x1cec] ss:$16 sps:$4 sm:$0xff]  }
 0x481   : > { %9669 = vmatprep.subr.bf16.mxu1 %v13343_v24  ;;  %v13403_v23 = vld [vmem:[%s14003_s22 + $0x1eec] ss:$16 sps:$4 sm:$0xff]   ;;  %v13398_v24 = vld [vmem:[%s14003_s22 + $0x1ce8] ss:$16 sps:$4 sm:$0xff]  }
 0x483   : > { %9627 = vmatpush1.bf16.msra.mxu0 %v13338_v11  ;;  %v13401_v11 = vld [vmem:[%s14003_s22 + $0x1ee8] ss:$16 sps:$4 sm:$0xff]  }
 0x484   : > { %9670 = vmatpush1.bf16.msra.mxu1 %v13341_v29  ;;  %9628 = vmatprep.subr.bf16.mxu0 %v13346_v14  ;;  %v13406_v29 = vld [vmem:[%s14003_s22 + $0x1ccc] ss:$16 sps:$4 sm:$0xff]  }
 0x485   : > { %9671 = vmatprep.subr.bf16.mxu1 %v13349_v38  ;;  %v13409_v14 = vld [vmem:[%s14003_s22 + $0x1ecc] ss:$16 sps:$4 sm:$0xff]   ;;  %v13404_v38 = vld [vmem:[%s14003_s22 + $0x1cc8] ss:$16 sps:$4 sm:$0xff]  }
 0x487   : > { %9629 = vmatpush1.bf16.msra.mxu0 %v13344_v39  ;;  %v13407_v39 = vld [vmem:[%s14003_s22 + $0x1ec8] ss:$16 sps:$4 sm:$0xff]  }
 0x488   : > { %9672 = vmatpush1.bf16.msra.mxu1 %v13347_v15  ;;  %9630 = vmatprep.subr.bf16.mxu0 %v13352_v30  ;;  %v13412_v15 = vld [vmem:[%s14003_s22 + $0x1cac] ss:$16 sps:$4 sm:$0xff]  }
 0x489   : > { %9673 = vmatprep.subr.bf16.mxu1 %v13355_v53  ;;  %v13415_v30 = vld [vmem:[%s14003_s22 + $0x1eac] ss:$16 sps:$4 sm:$0xff]  }
 0x48a   : > { %v13418_v53 = vld [vmem:[%s14003_s22 + $0x1c8c] ss:$16 sps:$4 sm:$0xff]  }
 0x48b   : > { %9631 = vmatpush2.bf16.msra.mxu0 %v13350_v55  ;;  %v13421_v55 = vld [vmem:[%s14003_s22 + $0x1e8c] ss:$16 sps:$4 sm:$0xff]  }
 0x48c   : > { %9674 = vmatpush2.bf16.msra.mxu1 %v13353_v46  ;;  %9632 = vmatprep.subr.bf16.mxu0 %v13358_v47  ;;  %v13416_v46 = vld [vmem:[%s14003_s22 + $0x1c88] ss:$16 sps:$4 sm:$0xff]   ;;  %v13427_v47 = vld [vmem:[%s14003_s22 + $0x1e6c] ss:$16 sps:$4 sm:$0xff]  }
 0x48d   : > { %9675 = vmatprep.subr.bf16.mxu1 %v13361_v17  ;;  %v13422_v17 = vld [vmem:[%s14003_s22 + $0x1c68] ss:$16 sps:$4 sm:$0xff]  }
 0x48f   : > { %9633 = vmatpush2.bf16.msra.mxu0 %v13356_v18  ;;  %v13425_v18 = vld [vmem:[%s14003_s22 + $0x1e68] ss:$16 sps:$4 sm:$0xff]  }
 0x490   : > { %9676 = vmatpush2.bf16.msra.mxu1 %v13359_v0  ;;  %9634 = vmatprep.subr.bf16.mxu0 %v13364_v50  ;;  %v13430_v0 = vld [vmem:[%s14003_s22 + $0x1c4c] ss:$16 sps:$4 sm:$0xff]  }
 0x491   : > { %9677 = vmatprep.subr.bf16.mxu1 %v13367_v34  ;;  %v13433_v50 = vld [vmem:[%s14003_s22 + $0x1e4c] ss:$16 sps:$4 sm:$0xff]   ;;  %v13428_v34 = vld [vmem:[%s14003_s22 + $0x1c48] ss:$16 sps:$4 sm:$0xff]  }
 0x493   : > { %9635 = vmatpush2.bf16.msra.mxu0 %v13362_v4  ;;  %v13431_v4 = vld [vmem:[%s14003_s22 + $0x1e48] ss:$16 sps:$4 sm:$0xff]  }
 0x494   : > { %9678 = vmatpush2.bf16.msra.mxu1 %v13365_v20  ;;  %9636 = vmatprep.subr.bf16.mxu0 %v13370_v21  ;;  %v13436_v20 = vld [vmem:[%s14003_s22 + $0x1c2c] ss:$16 sps:$4 sm:$0xff]  }
 0x495   : > { %9679 = vmatprep.subr.bf16.mxu1 %v13373_v58  ;;  %v13439_v21 = vld [vmem:[%s14003_s22 + $0x1e2c] ss:$16 sps:$4 sm:$0xff]   ;;  %v13434_v58 = vld [vmem:[%s14003_s22 + $0x1c28] ss:$16 sps:$4 sm:$0xff]  }
 0x497   : > { %9637 = vmatpush2.bf16.msra.mxu0 %v13368_v8  ;;  %v13437_v8 = vld [vmem:[%s14003_s22 + $0x1e28] ss:$16 sps:$4 sm:$0xff]  }
 0x498   : > { %9680 = vmatpush2.bf16.msra.mxu1 %v13371_v9  ;;  %9638 = vmatprep.subr.bf16.mxu0 %v13376_v33  ;;  %v13442_v9 = vld [vmem:[%s14003_s22 + $0x1c0c] ss:$16 sps:$4 sm:$0xff]  }
 0x499   : > { %9681 = vmatprep.subr.bf16.mxu1 %v13379_v35  ;;  %v13445_v33 = vld [vmem:[%s14003_s22 + $0x1e0c] ss:$16 sps:$4 sm:$0xff]   ;;  %v13440_v35 = vld [vmem:[%s14003_s22 + $0x1c08] ss:$16 sps:$4 sm:$0xff]  }
 0x49b   : > { %9639 = vmatpush2.bf16.msra.mxu0 %v13374_v19  ;;  %v13443_v19 = vld [vmem:[%s14003_s22 + $0x1e08] ss:$16 sps:$4 sm:$0xff]  }
 0x49c   : > { %9682 = vmatpush2.bf16.msra.mxu1 %v13377_v61  ;;  %9640 = vmatprep.subr.bf16.mxu0 %v13382_v62  ;;  %v13448_v61 = vld [vmem:[%s14003_s22 + $0x1dec] ss:$16 sps:$4 sm:$0xff]  }
 0x49d   : > { %9683 = vmatprep.subr.bf16.mxu1 %v13385_v44  ;;  %v13451_v62 = vld [vmem:[%s14003_s22 + $0x1fec] ss:$16 sps:$4 sm:$0xff]   ;;  %v13446_v44 = vld [vmem:[%s14003_s22 + $0x1de8] ss:$16 sps:$4 sm:$0xff]  }
 0x49f   : > { %9641 = vmatpush2.bf16.msra.mxu0 %v13380_v41  ;;  %v13449_v41 = vld [vmem:[%s14003_s22 + $0x1fe8] ss:$16 sps:$4 sm:$0xff]  }
 0x4a0   : > { %9684 = vmatpush2.bf16.msra.mxu1 %v13383_v43  ;;  %9642 = vmatprep.subr.bf16.mxu0 %v13388_v54  ;;  %v13454_v43 = vld [vmem:[%s14003_s22 + $0x1dcc] ss:$16 sps:$4 sm:$0xff]  }
 0x4a1   : > { %9685 = vmatprep.subr.bf16.mxu1 %v13391_v5  ;;  %v13457_v54 = vld [vmem:[%s14003_s22 + $0x1fcc] ss:$16 sps:$4 sm:$0xff]   ;;  %v13452_v5 = vld [vmem:[%s14003_s22 + $0x1dc8] ss:$16 sps:$4 sm:$0xff]  }
 0x4a3   : > { %9643 = vmatpush2.bf16.msra.mxu0 %v13386_v22  ;;  %v13455_v22 = vld [vmem:[%s14003_s22 + $0x1fc8] ss:$16 sps:$4 sm:$0xff]  }
 0x4a4   : > { %9686 = vmatpush2.bf16.msra.mxu1 %v13389_v12  ;;  %9644 = vmatprep.subr.bf16.mxu0 %v13394_v37  ;;  %v13460_v12 = vld [vmem:[%s14003_s22 + $0x1dac] ss:$16 sps:$4 sm:$0xff]  }
 0x4a5   : > { %9687 = vmatprep.subr.bf16.mxu1 %v13397_v48  ;;  %v13463_v37 = vld [vmem:[%s14003_s22 + $0x1fac] ss:$16 sps:$4 sm:$0xff]   ;;  %v13458_v48 = vld [vmem:[%s14003_s22 + $0x1da8] ss:$16 sps:$4 sm:$0xff]  }
 0x4a7   : > { %9645 = vmatpush2.bf16.msra.mxu0 %v13392_v49  ;;  %v13461_v49 = vld [vmem:[%s14003_s22 + $0x1fa8] ss:$16 sps:$4 sm:$0xff]  }
 0x4a8   : > { %9688 = vmatpush2.bf16.msra.mxu1 %v13395_v6  ;;  %9700 = vmatprep.subr.bf16.mxu0 %v13400_v7  ;;  %v13466_v6 = vld [vmem:[%s14003_s22 + $0x1d8c] ss:$16 sps:$4 sm:$0xff]  }
 0x4a9   : > { %9743 = vmatprep.subr.bf16.mxu1 %v13403_v23  ;;  %v13469_v7 = vld [vmem:[%s14003_s22 + $0x1f8c] ss:$16 sps:$4 sm:$0xff]   ;;  %v13464_v23 = vld [vmem:[%s14003_s22 + $0x1d88] ss:$16 sps:$4 sm:$0xff]  }
 0x4aa   : > { %9647 = vmatmul.mubr.bf16.vlgmr.msra.gmra.mxu0 %v14757_v13  ;;  %v13410_v13 = vld [vmem:[%s14003_s22 + $0x1ca8] ss:$16 sps:$4 sm:$0xff]  }
 0x4ab   : > { %9690 = vmatmul.mubr.bf16.vlgmr.msra.gmra.mxu1 %v14761_v16  ;;  %9701 = vmatpush1.bf16.msra.mxu0 %v13398_v24  ;;  %v13413_v16 = vld [vmem:[%s14003_s22 + $0x1ea8] ss:$16 sps:$4 sm:$0xff]  }
 0x4ac   : > { %9744 = vmatpush1.bf16.msra.mxu1 %v13401_v11  ;;  %9702 = vmatprep.subr.bf16.mxu0 %v13406_v29  ;;  %v13467_v24 = vld [vmem:[%s14003_s22 + $0x1f88] ss:$16 sps:$4 sm:$0xff]   ;;  %v13472_v11 = vld [vmem:[%s14003_s22 + $0x1d6c] ss:$16 sps:$4 sm:$0xff]  }
 0x4ad   : > { %9745 = vmatprep.subr.bf16.mxu1 %v13409_v14  ;;  %9732 = vmatprep.mubr.bf16.mxu0 %v14785_v31  ;;  %v13419_v31 = vld [vmem:[%s14003_s22 + $0x1e88] ss:$16 sps:$4 sm:$0xff]   ;;  %v13475_v29 = vld [vmem:[%s14003_s22 + $0x1f6c] ss:$16 sps:$4 sm:$0xff]  }
 0x4ae   : > { %9775 = vmatprep.mubr.bf16.mxu1 %v14789_v56  ;;  %v13424_v56 = vld [vmem:[%s14003_s22 + $0x1c6c] ss:$16 sps:$4 sm:$0xff]   ;;  %v13470_v14 = vld [vmem:[%s14003_s22 + $0x1d68] ss:$16 sps:$4 sm:$0xff]  }
 0x4af   : > { %9703 = vmatpush1.bf16.msra.mxu0 %v13404_v38  ;;  %v13473_v38 = vld [vmem:[%s14003_s22 + $0x1f68] ss:$16 sps:$4 sm:$0xff]  }
 0x4b0   : > { %9746 = vmatpush1.bf16.msra.mxu1 %v13407_v39  ;;  %9704 = vmatprep.subr.bf16.mxu0 %v13412_v15  ;;  %v13478_v39 = vld [vmem:[%s14003_s22 + $0x1d4c] ss:$16 sps:$4 sm:$0xff]  }
 0x4b1   : > { %9747 = vmatprep.subr.bf16.mxu1 %v13415_v30  ;;  %v13481_v15 = vld [vmem:[%s14003_s22 + $0x1f4c] ss:$16 sps:$4 sm:$0xff]   ;;  %v13476_v30 = vld [vmem:[%s14003_s22 + $0x1d48] ss:$16 sps:$4 sm:$0xff]  }
 0x4b3   : > { %9705 = vmatpush1.bf16.msra.mxu0 %v13410_v13  ;;  %v13479_v13 = vld [vmem:[%s14003_s22 + $0x1f48] ss:$16 sps:$4 sm:$0xff]  }
 0x4b4   : > { %9748 = vmatpush1.bf16.msra.mxu1 %v13413_v16  ;;  %9706 = vmatprep.subr.bf16.mxu0 %v13418_v53  ;;  %v13484_v16 = vld [vmem:[%s14003_s22 + $0x1d2c] ss:$16 sps:$4 sm:$0xff]  }
 0x4b5   : > { %9749 = vmatprep.subr.bf16.mxu1 %v13421_v55  ;;  %v13487_v53 = vld [vmem:[%s14003_s22 + $0x1f2c] ss:$16 sps:$4 sm:$0xff]   ;;  %v13482_v55 = vld [vmem:[%s14003_s22 + $0x1d28] ss:$16 sps:$4 sm:$0xff]  }
 0x4b7   : > { %9707 = vmatpush1.bf16.msra.mxu0 %v13416_v46  ;;  %v13485_v46 = vld [vmem:[%s14003_s22 + $0x1f28] ss:$16 sps:$4 sm:$0xff]  }
 0x4b8   : > { %9750 = vmatpush1.bf16.msra.mxu1 %v13419_v31  ;;  %9708 = vmatprep.subr.bf16.mxu0 %v13424_v56  ;;  %v13490_v31 = vld [vmem:[%s14003_s22 + $0x1d0c] ss:$16 sps:$4 sm:$0xff]  }
 0x4b9   : > { %9751 = vmatprep.subr.bf16.mxu1 %v13427_v47  ;;  %v13493_v56 = vld [vmem:[%s14003_s22 + $0x1f0c] ss:$16 sps:$4 sm:$0xff]   ;;  %v13488_v47 = vld [vmem:[%s14003_s22 + $0x1d08] ss:$16 sps:$4 sm:$0xff]  }
 0x4bb   : > { %9709 = vmatpush1.bf16.msra.mxu0 %v13422_v17  ;;  %v13491_v17 = vld [vmem:[%s14003_s22 + $0x1f08] ss:$16 sps:$4 sm:$0xff]  }
 0x4bc   : > { %9752 = vmatpush1.bf16.msra.mxu1 %v13425_v18  ;;  %9710 = vmatprep.subr.bf16.mxu0 %v13430_v0  ;;  %v13496_v18 = vld [vmem:[%s14003_s22 + $0x20ec] ss:$16 sps:$4 sm:$0xff]  }
 0x4bd   : > { %9753 = vmatprep.subr.bf16.mxu1 %v13433_v50  ;;  %v13499_v0 = vld [vmem:[%s14003_s22 + $0x22ec] ss:$16 sps:$4 sm:$0xff]   ;;  %v13494_v50 = vld [vmem:[%s14003_s22 + $0x20e8] ss:$16 sps:$4 sm:$0xff]  }
 0x4bf   : > { %9711 = vmatpush1.bf16.msra.mxu0 %v13428_v34  ;;  %v13497_v34 = vld [vmem:[%s14003_s22 + $0x22e8] ss:$16 sps:$4 sm:$0xff]  }
 0x4c0   : > { %9754 = vmatpush1.bf16.msra.mxu1 %v13431_v4  ;;  %9712 = vmatprep.subr.bf16.mxu0 %v13436_v20  ;;  %v13502_v4 = vld [vmem:[%s14003_s22 + $0x20cc] ss:$16 sps:$4 sm:$0xff]  }
 0x4c1   : > { %9755 = vmatprep.subr.bf16.mxu1 %v13439_v21  ;;  %v13505_v20 = vld [vmem:[%s14003_s22 + $0x22cc] ss:$16 sps:$4 sm:$0xff]   ;;  %v13500_v21 = vld [vmem:[%s14003_s22 + $0x20c8] ss:$16 sps:$4 sm:$0xff]  }
 0x4c3   : > { %9713 = vmatpush1.bf16.msra.mxu0 %v13434_v58  ;;  %v13503_v58 = vld [vmem:[%s14003_s22 + $0x22c8] ss:$16 sps:$4 sm:$0xff]  }
 0x4c4   : > { %9756 = vmatpush1.bf16.msra.mxu1 %v13437_v8  ;;  %9714 = vmatprep.subr.bf16.mxu0 %v13442_v9  ;;  %v13508_v8 = vld [vmem:[%s14003_s22 + $0x20ac] ss:$16 sps:$4 sm:$0xff]  }
 0x4c5   : > { %9757 = vmatprep.subr.bf16.mxu1 %v13445_v33  ;;  %v13511_v9 = vld [vmem:[%s14003_s22 + $0x22ac] ss:$16 sps:$4 sm:$0xff]  }
 0x4c6   : > { %v13514_v33 = vld [vmem:[%s14003_s22 + $0x208c] ss:$16 sps:$4 sm:$0xff]  }
 0x4c7   : > { %9715 = vmatpush1.bf16.msra.mxu0 %v13440_v35  ;;  %v13517_v35 = vld [vmem:[%s14003_s22 + $0x228c] ss:$16 sps:$4 sm:$0xff]  }
 0x4c8   : > { %9758 = vmatpush1.bf16.msra.mxu1 %v13443_v19  ;;  %9716 = vmatprep.subr.bf16.mxu0 %v13448_v61  ;;  %v13512_v19 = vld [vmem:[%s14003_s22 + $0x2088] ss:$16 sps:$4 sm:$0xff]   ;;  %v13523_v61 = vld [vmem:[%s14003_s22 + $0x226c] ss:$16 sps:$4 sm:$0xff]  }
 0x4c9   : > { %9759 = vmatprep.subr.bf16.mxu1 %v13451_v62  ;;  %v15633_v62 = vpop.f32.mrf.mxu0 }
 0x4cb   : > { %9717 = vmatpush2.bf16.msra.mxu0 %v13446_v44  ;;  %v13518_v44 = vld [vmem:[%s14003_s22 + $0x2068] ss:$16 sps:$4 sm:$0xff]  }
 0x4cc   : > { %9760 = vmatpush2.bf16.msra.mxu1 %v13449_v41  ;;  %9718 = vmatprep.subr.bf16.mxu0 %v13454_v43  ;;  %v13521_v41 = vld [vmem:[%s14003_s22 + $0x2268] ss:$16 sps:$4 sm:$0xff]   ;;  %v15637_v43 = vpop.f32.mrf.mxu0 }
 0x4cd   : > { %9761 = vmatprep.subr.bf16.mxu1 %v13457_v54  ;;  %v13526_v54 = vld [vmem:[%s14003_s22 + $0x204c] ss:$16 sps:$4 sm:$0xff]  }
 0x4cf   : > { %9719 = vmatpush2.bf16.msra.mxu0 %v13452_v5  ;;  %v13529_v5 = vld [vmem:[%s14003_s22 + $0x224c] ss:$16 sps:$4 sm:$0xff]  }
 0x4d0   : > { %9762 = vmatpush2.bf16.msra.mxu1 %v13455_v22  ;;  %9720 = vmatprep.subr.bf16.mxu0 %v13460_v12  ;;  %v13524_v22 = vld [vmem:[%s14003_s22 + $0x2048] ss:$16 sps:$4 sm:$0xff]  }
 0x4d1   : > { %9763 = vmatprep.subr.bf16.mxu1 %v13463_v37  ;;  %v13527_v12 = vld [vmem:[%s14003_s22 + $0x2248] ss:$16 sps:$4 sm:$0xff]   ;;  %v15643_v37 = vpop.f32.mrf.mxu1 }
 0x4d3   : > { %9721 = vmatpush2.bf16.msra.mxu0 %v13458_v48  ;;  %v15645_v48 = vpop.f32.mrf.mxu0 }
 0x4d4   : > { %9764 = vmatpush2.bf16.msra.mxu1 %v13461_v49  ;;  %9722 = vmatprep.subr.bf16.mxu0 %v13466_v6  ;;  %v13532_v49 = vld [vmem:[%s14003_s22 + $0x202c] ss:$16 sps:$4 sm:$0xff]  }
 0x4d5   : > { %9765 = vmatprep.subr.bf16.mxu1 %v13469_v7  ;;  %v13535_v6 = vld [vmem:[%s14003_s22 + $0x222c] ss:$16 sps:$4 sm:$0xff]   ;;  %v15649_v7 = vpop.f32.mrf.mxu1 }
 0x4d7   : > { %9723 = vmatpush2.bf16.msra.mxu0 %v13464_v23  ;;  %v13530_v23 = vld [vmem:[%s14003_s22 + $0x2028] ss:$16 sps:$4 sm:$0xff]  }
 0x4d8   : > { %9766 = vmatpush2.bf16.msra.mxu1 %v13467_v24  ;;  %9724 = vmatprep.subr.bf16.mxu0 %v13472_v11  ;;  %v13533_v24 = vld [vmem:[%s14003_s22 + $0x2228] ss:$16 sps:$4 sm:$0xff]   ;;  %v15653_v11 = vpop.f32.mrf.mxu0 }
 0x4d9   : > { %9767 = vmatprep.subr.bf16.mxu1 %v13475_v29  ;;  %v13538_v29 = vld [vmem:[%s14003_s22 + $0x200c] ss:$16 sps:$4 sm:$0xff]  }
 0x4db   : > { %9725 = vmatpush2.bf16.msra.mxu0 %v13470_v14  ;;  %v13541_v14 = vld [vmem:[%s14003_s22 + $0x220c] ss:$16 sps:$4 sm:$0xff]  }
 0x4dc   : > { %9768 = vmatpush2.bf16.msra.mxu1 %v13473_v38  ;;  %9726 = vmatprep.subr.bf16.mxu0 %v13478_v39  ;;  %v15657_v38 = vpop.f32.mrf.mxu1  ;;  %v13536_v39 = vld [vmem:[%s14003_s22 + $0x2008] ss:$16 sps:$4 sm:$0xff]  }
 0x4dd   : > { %9769 = vmatprep.subr.bf16.mxu1 %v13481_v15  ;;  %v13539_v15 = vld [vmem:[%s14003_s22 + $0x2208] ss:$16 sps:$4 sm:$0xff]  }
 0x4df   : > { %9727 = vmatpush2.bf16.msra.mxu0 %v13476_v30  ;;  %v15661_v30 = vpop.f32.mrf.mxu0 }
 0x4e0   : > { %9770 = vmatpush2.bf16.msra.mxu1 %v13479_v13  ;;  %9728 = vmatprep.subr.bf16.mxu0 %v13484_v16  ;;  %v13544_v13 = vld [vmem:[%s14003_s22 + $0x21ec] ss:$16 sps:$4 sm:$0xff]  }
 0x4e1   : > { %9771 = vmatprep.subr.bf16.mxu1 %v13487_v53  ;;  %v13547_v16 = vld [vmem:[%s14003_s22 + $0x23ec] ss:$16 sps:$4 sm:$0xff]   ;;  %v15665_v53 = vpop.f32.mrf.mxu1 }
 0x4e3   : > { %9729 = vmatpush2.bf16.msra.mxu0 %v13482_v55  ;;  %v15667_v55 = vpop.f32.mrf.mxu0 }
 0x4e4   : > { %9772 = vmatpush2.bf16.msra.mxu1 %v13485_v46  ;;  %9730 = vmatprep.subr.bf16.mxu0 %v13490_v31  ;;  %v13542_v46 = vld [vmem:[%s14003_s22 + $0x21e8] ss:$16 sps:$4 sm:$0xff]  }
 0x4e5   : > { %9773 = vmatprep.subr.bf16.mxu1 %v13493_v56  ;;  %v13545_v31 = vld [vmem:[%s14003_s22 + $0x23e8] ss:$16 sps:$4 sm:$0xff]   ;;  %v13550_v56 = vld [vmem:[%s14003_s22 + $0x21cc] ss:$16 sps:$4 sm:$0xff]  }
 0x4e7   : > { %9731 = vmatpush2.bf16.msra.mxu0 %v13488_v47  ;;  %v13553_v47 = vld [vmem:[%s14003_s22 + $0x23cc] ss:$16 sps:$4 sm:$0xff]  }
 0x4e8   : > { %9774 = vmatpush2.bf16.msra.mxu1 %v13491_v17  ;;  %9786 = vmatprep.subr.bf16.mxu0 %v13496_v18  ;;  %v15673_v17 = vpop.f32.mrf.mxu1  ;;  %v15675_v18 = vpop.f32.mrf.mxu0 }
 0x4e9   : > { %9829 = vmatprep.subr.bf16.mxu1 %v13499_v0  ;;  %v13548_v0 = vld [vmem:[%s14003_s22 + $0x21c8] ss:$16 sps:$4 sm:$0xff]  }
 0x4ea   : > { %9733 = vmatmul.mubr.bf16.vlgmr.msra.gmra.mxu0 %v14861_v1  ;;  %v13506_v1 = vld [vmem:[%s14003_s22 + $0x20a8] ss:$16 sps:$4 sm:$0xff]  }
 0x4eb   : > { %9776 = vmatmul.mubr.bf16.vlgmr.msra.gmra.mxu1 %v14865_v3  ;;  %9787 = vmatpush1.bf16.msra.mxu0 %v13494_v50  ;;  %v13509_v3 = vld [vmem:[%s14003_s22 + $0x22a8] ss:$16 sps:$4 sm:$0xff]  }
 0x4ec   : > { %9830 = vmatpush1.bf16.msra.mxu1 %v13497_v34  ;;  %9788 = vmatprep.subr.bf16.mxu0 %v13502_v4  ;;  %v13551_v50 = vld [vmem:[%s14003_s22 + $0x23c8] ss:$16 sps:$4 sm:$0xff]   ;;  %v15679_v34 = vpop.f32.mrf.mxu1  ;;  %v13556_v4 = vld [vmem:[%s14003_s22 + $0x21ac] ss:$16 sps:$4 sm:$0xff]  }
 0x4ed   : > { %9831 = vmatprep.subr.bf16.mxu1 %v13505_v20  ;;  %9818 = vmatprep.mubr.bf16.mxu0 %v14889_v25  ;;  %v13515_v25 = vld [vmem:[%s14003_s22 + $0x2288] ss:$16 sps:$4 sm:$0xff]   ;;  %v13559_v20 = vld [vmem:[%s14003_s22 + $0x23ac] ss:$16 sps:$4 sm:$0xff]  }
 0x4ee   : > { %9861 = vmatprep.mubr.bf16.mxu1 %v14893_v26  ;;  %v13520_v26 = vld [vmem:[%s14003_s22 + $0x206c] ss:$16 sps:$4 sm:$0xff]  }
 0x4ef   : > { %9789 = vmatpush1.bf16.msra.mxu0 %v13500_v21  ;;  %v15683_v21 = vpop.f32.mrf.mxu0 }
 0x4f0   : > { %9832 = vmatpush1.bf16.msra.mxu1 %v13503_v58  ;;  %9790 = vmatprep.subr.bf16.mxu0 %v13508_v8  ;;  %v13554_v58 = vld [vmem:[%s14003_s22 + $0x21a8] ss:$16 sps:$4 sm:$0xff]  }
 0x4f1   : > { %9833 = vmatprep.subr.bf16.mxu1 %v13511_v9  ;;  %v13557_v8 = vld [vmem:[%s14003_s22 + $0x23a8] ss:$16 sps:$4 sm:$0xff]   ;;  %v15687_v9 = vpop.f32.mrf.mxu1 }
 0x4f3   : > { %9791 = vmatpush1.bf16.msra.mxu0 %v13506_v1  ;;  %v13562_v1 = vld [vmem:[%s14003_s22 + $0x218c] ss:$16 sps:$4 sm:$0xff]  }
 0x4f4   : > { %9834 = vmatpush1.bf16.msra.mxu1 %v13509_v3  ;;  %9792 = vmatprep.subr.bf16.mxu0 %v13514_v33  ;;  %v13565_v3 = vld [vmem:[%s14003_s22 + $0x238c] ss:$16 sps:$4 sm:$0xff]   ;;  %v15691_v33 = vpop.f32.mrf.mxu0 }
 0x4f5   : > { %9835 = vmatprep.subr.bf16.mxu1 %v13517_v35  ;;  %v13560_v35 = vld [vmem:[%s14003_s22 + $0x2188] ss:$16 sps:$4 sm:$0xff]  }
 0x4f7   : > { %9793 = vmatpush1.bf16.msra.mxu0 %v13512_v19  ;;  %v13563_v19 = vld [vmem:[%s14003_s22 + $0x2388] ss:$16 sps:$4 sm:$0xff]  }
 0x4f8   : > { %9836 = vmatpush1.bf16.msra.mxu1 %v13515_v25  ;;  %9794 = vmatprep.subr.bf16.mxu0 %v13520_v26  ;;  %v15695_v25 = vpop.f32.mrf.mxu1  ;;  %v15697_v26 = vpop.f32.mrf.mxu0 }
 0x4f9   : > { %9837 = vmatprep.subr.bf16.mxu1 %v13523_v61  ;;  %v13568_v61 = vld [vmem:[%s14003_s22 + $0x216c] ss:$16 sps:$4 sm:$0xff]  }
 0x4fb   : > { %9795 = vmatpush1.bf16.msra.mxu0 %v13518_v44  ;;  %v13571_v44 = vld [vmem:[%s14003_s22 + $0x236c] ss:$16 sps:$4 sm:$0xff]  }
 0x4fc   : > { %9838 = vmatpush1.bf16.msra.mxu1 %v13521_v41  ;;  %9796 = vmatprep.subr.bf16.mxu0 %v13526_v54  ;;  %v13566_v41 = vld [vmem:[%s14003_s22 + $0x2168] ss:$16 sps:$4 sm:$0xff]  }
 0x4fd   : > { %9839 = vmatprep.subr.bf16.mxu1 %v13529_v5  ;;  %v13569_v54 = vld [vmem:[%s14003_s22 + $0x2368] ss:$16 sps:$4 sm:$0xff]   ;;  %v15703_v5 = vpop.f32.mrf.mxu1 }
 0x4ff   : > { %9797 = vmatpush1.bf16.msra.mxu0 %v13524_v22  ;;  %v15705_v22 = vpop.f32.mrf.mxu0 }
 0x500   : > { %9840 = vmatpush1.bf16.msra.mxu1 %v13527_v12  ;;  %9798 = vmatprep.subr.bf16.mxu0 %v13532_v49  ;;  %v13574_v12 = vld [vmem:[%s14003_s22 + $0x214c] ss:$16 sps:$4 sm:$0xff]  }
 0x501   : > { %9841 = vmatprep.subr.bf16.mxu1 %v13535_v6  ;;  %v13577_v49 = vld [vmem:[%s14003_s22 + $0x234c] ss:$16 sps:$4 sm:$0xff]   ;;  %v15709_v6 = vpop.f32.mrf.mxu1 }
 0x503   : > { %9799 = vmatpush1.bf16.msra.mxu0 %v13530_v23  ;;  %v13572_v23 = vld [vmem:[%s14003_s22 + $0x2148] ss:$16 sps:$4 sm:$0xff]  }
 0x504   : > { %9842 = vmatpush1.bf16.msra.mxu1 %v13533_v24  ;;  %9800 = vmatprep.subr.bf16.mxu0 %v13538_v29  ;;  %v13575_v24 = vld [vmem:[%s14003_s22 + $0x2348] ss:$16 sps:$4 sm:$0xff]   ;;  %v15713_v29 = vpop.f32.mrf.mxu0 }
 0x505   : > { %9843 = vmatprep.subr.bf16.mxu1 %v13541_v14  ;;  %v13580_v14 = vld [vmem:[%s14003_s22 + $0x212c] ss:$16 sps:$4 sm:$0xff]  }
 0x507   : > { %9801 = vmatpush1.bf16.msra.mxu0 %v13536_v39  ;;  %v13583_v39 = vld [vmem:[%s14003_s22 + $0x232c] ss:$16 sps:$4 sm:$0xff]  }
 0x508   : > { %9844 = vmatpush1.bf16.msra.mxu1 %v13539_v15  ;;  %9802 = vmatprep.subr.bf16.mxu0 %v13544_v13  ;;  %v15717_v15 = vpop.f32.mrf.mxu1  ;;  %v13578_v13 = vld [vmem:[%s14003_s22 + $0x2128] ss:$16 sps:$4 sm:$0xff]  }
 0x509   : > { %9845 = vmatprep.subr.bf16.mxu1 %v13547_v16  ;;  %v13581_v16 = vld [vmem:[%s14003_s22 + $0x2328] ss:$16 sps:$4 sm:$0xff]  }
 0x50b   : > { %9803 = vmatpush2.bf16.msra.mxu0 %v13542_v46  ;;  %v15721_v46 = vpop.f32.mrf.mxu0 }
 0x50c   : > { %9846 = vmatpush2.bf16.msra.mxu1 %v13545_v31  ;;  %9804 = vmatprep.subr.bf16.mxu0 %v13550_v56  ;;  %v13586_v31 = vld [vmem:[%s14003_s22 + $0x210c] ss:$16 sps:$4 sm:$0xff]  }
 0x50d   : > { %9847 = vmatprep.subr.bf16.mxu1 %v13553_v47  ;;  %v13589_v56 = vld [vmem:[%s14003_s22 + $0x230c] ss:$16 sps:$4 sm:$0xff]   ;;  %v15725_v47 = vpop.f32.mrf.mxu1 }
 0x50f   : > { %9805 = vmatpush2.bf16.msra.mxu0 %v13548_v0  ;;  %v15727_v0 = vpop.f32.mrf.mxu0 }
 0x510   : > { %9848 = vmatpush2.bf16.msra.mxu1 %v13551_v50  ;;  %9806 = vmatprep.subr.bf16.mxu0 %v13556_v4  ;;  %v13584_v50 = vld [vmem:[%s14003_s22 + $0x2108] ss:$16 sps:$4 sm:$0xff]  }
 0x511   : > { %9849 = vmatprep.subr.bf16.mxu1 %v13559_v20  ;;  %v13587_v4 = vld [vmem:[%s14003_s22 + $0x2308] ss:$16 sps:$4 sm:$0xff]   ;;  %v13592_v20 = vld [vmem:[%s14003_s22 + $0x24ec] ss:$16 sps:$4 sm:$0xff]  }
 0x513   : > { %9807 = vmatpush2.bf16.msra.mxu0 %v13554_v58  ;;  %v13595_v58 = vld [vmem:[%s14003_s22 + $0x26ec] ss:$16 sps:$4 sm:$0xff]  }
 0x514   : > { %9850 = vmatpush2.bf16.msra.mxu1 %v13557_v8  ;;  %9808 = vmatprep.subr.bf16.mxu0 %v13562_v1  ;;  %v15733_v8 = vpop.f32.mrf.mxu1  ;;  %v15735_v1 = vpop.f32.mrf.mxu0 }
 0x515   : > { %9851 = vmatprep.subr.bf16.mxu1 %v13565_v3  ;;  %v13590_v3 = vld [vmem:[%s14003_s22 + $0x24e8] ss:$16 sps:$4 sm:$0xff]  }
 0x517   : > { %9809 = vmatpush2.bf16.msra.mxu0 %v13560_v35  ;;  %v13593_v35 = vld [vmem:[%s14003_s22 + $0x26e8] ss:$16 sps:$4 sm:$0xff]  }
 0x518   : > { %9852 = vmatpush2.bf16.msra.mxu1 %v13563_v19  ;;  %9810 = vmatprep.subr.bf16.mxu0 %v13568_v61  ;;  %v15739_v19 = vpop.f32.mrf.mxu1  ;;  %v13598_v61 = vld [vmem:[%s14003_s22 + $0x24cc] ss:$16 sps:$4 sm:$0xff]  }
 0x519   : > { %9853 = vmatprep.subr.bf16.mxu1 %v13571_v44  ;;  %v13601_v44 = vld [vmem:[%s14003_s22 + $0x26cc] ss:$16 sps:$4 sm:$0xff]  }
 0x51b   : > { %9811 = vmatpush2.bf16.msra.mxu0 %v13566_v41  ;;  %v15743_v41 = vpop.f32.mrf.mxu0 }
 0x51c   : > { %9854 = vmatpush2.bf16.msra.mxu1 %v13569_v54  ;;  %9812 = vmatprep.subr.bf16.mxu0 %v13574_v12  ;;  %v8275_v54 = vadd.f32 %v14458_v27, %v14469_v42  ;;  %v13596_v12 = vld [vmem:[%s14003_s22 + $0x24c8] ss:$16 sps:$4 sm:$0xff]  }
 0x51d   : > { %9855 = vmatprep.subr.bf16.mxu1 %v13577_v49  ;;  %v13599_v49 = vld [vmem:[%s14003_s22 + $0x26c8] ss:$16 sps:$4 sm:$0xff]   ;;  %v15757_v27 = vpop.f32.mrf.mxu0 }
 0x51e   : > { %v8318_v42 = vadd.f32 %v14460_v32, %v8275_v54  ;;  %v13608_v32 = vld [vmem:[%s14003_s22 + $0x2488] ss:$16 sps:$4 sm:$0xff]   ;;  %v13622_v54 = vld [vmem:[%s14003_s22 + $0x244c] ss:$16 sps:$4 sm:$0xff]  }
 0x51f   : > { %9813 = vmatpush2.bf16.msra.mxu0 %v13572_v23  ;;  %v15751_v23 = vpop.f32.mrf.mxu1 }
 0x520   : > { %9856 = vmatpush2.bf16.msra.mxu1 %v13575_v24  ;;  %9814 = vmatprep.subr.bf16.mxu0 %v13580_v14  ;;  %v13604_v24 = vld [vmem:[%s14003_s22 + $0x24ac] ss:$16 sps:$4 sm:$0xff]  }
 0x521   : > { %9857 = vmatprep.subr.bf16.mxu1 %v13583_v39  ;;  %v13607_v14 = vld [vmem:[%s14003_s22 + $0x26ac] ss:$16 sps:$4 sm:$0xff]   ;;  %v15762_v39 = vpop.f32.mrf.mxu1 }
 0x523   : > { %9815 = vmatpush2.bf16.msra.mxu0 %v13578_v13  ;;  %v15764_v13 = vpop.f32.mrf.mxu0 }
 0x524   : > { %9858 = vmatpush2.bf16.msra.mxu1 %v13581_v16  ;;  %9816 = vmatprep.subr.bf16.mxu0 %v13586_v31  ;;  %v8361_v16 = vadd.f32 %v14576_v52, %v8318_v42  ;;  %v13611_v31 = vld [vmem:[%s14003_s22 + $0x2688] ss:$16 sps:$4 sm:$0xff]   ;;  %v13628_v42 = vld [vmem:[%s14003_s22 + $0x242c] ss:$16 sps:$4 sm:$0xff]  }
 0x525   : > { %9859 = vmatprep.subr.bf16.mxu1 %v13589_v56  ;;  %v15771_v56 = vpop.f32.mrf.mxu1 }
 0x527   : > { %9817 = vmatpush2.bf16.msra.mxu0 %v13584_v50  ;;  %v15773_v50 = vpop.f32.mrf.mxu0  ;;  %v15778_v52 = vpop.f32.mrf.mxu1 }
 0x528   : > { %9860 = vmatpush2.bf16.msra.mxu1 %v13587_v4  ;;  %9872 = vmatprep.subr.bf16.mxu0 %v13592_v20  ;;  %v13616_v4 = vld [vmem:[%s14003_s22 + $0x246c] ss:$16 sps:$4 sm:$0xff]  }
 0x529   : > { %9915 = vmatprep.subr.bf16.mxu1 %v13595_v58  ;;  %v13619_v20 = vld [vmem:[%s14003_s22 + $0x266c] ss:$16 sps:$4 sm:$0xff]   ;;  %v8404_v58 = vadd.f32 %v14578_v28, %v8361_v16  ;;  %v13629_v16 = vld [vmem:[%s14003_s22 + $0x2628] ss:$16 sps:$4 sm:$0xff]  }
 0x52a   : > { %9819 = vmatmul.mubr.bf16.vlgmr.msra.gmra.mxu0 %v14981_v36  ;;  %v13602_v36 = vld [vmem:[%s14003_s22 + $0x24a8] ss:$16 sps:$4 sm:$0xff]  }
 0x52b   : > { %9862 = vmatmul.mubr.bf16.vlgmr.msra.gmra.mxu1 %v14985_v40  ;;  %9873 = vmatpush1.bf16.msra.mxu0 %v13590_v3  ;;  %v13605_v40 = vld [vmem:[%s14003_s22 + $0x26a8] ss:$16 sps:$4 sm:$0xff]   ;;  %v8447_v3 = vadd.f32 %v15645_v48, %v8404_v58 }
 0x52c   : > { %9916 = vmatpush1.bf16.msra.mxu1 %v13593_v35  ;;  %9874 = vmatprep.subr.bf16.mxu0 %v13598_v61  ;;  %v13614_v35 = vld [vmem:[%s14003_s22 + $0x2468] ss:$16 sps:$4 sm:$0xff]  }
 0x52d   : > { %9917 = vmatprep.subr.bf16.mxu1 %v13601_v44  ;;  %9904 = vmatprep.mubr.bf16.mxu0 %v14993_v60  ;;  %v13610_v60 = vld [vmem:[%s14003_s22 + $0x248c] ss:$16 sps:$4 sm:$0xff]   ;;  %v13617_v61 = vld [vmem:[%s14003_s22 + $0x2668] ss:$16 sps:$4 sm:$0xff]   ;;  %v15783_v44 = vpop.f32.mrf.mxu0  ;;  %v8490_v28 = vadd.f32 %v15657_v38, %v8447_v3 }
 0x52e   : > { %9947 = vmatprep.mubr.bf16.mxu1 %v14997_v51  ;;  %v13613_v51 = vld [vmem:[%s14003_s22 + $0x268c] ss:$16 sps:$4 sm:$0xff]   ;;  %v13620_v48 = vld [vmem:[%s14003_s22 + $0x2448] ss:$16 sps:$4 sm:$0xff]  }
 0x52f   : > { %9875 = vmatpush1.bf16.msra.mxu0 %v13596_v12  ;;  %v13625_v12 = vld [vmem:[%s14003_s22 + $0x264c] ss:$16 sps:$4 sm:$0xff]   ;;  %v13626_v38 = vld [vmem:[%s14003_s22 + $0x2428] ss:$16 sps:$4 sm:$0xff]  }
 0x530   : > { %9918 = vmatpush1.bf16.msra.mxu1 %v13599_v49  ;;  %9876 = vmatprep.subr.bf16.mxu0 %v13604_v24  ;;  %v15787_v49 = vpop.f32.mrf.mxu1  ;;  %v13623_v24 = vld [vmem:[%s14003_s22 + $0x2648] ss:$16 sps:$4 sm:$0xff]  }
 0x531   : > { %9919 = vmatprep.subr.bf16.mxu1 %v13607_v14  ;;  %v15792_v14 = vpop.f32.mrf.mxu0  ;;  %v13632_v3 = vld [vmem:[%s14003_s22 + $0x2408] ss:$16 sps:$4 sm:$0xff]  }
 0x533   : > { %9877 = vmatpush1.bf16.msra.mxu0 %v13602_v36  ;;  %v13631_v36 = vld [vmem:[%s14003_s22 + $0x262c] ss:$16 sps:$4 sm:$0xff]  }
 0x534   : > { %9920 = vmatpush1.bf16.msra.mxu1 %v13605_v40  ;;  %9878 = vmatprep.subr.bf16.mxu0 %v13610_v60  ;;  %v8533_v40 = vadd.f32 %v15675_v18, %v8490_v28  ;;  %v15797_v60 = vpop.f32.mrf.mxu1 }
 0x535   : > { %9921 = vmatprep.subr.bf16.mxu1 %v13613_v51  ;;  %v15799_v51 = vpop.f32.mrf.mxu0 }
 0x537   : > { %9879 = vmatpush1.bf16.msra.mxu0 %v13608_v32  ;;  %v13634_v32 = vld [vmem:[%s14003_s22 + $0x240c] ss:$16 sps:$4 sm:$0xff]   ;;  %v8876_v18 = vpop.f32.mrf.mxu0 }
 0x538   : > { %9922 = vmatpush1.bf16.msra.mxu1 %v13611_v31  ;;  %9880 = vmatprep.subr.bf16.mxu0 %v13616_v4  ;;  %v13637_v31 = vld [vmem:[%s14003_s22 + $0x260c] ss:$16 sps:$4 sm:$0xff]   ;;  %v8576_v4 = vadd.f32 %v15687_v9, %v8533_v40 }
 0x539   : > { %9923 = vmatprep.subr.bf16.mxu1 %v13619_v20  ;;  %v15806_v20 = vpop.f32.mrf.mxu1  ;;  %v15815_v9 = vpop.f32.mrf.mxu0 }
 0x53a   : > { %v8619_v58 = vadd.f32 %v15705_v22, %v8576_v4  ;;  %v13638_v22 = vld [vmem:[%s14003_s22 + $0x25e8] ss:$16 sps:$4 sm:$0xff]   ;;  %v13652_v4 = vld [vmem:[%s14003_s22 + $0x25ac] ss:$16 sps:$4 sm:$0xff]  }
 0x53b   : > { %9881 = vmatpush1.bf16.msra.mxu0 %v13614_v35  ;;  %v13635_v35 = vld [vmem:[%s14003_s22 + $0x2608] ss:$16 sps:$4 sm:$0xff]  }
 0x53c   : > { %9924 = vmatpush1.bf16.msra.mxu1 %v13617_v61  ;;  %9882 = vmatprep.subr.bf16.mxu0 %v13622_v54  ;;  %v15811_v61 = vpop.f32.mrf.mxu1  ;;  %v13640_v54 = vld [vmem:[%s14003_s22 + $0x25ec] ss:$16 sps:$4 sm:$0xff]   ;;  %v8662_v28 = vadd.f32 %v15717_v15, %v8619_v58  ;;  %v13644_v15 = vld [vmem:[%s14003_s22 + $0x25c8] ss:$16 sps:$4 sm:$0xff]  }
 0x53d   : > { %9925 = vmatprep.subr.bf16.mxu1 %v13625_v12  ;;  %v13643_v12 = vld [vmem:[%s14003_s22 + $0x27ec] ss:$16 sps:$4 sm:$0xff]  }
 0x53e   : > { %v8705_v40 = vadd.f32 %v15735_v1, %v8662_v28  ;;  %v13655_v58 = vld [vmem:[%s14003_s22 + $0x27ac] ss:$16 sps:$4 sm:$0xff]  }
 0x53f   : > { %9883 = vmatpush1.bf16.msra.mxu0 %v13620_v48  ;;  %v13641_v48 = vld [vmem:[%s14003_s22 + $0x27e8] ss:$16 sps:$4 sm:$0xff]  }
 0x540   : > { %9926 = vmatpush1.bf16.msra.mxu1 %v13623_v24  ;;  %9884 = vmatprep.subr.bf16.mxu0 %v13628_v42  ;;  %v8919_v24 = vpop.f32.mrf.mxu1  ;;  %v13646_v42 = vld [vmem:[%s14003_s22 + $0x25cc] ss:$16 sps:$4 sm:$0xff]   ;;  %v8748_v1 = vadd.f32 %v15751_v23, %v8705_v40  ;;  %v8365_v23 = vadd.f32 %v15633_v62, %v14478_v59  ;;  %v13659_v40 = vld [vmem:[%s14003_s22 + $0x2788] ss:$16 sps:$4 sm:$0xff]  }
 0x541   : > { %9927 = vmatprep.subr.bf16.mxu1 %v13631_v36  ;;  %v13649_v36 = vld [vmem:[%s14003_s22 + $0x27cc] ss:$16 sps:$4 sm:$0xff]  }
 0x542   : > { %v8408_v59 = vadd.f32 %v15643_v37, %v8365_v23  ;;  %v13673_v37 = vld [vmem:[%s14003_s22 + $0x274c] ss:$16 sps:$4 sm:$0xff]  }
 0x543   : > { %9885 = vmatpush1.bf16.msra.mxu0 %v13626_v38  ;;  %v15823_v38 = vpop.f32.mrf.mxu0 }
 0x544   : > { %9928 = vmatpush1.bf16.msra.mxu1 %v13629_v16  ;;  %9886 = vmatprep.subr.bf16.mxu0 %v13634_v32  ;;  %v13647_v16 = vld [vmem:[%s14003_s22 + $0x27c8] ss:$16 sps:$4 sm:$0xff]   ;;  %v15827_v32 = vpop.f32.mrf.mxu1 }
 0x545   : > { %9929 = vmatprep.subr.bf16.mxu1 %v13637_v31  ;;  %v15829_v31 = vpop.f32.mrf.mxu0 }
 0x547   : > { %9887 = vmatpush1.bf16.msra.mxu0 %v13632_v3  ;;  %v8791_v3 = vadd.f32 %v15773_v50, %v8748_v1  ;;  %v8962_v28 = vpop.f32.mrf.mxu0  ;;  %v8451_v1 = vadd.f32 %v15661_v30, %v8408_v59  ;;  %v13674_v59 = vld [vmem:[%s14003_s22 + $0x2528] ss:$16 sps:$4 sm:$0xff]  }
 0x548   : > { %9930 = vmatpush1.bf16.msra.mxu1 %v13635_v35  ;;  %9888 = vmatprep.subr.bf16.mxu0 %v13640_v54  ;;  %v13650_v35 = vld [vmem:[%s14003_s22 + $0x25a8] ss:$16 sps:$4 sm:$0xff]  }
 0x549   : > { %9931 = vmatprep.subr.bf16.mxu1 %v13643_v12  ;;  %v13653_v54 = vld [vmem:[%s14003_s22 + $0x27a8] ss:$16 sps:$4 sm:$0xff]   ;;  %v15837_v12 = vpop.f32.mrf.mxu1  ;;  %v8834_v50 = vadd.f32 %v15787_v49, %v8791_v3  ;;  %v8445_v49 = vadd.f32 %v15637_v43, %v14582_v57  ;;  %v8449_v43 = vadd.f32 %v15653_v11, %v14591_v2  ;;  %v8494_v23 = vadd.f32 %v15673_v17, %v8451_v1  ;;  %v13679_v2 = vld [vmem:[%s14003_s22 + $0x272c] ss:$16 sps:$4 sm:$0xff]  }
 0x54a   : > { %v13662_v3 = vld [vmem:[%s14003_s22 + $0x2568] ss:$16 sps:$4 sm:$0xff]  }
 0x54b   : > { %9889 = vmatpush2.bf16.msra.mxu0 %v13638_v22  ;;  %v13658_v22 = vld [vmem:[%s14003_s22 + $0x258c] ss:$16 sps:$4 sm:$0xff]   ;;  %v8877_v62 = vadd.f32 %v8876_v18, %v8834_v50  ;;  %v8488_v57 = vadd.f32 %v15649_v7, %v8445_v49  ;;  %v8537_v11 = vadd.f32 %v15691_v33, %v8494_v23  ;;  %v8492_v17 = vadd.f32 %v15665_v53, %v8449_v43  ;;  %v9981_v23 = vld [vmem:[%s15894_s13 + $0x78] sm:$0xff] }
 0x54c   : > { %9932 = vmatpush2.bf16.msra.mxu1 %v13641_v48  ;;  %9890 = vmatprep.subr.bf16.mxu0 %v13646_v42  ;;  %v13661_v48 = vld [vmem:[%s14003_s22 + $0x278c] ss:$16 sps:$4 sm:$0xff]   ;;  %v15843_v42 = vpop.f32.mrf.mxu1 }
 0x54d   : > { %9933 = vmatprep.subr.bf16.mxu1 %v13649_v36  ;;  %v13656_v36 = vld [vmem:[%s14003_s22 + $0x2588] ss:$16 sps:$4 sm:$0xff]   ;;  %v8920_v18 = vadd.f32 %v8919_v24, %v8877_v62  ;;  %v8531_v24 = vadd.f32 %v15667_v55, %v8488_v57  ;;  %v13676_v7 = vld [vmem:[%s14003_s22 + $0x252c] ss:$16 sps:$4 sm:$0xff]   ;;  %v8535_v49 = vadd.f32 %v15683_v21, %v8492_v17 }
 0x54e   : > { %v13677_v62 = vld [vmem:[%s14003_s22 + $0x2728] ss:$16 sps:$4 sm:$0xff]   ;;  %v13682_v53 = vld [vmem:[%s14003_s22 + $0x250c] ss:$16 sps:$4 sm:$0xff]  }
 0x54f   : > { %9891 = vmatpush2.bf16.msra.mxu0 %v13644_v15  ;;  %v15848_v15 = vpop.f32.mrf.mxu0  ;;  %v8963_v50 = vadd.f32 %v8962_v28, %v8920_v18  ;;  %v8574_v55 = vadd.f32 %v15679_v34, %v8531_v24  ;;  %v13685_v33 = vld [vmem:[%s14003_s22 + $0x270c] ss:$16 sps:$4 sm:$0xff]   ;;  %v13683_v18 = vld [vmem:[%s14003_s22 + $0x2708] ss:$16 sps:$4 sm:$0xff]   ;;  %v8578_v34 = vadd.f32 %v15695_v25, %v8535_v49 }
 0x550   : > { %9934 = vmatpush2.bf16.msra.mxu1 %v13647_v16  ;;  %9892 = vmatprep.subr.bf16.mxu0 %v13652_v4  ;;  %v13664_v16 = vld [vmem:[%s14003_s22 + $0x256c] ss:$16 sps:$4 sm:$0xff]  }
 0x551   : > { %9935 = vmatprep.subr.bf16.mxu1 %v13655_v58  ;;  %v13667_v4 = vld [vmem:[%s14003_s22 + $0x276c] ss:$16 sps:$4 sm:$0xff]   ;;  %v9005_v58 = vpop.f32.mrf.mxu1 }
 0x553   : > { %9893 = vmatpush2.bf16.msra.mxu0 %v13650_v35  ;;  %v13665_v35 = vld [vmem:[%s14003_s22 + $0x2768] ss:$16 sps:$4 sm:$0xff]   ;;  %v15865_v30 = vpop.f32.mrf.mxu1 }
 0x554   : > { %9936 = vmatpush2.bf16.msra.mxu1 %v13653_v54  ;;  %9894 = vmatprep.subr.bf16.mxu0 %v13658_v22  ;;  %v15858_v54 = vpop.f32.mrf.mxu0  ;;  %v13670_v22 = vld [vmem:[%s14003_s22 + $0x254c] ss:$16 sps:$4 sm:$0xff]  }
 0x555   : > { %9937 = vmatprep.subr.bf16.mxu1 %v13661_v48  ;;  %v15877_v28 = vpop.f32.mrf.mxu1 }
 0x556   : > { %v15867_v48 = vpop.f32.mrf.mxu0 }
 0x557   : > { %9895 = vmatpush2.bf16.msra.mxu0 %v13656_v36  ;;  %v13668_v36 = vld [vmem:[%s14003_s22 + $0x2548] ss:$16 sps:$4 sm:$0xff]   ;;  %v15884_v1 = vpop.f32.mrf.mxu1 }
 0x558   : > { %9938 = vmatpush2.bf16.msra.mxu1 %v13659_v40  ;;  %9896 = vmatprep.subr.bf16.mxu0 %v13664_v16  ;;  %v13671_v40 = vld [vmem:[%s14003_s22 + $0x2748] ss:$16 sps:$4 sm:$0xff]   ;;  %v9048_v16 = vpop.f32.mrf.mxu0 }
 0x559   : > { %9939 = vmatprep.subr.bf16.mxu1 %v13667_v4  ;;  %v9006_v4 = vadd.f32 %v9005_v58, %v8963_v50  ;;  %v9091_v21 = vpop.f32.mrf.mxu1 }
 0x55b   : > { %9897 = vmatpush2.bf16.msra.mxu0 %v13662_v3  ;;  %v8580_v3 = vadd.f32 %v15703_v5, %v8537_v11  ;;  %v9049_v58 = vadd.f32 %v9048_v16, %v9006_v4  ;;  %v9997_v5 = vld [vmem:[%s15894_s13 + $0xf8] sm:$0xff]  ;;  %v9992_v11 = vld [vmem:[%s15894_s13 + $0xd0] sm:$0xff] }
 0x55c   : > { %9940 = vmatpush2.bf16.msra.mxu1 %v13665_v35  ;;  %9898 = vmatprep.subr.bf16.mxu0 %v13670_v22  ;;  %v8617_v35 = vadd.f32 %v15697_v26, %v8574_v55  ;;  %v9976_v16 = vld [vmem:[%s15894_s13 + $0x50] sm:$0xff] }
 0x55d   : > { %9941 = vmatprep.subr.bf16.mxu1 %v13673_v37  ;;  %v8623_v22 = vadd.f32 %v15721_v46, %v8580_v3  ;;  %v13680_v37 = vld [vmem:[%s14003_s22 + $0x2508] ss:$16 sps:$4 sm:$0xff]   ;;  %v9092_v57 = vadd.f32 %v9091_v21, %v9049_v58  ;;  %v8621_v46 = vadd.f32 %v15713_v29, %v8578_v34  ;;  %v9995_v29 = vld [vmem:[%s15894_s13 + $0xe8] sm:$0xff]  ;;  %v9989_v58 = vld [vmem:[%s15894_s13 + $0xb8] sm:$0xff]  ;;  %s11633_s22 = sshll.u32 %s16058_s19, 4 }
 0x55e   : > { %v8660_v26 = vadd.f32 %v15709_v6, %v8617_v35  ;;  %v9980_v6 = vld [vmem:[%s15894_s13 + $0x70] sm:$0xff]  ;;  %v9974_v3 = vld [vmem:[%s15894_s13 + $0x40] sm:$0xff]  ;;  %v10025_v21 = vld [vmem:[%s15894_s13 + $0x1d8] sm:$0xff]  ;;  %s295_s30 = scalar_lea.vmem %s16041_s4, %s11633_s22 }
 0x55f   : > { %9899 = vmatpush2.bf16.msra.mxu0 %v13668_v36  ;;  %v8666_v43 = vadd.f32 %v15733_v8, %v8623_v22  ;;  %v9959_v36 = vmax.f32 %v9092_v57, 0.0  ;;  %v8664_v24 = vadd.f32 %v15725_v47, %v8621_v46  ;;  %v10026_v35 = vld [vmem:[%s15894_s13 + $0x1e0] sm:$0xff]  ;;  %v9988_v34 = vld [vmem:[%s15894_s13 + $0xb0] sm:$0xff]  ;;  %v9987_v46 = vld [vmem:[%s15894_s13 + $0xa8] sm:$0xff] }
 0x560   : > { %9942 = vmatpush2.bf16.msra.mxu1 %v13671_v40  ;;  %9900 = vmatprep.subr.bf16.mxu0 %v13676_v7  ;;  %v8703_v25 = vadd.f32 %v15727_v0, %v8660_v26  ;;  %v9996_v40 = vld [vmem:[%s15894_s13 + $0xf0] sm:$0xff]  ;;  %v9978_v7 = vld [vmem:[%s15894_s13 + $0x60] sm:$0xff] }
 0x561   : > { %9943 = vmatprep.subr.bf16.mxu1 %v13679_v2  ;;  %v8709_v50 = vadd.f32 %v15757_v27, %v8666_v43  ;;  %v8707_v8 = vadd.f32 %v15743_v41, %v8664_v24  ;;  %v9979_v27 = vld [vmem:[%s15894_s13 + $0x68] sm:$0xff]  ;;  %v9970_v24 = vld [vmem:[%s15894_s13 + $0x20] sm:$0xff] }
 0x562   : > { %v8746_v0 = vadd.f32 %v15739_v19, %v8703_v25  ;;  %v9993_v19 = vld [vmem:[%s15894_s13 + $0xd8] sm:$0xff]  ;;  %v9971_v25 = vld [vmem:[%s15894_s13 + $0x28] sm:$0xff] }
 0x563   : > { %9901 = vmatpush2.bf16.msra.mxu0 %v13674_v59  ;;  %v8752_v47 = vadd.f32 %v15771_v56, %v8709_v50  ;;  %v8750_v41 = vadd.f32 %v15762_v39, %v8707_v8  ;;  %v9977_v56 = vld [vmem:[%s15894_s13 + $0x58] sm:$0xff]  ;;  %v10023_v50 = vld [vmem:[%s15894_s13 + $0x1c8] sm:$0xff]  ;;  %v9093_v8 = vpop.f32.mrf.mxu1 }
 0x564   : > { %9944 = vmatpush2.bf16.msra.mxu1 %v13677_v62  ;;  %9902 = vmatprep.subr.bf16.mxu0 %v13682_v53  ;;  %v10029_v39 = vld [vmem:[%s15894_s13 + $0x1f8] sm:$0xff]  ;;  %v10028_v62 = vld [vmem:[%s15894_s13 + $0x1f0] sm:$0xff]  ;;  %v9990_v53 = vld [vmem:[%s15894_s13 + $0xc0] sm:$0xff] }
 0x565   : > { %9945 = vmatprep.subr.bf16.mxu1 %v13685_v33  ;;  %v8795_v2 = vadd.f32 %v15792_v14, %v8752_v47  ;;  %v9991_v14 = vld [vmem:[%s15894_s13 + $0xc8] sm:$0xff]  ;;  %v10013_v59 = vld [vmem:[%s15894_s13 + $0x178] sm:$0xff] }
 0x567   : > { %9903 = vmatpush2.bf16.msra.mxu0 %v13680_v37  ;;  %v8838_v4 = vadd.f32 %v15806_v20, %v8795_v2  ;;  %v10027_v20 = vld [vmem:[%s15894_s13 + $0x1e8] sm:$0xff]  ;;  %v9973_v37 = vld [vmem:[%s15894_s13 + $0x38] sm:$0xff] }
 0x568   : > { %9946 = vmatpush2.bf16.msra.mxu1 %v13683_v18  ;;  %11634 = vmatprep.subr.mxu0 %v9997_v5  ;;  %v10009_v5 = vld [vmem:[%s15894_s13 + $0x158] sm:$0xff]  ;;  %v9983_v2 = vld [vmem:[%s15894_s13 + $0x88] sm:$0xff] }
 0x569   : > { %11672 = vmatprep.subr.mxu1 %v10029_v39  ;;  %v8881_v49 = vadd.f32 %v15823_v38, %v8838_v4  ;;  %v9966_v4 = vld [vmem:[%s15894_s13] sm:$0xff]  ;;  %v10003_v39 = vld [vmem:[%s15894_s13 + $0x128] sm:$0xff] }
 0x56a   : > { %9905 = vmatmul.mubr.bf16.vlgmr.msra.gmra.mxu0 %v15065_v10  ;;  %v9994_v10 = vld [vmem:[%s15894_s13 + $0xe0] sm:$0xff] }
 0x56b   : > { %9948 = vmatmul.mubr.bf16.vlgmr.msra.gmra.mxu1 %v15069_v45  ;;  %11635 = vmatpush3.msra.mxu0 %v9981_v23  ;;  %v8789_v45 = vadd.f32 %v15764_v13, %v8746_v0  ;;  %v8793_v13 = vadd.f32 %v15783_v44, %v8750_v41  ;;  %v10012_v44 = vld [vmem:[%s15894_s13 + $0x170] sm:$0xff]  ;;  %v8924_v18 = vadd.f32 %v15837_v12, %v8881_v49  ;;  %v9986_v23 = vld [vmem:[%s15894_s13 + $0xa0] sm:$0xff]  ;;  %v10017_v49 = vld [vmem:[%s15894_s13 + $0x198] sm:$0xff] }
 0x56c   : > { %10094 = vmatprep.mubr.f32.mxu0 %v9959_v36  ;;  %11636 = vmatprep.subr.mxu0 %v9996_v40  ;;  %v10024_v12 = vld [vmem:[%s15894_s13 + $0x1d0] sm:$0xff]  ;;  %v10022_v0 = vld [vmem:[%s15894_s13 + $0x1c0] sm:$0xff] }
 0x56d   : > { %11637 = vmatpush3.msra.mxu0 %v9980_v6  ;;  %v8832_v17 = vadd.f32 %v15778_v52, %v8789_v45  ;;  %v9975_v52 = vld [vmem:[%s15894_s13 + $0x48] sm:$0xff]  ;;  %11673 = vmatpush3.msra.mxu1 %v10013_v59  ;;  %v8836_v33 = vadd.f32 %v15797_v60, %v8793_v13  ;;  %v10010_v60 = vld [vmem:[%s15894_s13 + $0x160] sm:$0xff]  ;;  %v8967_v26 = vadd.f32 %v15858_v54, %v8924_v18 }
 0x56e   : > { %11638 = vmatprep.subr.mxu0 %v9995_v29  ;;  %11674 = vmatprep.subr.mxu1 %v10028_v62  ;;  %v9985_v29 = vld [vmem:[%s15894_s13 + $0x98] sm:$0xff] }
 0x56f   : > { %11639 = vmatpush3.msra.mxu0 %v9979_v27  ;;  %v8875_v55 = vadd.f32 %v15799_v51, %v8832_v17  ;;  %v10011_v51 = vld [vmem:[%s15894_s13 + $0x168] sm:$0xff]  ;;  %11675 = vmatpush3.msra.mxu1 %v10012_v44  ;;  %v8879_v22 = vadd.f32 %v15815_v9, %v8836_v33  ;;  %v9972_v9 = vld [vmem:[%s15894_s13 + $0x30] sm:$0xff]  ;;  %v9010_v6 = vadd.f32 %v15877_v28, %v8967_v26  ;;  %v10006_v27 = vld [vmem:[%s15894_s13 + $0x140] sm:$0xff] }
 0x570   : > { %11640 = vmatprep.subr.mxu0 %v9994_v10  ;;  %11676 = vmatprep.subr.mxu1 %v10027_v20  ;;  %v9984_v10 = vld [vmem:[%s15894_s13 + $0x90] sm:$0xff]  ;;  %v10021_v28 = vld [vmem:[%s15894_s13 + $0x1b8] sm:$0xff]  ;;  %v9967_v17 = vld [vmem:[%s15894_s13 + $0x8] sm:$0xff] }
 0x571   : > { %11641 = vmatpush3.msra.mxu0 %v9978_v7  ;;  %v8918_v38 = vadd.f32 %v15811_v61, %v8875_v55  ;;  %11677 = vmatpush3.msra.mxu1 %v10011_v51  ;;  %v9050_v61 = vpop.f32.mrf.mxu0  ;;  %v8922_v43 = vadd.f32 %v15827_v32, %v8879_v22  ;;  %v10007_v32 = vld [vmem:[%s15894_s13 + $0x148] sm:$0xff]  ;;  %v9968_v7 = vld [vmem:[%s15894_s13 + $0x10] sm:$0xff]  ;;  %v10002_v44 = vld [vmem:[%s15894_s13 + $0x120] sm:$0xff] }
 0x572   : > { %11642 = vmatprep.subr.mxu0 %v9993_v19  ;;  %11678 = vmatprep.subr.mxu1 %v10026_v35  ;;  %v10020_v19 = vld [vmem:[%s15894_s13 + $0x1b0] sm:$0xff]  ;;  %v10001_v33 = vld [vmem:[%s15894_s13 + $0x118] sm:$0xff]  ;;  %v9999_v22 = vld [vmem:[%s15894_s13 + $0x108] sm:$0xff] }
 0x573   : > { %11643 = vmatpush3.msra.mxu0 %v9977_v56  ;;  %v8961_v57 = vadd.f32 %v15829_v31, %v8918_v38  ;;  %11679 = vmatpush3.msra.mxu1 %v10010_v60  ;;  %v10008_v31 = vld [vmem:[%s15894_s13 + $0x150] sm:$0xff]  ;;  %v8965_v36 = vadd.f32 %v15848_v15, %v8922_v43  ;;  %v9052_v40 = vpop.f32.mrf.mxu0  ;;  %v9969_v15 = vld [vmem:[%s15894_s13 + $0x18] sm:$0xff]  ;;  %v9998_v60 = vld [vmem:[%s15894_s13 + $0x100] sm:$0xff] }
 0x574   : > { %11644 = vmatprep.subr.mxu0 %v9992_v11  ;;  %11680 = vmatprep.subr.mxu1 %v10025_v21  ;;  %v9053_v47 = vadd.f32 %v9052_v40, %v9010_v6  ;;  %v9095_v11 = vpop.f32.mrf.mxu1  ;;  %v10000_v51 = vld [vmem:[%s15894_s13 + $0x110] sm:$0xff] }
 0x575   : > { %11645 = vmatpush3.msra.mxu0 %v9976_v16  ;;  %11681 = vmatpush3.msra.mxu1 %v10009_v5  ;;  %v9004_v54 = vadd.f32 %v15843_v42, %v8961_v57  ;;  %v9008_v45 = vadd.f32 %v15865_v30, %v8965_v36  ;;  %v10004_v30 = vld [vmem:[%s15894_s13 + $0x130] sm:$0xff]  ;;  %v9982_v16 = vld [vmem:[%s15894_s13 + $0x80] sm:$0xff] }
 0x576   : > { %11646 = vmatprep.subr.mxu0 %v9991_v14  ;;  %11682 = vmatprep.subr.mxu1 %v10024_v12  ;;  %v9096_v13 = vadd.f32 %v9095_v11, %v9053_v47  ;;  %v10019_v14 = vld [vmem:[%s15894_s13 + $0x1a8] sm:$0xff]  ;;  %v15985_v20 = vpop.f32.mrf.mxu1 }
 0x577   : > { %11647 = vmatpush3.msra.mxu0 %v9975_v52  ;;  %11683 = vmatpush3.msra.mxu1 %v10008_v31  ;;  %v9047_v42 = vadd.f32 %v15867_v48, %v9004_v54  ;;  %v10005_v48 = vld [vmem:[%s15894_s13 + $0x138] sm:$0xff]  ;;  %v9051_v56 = vadd.f32 %v9050_v61, %v9008_v45  ;;  %v10018_v52 = vld [vmem:[%s15894_s13 + $0x1a0] sm:$0xff] }
 0x578   : > { %11648 = vmatprep.subr.mxu0 %v9990_v53  ;;  %11684 = vmatprep.subr.mxu1 %v10023_v50  ;;  %v9963_v62 = vmax.f32 %v9096_v13, 0.0  ;;  %v9132_v53 = vpop.f32.mrf.mxu0  ;;  %v9177_v38 = vpop.f32.mrf.mxu1 }
 0x579   : > { %11649 = vmatpush3.msra.mxu0 %v9974_v3  ;;  %11685 = vmatpush3.msra.mxu1 %v10007_v32  ;;  %v9090_v41 = vadd.f32 %v15884_v1, %v9047_v42  ;;  %v9094_v59 = vadd.f32 %v9093_v8, %v9051_v56  ;;  %v10016_v3 = vld [vmem:[%s15894_s13 + $0x190] sm:$0xff] }
 0x57a   : > { %11650 = vmatprep.subr.mxu0 %v9989_v58  ;;  %11686 = vmatprep.subr.mxu1 %v10022_v0  ;;  %v10015_v58 = vld [vmem:[%s15894_s13 + $0x188] sm:$0xff]  ;;  %v9134_v35 = vpop.f32.mrf.mxu0 }
 0x57b   : > { %11651 = vmatpush3.msra.mxu0 %v9973_v37  ;;  %11687 = vmatpush3.msra.mxu1 %v10006_v27  ;;  %v9958_v1 = vmax.f32 %v9090_v41, 0.0  ;;  %v9962_v55 = vmax.f32 %v9094_v59, 0.0  ;;  %v10014_v37 = vld [vmem:[%s15894_s13 + $0x180] sm:$0xff]  ;;  %v1632_v41 = vsub.s32 3, %v14403_v63 }
 0x57c   : > { %11652 = vmatprep.subr.mxu0 %v9988_v34  ;;  %11688 = vmatprep.subr.mxu1 %v10021_v28  ;;  %v9136_v18 = vpop.f32.mrf.mxu0  ;;  %v9179_v34 = vpop.f32.mrf.mxu1 }
 0x57d   : > { %11653 = vmatpush3.msra.mxu0 %v9972_v9  ;;  %11689 = vmatpush3.msra.mxu1 %v10005_v48 }
 0x57e   : > { %11654 = vmatprep.subr.mxu0 %v9987_v46  ;;  %11690 = vmatprep.subr.mxu1 %v10020_v19  ;;  %v9138_v21 = vpop.f32.mrf.mxu0  ;;  %v9181_v57 = vpop.f32.mrf.mxu1  ;;  %v1628_v19 = vsub.s32 2, %v14403_v63 }
 0x57f   : > { %11655 = vmatpush3.msra.mxu0 %v9971_v25  ;;  %11691 = vmatpush3.msra.mxu1 %v10004_v30 }
 0x580   : > { %11656 = vmatprep.subr.mxu0 %v9986_v23  ;;  %11692 = vmatprep.subr.mxu1 %v10019_v14  ;;  %v9218_v61 = vpop.f32.mrf.mxu0  ;;  %v9261_v9 = vpop.f32.mrf.mxu1 }
 0x581   : > { %11657 = vmatpush3.msra.mxu0 %v9970_v24  ;;  %11693 = vmatpush3.msra.mxu1 %v10003_v39 }
 0x582   : > { %11658 = vmatprep.subr.mxu0 %v9985_v29  ;;  %11694 = vmatprep.subr.mxu1 %v10018_v52  ;;  %v9220_v5 = vpop.f32.mrf.mxu0  ;;  %v9263_v26 = vpop.f32.mrf.mxu1 }
 0x583   : > { %11659 = vmatpush3.msra.mxu0 %v9969_v15  ;;  %11695 = vmatpush3.msra.mxu1 %v10002_v44 }
 0x584   : > { %11660 = vmatprep.subr.mxu0 %v9984_v10  ;;  %11696 = vmatprep.subr.mxu1 %v10017_v49  ;;  %v9222_v46 = vpop.f32.mrf.mxu0  ;;  %v9265_v12 = vpop.f32.mrf.mxu1 }
 0x585   : > { %11661 = vmatpush3.msra.mxu0 %v9968_v7  ;;  %11697 = vmatpush3.msra.mxu1 %v10001_v33 }
 0x586   : > { %11662 = vmatprep.subr.mxu0 %v9983_v2  ;;  %11698 = vmatprep.subr.mxu1 %v10016_v3  ;;  %v9224_v43 = vpop.f32.mrf.mxu0  ;;  %v9267_v25 = vpop.f32.mrf.mxu1 }
 0x587   : > { %11663 = vmatpush3.msra.mxu0 %v9967_v17  ;;  %11699 = vmatpush3.msra.mxu1 %v10000_v51  ;;  %v13686_v17 = vld [vmem:[%s14011_s26] sm:$0xf] }
 0x588   : > { %11664 = vmatprep.subr.mxu0 %v9982_v16  ;;  %11700 = vmatprep.subr.mxu1 %v10015_v58  ;;  %v9304_v31 = vpop.f32.mrf.mxu0  ;;  %v9347_v23 = vpop.f32.mrf.mxu1  ;;  %v1629_v30 = vrot.slane %v13686_v17, %v1628_v19  ;;  %v1633_v14 = vrot.slane %v13686_v17, %v1632_v41 }
 0x589   : > { %11665 = vmatpush3.msra.mxu0 %v9966_v4  ;;  %11701 = vmatpush3.msra.mxu1 %v9999_v22 }
 0x58a   : > { %10095 = vmatmul.mubr.f32.vlgmr.msra.gmra.mxu0 %v9958_v1  ;;  %11702 = vmatprep.subr.mxu1 %v10014_v37  ;;  %v9306_v50 = vpop.f32.mrf.mxu0  ;;  %v9349_v54 = vpop.f32.mrf.mxu1  ;;  %v9133_v4 = vadd.f32 %v9132_v53, %v1629_v30  ;;  %v9135_v59 = vadd.f32 %v9134_v35, %v1633_v14  ;;  %v9139_v63 = vadd.f32 %v9138_v21, %v1633_v14 }
 0x58b   : > { %10099 = vmatprep.mubr.f32.mxu0 %v9963_v62  ;;  %11703 = vmatpush3.msra.mxu1 %v9998_v60 }
 0x58c   : > { %v9308_v36 = vpop.f32.mrf.mxu0  ;;  %v9351_v40 = vpop.f32.mrf.mxu1  ;;  %v9176_v62 = vadd.f32 %v15985_v20, %v9133_v4  ;;  %v9178_v49 = vadd.f32 %v9177_v38, %v9135_v59  ;;  %v9182_v37 = vadd.f32 %v9181_v57, %v9139_v63 }
 0x58e   : > { %10100 = vmatmul.mubr.f32.gmra.mxu0 %v9962_v55  ;;  %v9310_v24 = vpop.f32.mrf.mxu0  ;;  %v9353_v32 = vpop.f32.mrf.mxu1  ;;  %v9137_v55 = vadd.f32 %v9136_v18, %v1629_v30  ;;  %v9219_v33 = vadd.f32 %v9218_v61, %v9176_v62  ;;  %v9221_v51 = vadd.f32 %v9220_v5, %v9178_v49 }
 0x590   : > { %v9390_v6 = vpop.f32.mrf.mxu0  ;;  %v9433_v29 = vpop.f32.mrf.mxu1  ;;  %v9180_v3 = vadd.f32 %v9179_v34, %v9137_v55  ;;  %v9262_v60 = vadd.f32 %v9261_v9, %v9219_v33  ;;  %v9264_v17 = vadd.f32 %v9263_v26, %v9221_v51 }
 0x592   : > { %v9392_v0 = vpop.f32.mrf.mxu0  ;;  %v9435_v42 = vpop.f32.mrf.mxu1  ;;  %v9223_v19 = vadd.f32 %v9222_v46, %v9180_v3  ;;  %v9305_v35 = vadd.f32 %v9304_v31, %v9262_v60  ;;  %v9307_v20 = vadd.f32 %v9306_v50, %v9264_v17 }
 0x594   : > { %v9394_v8 = vpop.f32.mrf.mxu0  ;;  %v15994_v15 = vpop.f32.mrf.mxu1  ;;  %v9348_v38 = vadd.f32 %v9347_v23, %v9305_v35  ;;  %v9350_v61 = vadd.f32 %v9349_v54, %v9307_v20 }
 0x596   : > { %v9396_v27 = vpop.f32.mrf.mxu0  ;;  %v15996_v47 = vpop.f32.mrf.mxu1  ;;  %v9391_v5 = vadd.f32 %v9390_v6, %v9348_v38  ;;  %v9393_v9 = vadd.f32 %v9392_v0, %v9350_v61 }
 0x598   : > { %v9476_v10 = vpop.f32.mrf.mxu0  ;;  %v15998_v28 = vpop.f32.mrf.mxu1  ;;  %v9434_v62 = vadd.f32 %v9433_v29, %v9391_v5  ;;  %v9436_v31 = vadd.f32 %v9435_v42, %v9393_v9 }
 0x59a   : > { %v9478_v45 = vpop.f32.mrf.mxu0  ;;  %v16000_v7 = vpop.f32.mrf.mxu1  ;;  %v9477_v50 = vadd.f32 %v9476_v10, %v9434_v62 }
 0x59b   : > { %v9479_v23 = vadd.f32 %v9478_v45, %v9436_v31 }
 0x59c   : > { %v9480_v48 = vpop.f32.mrf.mxu0  ;;  %v16002_v2 = vpop.f32.mrf.mxu1 }
 0x59e   : > { %v9482_v56 = vpop.f32.mrf.mxu0  ;;  %v16006_v11 = vpop.f32.mrf.mxu1 }
 0x59f   : > { %16049 = vst [vmem:[#allocation9_spill] sm:$0xff] %v16006_v11  ;;  %v9266_v11 = vadd.f32 %v9265_v12, %v9223_v19 }
 0x5a0   : > { %v9562_v13 = vpop.f32.mrf.mxu0  ;;  %v16009_v16 = vpop.f32.mrf.mxu1 }
 0x5a1   : > { %16050 = vst [vmem:[#allocation10_spill] sm:$0xff] %v16009_v16  ;;  %v9225_v16 = vadd.f32 %v9224_v43, %v9182_v37  ;;  %v9309_v21 = vadd.f32 %v9308_v36, %v9266_v11  ;;  %v9520_v36 = vadd.f32 %v15998_v28, %v9477_v50 }
 0x5a2   : > { %v9564_v39 = vpop.f32.mrf.mxu0  ;;  %v9607_v1 = vpop.f32.mrf.mxu1 }
 0x5a3   : > { %v9268_v4 = vadd.f32 %v9267_v25, %v9225_v16  ;;  %v9352_v57 = vadd.f32 %v9351_v40, %v9309_v21  ;;  %v9563_v0 = vadd.f32 %v9562_v13, %v9520_v36 }
 0x5a4   : > { %v9566_v52 = vpop.f32.mrf.mxu0  ;;  %v9609_v44 = vpop.f32.mrf.mxu1 }
 0x5a5   : > { %v9311_v34 = vadd.f32 %v9310_v24, %v9268_v4  ;;  %v9395_v55 = vadd.f32 %v9394_v8, %v9352_v57 }
 0x5a6   : > { %v9568_v58 = vpop.f32.mrf.mxu0  ;;  %v9611_v22 = vpop.f32.mrf.mxu1  ;;  %v16051_v11 = vld [vmem:[#allocation9_spill] sm:$0xff] }
 0x5a7   : > { %v9354_v46 = vadd.f32 %v9353_v32, %v9311_v34  ;;  %v9438_v25 = vadd.f32 %v15994_v15, %v9395_v55  ;;  %v9522_v32 = vadd.f32 %v16000_v7, %v9479_v23 }
 0x5a8   : > { %v9648_v41 = vpop.f32.mrf.mxu0  ;;  %v9691_v53 = vpop.f32.mrf.mxu1  ;;  %v16052_v15 = vld [vmem:[#allocation10_spill] sm:$0xff] }
 0x5a9   : > { %v9397_v12 = vadd.f32 %v9396_v27, %v9354_v46  ;;  %v9481_v24 = vadd.f32 %v9480_v48, %v9438_v25  ;;  %v9565_v8 = vadd.f32 %v9564_v39, %v9522_v32  ;;  %v9606_v45 = vadd.f32 %v16052_v15, %v9563_v0 }
 0x5aa   : > { %v9650_v18 = vpop.f32.mrf.mxu0  ;;  %v9693_v30 = vpop.f32.mrf.mxu1 }
 0x5ab   : > { %v9440_v54 = vadd.f32 %v15996_v47, %v9397_v12  ;;  %v9524_v42 = vadd.f32 %v16002_v2, %v9481_v24  ;;  %v9608_v47 = vadd.f32 %v9607_v1, %v9565_v8  ;;  %v9649_v28 = vadd.f32 %v9648_v41, %v9606_v45 }
 0x5ac   : > { %v9652_v14 = vpop.f32.mrf.mxu0  ;;  %v9695_v59 = vpop.f32.mrf.mxu1 }
 0x5ad   : > { %v9483_v29 = vadd.f32 %v9482_v56, %v9440_v54  ;;  %v9567_v33 = vadd.f32 %v9566_v52, %v9524_v42  ;;  %v9651_v60 = vadd.f32 %v9650_v18, %v9608_v47  ;;  %v9692_v19 = vadd.f32 %v9691_v53, %v9649_v28 }
 0x5ae   : > { %v9654_v26 = vpop.f32.mrf.mxu0  ;;  %v9697_v43 = vpop.f32.mrf.mxu1 }
 0x5af   : > { %v9526_v16 = vadd.f32 %v16051_v11, %v9483_v29  ;;  %v9610_v37 = vadd.f32 %v9609_v44, %v9567_v33  ;;  %v9694_v39 = vadd.f32 %v9693_v30, %v9651_v60 }
 0x5b0   : > { %v9734_v49 = vpop.f32.mrf.mxu0  ;;  %v9777_v63 = vpop.f32.mrf.mxu1 }
 0x5b1   : > { %v9569_v3 = vadd.f32 %v9568_v58, %v9526_v16  ;;  %v9653_v2 = vadd.f32 %v9652_v14, %v9610_v37  ;;  %v9735_v35 = vadd.f32 %v9734_v49, %v9692_v19 }
 0x5b2   : > { %v9736_v40 = vpop.f32.mrf.mxu0  ;;  %v9779_v6 = vpop.f32.mrf.mxu1 }
 0x5b3   : > { %v9612_v13 = vadd.f32 %v9611_v22, %v9569_v3  ;;  %v9696_v38 = vadd.f32 %v9695_v59, %v9653_v2  ;;  %v9737_v21 = vadd.f32 %v9736_v40, %v9694_v39  ;;  %v9778_v1 = vadd.f32 %v9777_v63, %v9735_v35 }
 0x5b4   : > { %v9738_v27 = vpop.f32.mrf.mxu0  ;;  %v9781_v10 = vpop.f32.mrf.mxu1 }
 0x5b5   : > { %v9655_v17 = vadd.f32 %v9654_v26, %v9612_v13  ;;  %v9739_v58 = vadd.f32 %v9738_v27, %v9696_v38  ;;  %v9780_v34 = vadd.f32 %v9779_v6, %v9737_v21 }
 0x5b6   : > { %v9740_v48 = vpop.f32.mrf.mxu0  ;;  %v9783_v51 = vpop.f32.mrf.mxu1 }
 0x5b7   : > { %v9698_v52 = vadd.f32 %v9697_v43, %v9655_v17  ;;  %v9782_v5 = vadd.f32 %v9781_v10, %v9739_v58 }
 0x5b9   : > { %v9741_v44 = vadd.f32 %v9740_v48, %v9698_v52 }
 0x5bb   : > { %v9784_v14 = vadd.f32 %v9783_v51, %v9741_v44 }
 0x5ea   : > { %v9820_v7 = vpop.f32.mrf.mxu0 }
 0x5eb   : > { %v9863_v56 = vpop.f32.mrf.mxu1  ;;  %v9821_v18 = vadd.f32 %v9820_v7, %v9778_v1 }
 0x5ec   : > { %v9822_v20 = vpop.f32.mrf.mxu0 }
 0x5ed   : > { %v9865_v4 = vpop.f32.mrf.mxu1  ;;  %v9823_v57 = vadd.f32 %v9822_v20, %v9780_v34  ;;  %v9864_v30 = vadd.f32 %v9863_v56, %v9821_v18 }
 0x5ee   : > { %v9824_v41 = vpop.f32.mrf.mxu0 }
 0x5ef   : > { %v9867_v61 = vpop.f32.mrf.mxu1  ;;  %v9825_v9 = vadd.f32 %v9824_v41, %v9782_v5  ;;  %v9866_v55 = vadd.f32 %v9865_v4, %v9823_v57 }
 0x5f0   : > { %v9826_v22 = vpop.f32.mrf.mxu0 }
 0x5f1   : > { %v9869_v53 = vpop.f32.mrf.mxu1  ;;  %v9827_v59 = vadd.f32 %v9826_v22, %v9784_v14  ;;  %v9868_v12 = vadd.f32 %v9867_v61, %v9825_v9 }
 0x5f3   : > { %v9870_v23 = vadd.f32 %v9869_v53, %v9827_v59 }
 0x62a   : > { %v9906_v46 = vpop.f32.mrf.mxu0 }
 0x62b   : > { %v9949_v62 = vpop.f32.mrf.mxu1  ;;  %v9907_v26 = vadd.f32 %v9906_v46, %v9864_v30 }
 0x62c   : > { %v9908_v43 = vpop.f32.mrf.mxu0 }
 0x62d   : > { %v9951_v31 = vpop.f32.mrf.mxu1  ;;  %v9909_v50 = vadd.f32 %v9908_v43, %v9866_v55  ;;  %v9950_v49 = vadd.f32 %v9949_v62, %v9907_v26 }
 0x62e   : > { %v9910_v63 = vpop.f32.mrf.mxu0 }
 0x62f   : > { %v9953_v25 = vpop.f32.mrf.mxu1  ;;  %v9952_v54 = vadd.f32 %v9951_v31, %v9909_v50  ;;  %v9911_v36 = vadd.f32 %v9910_v63, %v9868_v12  ;;  %v9960_v32 = vmax.f32 %v9950_v49, 0.0 }
 0x630   : > { %v9912_v24 = vpop.f32.mrf.mxu0 }
 0x631   : > { %v9961_v40 = vmax.f32 %v9952_v54, 0.0  ;;  %v9913_v6 = vadd.f32 %v9912_v24, %v9870_v23  ;;  %v9954_v29 = vadd.f32 %v9953_v25, %v9911_v36  ;;  %v9955_v0 = vpop.f32.mrf.mxu1 }
 0x633   : > { %v9956_v42 = vadd.f32 %v9955_v0, %v9913_v6  ;;  %10169 = vmatprep.mubr.f32.mxu1 %v9961_v40  ;;  %v9964_v27 = vmax.f32 %v9954_v29, 0.0 }
 0x634   : > { %10170 = vmatmul.mubr.f32.vlgmr.msra.gmra.mxu1 %v9960_v32 }
 0x635   : > { %v9965_v8 = vmax.f32 %v9956_v42, 0.0 }
 0x637   : > { %10174 = vmatprep.mubr.f32.mxu1 %v9965_v8 }
 0x638   : > { %10175 = vmatmul.mubr.f32.gmra.mxu1 %v9964_v27 }
 0x64a   : > { %v11666_v10 = vpop.f32.mrf.mxu0 }
 0x64c   : > { %v11667_v11 = vpop.f32.mrf.mxu0 }
 0x64d   : > { %v11668_v33 = vadd.f32 %v11667_v11, %v11666_v10 }
 0x64e   : > { %v11669_v16 = vpop.f32.mrf.mxu0 }
 0x650   : > { %v11670_v3 = vpop.f32.mrf.mxu0 }
 0x651   : > { %v11671_v37 = vadd.f32 %v11670_v3, %v11669_v16 }
 0x6f4   : > { %v11704_v15 = vpop.f32.mrf.mxu1 }
 0x6f6   : > { %v11705_v45 = vpop.f32.mrf.mxu1 }
 0x6f7   : > { %v11706_v47 = vadd.f32 %v11705_v45, %v11704_v15 }
 0x6f8   : > { %v11707_v28 = vpop.f32.mrf.mxu1 }
 0x6f9   : > { %v10172_v48 = vadd.f32 %v11706_v47, %v11668_v33 }
 0x6fa   : > { %v11708_v51 = vpop.f32.mrf.mxu1 }
 0x6fb   : > { %10180 = vst [vmem:[%s295_s30] sm:$0xff] %v10172_v48  ;;  %v11709_v60 = vadd.f32 %v11708_v51, %v11707_v28 }
 0x6fd   : > { %v10177_v7 = vadd.f32 %v11709_v60, %v11671_v37 }
 0x6ff   : > { %10181 = vst [vmem:[%s295_s30 + $0x8] sm:$0xff] %v10177_v7 }
 0x700 PF: > { %p17_p4 = scmp.ge.s32.totalorder %s13866_s20, 6   ;;  %s16053_s15 = smov %s13801_s16 }
 0x701   : > { %s16054_s16 = smov %s13805_s17  ;;  %s16055_s17 = smov %s13876_s23 }
 0x702   : > { %s16056_s18 = smov %s13866_s20  ;;  %19 = sbr.rel (!%p17_p4) target bundleno = 5 (0x5), region = 100 }
 0x707   :  { %10203 = vsyncpa [#allocation3], 1 }
 0x708   :  { %10205 = vsyncpa [#allocation3 + $0x1], 1 }
 0x709   :  { %10206 = vsyncpa [#allocation5], 1 }
 0x70a   :  { %10208 = vsyncpa [#allocation5 + $0x1], 1 }

</bundles_post_ra>
